<compile_context>
chip_gen: v5e
topology: v5e:2x2
jax: 0.10.0
libtpu: 0.0.40
codegen_flags: <defaults>
</compile_context>

<pallas_src>
import jax
import jax.numpy as jnp
from jax.experimental import pallas as pl
from jax.experimental.pallas import tpu as pltpu

F32 = jnp.float32

# ----------------------------- model config ---------------------------------
VOCAB = 100          # synthetic vocab
MAXLEN = 8           # tokens per utterance
HID = 32             # "bert hidden size"
NHEADS = 2
NLAYERS = 2
INTER = 4 * HID
LSTM_HID = 16        # hidden_dim of the bi-LSTM
OUT_DIM = 7
OUT_PAD = 128        # lane-dense padded classifier width (sliced back to 7)
B = 2                # dialogues per batch
U = 4                # utterances per dialogue
AUD_LEN = 640        # 640 = 4 * 2 * 5 * 2 * 8  -> final conv length 4
AUD_T4 = AUD_LEN // (8 * 2 * 5 * 2)   # = 4, flatten dim = 16 * AUD_T4
TEXT_GRID = 2        # utterance-axis grid for the text encoder (v7x: 2 TCs)


def _vmem_spec():
    return pl.BlockSpec(memory_space=pltpu.MemorySpace.VMEM)


# ===================== fused text (BERT) encoder kernel ======================
def _text_encoder_kernel(x_ref, mask_ref, eg_ref, eb_ref,
                         wqkv_ref, bqkv_ref, wo_ref, bo_ref,
                         l1g_ref, l1b_ref, wi_ref, bi_ref,
                         wo2_ref, bo2_ref, l2g_ref, l2b_ref,
                         fcw_ref, fcb_ref, out_ref):
    Nb, L, H = x_ref.shape
    dh = H // NHEADS
    scale = 1.0 / (dh ** 0.5)

    def ln(x2d, g, b, eps=1e-12):
        mu = jnp.mean(x2d, axis=-1, keepdims=True)
        var = jnp.mean(jnp.square(x2d - mu), axis=-1, keepdims=True)
        return (x2d - mu) * jax.lax.rsqrt(var + eps) * g + b

    mask = mask_ref[...]                       # (Nb, 1, L)
    bias = (1.0 - mask) * -1e4                 # additive attention bias (in-kernel)

    x = ln(x_ref[...].reshape(Nb * L, H), eg_ref[...], eb_ref[...])

    for l in range(NLAYERS):
        # fused QKV projection: one lane-dense (H, 3H) matmul instead of three
        qkv = jnp.dot(x, wqkv_ref[l], preferred_element_type=F32) + bqkv_ref[l]
        q = qkv[:, 0 * H:1 * H].reshape(Nb, L, H)
        k = qkv[:, 1 * H:2 * H].reshape(Nb, L, H)
        v = qkv[:, 2 * H:3 * H].reshape(Nb, L, H)

        ctx_heads = []
        for h in range(NHEADS):                # static head loop; no transposes
            sl = slice(h * dh, (h + 1) * dh)
            s = jnp.einsum("bqd,bkd->bqk", q[:, :, sl], k[:, :, sl],
                           preferred_element_type=F32) * scale + bias
            s = s - jnp.max(s, axis=-1, keepdims=True)
            p = jnp.exp(s)
            p = p * pl.reciprocal(jnp.sum(p, axis=-1, keepdims=True), approx=True)
            ctx_heads.append(jnp.einsum("bqk,bkd->bqd", p, v[:, :, sl],
                                        preferred_element_type=F32))
        ctx = jnp.concatenate(ctx_heads, axis=-1).reshape(Nb * L, H)

        attn = jnp.dot(ctx, wo_ref[l], preferred_element_type=F32) + bo_ref[l]
        x1 = ln(attn + x, l1g_ref[l], l1b_ref[l])
        # TODO(synk): HF BERT uses erf-based GELU; tanh approximation used here.
        inter = jax.nn.gelu(
            jnp.dot(x1, wi_ref[l], preferred_element_type=F32) + bi_ref[l],
            approximate=True)
        ffn = jnp.dot(inter, wo2_ref[l], preferred_element_type=F32) + bo2_ref[l]
        x = ln(ffn + x1, l2g_ref[l], l2b_ref[l])

    # [CLS] token, zero fully-masked utterances, then Linear + ReLU (text fc)
    cls = x.reshape(Nb, L, H)[:, 0, :]                    # (Nb, H)
    keep = (jnp.sum(mask, axis=-1) > 0.0).astype(F32)     # (Nb, 1)
    cls = cls * keep
    out = jnp.dot(cls, fcw_ref[...], preferred_element_type=F32) + fcb_ref[...]
    out_ref[...] = jnp.maximum(out, 0.0)[:, None, :].astype(out_ref.dtype)


def text_encode(tp, x_emb, mask):
    N, L, H = x_emb.shape
    bert = tp["bert"]
    grid = TEXT_GRID if N % TEXT_GRID == 0 else 1
    nblk = N // grid
    mask3 = mask.reshape(N, 1, L).astype(F32)

    weights = (bert["emb_ln_g"], bert["emb_ln_b"],
               bert["wqkv"], bert["bqkv"], bert["wo"], bert["bo"],
               bert["ln1_g"], bert["ln1_b"], bert["wi"], bert["bi"],
               bert["wo2"], bert["bo2"], bert["ln2_g"], bert["ln2_b"],
               tp["fc_w"], tp["fc_b"])

    def _const_spec(a):           # full-array block, DMA'd once across the grid
        nd = a.ndim
        return pl.BlockSpec(a.shape, lambda i, nd=nd: (0,) * nd)

    in_specs = ([pl.BlockSpec((nblk, L, H), lambda i: (i, 0, 0)),
                 pl.BlockSpec((nblk, 1, L), lambda i: (i, 0, 0))]
                + [_const_spec(w) for w in weights])

    flops = 2 * N * L * NLAYERS * (4 * H * H + 2 * H * INTER + 2 * L * H) + 2 * N * H * H
    cost = pl.CostEstimate(
        flops=int(flops),
        transcendentals=int(N * L * NLAYERS * (L + INTER)),
        bytes_accessed=int(4 * (x_emb.size + sum(int(w.size) for w in weights) + N * H)))

    out = pl.pallas_call(
        _text_encoder_kernel,
        out_shape=jax.ShapeDtypeStruct((N, 1, H), F32),
        grid_spec=pltpu.PrefetchScalarGridSpec(
            num_scalar_prefetch=0,
            grid=(grid,),
            in_specs=in_specs,
            out_specs=pl.BlockSpec((nblk, 1, H), lambda i: (i, 0, 0))),
        compiler_params=pltpu.CompilerParams(
            dimension_semantics=("parallel",)),
        cost_estimate=cost,
    )(x_emb.astype(F32), mask3, *weights)
    return out.reshape(N, H)


# ========================= fused audio encoder kernel ========================
# Wrapper-side im2col layout: slabs[q, e] has rows ordered (r, m, n) and lanes
# k, where the raw sample index is 160*m + 80*q + 16*r + 8*e + k.  This makes
# both maxpools elementwise maxes over e / q and both conv patch gathers static
# contiguous row slices + lane concats — no in-kernel reshapes at all.
def _aud_encoder_kernel(p_ref, w1_ref, b1_ref, g1_ref, be1_ref,
                        w2_ref, b2_ref, g2_ref, be2_ref,
                        lw_ref, lb_ref, out_ref):
    N = out_ref.shape[0]
    T4 = AUD_T4
    blk = T4 * N                                   # rows per r-block

    w1, b1 = w1_ref[...], b1_ref[...]
    # Conv1d(1->4, k=8, s=8) + ReLU + MaxPool1d(2)  (pool folded over e)
    pool1 = []
    for q in range(2):
        ys = []
        for e in range(2):
            y = jnp.dot(p_ref[q, e], w1, preferred_element_type=F32) + b1
            ys.append(jnp.maximum(y, 0.0))
        pool1.append(jnp.maximum(ys[0], ys[1]))    # (5*T4*N, 4), rows (r, m, n)

    # BatchNorm1d(4), training-mode batch stats over all (n, t) positions
    rows1 = 2.0 * pool1[0].shape[0]
    mean1 = (jnp.sum(pool1[0], axis=0, keepdims=True)
             + jnp.sum(pool1[1], axis=0, keepdims=True)) / rows1
    var1 = (jnp.sum(jnp.square(pool1[0] - mean1), axis=0, keepdims=True)
            + jnp.sum(jnp.square(pool1[1] - mean1), axis=0, keepdims=True)) / rows1
    scale1 = jax.lax.rsqrt(var1 + 1e-5) * g1_ref[...]
    pool1 = [(p - mean1) * scale1 + be1_ref[...] for p in pool1]

    # Conv1d(4->16, k=5, s=5) + ReLU + MaxPool1d(2)  (pool folded over q)
    w2, b2 = w2_ref[...], b2_ref[...]
    c2 = []
    for q in range(2):
        patches = jnp.concatenate(
            [pool1[q][r * blk:(r + 1) * blk, :] for r in range(5)], axis=-1)  # (T4*N, 20)
        y = jnp.dot(patches, w2, preferred_element_type=F32) + b2
        c2.append(jnp.maximum(y, 0.0))
    y2 = jnp.maximum(c2[0], c2[1])                 # (T4*N, 16), rows (m, n)

    # BatchNorm1d(16)
    mean2 = jnp.mean(y2, axis=0, keepdims=True)
    var2 = jnp.mean(jnp.square(y2 - mean2), axis=0, keepdims=True)
    y2 = (y2 - mean2) * jax.lax.rsqrt(var2 + 1e-5) * g2_ref[...] + be2_ref[...]

    # Flatten (per utterance) + Linear -> HID
    flat = jnp.concatenate([y2[m * N:(m + 1) * N, :] for m in range(T4)], axis=-1)  # (N, 16*T4)
    out_ref[...] = (jnp.dot(flat, lw_ref[...], preferred_element_type=F32)
                    + lb_ref[...]).astype(out_ref.dtype)


def aud_encode(ap, aud_flat):
    N = aud_flat.shape[0]
    a6 = aud_flat.reshape(N, AUD_T4, 2, 5, 2, 8)           # (n, m, q, r, e, k)
    slabs = a6.transpose(2, 4, 3, 1, 0, 5).reshape(2, 2, 5 * AUD_T4 * N, 8).astype(F32)
    args = (slabs, ap["conv1_w"], ap["conv1_b"], ap["bn1_g"], ap["bn1_b"],
            ap["conv2_w"], ap["conv2_b"], ap["bn2_g"], ap["bn2_b"],
            ap["lin_w"], ap["lin_b"])
    return pl.pallas_call(
        _aud_encoder_kernel,
        out_shape=jax.ShapeDtypeStruct((N, HID), F32),
        in_specs=[_vmem_spec()] * len(args),
        out_specs=_vmem_spec(),
    )(*args)


# ================== fused bidirectional LSTM + classifier ====================
def _bilstm_head_kernel(x_ref, wif_ref, whf_ref, bf_ref,
                        wib_ref, whb_ref, bb_ref,
                        fcw_ref, fcb_ref, out_ref):
    Bb, T, D = x_ref.shape
    Hh = whf_ref.shape[0]

    def cell(xt, h, c, wih, whh, b):
        gates = (jnp.dot(xt, wih, preferred_element_type=F32) + b
                 + jnp.dot(h, whh, preferred_element_type=F32))
        # gate order i, f, g, o (PyTorch convention); lane slices of a 4H vector
        i = jax.nn.sigmoid(gates[:, 0 * Hh:1 * Hh])
        f = jax.nn.sigmoid(gates[:, 1 * Hh:2 * Hh])
        g = jnp.tanh(gates[:, 2 * Hh:3 * Hh])
        o = jax.nn.sigmoid(gates[:, 3 * Hh:4 * Hh])
        c = f * c + i * g
        h = o * jnp.tanh(c)
        return h, c

    wif, whf, bf = wif_ref[...], whf_ref[...], bf_ref[...]
    wib, whb, bb = wib_ref[...], whb_ref[...], bb_ref[...]
    zeros = jnp.zeros((Bb, Hh), F32)

    # forward direction — static unroll, h/c carried in vregs
    h, c = zeros, zeros
    h_fwd = []
    for t in range(T):
        h, c = cell(x_ref[:, t, :], h, c, wif, whf, bf)
        h_fwd.append(h)

    # backward direction
    h, c = zeros, zeros
    h_bwd = [None] * T
    for t in range(T - 1, -1, -1):
        h, c = cell(x_ref[:, t, :], h, c, wib, whb, bb)
        h_bwd[t] = h

    # classifier head fused in; output padded to a lane-dense width (OUT_PAD)
    fcw, fcb = fcw_ref[...], fcb_ref[...]
    for t in range(T):
        rnn_t = jnp.concatenate([h_fwd[t], h_bwd[t]], axis=-1)   # (B, 2H)
        out_ref[:, t, :] = (jnp.dot(rnn_t, fcw, preferred_element_type=F32)
                            + fcb).astype(out_ref.dtype)


def bilstm_head(lp, fcw_pad, fcb_pad, x):
    Bd, T, _ = x.shape
    args = (x.astype(F32),
            lp["fwd"]["w_ih"], lp["fwd"]["w_hh"], lp["fwd"]["b"],
            lp["bwd"]["w_ih"], lp["bwd"]["w_hh"], lp["bwd"]["b"],
            fcw_pad, fcb_pad)
    return pl.pallas_call(
        _bilstm_head_kernel,
        out_shape=jax.ShapeDtypeStruct((Bd, T, OUT_PAD), F32),
        in_specs=[_vmem_spec()] * len(args),
        out_specs=_vmem_spec(),
    )(*args)


# ------------------------------ full forward ---------------------------------
def dialogue_classifier_forward(params, text_ids, aud, attention_mask):
    Bd, Ud, L = text_ids.shape
    N = Bd * Ud
    ids = text_ids.reshape(N, L)
    mask = attention_mask.reshape(N, L).astype(F32)
    aud_flat = aud.reshape(N, -1)

    bert = params["text"]["bert"]
    # embedding gather + sums kept in XLA (tiny); everything downstream is fused Pallas
    x_emb = (bert["word_emb"][ids] + bert["pos_emb"][None, :L, :]
             + bert["type_emb"][0][None, None, :])

    utt = text_encode(params["text"], x_emb, mask)                  # (N, HID)
    aud_enc = aud_encode(params["aud"], aud_flat)                   # (N, HID)
    combined = jnp.concatenate([utt, aud_enc], axis=-1).reshape(Bd, Ud, 2 * HID)

    logits_pad = bilstm_head(params["lstm"], params["fc_w_pad"], params["fc_b_pad"],
                             combined)                              # (B, U, OUT_PAD)
    return logits_pad[:, :, :OUT_DIM]                               # raw logits


# ------------------------------- parameters ----------------------------------
def init_params(key):
    keys = iter(jax.random.split(key, 64))

    def nrm(shape, scale=0.02):
        return scale * jax.random.normal(next(keys), shape, dtype=F32)

    bert = dict(
        word_emb=nrm((VOCAB, HID)),
        pos_emb=nrm((MAXLEN, HID)),
        type_emb=nrm((2, HID)),
        emb_ln_g=jnp.ones((1, HID), F32), emb_ln_b=jnp.zeros((1, HID), F32),
        wqkv=nrm((NLAYERS, HID, 3 * HID)), bqkv=nrm((NLAYERS, 1, 3 * HID)),
        wo=nrm((NLAYERS, HID, HID)), bo=nrm((NLAYERS, 1, HID)),
        ln1_g=jnp.ones((NLAYERS, 1, HID), F32), ln1_b=jnp.zeros((NLAYERS, 1, HID), F32),
        wi=nrm((NLAYERS, HID, INTER)), bi=nrm((NLAYERS, 1, INTER)),
        wo2=nrm((NLAYERS, INTER, HID)), bo2=nrm((NLAYERS, 1, HID)),
        ln2_g=jnp.ones((NLAYERS, 1, HID), F32), ln2_b=jnp.zeros((NLAYERS, 1, HID), F32),
    )
    text = dict(bert=bert, fc_w=nrm((HID, HID)), fc_b=nrm((1, HID)))

    aud_p = dict(
        conv1_w=nrm((8, 4)), conv1_b=nrm((1, 4)),          # Conv1d(1,4,k=8) as (k, out)
        bn1_g=jnp.ones((1, 4), F32), bn1_b=jnp.zeros((1, 4), F32),
        conv2_w=nrm((20, 16)), conv2_b=nrm((1, 16)),       # Conv1d(4,16,k=5) as (k*C, out)
        bn2_g=jnp.ones((1, 16), F32), bn2_b=jnp.zeros((1, 16), F32),
        lin_w=nrm((16 * AUD_T4, HID)), lin_b=nrm((1, HID)),
    )

    def lstm_dir():
        return dict(w_ih=nrm((2 * HID, 4 * LSTM_HID)),     # W_ih^T
                    w_hh=nrm((LSTM_HID, 4 * LSTM_HID)),    # W_hh^T
                    b=nrm((1, 4 * LSTM_HID)))              # b_ih + b_hh folded

    lstm = dict(fwd=lstm_dir(), bwd=lstm_dir())

    fc_w = nrm((2 * LSTM_HID, OUT_DIM))
    fc_b = nrm((1, OUT_DIM))
    fc_w_pad = jnp.zeros((2 * LSTM_HID, OUT_PAD), F32).at[:, :OUT_DIM].set(fc_w)
    fc_b_pad = jnp.zeros((1, OUT_PAD), F32).at[:, :OUT_DIM].set(fc_b)

    return dict(text=text, aud=aud_p, lstm=lstm, fc_w_pad=fc_w_pad, fc_b_pad=fc_b_pad)


# ---------------------------------- main --------------------------------------
if __name__ == "__main__":
    key = jax.random.PRNGKey(0)
    kp, k1, k2 = jax.random.split(key, 3)
    params = init_params(kp)

    text_ids = jax.random.randint(k1, (B, U, MAXLEN), 0, VOCAB)
    aud = jax.random.normal(k2, (B, U, AUD_LEN), dtype=F32)
    # deterministic per-utterance lengths; includes one fully-masked utterance
    lengths = jnp.array([[8, 5, 3, 0], [8, 8, 2, 4]], dtype=jnp.int32)
    attention_mask = (jnp.arange(MAXLEN)[None, None, :] < lengths[:, :, None]).astype(jnp.int32)

    fwd = jax.jit(dialogue_classifier_forward)
    out = fwd(params, text_ids, aud, attention_mask)
    out = jax.block_until_ready(out)
    assert out.shape == (B, U, OUT_DIM) and out.dtype == F32
    print("KERNEL_OK")
</pallas_src>

<mosaic_0001>
module attributes {stable_mosaic.version = 11 : i64} {
  func.func @_aud_encoder_kernel(%arg0: memref<2x2x160x8xf32, #tpu.memory_space<vmem>>, %arg1: memref<8x4xf32, #tpu.memory_space<vmem>>, %arg2: memref<1x4xf32, #tpu.memory_space<vmem>>, %arg3: memref<1x4xf32, #tpu.memory_space<vmem>>, %arg4: memref<1x4xf32, #tpu.memory_space<vmem>>, %arg5: memref<20x16xf32, #tpu.memory_space<vmem>>, %arg6: memref<1x16xf32, #tpu.memory_space<vmem>>, %arg7: memref<1x16xf32, #tpu.memory_space<vmem>>, %arg8: memref<1x16xf32, #tpu.memory_space<vmem>>, %arg9: memref<64x32xf32, #tpu.memory_space<vmem>>, %arg10: memref<1x32xf32, #tpu.memory_space<vmem>>, %arg11: memref<8x32xf32, #tpu.memory_space<vmem>>) attributes {dimension_semantics = [], scalar_prefetch = 0 : i64, scratch_operands = 0 : i64, tpu.core_type = #tpu.core_type<tc>} {
    %c0 = arith.constant 0 : index
    %c0_0 = arith.constant 0 : index
    %0 = vector.load %arg1[%c0, %c0_0] : memref<8x4xf32, #tpu.memory_space<vmem>>, vector<8x4xf32>
    %c0_1 = arith.constant 0 : index
    %c0_2 = arith.constant 0 : index
    %1 = vector.load %arg2[%c0_1, %c0_2] : memref<1x4xf32, #tpu.memory_space<vmem>>, vector<1x4xf32>
    %c0_3 = arith.constant 0 : index
    %c0_4 = arith.constant 0 : index
    %c0_5 = arith.constant 0 : index
    %c0_6 = arith.constant 0 : index
    %2 = vector.load %arg0[%c0_3, %c0_4, %c0_5, %c0_6] : memref<2x2x160x8xf32, #tpu.memory_space<vmem>>, vector<1x1x160x8xf32>
    %3 = vector.shape_cast %2 : vector<1x1x160x8xf32> to vector<160x8xf32>
    %cst = arith.constant dense<0.000000e+00> : vector<160x4xf32>
    %4 = tpu.matmul %3, %0, %cst {dimension_numbers = #tpu.dot_dimension_numbers<[1], [0], [0], [1], [0, 0, 1, 1], [], []>} : vector<160x8xf32>, vector<8x4xf32>, vector<160x4xf32> -> vector<160x4xf32>
    %5 = vector.broadcast %1 : vector<1x4xf32> to vector<160x4xf32>
    %6 = arith.addf %4, %5 : vector<160x4xf32>
    %cst_7 = arith.constant 0.000000e+00 : f32
    %7 = vector.broadcast %cst_7 : f32 to vector<160x4xf32>
    %8 = arith.maximumf %6, %7 : vector<160x4xf32>
    %c0_8 = arith.constant 0 : index
    %c1 = arith.constant 1 : index
    %c0_9 = arith.constant 0 : index
    %c0_10 = arith.constant 0 : index
    %9 = vector.load %arg0[%c0_8, %c1, %c0_9, %c0_10] : memref<2x2x160x8xf32, #tpu.memory_space<vmem>>, vector<1x1x160x8xf32>
    %10 = vector.shape_cast %9 : vector<1x1x160x8xf32> to vector<160x8xf32>
    %cst_11 = arith.constant dense<0.000000e+00> : vector<160x4xf32>
    %11 = tpu.matmul %10, %0, %cst_11 {dimension_numbers = #tpu.dot_dimension_numbers<[1], [0], [0], [1], [0, 0, 1, 1], [], []>} : vector<160x8xf32>, vector<8x4xf32>, vector<160x4xf32> -> vector<160x4xf32>
    %12 = vector.broadcast %1 : vector<1x4xf32> to vector<160x4xf32>
    %13 = arith.addf %11, %12 : vector<160x4xf32>
    %cst_12 = arith.constant 0.000000e+00 : f32
    %14 = vector.broadcast %cst_12 : f32 to vector<160x4xf32>
    %15 = arith.maximumf %13, %14 : vector<160x4xf32>
    %16 = arith.maximumf %8, %15 : vector<160x4xf32>
    %c1_13 = arith.constant 1 : index
    %c0_14 = arith.constant 0 : index
    %c0_15 = arith.constant 0 : index
    %c0_16 = arith.constant 0 : index
    %17 = vector.load %arg0[%c1_13, %c0_14, %c0_15, %c0_16] : memref<2x2x160x8xf32, #tpu.memory_space<vmem>>, vector<1x1x160x8xf32>
    %18 = vector.shape_cast %17 : vector<1x1x160x8xf32> to vector<160x8xf32>
    %cst_17 = arith.constant dense<0.000000e+00> : vector<160x4xf32>
    %19 = tpu.matmul %18, %0, %cst_17 {dimension_numbers = #tpu.dot_dimension_numbers<[1], [0], [0], [1], [0, 0, 1, 1], [], []>} : vector<160x8xf32>, vector<8x4xf32>, vector<160x4xf32> -> vector<160x4xf32>
    %20 = vector.broadcast %1 : vector<1x4xf32> to vector<160x4xf32>
    %21 = arith.addf %19, %20 : vector<160x4xf32>
    %cst_18 = arith.constant 0.000000e+00 : f32
    %22 = vector.broadcast %cst_18 : f32 to vector<160x4xf32>
    %23 = arith.maximumf %21, %22 : vector<160x4xf32>
    %c1_19 = arith.constant 1 : index
    %c1_20 = arith.constant 1 : index
    %c0_21 = arith.constant 0 : index
    %c0_22 = arith.constant 0 : index
    %24 = vector.load %arg0[%c1_19, %c1_20, %c0_21, %c0_22] : memref<2x2x160x8xf32, #tpu.memory_space<vmem>>, vector<1x1x160x8xf32>
    %25 = vector.shape_cast %24 : vector<1x1x160x8xf32> to vector<160x8xf32>
    %cst_23 = arith.constant dense<0.000000e+00> : vector<160x4xf32>
    %26 = tpu.matmul %25, %0, %cst_23 {dimension_numbers = #tpu.dot_dimension_numbers<[1], [0], [0], [1], [0, 0, 1, 1], [], []>} : vector<160x8xf32>, vector<8x4xf32>, vector<160x4xf32> -> vector<160x4xf32>
    %27 = vector.broadcast %1 : vector<1x4xf32> to vector<160x4xf32>
    %28 = arith.addf %26, %27 : vector<160x4xf32>
    %cst_24 = arith.constant 0.000000e+00 : f32
    %29 = vector.broadcast %cst_24 : f32 to vector<160x4xf32>
    %30 = arith.maximumf %28, %29 : vector<160x4xf32>
    %31 = arith.maximumf %23, %30 : vector<160x4xf32>
    %cst_25 = arith.constant dense<0.000000e+00> : vector<4xf32>
    %32 = vector.multi_reduction <add>, %16, %cst_25 [0] : vector<160x4xf32> to vector<4xf32>
    %33 = vector.shape_cast %32 : vector<4xf32> to vector<1x4xf32>
    %cst_26 = arith.constant dense<0.000000e+00> : vector<4xf32>
    %34 = vector.multi_reduction <add>, %31, %cst_26 [0] : vector<160x4xf32> to vector<4xf32>
    %35 = vector.shape_cast %34 : vector<4xf32> to vector<1x4xf32>
    %36 = arith.addf %33, %35 : vector<1x4xf32>
    %cst_27 = arith.constant 3.200000e+02 : f32
    %37 = vector.broadcast %cst_27 : f32 to vector<1x4xf32>
    %38 = arith.divf %36, %37 : vector<1x4xf32>
    %39 = vector.broadcast %38 : vector<1x4xf32> to vector<160x4xf32>
    %40 = arith.subf %16, %39 : vector<160x4xf32>
    %41 = arith.mulf %40, %40 : vector<160x4xf32>
    %cst_28 = arith.constant dense<0.000000e+00> : vector<4xf32>
    %42 = vector.multi_reduction <add>, %41, %cst_28 [0] : vector<160x4xf32> to vector<4xf32>
    %43 = vector.shape_cast %42 : vector<4xf32> to vector<1x4xf32>
    %44 = vector.broadcast %38 : vector<1x4xf32> to vector<160x4xf32>
    %45 = arith.subf %31, %44 : vector<160x4xf32>
    %46 = arith.mulf %45, %45 : vector<160x4xf32>
    %cst_29 = arith.constant dense<0.000000e+00> : vector<4xf32>
    %47 = vector.multi_reduction <add>, %46, %cst_29 [0] : vector<160x4xf32> to vector<4xf32>
    %48 = vector.shape_cast %47 : vector<4xf32> to vector<1x4xf32>
    %49 = arith.addf %43, %48 : vector<1x4xf32>
    %cst_30 = arith.constant 3.200000e+02 : f32
    %50 = vector.broadcast %cst_30 : f32 to vector<1x4xf32>
    %51 = arith.divf %49, %50 : vector<1x4xf32>
    %cst_31 = arith.constant 9.99999974E-6 : f32
    %52 = vector.broadcast %cst_31 : f32 to vector<1x4xf32>
    %53 = arith.addf %51, %52 : vector<1x4xf32>
    %54 = math.rsqrt %53 : vector<1x4xf32>
    %c0_32 = arith.constant 0 : index
    %c0_33 = arith.constant 0 : index
    %55 = vector.load %arg3[%c0_32, %c0_33] : memref<1x4xf32, #tpu.memory_space<vmem>>, vector<1x4xf32>
    %56 = arith.mulf %54, %55 : vector<1x4xf32>
    %57 = vector.broadcast %38 : vector<1x4xf32> to vector<160x4xf32>
    %58 = arith.subf %16, %57 : vector<160x4xf32>
    %59 = vector.broadcast %56 : vector<1x4xf32> to vector<160x4xf32>
    %60 = arith.mulf %58, %59 : vector<160x4xf32>
    %c0_34 = arith.constant 0 : index
    %c0_35 = arith.constant 0 : index
    %61 = vector.load %arg4[%c0_34, %c0_35] : memref<1x4xf32, #tpu.memory_space<vmem>>, vector<1x4xf32>
    %62 = vector.broadcast %61 : vector<1x4xf32> to vector<160x4xf32>
    %63 = arith.addf %60, %62 : vector<160x4xf32>
    %64 = vector.broadcast %38 : vector<1x4xf32> to vector<160x4xf32>
    %65 = arith.subf %31, %64 : vector<160x4xf32>
    %66 = vector.broadcast %56 : vector<1x4xf32> to vector<160x4xf32>
    %67 = arith.mulf %65, %66 : vector<160x4xf32>
    %c0_36 = arith.constant 0 : index
    %c0_37 = arith.constant 0 : index
    %68 = vector.load %arg4[%c0_36, %c0_37] : memref<1x4xf32, #tpu.memory_space<vmem>>, vector<1x4xf32>
    %69 = vector.broadcast %68 : vector<1x4xf32> to vector<160x4xf32>
    %70 = arith.addf %67, %69 : vector<160x4xf32>
    %c0_38 = arith.constant 0 : index
    %c0_39 = arith.constant 0 : index
    %71 = vector.load %arg5[%c0_38, %c0_39] : memref<20x16xf32, #tpu.memory_space<vmem>>, vector<20x16xf32>
    %c0_40 = arith.constant 0 : index
    %c0_41 = arith.constant 0 : index
    %72 = vector.load %arg6[%c0_40, %c0_41] : memref<1x16xf32, #tpu.memory_space<vmem>>, vector<1x16xf32>
    %73 = vector.extract_strided_slice %63 {offsets = [0, 0], sizes = [32, 4], strides = [1, 1]} : vector<160x4xf32> to vector<32x4xf32>
    %74 = vector.extract_strided_slice %63 {offsets = [32, 0], sizes = [32, 4], strides = [1, 1]} : vector<160x4xf32> to vector<32x4xf32>
    %75 = vector.extract_strided_slice %63 {offsets = [64, 0], sizes = [32, 4], strides = [1, 1]} : vector<160x4xf32> to vector<32x4xf32>
    %76 = vector.extract_strided_slice %63 {offsets = [96, 0], sizes = [32, 4], strides = [1, 1]} : vector<160x4xf32> to vector<32x4xf32>
    %77 = vector.extract_strided_slice %63 {offsets = [128, 0], sizes = [32, 4], strides = [1, 1]} : vector<160x4xf32> to vector<32x4xf32>
    %78 = tpu.concatenate %73, %74, %75, %76, %77 in 1 : vector<32x4xf32>, vector<32x4xf32>, vector<32x4xf32>, vector<32x4xf32>, vector<32x4xf32> -> vector<32x20xf32>
    %cst_42 = arith.constant dense<0.000000e+00> : vector<32x16xf32>
    %79 = tpu.matmul %78, %71, %cst_42 {dimension_numbers = #tpu.dot_dimension_numbers<[1], [0], [0], [1], [0, 0, 1, 1], [], []>} : vector<32x20xf32>, vector<20x16xf32>, vector<32x16xf32> -> vector<32x16xf32>
    %80 = vector.broadcast %72 : vector<1x16xf32> to vector<32x16xf32>
    %81 = arith.addf %79, %80 : vector<32x16xf32>
    %cst_43 = arith.constant 0.000000e+00 : f32
    %82 = vector.broadcast %cst_43 : f32 to vector<32x16xf32>
    %83 = arith.maximumf %81, %82 : vector<32x16xf32>
    %84 = vector.extract_strided_slice %70 {offsets = [0, 0], sizes = [32, 4], strides = [1, 1]} : vector<160x4xf32> to vector<32x4xf32>
    %85 = vector.extract_strided_slice %70 {offsets = [32, 0], sizes = [32, 4], strides = [1, 1]} : vector<160x4xf32> to vector<32x4xf32>
    %86 = vector.extract_strided_slice %70 {offsets = [64, 0], sizes = [32, 4], strides = [1, 1]} : vector<160x4xf32> to vector<32x4xf32>
    %87 = vector.extract_strided_slice %70 {offsets = [96, 0], sizes = [32, 4], strides = [1, 1]} : vector<160x4xf32> to vector<32x4xf32>
    %88 = vector.extract_strided_slice %70 {offsets = [128, 0], sizes = [32, 4], strides = [1, 1]} : vector<160x4xf32> to vector<32x4xf32>
    %89 = tpu.concatenate %84, %85, %86, %87, %88 in 1 : vector<32x4xf32>, vector<32x4xf32>, vector<32x4xf32>, vector<32x4xf32>, vector<32x4xf32> -> vector<32x20xf32>
    %cst_44 = arith.constant dense<0.000000e+00> : vector<32x16xf32>
    %90 = tpu.matmul %89, %71, %cst_44 {dimension_numbers = #tpu.dot_dimension_numbers<[1], [0], [0], [1], [0, 0, 1, 1], [], []>} : vector<32x20xf32>, vector<20x16xf32>, vector<32x16xf32> -> vector<32x16xf32>
    %91 = vector.broadcast %72 : vector<1x16xf32> to vector<32x16xf32>
    %92 = arith.addf %90, %91 : vector<32x16xf32>
    %cst_45 = arith.constant 0.000000e+00 : f32
    %93 = vector.broadcast %cst_45 : f32 to vector<32x16xf32>
    %94 = arith.maximumf %92, %93 : vector<32x16xf32>
    %95 = arith.maximumf %83, %94 : vector<32x16xf32>
    %cst_46 = arith.constant dense<0.000000e+00> : vector<16xf32>
    %96 = vector.multi_reduction <add>, %95, %cst_46 [0] : vector<32x16xf32> to vector<16xf32>
    %97 = vector.shape_cast %96 : vector<16xf32> to vector<1x16xf32>
    %cst_47 = arith.constant 3.200000e+01 : f32
    %98 = vector.broadcast %cst_47 : f32 to vector<1x16xf32>
    %99 = arith.divf %97, %98 : vector<1x16xf32>
    %100 = vector.broadcast %99 : vector<1x16xf32> to vector<32x16xf32>
    %101 = arith.subf %95, %100 : vector<32x16xf32>
    %102 = arith.mulf %101, %101 : vector<32x16xf32>
    %cst_48 = arith.constant dense<0.000000e+00> : vector<16xf32>
    %103 = vector.multi_reduction <add>, %102, %cst_48 [0] : vector<32x16xf32> to vector<16xf32>
    %104 = vector.shape_cast %103 : vector<16xf32> to vector<1x16xf32>
    %cst_49 = arith.constant 3.200000e+01 : f32
    %105 = vector.broadcast %cst_49 : f32 to vector<1x16xf32>
    %106 = arith.divf %104, %105 : vector<1x16xf32>
    %107 = vector.broadcast %99 : vector<1x16xf32> to vector<32x16xf32>
    %108 = arith.subf %95, %107 : vector<32x16xf32>
    %cst_50 = arith.constant 9.99999974E-6 : f32
    %109 = vector.broadcast %cst_50 : f32 to vector<1x16xf32>
    %110 = arith.addf %106, %109 : vector<1x16xf32>
    %111 = math.rsqrt %110 : vector<1x16xf32>
    %112 = vector.broadcast %111 : vector<1x16xf32> to vector<32x16xf32>
    %113 = arith.mulf %108, %112 : vector<32x16xf32>
    %c0_51 = arith.constant 0 : index
    %c0_52 = arith.constant 0 : index
    %114 = vector.load %arg7[%c0_51, %c0_52] : memref<1x16xf32, #tpu.memory_space<vmem>>, vector<1x16xf32>
    %115 = vector.broadcast %114 : vector<1x16xf32> to vector<32x16xf32>
    %116 = arith.mulf %113, %115 : vector<32x16xf32>
    %c0_53 = arith.constant 0 : index
    %c0_54 = arith.constant 0 : index
    %117 = vector.load %arg8[%c0_53, %c0_54] : memref<1x16xf32, #tpu.memory_space<vmem>>, vector<1x16xf32>
    %118 = vector.broadcast %117 : vector<1x16xf32> to vector<32x16xf32>
    %119 = arith.addf %116, %118 : vector<32x16xf32>
    %120 = vector.extract_strided_slice %119 {offsets = [0, 0], sizes = [8, 16], strides = [1, 1]} : vector<32x16xf32> to vector<8x16xf32>
    %121 = vector.extract_strided_slice %119 {offsets = [8, 0], sizes = [8, 16], strides = [1, 1]} : vector<32x16xf32> to vector<8x16xf32>
    %122 = vector.extract_strided_slice %119 {offsets = [16, 0], sizes = [8, 16], strides = [1, 1]} : vector<32x16xf32> to vector<8x16xf32>
    %123 = vector.extract_strided_slice %119 {offsets = [24, 0], sizes = [8, 16], strides = [1, 1]} : vector<32x16xf32> to vector<8x16xf32>
    %124 = tpu.concatenate %120, %121, %122, %123 in 1 : vector<8x16xf32>, vector<8x16xf32>, vector<8x16xf32>, vector<8x16xf32> -> vector<8x64xf32>
    %c0_55 = arith.constant 0 : index
    %c0_56 = arith.constant 0 : index
    %125 = vector.load %arg9[%c0_55, %c0_56] : memref<64x32xf32, #tpu.memory_space<vmem>>, vector<64x32xf32>
    %cst_57 = arith.constant dense<0.000000e+00> : vector<8x32xf32>
    %126 = tpu.matmul %124, %125, %cst_57 {dimension_numbers = #tpu.dot_dimension_numbers<[1], [0], [0], [1], [0, 0, 1, 1], [], []>} : vector<8x64xf32>, vector<64x32xf32>, vector<8x32xf32> -> vector<8x32xf32>
    %c0_58 = arith.constant 0 : index
    %c0_59 = arith.constant 0 : index
    %127 = vector.load %arg10[%c0_58, %c0_59] : memref<1x32xf32, #tpu.memory_space<vmem>>, vector<1x32xf32>
    %128 = vector.broadcast %127 : vector<1x32xf32> to vector<8x32xf32>
    %129 = arith.addf %126, %128 : vector<8x32xf32>
    %c0_60 = arith.constant 0 : index
    %c0_61 = arith.constant 0 : index
    %130 = vector.load %arg11[%c0_60, %c0_61] : memref<8x32xf32, #tpu.memory_space<vmem>>, vector<8x32xf32>
    tpu.vector_store %arg11[%c0_60, %c0_61], %129 {strides = array<i32>} : memref<8x32xf32, #tpu.memory_space<vmem>>, vector<8x32xf32>,
    return
  }
}

module attributes {stable_mosaic.version = 11 : i64} {
  func.func @_bilstm_head_kernel(%arg0: memref<2x4x64xf32, #tpu.memory_space<vmem>>, %arg1: memref<64x64xf32, #tpu.memory_space<vmem>>, %arg2: memref<16x64xf32, #tpu.memory_space<vmem>>, %arg3: memref<1x64xf32, #tpu.memory_space<vmem>>, %arg4: memref<64x64xf32, #tpu.memory_space<vmem>>, %arg5: memref<16x64xf32, #tpu.memory_space<vmem>>, %arg6: memref<1x64xf32, #tpu.memory_space<vmem>>, %arg7: memref<32x128xf32, #tpu.memory_space<vmem>>, %arg8: memref<1x128xf32, #tpu.memory_space<vmem>>, %arg9: memref<2x4x128xf32, #tpu.memory_space<vmem>>) attributes {dimension_semantics = [], scalar_prefetch = 0 : i64, scratch_operands = 0 : i64, tpu.core_type = #tpu.core_type<tc>} {
    %c0 = arith.constant 0 : index
    %c0_0 = arith.constant 0 : index
    %0 = vector.load %arg1[%c0, %c0_0] : memref<64x64xf32, #tpu.memory_space<vmem>>, vector<64x64xf32>
    %c0_1 = arith.constant 0 : index
    %c0_2 = arith.constant 0 : index
    %1 = vector.load %arg2[%c0_1, %c0_2] : memref<16x64xf32, #tpu.memory_space<vmem>>, vector<16x64xf32>
    %c0_3 = arith.constant 0 : index
    %c0_4 = arith.constant 0 : index
    %2 = vector.load %arg3[%c0_3, %c0_4] : memref<1x64xf32, #tpu.memory_space<vmem>>, vector<1x64xf32>
    %c0_5 = arith.constant 0 : index
    %c0_6 = arith.constant 0 : index
    %3 = vector.load %arg4[%c0_5, %c0_6] : memref<64x64xf32, #tpu.memory_space<vmem>>, vector<64x64xf32>
    %c0_7 = arith.constant 0 : index
    %c0_8 = arith.constant 0 : index
    %4 = vector.load %arg5[%c0_7, %c0_8] : memref<16x64xf32, #tpu.memory_space<vmem>>, vector<16x64xf32>
    %c0_9 = arith.constant 0 : index
    %c0_10 = arith.constant 0 : index
    %5 = vector.load %arg6[%c0_9, %c0_10] : memref<1x64xf32, #tpu.memory_space<vmem>>, vector<1x64xf32>
    %cst = arith.constant 0.000000e+00 : f32
    %6 = vector.broadcast %cst : f32 to vector<2x16xf32>
    %c0_11 = arith.constant 0 : index
    %c0_12 = arith.constant 0 : index
    %c0_13 = arith.constant 0 : index
    %7 = vector.load %arg0[%c0_11, %c0_12, %c0_13] : memref<2x4x64xf32, #tpu.memory_space<vmem>>, vector<2x1x64xf32>
    %8 = vector.shape_cast %7 : vector<2x1x64xf32> to vector<2x64xf32>
    %cst_14 = arith.constant dense<0.000000e+00> : vector<2x64xf32>
    %9 = tpu.matmul %8, %0, %cst_14 {dimension_numbers = #tpu.dot_dimension_numbers<[1], [0], [0], [1], [0, 0, 1, 1], [], []>} : vector<2x64xf32>, vector<64x64xf32>, vector<2x64xf32> -> vector<2x64xf32>
    %10 = vector.broadcast %2 : vector<1x64xf32> to vector<2x64xf32>
    %11 = arith.addf %9, %10 : vector<2x64xf32>
    %cst_15 = arith.constant dense<0.000000e+00> : vector<2x64xf32>
    %12 = tpu.matmul %6, %1, %cst_15 {dimension_numbers = #tpu.dot_dimension_numbers<[1], [0], [0], [1], [0, 0, 1, 1], [], []>} : vector<2x16xf32>, vector<16x64xf32>, vector<2x64xf32> -> vector<2x64xf32>
    %13 = arith.addf %11, %12 : vector<2x64xf32>
    %14 = vector.extract_strided_slice %13 {offsets = [0, 0], sizes = [2, 16], strides = [1, 1]} : vector<2x64xf32> to vector<2x16xf32>
    %15 = arith.negf %14 : vector<2x16xf32>
    %16 = math.exp %15 : vector<2x16xf32>
    %cst_16 = arith.constant 1.000000e+00 : f32
    %17 = vector.broadcast %cst_16 : f32 to vector<2x16xf32>
    %18 = arith.addf %17, %16 : vector<2x16xf32>
    %19 = arith.divf %17, %18 : vector<2x16xf32>
    %20 = vector.extract_strided_slice %13 {offsets = [0, 16], sizes = [2, 16], strides = [1, 1]} : vector<2x64xf32> to vector<2x16xf32>
    %21 = arith.negf %20 : vector<2x16xf32>
    %22 = math.exp %21 : vector<2x16xf32>
    %cst_17 = arith.constant 1.000000e+00 : f32
    %23 = vector.broadcast %cst_17 : f32 to vector<2x16xf32>
    %24 = arith.addf %23, %22 : vector<2x16xf32>
    %25 = arith.divf %23, %24 : vector<2x16xf32>
    %26 = vector.extract_strided_slice %13 {offsets = [0, 32], sizes = [2, 16], strides = [1, 1]} : vector<2x64xf32> to vector<2x16xf32>
    %27 = math.tanh %26 : vector<2x16xf32>
    %28 = vector.extract_strided_slice %13 {offsets = [0, 48], sizes = [2, 16], strides = [1, 1]} : vector<2x64xf32> to vector<2x16xf32>
    %29 = arith.negf %28 : vector<2x16xf32>
    %30 = math.exp %29 : vector<2x16xf32>
    %cst_18 = arith.constant 1.000000e+00 : f32
    %31 = vector.broadcast %cst_18 : f32 to vector<2x16xf32>
    %32 = arith.addf %31, %30 : vector<2x16xf32>
    %33 = arith.divf %31, %32 : vector<2x16xf32>
    %34 = arith.mulf %25, %6 : vector<2x16xf32>
    %35 = arith.mulf %19, %27 : vector<2x16xf32>
    %36 = arith.addf %34, %35 : vector<2x16xf32>
    %37 = math.tanh %36 : vector<2x16xf32>
    %38 = arith.mulf %33, %37 : vector<2x16xf32>
    %c0_19 = arith.constant 0 : index
    %c1 = arith.constant 1 : index
    %c0_20 = arith.constant 0 : index
    %39 = vector.load %arg0[%c0_19, %c1, %c0_20] : memref<2x4x64xf32, #tpu.memory_space<vmem>>, vector<2x1x64xf32>
    %40 = vector.shape_cast %39 : vector<2x1x64xf32> to vector<2x64xf32>
    %cst_21 = arith.constant dense<0.000000e+00> : vector<2x64xf32>
    %41 = tpu.matmul %40, %0, %cst_21 {dimension_numbers = #tpu.dot_dimension_numbers<[1], [0], [0], [1], [0, 0, 1, 1], [], []>} : vector<2x64xf32>, vector<64x64xf32>, vector<2x64xf32> -> vector<2x64xf32>
    %42 = vector.broadcast %2 : vector<1x64xf32> to vector<2x64xf32>
    %43 = arith.addf %41, %42 : vector<2x64xf32>
    %cst_22 = arith.constant dense<0.000000e+00> : vector<2x64xf32>
    %44 = tpu.matmul %38, %1, %cst_22 {dimension_numbers = #tpu.dot_dimension_numbers<[1], [0], [0], [1], [0, 0, 1, 1], [], []>} : vector<2x16xf32>, vector<16x64xf32>, vector<2x64xf32> -> vector<2x64xf32>
    %45 = arith.addf %43, %44 : vector<2x64xf32>
    %46 = vector.extract_strided_slice %45 {offsets = [0, 0], sizes = [2, 16], strides = [1, 1]} : vector<2x64xf32> to vector<2x16xf32>
    %47 = arith.negf %46 : vector<2x16xf32>
    %48 = math.exp %47 : vector<2x16xf32>
    %cst_23 = arith.constant 1.000000e+00 : f32
    %49 = vector.broadcast %cst_23 : f32 to vector<2x16xf32>
    %50 = arith.addf %49, %48 : vector<2x16xf32>
    %51 = arith.divf %49, %50 : vector<2x16xf32>
    %52 = vector.extract_strided_slice %45 {offsets = [0, 16], sizes = [2, 16], strides = [1, 1]} : vector<2x64xf32> to vector<2x16xf32>
    %53 = arith.negf %52 : vector<2x16xf32>
    %54 = math.exp %53 : vector<2x16xf32>
    %cst_24 = arith.constant 1.000000e+00 : f32
    %55 = vector.broadcast %cst_24 : f32 to vector<2x16xf32>
    %56 = arith.addf %55, %54 : vector<2x16xf32>
    %57 = arith.divf %55, %56 : vector<2x16xf32>
    %58 = vector.extract_strided_slice %45 {offsets = [0, 32], sizes = [2, 16], strides = [1, 1]} : vector<2x64xf32> to vector<2x16xf32>
    %59 = math.tanh %58 : vector<2x16xf32>
    %60 = vector.extract_strided_slice %45 {offsets = [0, 48], sizes = [2, 16], strides = [1, 1]} : vector<2x64xf32> to vector<2x16xf32>
    %61 = arith.negf %60 : vector<2x16xf32>
    %62 = math.exp %61 : vector<2x16xf32>
    %cst_25 = arith.constant 1.000000e+00 : f32
    %63 = vector.broadcast %cst_25 : f32 to vector<2x16xf32>
    %64 = arith.addf %63, %62 : vector<2x16xf32>
    %65 = arith.divf %63, %64 : vector<2x16xf32>
    %66 = arith.mulf %57, %36 : vector<2x16xf32>
    %67 = arith.mulf %51, %59 : vector<2x16xf32>
    %68 = arith.addf %66, %67 : vector<2x16xf32>
    %69 = math.tanh %68 : vector<2x16xf32>
    %70 = arith.mulf %65, %69 : vector<2x16xf32>
    %c0_26 = arith.constant 0 : index
    %c2 = arith.constant 2 : index
    %c0_27 = arith.constant 0 : index
    %71 = vector.load %arg0[%c0_26, %c2, %c0_27] : memref<2x4x64xf32, #tpu.memory_space<vmem>>, vector<2x1x64xf32>
    %72 = vector.shape_cast %71 : vector<2x1x64xf32> to vector<2x64xf32>
    %cst_28 = arith.constant dense<0.000000e+00> : vector<2x64xf32>
    %73 = tpu.matmul %72, %0, %cst_28 {dimension_numbers = #tpu.dot_dimension_numbers<[1], [0], [0], [1], [0, 0, 1, 1], [], []>} : vector<2x64xf32>, vector<64x64xf32>, vector<2x64xf32> -> vector<2x64xf32>
    %74 = vector.broadcast %2 : vector<1x64xf32> to vector<2x64xf32>
    %75 = arith.addf %73, %74 : vector<2x64xf32>
    %cst_29 = arith.constant dense<0.000000e+00> : vector<2x64xf32>
    %76 = tpu.matmul %70, %1, %cst_29 {dimension_numbers = #tpu.dot_dimension_numbers<[1], [0], [0], [1], [0, 0, 1, 1], [], []>} : vector<2x16xf32>, vector<16x64xf32>, vector<2x64xf32> -> vector<2x64xf32>
    %77 = arith.addf %75, %76 : vector<2x64xf32>
    %78 = vector.extract_strided_slice %77 {offsets = [0, 0], sizes = [2, 16], strides = [1, 1]} : vector<2x64xf32> to vector<2x16xf32>
    %79 = arith.negf %78 : vector<2x16xf32>
    %80 = math.exp %79 : vector<2x16xf32>
    %cst_30 = arith.constant 1.000000e+00 : f32
    %81 = vector.broadcast %cst_30 : f32 to vector<2x16xf32>
    %82 = arith.addf %81, %80 : vector<2x16xf32>
    %83 = arith.divf %81, %82 : vector<2x16xf32>
    %84 = vector.extract_strided_slice %77 {offsets = [0, 16], sizes = [2, 16], strides = [1, 1]} : vector<2x64xf32> to vector<2x16xf32>
    %85 = arith.negf %84 : vector<2x16xf32>
    %86 = math.exp %85 : vector<2x16xf32>
    %cst_31 = arith.constant 1.000000e+00 : f32
    %87 = vector.broadcast %cst_31 : f32 to vector<2x16xf32>
    %88 = arith.addf %87, %86 : vector<2x16xf32>
    %89 = arith.divf %87, %88 : vector<2x16xf32>
    %90 = vector.extract_strided_slice %77 {offsets = [0, 32], sizes = [2, 16], strides = [1, 1]} : vector<2x64xf32> to vector<2x16xf32>
    %91 = math.tanh %90 : vector<2x16xf32>
    %92 = vector.extract_strided_slice %77 {offsets = [0, 48], sizes = [2, 16], strides = [1, 1]} : vector<2x64xf32> to vector<2x16xf32>
    %93 = arith.negf %92 : vector<2x16xf32>
    %94 = math.exp %93 : vector<2x16xf32>
    %cst_32 = arith.constant 1.000000e+00 : f32
    %95 = vector.broadcast %cst_32 : f32 to vector<2x16xf32>
    %96 = arith.addf %95, %94 : vector<2x16xf32>
    %97 = arith.divf %95, %96 : vector<2x16xf32>
    %98 = arith.mulf %89, %68 : vector<2x16xf32>
    %99 = arith.mulf %83, %91 : vector<2x16xf32>
    %100 = arith.addf %98, %99 : vector<2x16xf32>
    %101 = math.tanh %100 : vector<2x16xf32>
    %102 = arith.mulf %97, %101 : vector<2x16xf32>
    %c0_33 = arith.constant 0 : index
    %c3 = arith.constant 3 : index
    %c0_34 = arith.constant 0 : index
    %103 = vector.load %arg0[%c0_33, %c3, %c0_34] : memref<2x4x64xf32, #tpu.memory_space<vmem>>, vector<2x1x64xf32>
    %104 = vector.shape_cast %103 : vector<2x1x64xf32> to vector<2x64xf32>
    %cst_35 = arith.constant dense<0.000000e+00> : vector<2x64xf32>
    %105 = tpu.matmul %104, %0, %cst_35 {dimension_numbers = #tpu.dot_dimension_numbers<[1], [0], [0], [1], [0, 0, 1, 1], [], []>} : vector<2x64xf32>, vector<64x64xf32>, vector<2x64xf32> -> vector<2x64xf32>
    %106 = vector.broadcast %2 : vector<1x64xf32> to vector<2x64xf32>
    %107 = arith.addf %105, %106 : vector<2x64xf32>
    %cst_36 = arith.constant dense<0.000000e+00> : vector<2x64xf32>
    %108 = tpu.matmul %102, %1, %cst_36 {dimension_numbers = #tpu.dot_dimension_numbers<[1], [0], [0], [1], [0, 0, 1, 1], [], []>} : vector<2x16xf32>, vector<16x64xf32>, vector<2x64xf32> -> vector<2x64xf32>
    %109 = arith.addf %107, %108 : vector<2x64xf32>
    %110 = vector.extract_strided_slice %109 {offsets = [0, 0], sizes = [2, 16], strides = [1, 1]} : vector<2x64xf32> to vector<2x16xf32>
    %111 = arith.negf %110 : vector<2x16xf32>
    %112 = math.exp %111 : vector<2x16xf32>
    %cst_37 = arith.constant 1.000000e+00 : f32
    %113 = vector.broadcast %cst_37 : f32 to vector<2x16xf32>
    %114 = arith.addf %113, %112 : vector<2x16xf32>
    %115 = arith.divf %113, %114 : vector<2x16xf32>
    %116 = vector.extract_strided_slice %109 {offsets = [0, 16], sizes = [2, 16], strides = [1, 1]} : vector<2x64xf32> to vector<2x16xf32>
    %117 = arith.negf %116 : vector<2x16xf32>
    %118 = math.exp %117 : vector<2x16xf32>
    %cst_38 = arith.constant 1.000000e+00 : f32
    %119 = vector.broadcast %cst_38 : f32 to vector<2x16xf32>
    %120 = arith.addf %119, %118 : vector<2x16xf32>
    %121 = arith.divf %119, %120 : vector<2x16xf32>
    %122 = vector.extract_strided_slice %109 {offsets = [0, 32], sizes = [2, 16], strides = [1, 1]} : vector<2x64xf32> to vector<2x16xf32>
    %123 = math.tanh %122 : vector<2x16xf32>
    %124 = vector.extract_strided_slice %109 {offsets = [0, 48], sizes = [2, 16], strides = [1, 1]} : vector<2x64xf32> to vector<2x16xf32>
    %125 = arith.negf %124 : vector<2x16xf32>
    %126 = math.exp %125 : vector<2x16xf32>
    %cst_39 = arith.constant 1.000000e+00 : f32
    %127 = vector.broadcast %cst_39 : f32 to vector<2x16xf32>
    %128 = arith.addf %127, %126 : vector<2x16xf32>
    %129 = arith.divf %127, %128 : vector<2x16xf32>
    %130 = arith.mulf %121, %100 : vector<2x16xf32>
    %131 = arith.mulf %115, %123 : vector<2x16xf32>
    %132 = arith.addf %130, %131 : vector<2x16xf32>
    %133 = math.tanh %132 : vector<2x16xf32>
    %134 = arith.mulf %129, %133 : vector<2x16xf32>
    %c0_40 = arith.constant 0 : index
    %c3_41 = arith.constant 3 : index
    %c0_42 = arith.constant 0 : index
    %135 = vector.load %arg0[%c0_40, %c3_41, %c0_42] : memref<2x4x64xf32, #tpu.memory_space<vmem>>, vector<2x1x64xf32>
    %136 = vector.shape_cast %135 : vector<2x1x64xf32> to vector<2x64xf32>
    %cst_43 = arith.constant dense<0.000000e+00> : vector<2x64xf32>
    %137 = tpu.matmul %136, %3, %cst_43 {dimension_numbers = #tpu.dot_dimension_numbers<[1], [0], [0], [1], [0, 0, 1, 1], [], []>} : vector<2x64xf32>, vector<64x64xf32>, vector<2x64xf32> -> vector<2x64xf32>
    %138 = vector.broadcast %5 : vector<1x64xf32> to vector<2x64xf32>
    %139 = arith.addf %137, %138 : vector<2x64xf32>
    %cst_44 = arith.constant dense<0.000000e+00> : vector<2x64xf32>
    %140 = tpu.matmul %6, %4, %cst_44 {dimension_numbers = #tpu.dot_dimension_numbers<[1], [0], [0], [1], [0, 0, 1, 1], [], []>} : vector<2x16xf32>, vector<16x64xf32>, vector<2x64xf32> -> vector<2x64xf32>
    %141 = arith.addf %139, %140 : vector<2x64xf32>
    %142 = vector.extract_strided_slice %141 {offsets = [0, 0], sizes = [2, 16], strides = [1, 1]} : vector<2x64xf32> to vector<2x16xf32>
    %143 = arith.negf %142 : vector<2x16xf32>
    %144 = math.exp %143 : vector<2x16xf32>
    %cst_45 = arith.constant 1.000000e+00 : f32
    %145 = vector.broadcast %cst_45 : f32 to vector<2x16xf32>
    %146 = arith.addf %145, %144 : vector<2x16xf32>
    %147 = arith.divf %145, %146 : vector<2x16xf32>
    %148 = vector.extract_strided_slice %141 {offsets = [0, 16], sizes = [2, 16], strides = [1, 1]} : vector<2x64xf32> to vector<2x16xf32>
    %149 = arith.negf %148 : vector<2x16xf32>
    %150 = math.exp %149 : vector<2x16xf32>
    %cst_46 = arith.constant 1.000000e+00 : f32
    %151 = vector.broadcast %cst_46 : f32 to vector<2x16xf32>
    %152 = arith.addf %151, %150 : vector<2x16xf32>
    %153 = arith.divf %151, %152 : vector<2x16xf32>
    %154 = vector.extract_strided_slice %141 {offsets = [0, 32], sizes = [2, 16], strides = [1, 1]} : vector<2x64xf32> to vector<2x16xf32>
    %155 = math.tanh %154 : vector<2x16xf32>
    %156 = vector.extract_strided_slice %141 {offsets = [0, 48], sizes = [2, 16], strides = [1, 1]} : vector<2x64xf32> to vector<2x16xf32>
    %157 = arith.negf %156 : vector<2x16xf32>
    %158 = math.exp %157 : vector<2x16xf32>
    %cst_47 = arith.constant 1.000000e+00 : f32
    %159 = vector.broadcast %cst_47 : f32 to vector<2x16xf32>
    %160 = arith.addf %159, %158 : vector<2x16xf32>
    %161 = arith.divf %159, %160 : vector<2x16xf32>
    %162 = arith.mulf %153, %6 : vector<2x16xf32>
    %163 = arith.mulf %147, %155 : vector<2x16xf32>
    %164 = arith.addf %162, %163 : vector<2x16xf32>
    %165 = math.tanh %164 : vector<2x16xf32>
    %166 = arith.mulf %161, %165 : vector<2x16xf32>
    %c0_48 = arith.constant 0 : index
    %c2_49 = arith.constant 2 : index
    %c0_50 = arith.constant 0 : index
    %167 = vector.load %arg0[%c0_48, %c2_49, %c0_50] : memref<2x4x64xf32, #tpu.memory_space<vmem>>, vector<2x1x64xf32>
    %168 = vector.shape_cast %167 : vector<2x1x64xf32> to vector<2x64xf32>
    %cst_51 = arith.constant dense<0.000000e+00> : vector<2x64xf32>
    %169 = tpu.matmul %168, %3, %cst_51 {dimension_numbers = #tpu.dot_dimension_numbers<[1], [0], [0], [1], [0, 0, 1, 1], [], []>} : vector<2x64xf32>, vector<64x64xf32>, vector<2x64xf32> -> vector<2x64xf32>
    %170 = vector.broadcast %5 : vector<1x64xf32> to vector<2x64xf32>
    %171 = arith.addf %169, %170 : vector<2x64xf32>
    %cst_52 = arith.constant dense<0.000000e+00> : vector<2x64xf32>
    %172 = tpu.matmul %166, %4, %cst_52 {dimension_numbers = #tpu.dot_dimension_numbers<[1], [0], [0], [1], [0, 0, 1, 1], [], []>} : vector<2x16xf32>, vector<16x64xf32>, vector<2x64xf32> -> vector<2x64xf32>
    %173 = arith.addf %171, %172 : vector<2x64xf32>
    %174 = vector.extract_strided_slice %173 {offsets = [0, 0], sizes = [2, 16], strides = [1, 1]} : vector<2x64xf32> to vector<2x16xf32>
    %175 = arith.negf %174 : vector<2x16xf32>
    %176 = math.exp %175 : vector<2x16xf32>
    %cst_53 = arith.constant 1.000000e+00 : f32
    %177 = vector.broadcast %cst_53 : f32 to vector<2x16xf32>
    %178 = arith.addf %177, %176 : vector<2x16xf32>
    %179 = arith.divf %177, %178 : vector<2x16xf32>
    %180 = vector.extract_strided_slice %173 {offsets = [0, 16], sizes = [2, 16], strides = [1, 1]} : vector<2x64xf32> to vector<2x16xf32>
    %181 = arith.negf %180 : vector<2x16xf32>
    %182 = math.exp %181 : vector<2x16xf32>
    %cst_54 = arith.constant 1.000000e+00 : f32
    %183 = vector.broadcast %cst_54 : f32 to vector<2x16xf32>
    %184 = arith.addf %183, %182 : vector<2x16xf32>
    %185 = arith.divf %183, %184 : vector<2x16xf32>
    %186 = vector.extract_strided_slice %173 {offsets = [0, 32], sizes = [2, 16], strides = [1, 1]} : vector<2x64xf32> to vector<2x16xf32>
    %187 = math.tanh %186 : vector<2x16xf32>
    %188 = vector.extract_strided_slice %173 {offsets = [0, 48], sizes = [2, 16], strides = [1, 1]} : vector<2x64xf32> to vector<2x16xf32>
    %189 = arith.negf %188 : vector<2x16xf32>
    %190 = math.exp %189 : vector<2x16xf32>
    %cst_55 = arith.constant 1.000000e+00 : f32
    %191 = vector.broadcast %cst_55 : f32 to vector<2x16xf32>
    %192 = arith.addf %191, %190 : vector<2x16xf32>
    %193 = arith.divf %191, %192 : vector<2x16xf32>
    %194 = arith.mulf %185, %164 : vector<2x16xf32>
    %195 = arith.mulf %179, %187 : vector<2x16xf32>
    %196 = arith.addf %194, %195 : vector<2x16xf32>
    %197 = math.tanh %196 : vector<2x16xf32>
    %198 = arith.mulf %193, %197 : vector<2x16xf32>
    %c0_56 = arith.constant 0 : index
    %c1_57 = arith.constant 1 : index
    %c0_58 = arith.constant 0 : index
    %199 = vector.load %arg0[%c0_56, %c1_57, %c0_58] : memref<2x4x64xf32, #tpu.memory_space<vmem>>, vector<2x1x64xf32>
    %200 = vector.shape_cast %199 : vector<2x1x64xf32> to vector<2x64xf32>
    %cst_59 = arith.constant dense<0.000000e+00> : vector<2x64xf32>
    %201 = tpu.matmul %200, %3, %cst_59 {dimension_numbers = #tpu.dot_dimension_numbers<[1], [0], [0], [1], [0, 0, 1, 1], [], []>} : vector<2x64xf32>, vector<64x64xf32>, vector<2x64xf32> -> vector<2x64xf32>
    %202 = vector.broadcast %5 : vector<1x64xf32> to vector<2x64xf32>
    %203 = arith.addf %201, %202 : vector<2x64xf32>
    %cst_60 = arith.constant dense<0.000000e+00> : vector<2x64xf32>
    %204 = tpu.matmul %198, %4, %cst_60 {dimension_numbers = #tpu.dot_dimension_numbers<[1], [0], [0], [1], [0, 0, 1, 1], [], []>} : vector<2x16xf32>, vector<16x64xf32>, vector<2x64xf32> -> vector<2x64xf32>
    %205 = arith.addf %203, %204 : vector<2x64xf32>
    %206 = vector.extract_strided_slice %205 {offsets = [0, 0], sizes = [2, 16], strides = [1, 1]} : vector<2x64xf32> to vector<2x16xf32>
    %207 = arith.negf %206 : vector<2x16xf32>
    %208 = math.exp %207 : vector<2x16xf32>
    %cst_61 = arith.constant 1.000000e+00 : f32
    %209 = vector.broadcast %cst_61 : f32 to vector<2x16xf32>
    %210 = arith.addf %209, %208 : vector<2x16xf32>
    %211 = arith.divf %209, %210 : vector<2x16xf32>
    %212 = vector.extract_strided_slice %205 {offsets = [0, 16], sizes = [2, 16], strides = [1, 1]} : vector<2x64xf32> to vector<2x16xf32>
    %213 = arith.negf %212 : vector<2x16xf32>
    %214 = math.exp %213 : vector<2x16xf32>
    %cst_62 = arith.constant 1.000000e+00 : f32
    %215 = vector.broadcast %cst_62 : f32 to vector<2x16xf32>
    %216 = arith.addf %215, %214 : vector<2x16xf32>
    %217 = arith.divf %215, %216 : vector<2x16xf32>
    %218 = vector.extract_strided_slice %205 {offsets = [0, 32], sizes = [2, 16], strides = [1, 1]} : vector<2x64xf32> to vector<2x16xf32>
    %219 = math.tanh %218 : vector<2x16xf32>
    %220 = vector.extract_strided_slice %205 {offsets = [0, 48], sizes = [2, 16], strides = [1, 1]} : vector<2x64xf32> to vector<2x16xf32>
    %221 = arith.negf %220 : vector<2x16xf32>
    %222 = math.exp %221 : vector<2x16xf32>
    %cst_63 = arith.constant 1.000000e+00 : f32
    %223 = vector.broadcast %cst_63 : f32 to vector<2x16xf32>
    %224 = arith.addf %223, %222 : vector<2x16xf32>
    %225 = arith.divf %223, %224 : vector<2x16xf32>
    %226 = arith.mulf %217, %196 : vector<2x16xf32>
    %227 = arith.mulf %211, %219 : vector<2x16xf32>
    %228 = arith.addf %226, %227 : vector<2x16xf32>
    %229 = math.tanh %228 : vector<2x16xf32>
    %230 = arith.mulf %225, %229 : vector<2x16xf32>
    %c0_64 = arith.constant 0 : index
    %c0_65 = arith.constant 0 : index
    %c0_66 = arith.constant 0 : index
    %231 = vector.load %arg0[%c0_64, %c0_65, %c0_66] : memref<2x4x64xf32, #tpu.memory_space<vmem>>, vector<2x1x64xf32>
    %232 = vector.shape_cast %231 : vector<2x1x64xf32> to vector<2x64xf32>
    %cst_67 = arith.constant dense<0.000000e+00> : vector<2x64xf32>
    %233 = tpu.matmul %232, %3, %cst_67 {dimension_numbers = #tpu.dot_dimension_numbers<[1], [0], [0], [1], [0, 0, 1, 1], [], []>} : vector<2x64xf32>, vector<64x64xf32>, vector<2x64xf32> -> vector<2x64xf32>
    %234 = vector.broadcast %5 : vector<1x64xf32> to vector<2x64xf32>
    %235 = arith.addf %233, %234 : vector<2x64xf32>
    %cst_68 = arith.constant dense<0.000000e+00> : vector<2x64xf32>
    %236 = tpu.matmul %230, %4, %cst_68 {dimension_numbers = #tpu.dot_dimension_numbers<[1], [0], [0], [1], [0, 0, 1, 1], [], []>} : vector<2x16xf32>, vector<16x64xf32>, vector<2x64xf32> -> vector<2x64xf32>
    %237 = arith.addf %235, %236 : vector<2x64xf32>
    %238 = vector.extract_strided_slice %237 {offsets = [0, 0], sizes = [2, 16], strides = [1, 1]} : vector<2x64xf32> to vector<2x16xf32>
    %239 = arith.negf %238 : vector<2x16xf32>
    %240 = math.exp %239 : vector<2x16xf32>
    %cst_69 = arith.constant 1.000000e+00 : f32
    %241 = vector.broadcast %cst_69 : f32 to vector<2x16xf32>
    %242 = arith.addf %241, %240 : vector<2x16xf32>
    %243 = arith.divf %241, %242 : vector<2x16xf32>
    %244 = vector.extract_strided_slice %237 {offsets = [0, 16], sizes = [2, 16], strides = [1, 1]} : vector<2x64xf32> to vector<2x16xf32>
    %245 = arith.negf %244 : vector<2x16xf32>
    %246 = math.exp %245 : vector<2x16xf32>
    %cst_70 = arith.constant 1.000000e+00 : f32
    %247 = vector.broadcast %cst_70 : f32 to vector<2x16xf32>
    %248 = arith.addf %247, %246 : vector<2x16xf32>
    %249 = arith.divf %247, %248 : vector<2x16xf32>
    %250 = vector.extract_strided_slice %237 {offsets = [0, 32], sizes = [2, 16], strides = [1, 1]} : vector<2x64xf32> to vector<2x16xf32>
    %251 = math.tanh %250 : vector<2x16xf32>
    %252 = vector.extract_strided_slice %237 {offsets = [0, 48], sizes = [2, 16], strides = [1, 1]} : vector<2x64xf32> to vector<2x16xf32>
    %253 = arith.negf %252 : vector<2x16xf32>
    %254 = math.exp %253 : vector<2x16xf32>
    %cst_71 = arith.constant 1.000000e+00 : f32
    %255 = vector.broadcast %cst_71 : f32 to vector<2x16xf32>
    %256 = arith.addf %255, %254 : vector<2x16xf32>
    %257 = arith.divf %255, %256 : vector<2x16xf32>
    %258 = arith.mulf %249, %228 : vector<2x16xf32>
    %259 = arith.mulf %243, %251 : vector<2x16xf32>
    %260 = arith.addf %258, %259 : vector<2x16xf32>
    %261 = math.tanh %260 : vector<2x16xf32>
    %262 = arith.mulf %257, %261 : vector<2x16xf32>
    %c0_72 = arith.constant 0 : index
    %c0_73 = arith.constant 0 : index
    %263 = vector.load %arg7[%c0_72, %c0_73] : memref<32x128xf32, #tpu.memory_space<vmem>>, vector<32x128xf32>
    %c0_74 = arith.constant 0 : index
    %c0_75 = arith.constant 0 : index
    %264 = vector.load %arg8[%c0_74, %c0_75] : memref<1x128xf32, #tpu.memory_space<vmem>>, vector<1x128xf32>
    %265 = tpu.concatenate %38, %262 in 1 : vector<2x16xf32>, vector<2x16xf32> -> vector<2x32xf32>
    %cst_76 = arith.constant dense<0.000000e+00> : vector<2x128xf32>
    %266 = tpu.matmul %265, %263, %cst_76 {dimension_numbers = #tpu.dot_dimension_numbers<[1], [0], [0], [1], [0, 0, 1, 1], [], []>} : vector<2x32xf32>, vector<32x128xf32>, vector<2x128xf32> -> vector<2x128xf32>
    %267 = vector.broadcast %264 : vector<1x128xf32> to vector<2x128xf32>
    %268 = arith.addf %266, %267 : vector<2x128xf32>
    %c0_77 = arith.constant 0 : index
    %c0_78 = arith.constant 0 : index
    %c0_79 = arith.constant 0 : index
    %269 = vector.load %arg9[%c0_77, %c0_78, %c0_79] : memref<2x4x128xf32, #tpu.memory_space<vmem>>, vector<2x1x128xf32>
    %270 = vector.shape_cast %269 : vector<2x1x128xf32> to vector<2x128xf32>
    %271 = vector.shape_cast %268 : vector<2x128xf32> to vector<2x1x128xf32>
    tpu.vector_store %arg9[%c0_77, %c0_78, %c0_79], %271 {strides = array<i32>} : memref<2x4x128xf32, #tpu.memory_space<vmem>>, vector<2x1x128xf32>,
    %272 = tpu.concatenate %70, %230 in 1 : vector<2x16xf32>, vector<2x16xf32> -> vector<2x32xf32>
    %cst_80 = arith.constant dense<0.000000e+00> : vector<2x128xf32>
    %273 = tpu.matmul %272, %263, %cst_80 {dimension_numbers = #tpu.dot_dimension_numbers<[1], [0], [0], [1], [0, 0, 1, 1], [], []>} : vector<2x32xf32>, vector<32x128xf32>, vector<2x128xf32> -> vector<2x128xf32>
    %274 = vector.broadcast %264 : vector<1x128xf32> to vector<2x128xf32>
    %275 = arith.addf %273, %274 : vector<2x128xf32>
    %c0_81 = arith.constant 0 : index
    %c1_82 = arith.constant 1 : index
    %c0_83 = arith.constant 0 : index
    %276 = vector.load %arg9[%c0_81, %c1_82, %c0_83] : memref<2x4x128xf32, #tpu.memory_space<vmem>>, vector<2x1x128xf32>
    %277 = vector.shape_cast %276 : vector<2x1x128xf32> to vector<2x128xf32>
    %278 = vector.shape_cast %275 : vector<2x128xf32> to vector<2x1x128xf32>
    tpu.vector_store %arg9[%c0_81, %c1_82, %c0_83], %278 {strides = array<i32>} : memref<2x4x128xf32, #tpu.memory_space<vmem>>, vector<2x1x128xf32>,
    %279 = tpu.concatenate %102, %198 in 1 : vector<2x16xf32>, vector<2x16xf32> -> vector<2x32xf32>
    %cst_84 = arith.constant dense<0.000000e+00> : vector<2x128xf32>
    %280 = tpu.matmul %279, %263, %cst_84 {dimension_numbers = #tpu.dot_dimension_numbers<[1], [0], [0], [1], [0, 0, 1, 1], [], []>} : vector<2x32xf32>, vector<32x128xf32>, vector<2x128xf32> -> vector<2x128xf32>
    %281 = vector.broadcast %264 : vector<1x128xf32> to vector<2x128xf32>
    %282 = arith.addf %280, %281 : vector<2x128xf32>
    %c0_85 = arith.constant 0 : index
    %c2_86 = arith.constant 2 : index
    %c0_87 = arith.constant 0 : index
    %283 = vector.load %arg9[%c0_85, %c2_86, %c0_87] : memref<2x4x128xf32, #tpu.memory_space<vmem>>, vector<2x1x128xf32>
    %284 = vector.shape_cast %283 : vector<2x1x128xf32> to vector<2x128xf32>
    %285 = vector.shape_cast %282 : vector<2x128xf32> to vector<2x1x128xf32>
    tpu.vector_store %arg9[%c0_85, %c2_86, %c0_87], %285 {strides = array<i32>} : memref<2x4x128xf32, #tpu.memory_space<vmem>>, vector<2x1x128xf32>,
    %286 = tpu.concatenate %134, %166 in 1 : vector<2x16xf32>, vector<2x16xf32> -> vector<2x32xf32>
    %cst_88 = arith.constant dense<0.000000e+00> : vector<2x128xf32>
    %287 = tpu.matmul %286, %263, %cst_88 {dimension_numbers = #tpu.dot_dimension_numbers<[1], [0], [0], [1], [0, 0, 1, 1], [], []>} : vector<2x32xf32>, vector<32x128xf32>, vector<2x128xf32> -> vector<2x128xf32>
    %288 = vector.broadcast %264 : vector<1x128xf32> to vector<2x128xf32>
    %289 = arith.addf %287, %288 : vector<2x128xf32>
    %c0_89 = arith.constant 0 : index
    %c3_90 = arith.constant 3 : index
    %c0_91 = arith.constant 0 : index
    %290 = vector.load %arg9[%c0_89, %c3_90, %c0_91] : memref<2x4x128xf32, #tpu.memory_space<vmem>>, vector<2x1x128xf32>
    %291 = vector.shape_cast %290 : vector<2x1x128xf32> to vector<2x128xf32>
    %292 = vector.shape_cast %289 : vector<2x128xf32> to vector<2x1x128xf32>
    tpu.vector_store %arg9[%c0_89, %c3_90, %c0_91], %292 {strides = array<i32>} : memref<2x4x128xf32, #tpu.memory_space<vmem>>, vector<2x1x128xf32>,
    return
  }
}

module attributes {stable_mosaic.version = 11 : i64} {
  func.func @_text_encoder_kernel(%arg0: i32, %arg1: memref<4x8x32xf32, #tpu.memory_space<vmem>>, %arg2: memref<4x1x8xf32, #tpu.memory_space<vmem>>, %arg3: memref<1x32xf32, #tpu.memory_space<vmem>>, %arg4: memref<1x32xf32, #tpu.memory_space<vmem>>, %arg5: memref<2x32x96xf32, #tpu.memory_space<vmem>>, %arg6: memref<2x1x96xf32, #tpu.memory_space<vmem>>, %arg7: memref<2x32x32xf32, #tpu.memory_space<vmem>>, %arg8: memref<2x1x32xf32, #tpu.memory_space<vmem>>, %arg9: memref<2x1x32xf32, #tpu.memory_space<vmem>>, %arg10: memref<2x1x32xf32, #tpu.memory_space<vmem>>, %arg11: memref<2x32x128xf32, #tpu.memory_space<vmem>>, %arg12: memref<2x1x128xf32, #tpu.memory_space<vmem>>, %arg13: memref<2x128x32xf32, #tpu.memory_space<vmem>>, %arg14: memref<2x1x32xf32, #tpu.memory_space<vmem>>, %arg15: memref<2x1x32xf32, #tpu.memory_space<vmem>>, %arg16: memref<2x1x32xf32, #tpu.memory_space<vmem>>, %arg17: memref<32x32xf32, #tpu.memory_space<vmem>>, %arg18: memref<1x32xf32, #tpu.memory_space<vmem>>, %arg19: memref<4x1x32xf32, #tpu.memory_space<vmem>>) attributes {dimension_semantics = [#tpu.dimension_semantics<parallel>], iteration_bounds = array<i64: 2>, scalar_prefetch = 0 : i64, scratch_operands = 0 : i64, tpu.core_type = #tpu.core_type<tc>, window_params = [{transform_indices = @transform_0, window_bounds = array<i64: 4, 8, 32>}, {transform_indices = @transform_1, window_bounds = array<i64: 4, 1, 8>}, {pipeline_mode = #tpu.pipeline_mode<synchronous>, transform_indices = @transform_2, window_bounds = array<i64: 1, 32>}, {pipeline_mode = #tpu.pipeline_mode<synchronous>, transform_indices = @transform_3, window_bounds = array<i64: 1, 32>}, {pipeline_mode = #tpu.pipeline_mode<synchronous>, transform_indices = @transform_4, window_bounds = array<i64: 2, 32, 96>}, {pipeline_mode = #tpu.pipeline_mode<synchronous>, transform_indices = @transform_5, window_bounds = array<i64: 2, 1, 96>}, {pipeline_mode = #tpu.pipeline_mode<synchronous>, transform_indices = @transform_6, window_bounds = array<i64: 2, 32, 32>}, {pipeline_mode = #tpu.pipeline_mode<synchronous>, transform_indices = @transform_7, window_bounds = array<i64: 2, 1, 32>}, {pipeline_mode = #tpu.pipeline_mode<synchronous>, transform_indices = @transform_8, window_bounds = array<i64: 2, 1, 32>}, {pipeline_mode = #tpu.pipeline_mode<synchronous>, transform_indices = @transform_9, window_bounds = array<i64: 2, 1, 32>}, {pipeline_mode = #tpu.pipeline_mode<synchronous>, transform_indices = @transform_10, window_bounds = array<i64: 2, 32, 128>}, {pipeline_mode = #tpu.pipeline_mode<synchronous>, transform_indices = @transform_11, window_bounds = array<i64: 2, 1, 128>}, {pipeline_mode = #tpu.pipeline_mode<synchronous>, transform_indices = @transform_12, window_bounds = array<i64: 2, 128, 32>}, {pipeline_mode = #tpu.pipeline_mode<synchronous>, transform_indices = @transform_13, window_bounds = array<i64: 2, 1, 32>}, {pipeline_mode = #tpu.pipeline_mode<synchronous>, transform_indices = @transform_14, window_bounds = array<i64: 2, 1, 32>}, {pipeline_mode = #tpu.pipeline_mode<synchronous>, transform_indices = @transform_15, window_bounds = array<i64: 2, 1, 32>}, {pipeline_mode = #tpu.pipeline_mode<synchronous>, transform_indices = @transform_16, window_bounds = array<i64: 32, 32>}, {pipeline_mode = #tpu.pipeline_mode<synchronous>, transform_indices = @transform_17, window_bounds = array<i64: 1, 32>}, {transform_indices = @transform_18, window_bounds = array<i64: 4, 1, 32>}]} {
    %c0 = arith.constant 0 : index
    %c0_0 = arith.constant 0 : index
    %c0_1 = arith.constant 0 : index
    %0 = vector.load %arg2[%c0, %c0_0, %c0_1] : memref<4x1x8xf32, #tpu.memory_space<vmem>>, vector<4x1x8xf32>
    %cst = arith.constant 1.000000e+00 : f32
    %1 = vector.broadcast %cst : f32 to vector<4x1x8xf32>
    %2 = arith.subf %1, %0 : vector<4x1x8xf32>
    %cst_2 = arith.constant -1.000000e+04 : f32
    %3 = vector.broadcast %cst_2 : f32 to vector<4x1x8xf32>
    %4 = arith.mulf %2, %3 : vector<4x1x8xf32>
    %c0_3 = arith.constant 0 : index
    %c0_4 = arith.constant 0 : index
    %c0_5 = arith.constant 0 : index
    %5 = vector.load %arg1[%c0_3, %c0_4, %c0_5] : memref<4x8x32xf32, #tpu.memory_space<vmem>>, vector<4x8x32xf32>
    %6 = vector.shape_cast %5 : vector<4x8x32xf32> to vector<32x32xf32>
    %c0_6 = arith.constant 0 : index
    %c0_7 = arith.constant 0 : index
    %7 = vector.load %arg3[%c0_6, %c0_7] : memref<1x32xf32, #tpu.memory_space<vmem>>, vector<1x32xf32>
    %c0_8 = arith.constant 0 : index
    %c0_9 = arith.constant 0 : index
    %8 = vector.load %arg4[%c0_8, %c0_9] : memref<1x32xf32, #tpu.memory_space<vmem>>, vector<1x32xf32>
    %cst_10 = arith.constant dense<0.000000e+00> : vector<32xf32>
    %9 = vector.multi_reduction <add>, %6, %cst_10 [1] : vector<32x32xf32> to vector<32xf32>
    %10 = vector.shape_cast %9 : vector<32xf32> to vector<32x1xf32>
    %cst_11 = arith.constant 3.200000e+01 : f32
    %11 = vector.broadcast %cst_11 : f32 to vector<32x1xf32>
    %12 = arith.divf %10, %11 : vector<32x1xf32>
    %13 = vector.broadcast %12 : vector<32x1xf32> to vector<32x32xf32>
    %14 = arith.subf %6, %13 : vector<32x32xf32>
    %15 = arith.mulf %14, %14 : vector<32x32xf32>
    %cst_12 = arith.constant dense<0.000000e+00> : vector<32xf32>
    %16 = vector.multi_reduction <add>, %15, %cst_12 [1] : vector<32x32xf32> to vector<32xf32>
    %17 = vector.shape_cast %16 : vector<32xf32> to vector<32x1xf32>
    %cst_13 = arith.constant 3.200000e+01 : f32
    %18 = vector.broadcast %cst_13 : f32 to vector<32x1xf32>
    %19 = arith.divf %17, %18 : vector<32x1xf32>
    %20 = vector.broadcast %12 : vector<32x1xf32> to vector<32x32xf32>
    %21 = arith.subf %6, %20 : vector<32x32xf32>
    %cst_14 = arith.constant 9.99999996E-13 : f32
    %22 = vector.broadcast %cst_14 : f32 to vector<32x1xf32>
    %23 = arith.addf %19, %22 : vector<32x1xf32>
    %24 = math.rsqrt %23 : vector<32x1xf32>
    %25 = vector.broadcast %24 : vector<32x1xf32> to vector<32x32xf32>
    %26 = arith.mulf %21, %25 : vector<32x32xf32>
    %27 = vector.broadcast %7 : vector<1x32xf32> to vector<32x32xf32>
    %28 = arith.mulf %26, %27 : vector<32x32xf32>
    %29 = vector.broadcast %8 : vector<1x32xf32> to vector<32x32xf32>
    %30 = arith.addf %28, %29 : vector<32x32xf32>
    %c0_15 = arith.constant 0 : index
    %c0_16 = arith.constant 0 : index
    %c0_17 = arith.constant 0 : index
    %31 = vector.load %arg5[%c0_15, %c0_16, %c0_17] : memref<2x32x96xf32, #tpu.memory_space<vmem>>, vector<1x32x96xf32>
    %32 = vector.shape_cast %31 : vector<1x32x96xf32> to vector<32x96xf32>
    %cst_18 = arith.constant dense<0.000000e+00> : vector<32x96xf32>
    %33 = tpu.matmul %30, %32, %cst_18 {dimension_numbers = #tpu.dot_dimension_numbers<[1], [0], [0], [1], [0, 0, 1, 1], [], []>} : vector<32x32xf32>, vector<32x96xf32>, vector<32x96xf32> -> vector<32x96xf32>
    %c0_19 = arith.constant 0 : index
    %c0_20 = arith.constant 0 : index
    %c0_21 = arith.constant 0 : index
    %34 = vector.load %arg6[%c0_19, %c0_20, %c0_21] : memref<2x1x96xf32, #tpu.memory_space<vmem>>, vector<1x1x96xf32>
    %35 = vector.shape_cast %34 : vector<1x1x96xf32> to vector<1x96xf32>
    %36 = vector.broadcast %35 : vector<1x96xf32> to vector<32x96xf32>
    %37 = arith.addf %33, %36 : vector<32x96xf32>
    %38 = vector.extract_strided_slice %37 {offsets = [0, 0], sizes = [32, 32], strides = [1, 1]} : vector<32x96xf32> to vector<32x32xf32>
    %39 = vector.shape_cast %38 : vector<32x32xf32> to vector<4x8x32xf32>
    %40 = vector.extract_strided_slice %37 {offsets = [0, 32], sizes = [32, 32], strides = [1, 1]} : vector<32x96xf32> to vector<32x32xf32>
    %41 = vector.shape_cast %40 : vector<32x32xf32> to vector<4x8x32xf32>
    %42 = vector.extract_strided_slice %37 {offsets = [0, 64], sizes = [32, 32], strides = [1, 1]} : vector<32x96xf32> to vector<32x32xf32>
    %43 = vector.shape_cast %42 : vector<32x32xf32> to vector<4x8x32xf32>
    %44 = vector.extract_strided_slice %39 {offsets = [0, 0, 0], sizes = [4, 8, 16], strides = [1, 1, 1]} : vector<4x8x32xf32> to vector<4x8x16xf32>
    %45 = vector.extract_strided_slice %41 {offsets = [0, 0, 0], sizes = [4, 8, 16], strides = [1, 1, 1]} : vector<4x8x32xf32> to vector<4x8x16xf32>
    "tpu.trace_start"() <{level = 10 : i32, message = "bqd,bkd->bqk"}> : () -> ()
    %cst_22 = arith.constant dense<0.000000e+00> : vector<4x8x8xf32>
    %46 = tpu.matmul %44, %45, %cst_22 {dimension_numbers = #tpu.dot_dimension_numbers<[2], [2], [1], [1], [0, 0, 0, 1, 1, 1], [0], [0]>} : vector<4x8x16xf32>, vector<4x8x16xf32>, vector<4x8x8xf32> -> vector<4x8x8xf32>
    "tpu.trace_stop"() : () -> ()
    %cst_23 = arith.constant 2.500000e-01 : f32
    %47 = vector.broadcast %cst_23 : f32 to vector<4x8x8xf32>
    %48 = arith.mulf %46, %47 : vector<4x8x8xf32>
    %49 = vector.broadcast %4 : vector<4x1x8xf32> to vector<4x8x8xf32>
    %50 = arith.addf %48, %49 : vector<4x8x8xf32>
    %cst_24 = arith.constant dense<0xFF800000> : vector<4x8xf32>
    %51 = vector.multi_reduction <maximumf>, %50, %cst_24 [2] : vector<4x8x8xf32> to vector<4x8xf32>
    %52 = vector.shape_cast %51 : vector<4x8xf32> to vector<4x8x1xf32>
    %53 = vector.broadcast %52 : vector<4x8x1xf32> to vector<4x8x8xf32>
    %54 = arith.subf %50, %53 : vector<4x8x8xf32>
    %55 = math.exp %54 : vector<4x8x8xf32>
    %cst_25 = arith.constant dense<0.000000e+00> : vector<4x8xf32>
    %56 = vector.multi_reduction <add>, %55, %cst_25 [2] : vector<4x8x8xf32> to vector<4x8xf32>
    %57 = vector.shape_cast %56 : vector<4x8xf32> to vector<4x8x1xf32>
    %58 = tpu.reciprocal %57 {approx = true} : vector<4x8x1xf32> -> vector<4x8x1xf32>
    %59 = vector.broadcast %58 : vector<4x8x1xf32> to vector<4x8x8xf32>
    %60 = arith.mulf %55, %59 : vector<4x8x8xf32>
    %61 = vector.extract_strided_slice %43 {offsets = [0, 0, 0], sizes = [4, 8, 16], strides = [1, 1, 1]} : vector<4x8x32xf32> to vector<4x8x16xf32>
    "tpu.trace_start"() <{level = 10 : i32, message = "bqk,bkd->bqd"}> : () -> ()
    %cst_26 = arith.constant dense<0.000000e+00> : vector<4x8x16xf32>
    %62 = tpu.matmul %60, %61, %cst_26 {dimension_numbers = #tpu.dot_dimension_numbers<[2], [1], [1], [2], [0, 0, 0, 1, 1, 2], [0], [0]>} : vector<4x8x8xf32>, vector<4x8x16xf32>, vector<4x8x16xf32> -> vector<4x8x16xf32>
    "tpu.trace_stop"() : () -> ()
    %63 = vector.extract_strided_slice %39 {offsets = [0, 0, 16], sizes = [4, 8, 16], strides = [1, 1, 1]} : vector<4x8x32xf32> to vector<4x8x16xf32>
    %64 = vector.extract_strided_slice %41 {offsets = [0, 0, 16], sizes = [4, 8, 16], strides = [1, 1, 1]} : vector<4x8x32xf32> to vector<4x8x16xf32>
    "tpu.trace_start"() <{level = 10 : i32, message = "bqd,bkd->bqk"}> : () -> ()
    %cst_27 = arith.constant dense<0.000000e+00> : vector<4x8x8xf32>
    %65 = tpu.matmul %63, %64, %cst_27 {dimension_numbers = #tpu.dot_dimension_numbers<[2], [2], [1], [1], [0, 0, 0, 1, 1, 1], [0], [0]>} : vector<4x8x16xf32>, vector<4x8x16xf32>, vector<4x8x8xf32> -> vector<4x8x8xf32>
    "tpu.trace_stop"() : () -> ()
    %cst_28 = arith.constant 2.500000e-01 : f32
    %66 = vector.broadcast %cst_28 : f32 to vector<4x8x8xf32>
    %67 = arith.mulf %65, %66 : vector<4x8x8xf32>
    %68 = vector.broadcast %4 : vector<4x1x8xf32> to vector<4x8x8xf32>
    %69 = arith.addf %67, %68 : vector<4x8x8xf32>
    %cst_29 = arith.constant dense<0xFF800000> : vector<4x8xf32>
    %70 = vector.multi_reduction <maximumf>, %69, %cst_29 [2] : vector<4x8x8xf32> to vector<4x8xf32>
    %71 = vector.shape_cast %70 : vector<4x8xf32> to vector<4x8x1xf32>
    %72 = vector.broadcast %71 : vector<4x8x1xf32> to vector<4x8x8xf32>
    %73 = arith.subf %69, %72 : vector<4x8x8xf32>
    %74 = math.exp %73 : vector<4x8x8xf32>
    %cst_30 = arith.constant dense<0.000000e+00> : vector<4x8xf32>
    %75 = vector.multi_reduction <add>, %74, %cst_30 [2] : vector<4x8x8xf32> to vector<4x8xf32>
    %76 = vector.shape_cast %75 : vector<4x8xf32> to vector<4x8x1xf32>
    %77 = tpu.reciprocal %76 {approx = true} : vector<4x8x1xf32> -> vector<4x8x1xf32>
    %78 = vector.broadcast %77 : vector<4x8x1xf32> to vector<4x8x8xf32>
    %79 = arith.mulf %74, %78 : vector<4x8x8xf32>
    %80 = vector.extract_strided_slice %43 {offsets = [0, 0, 16], sizes = [4, 8, 16], strides = [1, 1, 1]} : vector<4x8x32xf32> to vector<4x8x16xf32>
    "tpu.trace_start"() <{level = 10 : i32, message = "bqk,bkd->bqd"}> : () -> ()
    %cst_31 = arith.constant dense<0.000000e+00> : vector<4x8x16xf32>
    %81 = tpu.matmul %79, %80, %cst_31 {dimension_numbers = #tpu.dot_dimension_numbers<[2], [1], [1], [2], [0, 0, 0, 1, 1, 2], [0], [0]>} : vector<4x8x8xf32>, vector<4x8x16xf32>, vector<4x8x16xf32> -> vector<4x8x16xf32>
    "tpu.trace_stop"() : () -> ()
    %82 = tpu.concatenate %62, %81 in 2 : vector<4x8x16xf32>, vector<4x8x16xf32> -> vector<4x8x32xf32>
    %83 = vector.shape_cast %82 : vector<4x8x32xf32> to vector<32x32xf32>
    %c0_32 = arith.constant 0 : index
    %c0_33 = arith.constant 0 : index
    %c0_34 = arith.constant 0 : index
    %84 = vector.load %arg7[%c0_32, %c0_33, %c0_34] : memref<2x32x32xf32, #tpu.memory_space<vmem>>, vector<1x32x32xf32>
    %85 = vector.shape_cast %84 : vector<1x32x32xf32> to vector<32x32xf32>
    %cst_35 = arith.constant dense<0.000000e+00> : vector<32x32xf32>
    %86 = tpu.matmul %83, %85, %cst_35 {dimension_numbers = #tpu.dot_dimension_numbers<[1], [0], [0], [1], [0, 0, 1, 1], [], []>} : vector<32x32xf32>, vector<32x32xf32>, vector<32x32xf32> -> vector<32x32xf32>
    %c0_36 = arith.constant 0 : index
    %c0_37 = arith.constant 0 : index
    %c0_38 = arith.constant 0 : index
    %87 = vector.load %arg8[%c0_36, %c0_37, %c0_38] : memref<2x1x32xf32, #tpu.memory_space<vmem>>, vector<1x1x32xf32>
    %88 = vector.shape_cast %87 : vector<1x1x32xf32> to vector<1x32xf32>
    %89 = vector.broadcast %88 : vector<1x32xf32> to vector<32x32xf32>
    %90 = arith.addf %86, %89 : vector<32x32xf32>
    %91 = arith.addf %90, %30 : vector<32x32xf32>
    %c0_39 = arith.constant 0 : index
    %c0_40 = arith.constant 0 : index
    %c0_41 = arith.constant 0 : index
    %92 = vector.load %arg9[%c0_39, %c0_40, %c0_41] : memref<2x1x32xf32, #tpu.memory_space<vmem>>, vector<1x1x32xf32>
    %93 = vector.shape_cast %92 : vector<1x1x32xf32> to vector<1x32xf32>
    %c0_42 = arith.constant 0 : index
    %c0_43 = arith.constant 0 : index
    %c0_44 = arith.constant 0 : index
    %94 = vector.load %arg10[%c0_42, %c0_43, %c0_44] : memref<2x1x32xf32, #tpu.memory_space<vmem>>, vector<1x1x32xf32>
    %95 = vector.shape_cast %94 : vector<1x1x32xf32> to vector<1x32xf32>
    %cst_45 = arith.constant dense<0.000000e+00> : vector<32xf32>
    %96 = vector.multi_reduction <add>, %91, %cst_45 [1] : vector<32x32xf32> to vector<32xf32>
    %97 = vector.shape_cast %96 : vector<32xf32> to vector<32x1xf32>
    %cst_46 = arith.constant 3.200000e+01 : f32
    %98 = vector.broadcast %cst_46 : f32 to vector<32x1xf32>
    %99 = arith.divf %97, %98 : vector<32x1xf32>
    %100 = vector.broadcast %99 : vector<32x1xf32> to vector<32x32xf32>
    %101 = arith.subf %91, %100 : vector<32x32xf32>
    %102 = arith.mulf %101, %101 : vector<32x32xf32>
    %cst_47 = arith.constant dense<0.000000e+00> : vector<32xf32>
    %103 = vector.multi_reduction <add>, %102, %cst_47 [1] : vector<32x32xf32> to vector<32xf32>
    %104 = vector.shape_cast %103 : vector<32xf32> to vector<32x1xf32>
    %cst_48 = arith.constant 3.200000e+01 : f32
    %105 = vector.broadcast %cst_48 : f32 to vector<32x1xf32>
    %106 = arith.divf %104, %105 : vector<32x1xf32>
    %107 = vector.broadcast %99 : vector<32x1xf32> to vector<32x32xf32>
    %108 = arith.subf %91, %107 : vector<32x32xf32>
    %cst_49 = arith.constant 9.99999996E-13 : f32
    %109 = vector.broadcast %cst_49 : f32 to vector<32x1xf32>
    %110 = arith.addf %106, %109 : vector<32x1xf32>
    %111 = math.rsqrt %110 : vector<32x1xf32>
    %112 = vector.broadcast %111 : vector<32x1xf32> to vector<32x32xf32>
    %113 = arith.mulf %108, %112 : vector<32x32xf32>
    %114 = vector.broadcast %93 : vector<1x32xf32> to vector<32x32xf32>
    %115 = arith.mulf %113, %114 : vector<32x32xf32>
    %116 = vector.broadcast %95 : vector<1x32xf32> to vector<32x32xf32>
    %117 = arith.addf %115, %116 : vector<32x32xf32>
    %c0_50 = arith.constant 0 : index
    %c0_51 = arith.constant 0 : index
    %c0_52 = arith.constant 0 : index
    %118 = vector.load %arg11[%c0_50, %c0_51, %c0_52] : memref<2x32x128xf32, #tpu.memory_space<vmem>>, vector<1x32x128xf32>
    %119 = vector.shape_cast %118 : vector<1x32x128xf32> to vector<32x128xf32>
    %cst_53 = arith.constant dense<0.000000e+00> : vector<32x128xf32>
    %120 = tpu.matmul %117, %119, %cst_53 {dimension_numbers = #tpu.dot_dimension_numbers<[1], [0], [0], [1], [0, 0, 1, 1], [], []>} : vector<32x32xf32>, vector<32x128xf32>, vector<32x128xf32> -> vector<32x128xf32>
    %c0_54 = arith.constant 0 : index
    %c0_55 = arith.constant 0 : index
    %c0_56 = arith.constant 0 : index
    %121 = vector.load %arg12[%c0_54, %c0_55, %c0_56] : memref<2x1x128xf32, #tpu.memory_space<vmem>>, vector<1x1x128xf32>
    %122 = vector.shape_cast %121 : vector<1x1x128xf32> to vector<1x128xf32>
    %123 = vector.broadcast %122 : vector<1x128xf32> to vector<32x128xf32>
    %124 = arith.addf %120, %123 : vector<32x128xf32>
    %125 = arith.mulf %124, %124 : vector<32x128xf32>
    %126 = arith.mulf %124, %125 : vector<32x128xf32>
    %cst_57 = arith.constant 4.471500e-02 : f32
    %127 = vector.broadcast %cst_57 : f32 to vector<32x128xf32>
    %128 = arith.mulf %127, %126 : vector<32x128xf32>
    %129 = arith.addf %124, %128 : vector<32x128xf32>
    %cst_58 = arith.constant 0.797884583 : f32
    %130 = vector.broadcast %cst_58 : f32 to vector<32x128xf32>
    %131 = arith.mulf %130, %129 : vector<32x128xf32>
    %132 = math.tanh %131 : vector<32x128xf32>
    %cst_59 = arith.constant 1.000000e+00 : f32
    %133 = vector.broadcast %cst_59 : f32 to vector<32x128xf32>
    %134 = arith.addf %133, %132 : vector<32x128xf32>
    %cst_60 = arith.constant 5.000000e-01 : f32
    %135 = vector.broadcast %cst_60 : f32 to vector<32x128xf32>
    %136 = arith.mulf %135, %134 : vector<32x128xf32>
    %137 = arith.mulf %124, %136 : vector<32x128xf32>
    %c0_61 = arith.constant 0 : index
    %c0_62 = arith.constant 0 : index
    %c0_63 = arith.constant 0 : index
    %138 = vector.load %arg13[%c0_61, %c0_62, %c0_63] : memref<2x128x32xf32, #tpu.memory_space<vmem>>, vector<1x128x32xf32>
    %139 = vector.shape_cast %138 : vector<1x128x32xf32> to vector<128x32xf32>
    %cst_64 = arith.constant dense<0.000000e+00> : vector<32x32xf32>
    %140 = tpu.matmul %137, %139, %cst_64 {dimension_numbers = #tpu.dot_dimension_numbers<[1], [0], [0], [1], [0, 0, 1, 1], [], []>} : vector<32x128xf32>, vector<128x32xf32>, vector<32x32xf32> -> vector<32x32xf32>
    %c0_65 = arith.constant 0 : index
    %c0_66 = arith.constant 0 : index
    %c0_67 = arith.constant 0 : index
    %141 = vector.load %arg14[%c0_65, %c0_66, %c0_67] : memref<2x1x32xf32, #tpu.memory_space<vmem>>, vector<1x1x32xf32>
    %142 = vector.shape_cast %141 : vector<1x1x32xf32> to vector<1x32xf32>
    %143 = vector.broadcast %142 : vector<1x32xf32> to vector<32x32xf32>
    %144 = arith.addf %140, %143 : vector<32x32xf32>
    %145 = arith.addf %144, %117 : vector<32x32xf32>
    %c0_68 = arith.constant 0 : index
    %c0_69 = arith.constant 0 : index
    %c0_70 = arith.constant 0 : index
    %146 = vector.load %arg15[%c0_68, %c0_69, %c0_70] : memref<2x1x32xf32, #tpu.memory_space<vmem>>, vector<1x1x32xf32>
    %147 = vector.shape_cast %146 : vector<1x1x32xf32> to vector<1x32xf32>
    %c0_71 = arith.constant 0 : index
    %c0_72 = arith.constant 0 : index
    %c0_73 = arith.constant 0 : index
    %148 = vector.load %arg16[%c0_71, %c0_72, %c0_73] : memref<2x1x32xf32, #tpu.memory_space<vmem>>, vector<1x1x32xf32>
    %149 = vector.shape_cast %148 : vector<1x1x32xf32> to vector<1x32xf32>
    %cst_74 = arith.constant dense<0.000000e+00> : vector<32xf32>
    %150 = vector.multi_reduction <add>, %145, %cst_74 [1] : vector<32x32xf32> to vector<32xf32>
    %151 = vector.shape_cast %150 : vector<32xf32> to vector<32x1xf32>
    %cst_75 = arith.constant 3.200000e+01 : f32
    %152 = vector.broadcast %cst_75 : f32 to vector<32x1xf32>
    %153 = arith.divf %151, %152 : vector<32x1xf32>
    %154 = vector.broadcast %153 : vector<32x1xf32> to vector<32x32xf32>
    %155 = arith.subf %145, %154 : vector<32x32xf32>
    %156 = arith.mulf %155, %155 : vector<32x32xf32>
    %cst_76 = arith.constant dense<0.000000e+00> : vector<32xf32>
    %157 = vector.multi_reduction <add>, %156, %cst_76 [1] : vector<32x32xf32> to vector<32xf32>
    %158 = vector.shape_cast %157 : vector<32xf32> to vector<32x1xf32>
    %cst_77 = arith.constant 3.200000e+01 : f32
    %159 = vector.broadcast %cst_77 : f32 to vector<32x1xf32>
    %160 = arith.divf %158, %159 : vector<32x1xf32>
    %161 = vector.broadcast %153 : vector<32x1xf32> to vector<32x32xf32>
    %162 = arith.subf %145, %161 : vector<32x32xf32>
    %cst_78 = arith.constant 9.99999996E-13 : f32
    %163 = vector.broadcast %cst_78 : f32 to vector<32x1xf32>
    %164 = arith.addf %160, %163 : vector<32x1xf32>
    %165 = math.rsqrt %164 : vector<32x1xf32>
    %166 = vector.broadcast %165 : vector<32x1xf32> to vector<32x32xf32>
    %167 = arith.mulf %162, %166 : vector<32x32xf32>
    %168 = vector.broadcast %147 : vector<1x32xf32> to vector<32x32xf32>
    %169 = arith.mulf %167, %168 : vector<32x32xf32>
    %170 = vector.broadcast %149 : vector<1x32xf32> to vector<32x32xf32>
    %171 = arith.addf %169, %170 : vector<32x32xf32>
    %c1 = arith.constant 1 : index
    %c0_79 = arith.constant 0 : index
    %c0_80 = arith.constant 0 : index
    %172 = vector.load %arg5[%c1, %c0_79, %c0_80] : memref<2x32x96xf32, #tpu.memory_space<vmem>>, vector<1x32x96xf32>
    %173 = vector.shape_cast %172 : vector<1x32x96xf32> to vector<32x96xf32>
    %cst_81 = arith.constant dense<0.000000e+00> : vector<32x96xf32>
    %174 = tpu.matmul %171, %173, %cst_81 {dimension_numbers = #tpu.dot_dimension_numbers<[1], [0], [0], [1], [0, 0, 1, 1], [], []>} : vector<32x32xf32>, vector<32x96xf32>, vector<32x96xf32> -> vector<32x96xf32>
    %c1_82 = arith.constant 1 : index
    %c0_83 = arith.constant 0 : index
    %c0_84 = arith.constant 0 : index
    %175 = vector.load %arg6[%c1_82, %c0_83, %c0_84] : memref<2x1x96xf32, #tpu.memory_space<vmem>>, vector<1x1x96xf32>
    %176 = vector.shape_cast %175 : vector<1x1x96xf32> to vector<1x96xf32>
    %177 = vector.broadcast %176 : vector<1x96xf32> to vector<32x96xf32>
    %178 = arith.addf %174, %177 : vector<32x96xf32>
    %179 = vector.extract_strided_slice %178 {offsets = [0, 0], sizes = [32, 32], strides = [1, 1]} : vector<32x96xf32> to vector<32x32xf32>
    %180 = vector.shape_cast %179 : vector<32x32xf32> to vector<4x8x32xf32>
    %181 = vector.extract_strided_slice %178 {offsets = [0, 32], sizes = [32, 32], strides = [1, 1]} : vector<32x96xf32> to vector<32x32xf32>
    %182 = vector.shape_cast %181 : vector<32x32xf32> to vector<4x8x32xf32>
    %183 = vector.extract_strided_slice %178 {offsets = [0, 64], sizes = [32, 32], strides = [1, 1]} : vector<32x96xf32> to vector<32x32xf32>
    %184 = vector.shape_cast %183 : vector<32x32xf32> to vector<4x8x32xf32>
    %185 = vector.extract_strided_slice %180 {offsets = [0, 0, 0], sizes = [4, 8, 16], strides = [1, 1, 1]} : vector<4x8x32xf32> to vector<4x8x16xf32>
    %186 = vector.extract_strided_slice %182 {offsets = [0, 0, 0], sizes = [4, 8, 16], strides = [1, 1, 1]} : vector<4x8x32xf32> to vector<4x8x16xf32>
    "tpu.trace_start"() <{level = 10 : i32, message = "bqd,bkd->bqk"}> : () -> ()
    %cst_85 = arith.constant dense<0.000000e+00> : vector<4x8x8xf32>
    %187 = tpu.matmul %185, %186, %cst_85 {dimension_numbers = #tpu.dot_dimension_numbers<[2], [2], [1], [1], [0, 0, 0, 1, 1, 1], [0], [0]>} : vector<4x8x16xf32>, vector<4x8x16xf32>, vector<4x8x8xf32> -> vector<4x8x8xf32>
    "tpu.trace_stop"() : () -> ()
    %cst_86 = arith.constant 2.500000e-01 : f32
    %188 = vector.broadcast %cst_86 : f32 to vector<4x8x8xf32>
    %189 = arith.mulf %187, %188 : vector<4x8x8xf32>
    %190 = vector.broadcast %4 : vector<4x1x8xf32> to vector<4x8x8xf32>
    %191 = arith.addf %189, %190 : vector<4x8x8xf32>
    %cst_87 = arith.constant dense<0xFF800000> : vector<4x8xf32>
    %192 = vector.multi_reduction <maximumf>, %191, %cst_87 [2] : vector<4x8x8xf32> to vector<4x8xf32>
    %193 = vector.shape_cast %192 : vector<4x8xf32> to vector<4x8x1xf32>
    %194 = vector.broadcast %193 : vector<4x8x1xf32> to vector<4x8x8xf32>
    %195 = arith.subf %191, %194 : vector<4x8x8xf32>
    %196 = math.exp %195 : vector<4x8x8xf32>
    %cst_88 = arith.constant dense<0.000000e+00> : vector<4x8xf32>
    %197 = vector.multi_reduction <add>, %196, %cst_88 [2] : vector<4x8x8xf32> to vector<4x8xf32>
    %198 = vector.shape_cast %197 : vector<4x8xf32> to vector<4x8x1xf32>
    %199 = tpu.reciprocal %198 {approx = true} : vector<4x8x1xf32> -> vector<4x8x1xf32>
    %200 = vector.broadcast %199 : vector<4x8x1xf32> to vector<4x8x8xf32>
    %201 = arith.mulf %196, %200 : vector<4x8x8xf32>
    %202 = vector.extract_strided_slice %184 {offsets = [0, 0, 0], sizes = [4, 8, 16], strides = [1, 1, 1]} : vector<4x8x32xf32> to vector<4x8x16xf32>
    "tpu.trace_start"() <{level = 10 : i32, message = "bqk,bkd->bqd"}> : () -> ()
    %cst_89 = arith.constant dense<0.000000e+00> : vector<4x8x16xf32>
    %203 = tpu.matmul %201, %202, %cst_89 {dimension_numbers = #tpu.dot_dimension_numbers<[2], [1], [1], [2], [0, 0, 0, 1, 1, 2], [0], [0]>} : vector<4x8x8xf32>, vector<4x8x16xf32>, vector<4x8x16xf32> -> vector<4x8x16xf32>
    "tpu.trace_stop"() : () -> ()
    %204 = vector.extract_strided_slice %180 {offsets = [0, 0, 16], sizes = [4, 8, 16], strides = [1, 1, 1]} : vector<4x8x32xf32> to vector<4x8x16xf32>
    %205 = vector.extract_strided_slice %182 {offsets = [0, 0, 16], sizes = [4, 8, 16], strides = [1, 1, 1]} : vector<4x8x32xf32> to vector<4x8x16xf32>
    "tpu.trace_start"() <{level = 10 : i32, message = "bqd,bkd->bqk"}> : () -> ()
    %cst_90 = arith.constant dense<0.000000e+00> : vector<4x8x8xf32>
    %206 = tpu.matmul %204, %205, %cst_90 {dimension_numbers = #tpu.dot_dimension_numbers<[2], [2], [1], [1], [0, 0, 0, 1, 1, 1], [0], [0]>} : vector<4x8x16xf32>, vector<4x8x16xf32>, vector<4x8x8xf32> -> vector<4x8x8xf32>
    "tpu.trace_stop"() : () -> ()
    %cst_91 = arith.constant 2.500000e-01 : f32
    %207 = vector.broadcast %cst_91 : f32 to vector<4x8x8xf32>
    %208 = arith.mulf %206, %207 : vector<4x8x8xf32>
    %209 = vector.broadcast %4 : vector<4x1x8xf32> to vector<4x8x8xf32>
    %210 = arith.addf %208, %209 : vector<4x8x8xf32>
    %cst_92 = arith.constant dense<0xFF800000> : vector<4x8xf32>
    %211 = vector.multi_reduction <maximumf>, %210, %cst_92 [2] : vector<4x8x8xf32> to vector<4x8xf32>
    %212 = vector.shape_cast %211 : vector<4x8xf32> to vector<4x8x1xf32>
    %213 = vector.broadcast %212 : vector<4x8x1xf32> to vector<4x8x8xf32>
    %214 = arith.subf %210, %213 : vector<4x8x8xf32>
    %215 = math.exp %214 : vector<4x8x8xf32>
    %cst_93 = arith.constant dense<0.000000e+00> : vector<4x8xf32>
    %216 = vector.multi_reduction <add>, %215, %cst_93 [2] : vector<4x8x8xf32> to vector<4x8xf32>
    %217 = vector.shape_cast %216 : vector<4x8xf32> to vector<4x8x1xf32>
    %218 = tpu.reciprocal %217 {approx = true} : vector<4x8x1xf32> -> vector<4x8x1xf32>
    %219 = vector.broadcast %218 : vector<4x8x1xf32> to vector<4x8x8xf32>
    %220 = arith.mulf %215, %219 : vector<4x8x8xf32>
    %221 = vector.extract_strided_slice %184 {offsets = [0, 0, 16], sizes = [4, 8, 16], strides = [1, 1, 1]} : vector<4x8x32xf32> to vector<4x8x16xf32>
    "tpu.trace_start"() <{level = 10 : i32, message = "bqk,bkd->bqd"}> : () -> ()
    %cst_94 = arith.constant dense<0.000000e+00> : vector<4x8x16xf32>
    %222 = tpu.matmul %220, %221, %cst_94 {dimension_numbers = #tpu.dot_dimension_numbers<[2], [1], [1], [2], [0, 0, 0, 1, 1, 2], [0], [0]>} : vector<4x8x8xf32>, vector<4x8x16xf32>, vector<4x8x16xf32> -> vector<4x8x16xf32>
    "tpu.trace_stop"() : () -> ()
    %223 = tpu.concatenate %203, %222 in 2 : vector<4x8x16xf32>, vector<4x8x16xf32> -> vector<4x8x32xf32>
    %224 = vector.shape_cast %223 : vector<4x8x32xf32> to vector<32x32xf32>
    %c1_95 = arith.constant 1 : index
    %c0_96 = arith.constant 0 : index
    %c0_97 = arith.constant 0 : index
    %225 = vector.load %arg7[%c1_95, %c0_96, %c0_97] : memref<2x32x32xf32, #tpu.memory_space<vmem>>, vector<1x32x32xf32>
    %226 = vector.shape_cast %225 : vector<1x32x32xf32> to vector<32x32xf32>
    %cst_98 = arith.constant dense<0.000000e+00> : vector<32x32xf32>
    %227 = tpu.matmul %224, %226, %cst_98 {dimension_numbers = #tpu.dot_dimension_numbers<[1], [0], [0], [1], [0, 0, 1, 1], [], []>} : vector<32x32xf32>, vector<32x32xf32>, vector<32x32xf32> -> vector<32x32xf32>
    %c1_99 = arith.constant 1 : index
    %c0_100 = arith.constant 0 : index
    %c0_101 = arith.constant 0 : index
    %228 = vector.load %arg8[%c1_99, %c0_100, %c0_101] : memref<2x1x32xf32, #tpu.memory_space<vmem>>, vector<1x1x32xf32>
    %229 = vector.shape_cast %228 : vector<1x1x32xf32> to vector<1x32xf32>
    %230 = vector.broadcast %229 : vector<1x32xf32> to vector<32x32xf32>
    %231 = arith.addf %227, %230 : vector<32x32xf32>
    %232 = arith.addf %231, %171 : vector<32x32xf32>
    %c1_102 = arith.constant 1 : index
    %c0_103 = arith.constant 0 : index
    %c0_104 = arith.constant 0 : index
    %233 = vector.load %arg9[%c1_102, %c0_103, %c0_104] : memref<2x1x32xf32, #tpu.memory_space<vmem>>, vector<1x1x32xf32>
    %234 = vector.shape_cast %233 : vector<1x1x32xf32> to vector<1x32xf32>
    %c1_105 = arith.constant 1 : index
    %c0_106 = arith.constant 0 : index
    %c0_107 = arith.constant 0 : index
    %235 = vector.load %arg10[%c1_105, %c0_106, %c0_107] : memref<2x1x32xf32, #tpu.memory_space<vmem>>, vector<1x1x32xf32>
    %236 = vector.shape_cast %235 : vector<1x1x32xf32> to vector<1x32xf32>
    %cst_108 = arith.constant dense<0.000000e+00> : vector<32xf32>
    %237 = vector.multi_reduction <add>, %232, %cst_108 [1] : vector<32x32xf32> to vector<32xf32>
    %238 = vector.shape_cast %237 : vector<32xf32> to vector<32x1xf32>
    %cst_109 = arith.constant 3.200000e+01 : f32
    %239 = vector.broadcast %cst_109 : f32 to vector<32x1xf32>
    %240 = arith.divf %238, %239 : vector<32x1xf32>
    %241 = vector.broadcast %240 : vector<32x1xf32> to vector<32x32xf32>
    %242 = arith.subf %232, %241 : vector<32x32xf32>
    %243 = arith.mulf %242, %242 : vector<32x32xf32>
    %cst_110 = arith.constant dense<0.000000e+00> : vector<32xf32>
    %244 = vector.multi_reduction <add>, %243, %cst_110 [1] : vector<32x32xf32> to vector<32xf32>
    %245 = vector.shape_cast %244 : vector<32xf32> to vector<32x1xf32>
    %cst_111 = arith.constant 3.200000e+01 : f32
    %246 = vector.broadcast %cst_111 : f32 to vector<32x1xf32>
    %247 = arith.divf %245, %246 : vector<32x1xf32>
    %248 = vector.broadcast %240 : vector<32x1xf32> to vector<32x32xf32>
    %249 = arith.subf %232, %248 : vector<32x32xf32>
    %cst_112 = arith.constant 9.99999996E-13 : f32
    %250 = vector.broadcast %cst_112 : f32 to vector<32x1xf32>
    %251 = arith.addf %247, %250 : vector<32x1xf32>
    %252 = math.rsqrt %251 : vector<32x1xf32>
    %253 = vector.broadcast %252 : vector<32x1xf32> to vector<32x32xf32>
    %254 = arith.mulf %249, %253 : vector<32x32xf32>
    %255 = vector.broadcast %234 : vector<1x32xf32> to vector<32x32xf32>
    %256 = arith.mulf %254, %255 : vector<32x32xf32>
    %257 = vector.broadcast %236 : vector<1x32xf32> to vector<32x32xf32>
    %258 = arith.addf %256, %257 : vector<32x32xf32>
    %c1_113 = arith.constant 1 : index
    %c0_114 = arith.constant 0 : index
    %c0_115 = arith.constant 0 : index
    %259 = vector.load %arg11[%c1_113, %c0_114, %c0_115] : memref<2x32x128xf32, #tpu.memory_space<vmem>>, vector<1x32x128xf32>
    %260 = vector.shape_cast %259 : vector<1x32x128xf32> to vector<32x128xf32>
    %cst_116 = arith.constant dense<0.000000e+00> : vector<32x128xf32>
    %261 = tpu.matmul %258, %260, %cst_116 {dimension_numbers = #tpu.dot_dimension_numbers<[1], [0], [0], [1], [0, 0, 1, 1], [], []>} : vector<32x32xf32>, vector<32x128xf32>, vector<32x128xf32> -> vector<32x128xf32>
    %c1_117 = arith.constant 1 : index
    %c0_118 = arith.constant 0 : index
    %c0_119 = arith.constant 0 : index
    %262 = vector.load %arg12[%c1_117, %c0_118, %c0_119] : memref<2x1x128xf32, #tpu.memory_space<vmem>>, vector<1x1x128xf32>
    %263 = vector.shape_cast %262 : vector<1x1x128xf32> to vector<1x128xf32>
    %264 = vector.broadcast %263 : vector<1x128xf32> to vector<32x128xf32>
    %265 = arith.addf %261, %264 : vector<32x128xf32>
    %266 = arith.mulf %265, %265 : vector<32x128xf32>
    %267 = arith.mulf %265, %266 : vector<32x128xf32>
    %cst_120 = arith.constant 4.471500e-02 : f32
    %268 = vector.broadcast %cst_120 : f32 to vector<32x128xf32>
    %269 = arith.mulf %268, %267 : vector<32x128xf32>
    %270 = arith.addf %265, %269 : vector<32x128xf32>
    %cst_121 = arith.constant 0.797884583 : f32
    %271 = vector.broadcast %cst_121 : f32 to vector<32x128xf32>
    %272 = arith.mulf %271, %270 : vector<32x128xf32>
    %273 = math.tanh %272 : vector<32x128xf32>
    %cst_122 = arith.constant 1.000000e+00 : f32
    %274 = vector.broadcast %cst_122 : f32 to vector<32x128xf32>
    %275 = arith.addf %274, %273 : vector<32x128xf32>
    %cst_123 = arith.constant 5.000000e-01 : f32
    %276 = vector.broadcast %cst_123 : f32 to vector<32x128xf32>
    %277 = arith.mulf %276, %275 : vector<32x128xf32>
    %278 = arith.mulf %265, %277 : vector<32x128xf32>
    %c1_124 = arith.constant 1 : index
    %c0_125 = arith.constant 0 : index
    %c0_126 = arith.constant 0 : index
    %279 = vector.load %arg13[%c1_124, %c0_125, %c0_126] : memref<2x128x32xf32, #tpu.memory_space<vmem>>, vector<1x128x32xf32>
    %280 = vector.shape_cast %279 : vector<1x128x32xf32> to vector<128x32xf32>
    %cst_127 = arith.constant dense<0.000000e+00> : vector<32x32xf32>
    %281 = tpu.matmul %278, %280, %cst_127 {dimension_numbers = #tpu.dot_dimension_numbers<[1], [0], [0], [1], [0, 0, 1, 1], [], []>} : vector<32x128xf32>, vector<128x32xf32>, vector<32x32xf32> -> vector<32x32xf32>
    %c1_128 = arith.constant 1 : index
    %c0_129 = arith.constant 0 : index
    %c0_130 = arith.constant 0 : index
    %282 = vector.load %arg14[%c1_128, %c0_129, %c0_130] : memref<2x1x32xf32, #tpu.memory_space<vmem>>, vector<1x1x32xf32>
    %283 = vector.shape_cast %282 : vector<1x1x32xf32> to vector<1x32xf32>
    %284 = vector.broadcast %283 : vector<1x32xf32> to vector<32x32xf32>
    %285 = arith.addf %281, %284 : vector<32x32xf32>
    %286 = arith.addf %285, %258 : vector<32x32xf32>
    %c1_131 = arith.constant 1 : index
    %c0_132 = arith.constant 0 : index
    %c0_133 = arith.constant 0 : index
    %287 = vector.load %arg15[%c1_131, %c0_132, %c0_133] : memref<2x1x32xf32, #tpu.memory_space<vmem>>, vector<1x1x32xf32>
    %288 = vector.shape_cast %287 : vector<1x1x32xf32> to vector<1x32xf32>
    %c1_134 = arith.constant 1 : index
    %c0_135 = arith.constant 0 : index
    %c0_136 = arith.constant 0 : index
    %289 = vector.load %arg16[%c1_134, %c0_135, %c0_136] : memref<2x1x32xf32, #tpu.memory_space<vmem>>, vector<1x1x32xf32>
    %290 = vector.shape_cast %289 : vector<1x1x32xf32> to vector<1x32xf32>
    %cst_137 = arith.constant dense<0.000000e+00> : vector<32xf32>
    %291 = vector.multi_reduction <add>, %286, %cst_137 [1] : vector<32x32xf32> to vector<32xf32>
    %292 = vector.shape_cast %291 : vector<32xf32> to vector<32x1xf32>
    %cst_138 = arith.constant 3.200000e+01 : f32
    %293 = vector.broadcast %cst_138 : f32 to vector<32x1xf32>
    %294 = arith.divf %292, %293 : vector<32x1xf32>
    %295 = vector.broadcast %294 : vector<32x1xf32> to vector<32x32xf32>
    %296 = arith.subf %286, %295 : vector<32x32xf32>
    %297 = arith.mulf %296, %296 : vector<32x32xf32>
    %cst_139 = arith.constant dense<0.000000e+00> : vector<32xf32>
    %298 = vector.multi_reduction <add>, %297, %cst_139 [1] : vector<32x32xf32> to vector<32xf32>
    %299 = vector.shape_cast %298 : vector<32xf32> to vector<32x1xf32>
    %cst_140 = arith.constant 3.200000e+01 : f32
    %300 = vector.broadcast %cst_140 : f32 to vector<32x1xf32>
    %301 = arith.divf %299, %300 : vector<32x1xf32>
    %302 = vector.broadcast %294 : vector<32x1xf32> to vector<32x32xf32>
    %303 = arith.subf %286, %302 : vector<32x32xf32>
    %cst_141 = arith.constant 9.99999996E-13 : f32
    %304 = vector.broadcast %cst_141 : f32 to vector<32x1xf32>
    %305 = arith.addf %301, %304 : vector<32x1xf32>
    %306 = math.rsqrt %305 : vector<32x1xf32>
    %307 = vector.broadcast %306 : vector<32x1xf32> to vector<32x32xf32>
    %308 = arith.mulf %303, %307 : vector<32x32xf32>
    %309 = vector.broadcast %288 : vector<1x32xf32> to vector<32x32xf32>
    %310 = arith.mulf %308, %309 : vector<32x32xf32>
    %311 = vector.broadcast %290 : vector<1x32xf32> to vector<32x32xf32>
    %312 = arith.addf %310, %311 : vector<32x32xf32>
    %313 = vector.shape_cast %312 : vector<32x32xf32> to vector<4x8x32xf32>
    %314 = vector.extract_strided_slice %313 {offsets = [0, 0, 0], sizes = [4, 1, 32], strides = [1, 1, 1]} : vector<4x8x32xf32> to vector<4x1x32xf32>
    %315 = vector.shape_cast %314 : vector<4x1x32xf32> to vector<4x32xf32>
    %cst_142 = arith.constant dense<0.000000e+00> : vector<4x1xf32>
    %316 = vector.multi_reduction <add>, %0, %cst_142 [2] : vector<4x1x8xf32> to vector<4x1xf32>
    %cst_143 = arith.constant 0.000000e+00 : f32
    %317 = vector.broadcast %cst_143 : f32 to vector<4x1xf32>
    %318 = arith.cmpf ogt, %316, %317 : vector<4x1xf32>
    %319 = arith.extui %318 : vector<4x1xi1> to vector<4x1xi32>
    %320 = arith.sitofp %319 : vector<4x1xi32> to vector<4x1xf32>
    %321 = vector.broadcast %320 : vector<4x1xf32> to vector<4x32xf32>
    %322 = arith.mulf %315, %321 : vector<4x32xf32>
    %c0_144 = arith.constant 0 : index
    %c0_145 = arith.constant 0 : index
    %323 = vector.load %arg17[%c0_144, %c0_145] : memref<32x32xf32, #tpu.memory_space<vmem>>, vector<32x32xf32>
    %cst_146 = arith.constant dense<0.000000e+00> : vector<4x32xf32>
    %324 = tpu.matmul %322, %323, %cst_146 {dimension_numbers = #tpu.dot_dimension_numbers<[1], [0], [0], [1], [0, 0, 1, 1], [], []>} : vector<4x32xf32>, vector<32x32xf32>, vector<4x32xf32> -> vector<4x32xf32>
    %c0_147 = arith.constant 0 : index
    %c0_148 = arith.constant 0 : index
    %325 = vector.load %arg18[%c0_147, %c0_148] : memref<1x32xf32, #tpu.memory_space<vmem>>, vector<1x32xf32>
    %326 = vector.broadcast %325 : vector<1x32xf32> to vector<4x32xf32>
    %327 = arith.addf %324, %326 : vector<4x32xf32>
    %cst_149 = arith.constant 0.000000e+00 : f32
    %328 = vector.broadcast %cst_149 : f32 to vector<4x32xf32>
    %329 = arith.maximumf %327, %328 : vector<4x32xf32>
    %330 = vector.shape_cast %329 : vector<4x32xf32> to vector<4x1x32xf32>
    %c0_150 = arith.constant 0 : index
    %c0_151 = arith.constant 0 : index
    %c0_152 = arith.constant 0 : index
    %331 = vector.load %arg19[%c0_150, %c0_151, %c0_152] : memref<4x1x32xf32, #tpu.memory_space<vmem>>, vector<4x1x32xf32>
    tpu.vector_store %arg19[%c0_150, %c0_151, %c0_152], %330 {strides = array<i32>} : memref<4x1x32xf32, #tpu.memory_space<vmem>>, vector<4x1x32xf32>,
    return
  }
  func.func @transform_0(%arg0: i32) -> (i32, i32, i32) {
    %c0_i32 = arith.constant 0 : i32
    %c0_i32_0 = arith.constant 0 : i32
    %c0_i32_1 = arith.constant 0 : i32
    return %arg0, %c0_i32, %c0_i32_0 : i32, i32, i32
  }
  func.func @transform_1(%arg0: i32) -> (i32, i32, i32) {
    %c0_i32 = arith.constant 0 : i32
    %c0_i32_0 = arith.constant 0 : i32
    %c0_i32_1 = arith.constant 0 : i32
    return %arg0, %c0_i32, %c0_i32_0 : i32, i32, i32
  }
  func.func @transform_2(%arg0: i32) -> (i32, i32) {
    %c0_i32 = arith.constant 0 : i32
    %c0_i32_0 = arith.constant 0 : i32
    %c0_i32_1 = arith.constant 0 : i32
    return %c0_i32, %c0_i32_0 : i32, i32
  }
  func.func @transform_3(%arg0: i32) -> (i32, i32) {
    %c0_i32 = arith.constant 0 : i32
    %c0_i32_0 = arith.constant 0 : i32
    %c0_i32_1 = arith.constant 0 : i32
    return %c0_i32, %c0_i32_0 : i32, i32
  }
  func.func @transform_4(%arg0: i32) -> (i32, i32, i32) {
    %c0_i32 = arith.constant 0 : i32
    %c0_i32_0 = arith.constant 0 : i32
    %c0_i32_1 = arith.constant 0 : i32
    %c0_i32_2 = arith.constant 0 : i32
    return %c0_i32, %c0_i32_0, %c0_i32_1 : i32, i32, i32
  }
  func.func @transform_5(%arg0: i32) -> (i32, i32, i32) {
    %c0_i32 = arith.constant 0 : i32
    %c0_i32_0 = arith.constant 0 : i32
    %c0_i32_1 = arith.constant 0 : i32
    %c0_i32_2 = arith.constant 0 : i32
    return %c0_i32, %c0_i32_0, %c0_i32_1 : i32, i32, i32
  }
  func.func @transform_6(%arg0: i32) -> (i32, i32, i32) {
    %c0_i32 = arith.constant 0 : i32
    %c0_i32_0 = arith.constant 0 : i32
    %c0_i32_1 = arith.constant 0 : i32
    %c0_i32_2 = arith.constant 0 : i32
    return %c0_i32, %c0_i32_0, %c0_i32_1 : i32, i32, i32
  }
  func.func @transform_7(%arg0: i32) -> (i32, i32, i32) {
    %c0_i32 = arith.constant 0 : i32
    %c0_i32_0 = arith.constant 0 : i32
    %c0_i32_1 = arith.constant 0 : i32
    %c0_i32_2 = arith.constant 0 : i32
    return %c0_i32, %c0_i32_0, %c0_i32_1 : i32, i32, i32
  }
  func.func @transform_8(%arg0: i32) -> (i32, i32, i32) {
    %c0_i32 = arith.constant 0 : i32
    %c0_i32_0 = arith.constant 0 : i32
    %c0_i32_1 = arith.constant 0 : i32
    %c0_i32_2 = arith.constant 0 : i32
    return %c0_i32, %c0_i32_0, %c0_i32_1 : i32, i32, i32
  }
  func.func @transform_9(%arg0: i32) -> (i32, i32, i32) {
    %c0_i32 = arith.constant 0 : i32
    %c0_i32_0 = arith.constant 0 : i32
    %c0_i32_1 = arith.constant 0 : i32
    %c0_i32_2 = arith.constant 0 : i32
    return %c0_i32, %c0_i32_0, %c0_i32_1 : i32, i32, i32
  }
  func.func @transform_10(%arg0: i32) -> (i32, i32, i32) {
    %c0_i32 = arith.constant 0 : i32
    %c0_i32_0 = arith.constant 0 : i32
    %c0_i32_1 = arith.constant 0 : i32
    %c0_i32_2 = arith.constant 0 : i32
    return %c0_i32, %c0_i32_0, %c0_i32_1 : i32, i32, i32
  }
  func.func @transform_11(%arg0: i32) -> (i32, i32, i32) {
    %c0_i32 = arith.constant 0 : i32
    %c0_i32_0 = arith.constant 0 : i32
    %c0_i32_1 = arith.constant 0 : i32
    %c0_i32_2 = arith.constant 0 : i32
    return %c0_i32, %c0_i32_0, %c0_i32_1 : i32, i32, i32
  }
  func.func @transform_12(%arg0: i32) -> (i32, i32, i32) {
    %c0_i32 = arith.constant 0 : i32
    %c0_i32_0 = arith.constant 0 : i32
    %c0_i32_1 = arith.constant 0 : i32
    %c0_i32_2 = arith.constant 0 : i32
    return %c0_i32, %c0_i32_0, %c0_i32_1 : i32, i32, i32
  }
  func.func @transform_13(%arg0: i32) -> (i32, i32, i32) {
    %c0_i32 = arith.constant 0 : i32
    %c0_i32_0 = arith.constant 0 : i32
    %c0_i32_1 = arith.constant 0 : i32
    %c0_i32_2 = arith.constant 0 : i32
    return %c0_i32, %c0_i32_0, %c0_i32_1 : i32, i32, i32
  }
  func.func @transform_14(%arg0: i32) -> (i32, i32, i32) {
    %c0_i32 = arith.constant 0 : i32
    %c0_i32_0 = arith.constant 0 : i32
    %c0_i32_1 = arith.constant 0 : i32
    %c0_i32_2 = arith.constant 0 : i32
    return %c0_i32, %c0_i32_0, %c0_i32_1 : i32, i32, i32
  }
  func.func @transform_15(%arg0: i32) -> (i32, i32, i32) {
    %c0_i32 = arith.constant 0 : i32
    %c0_i32_0 = arith.constant 0 : i32
    %c0_i32_1 = arith.constant 0 : i32
    %c0_i32_2 = arith.constant 0 : i32
    return %c0_i32, %c0_i32_0, %c0_i32_1 : i32, i32, i32
  }
  func.func @transform_16(%arg0: i32) -> (i32, i32) {
    %c0_i32 = arith.constant 0 : i32
    %c0_i32_0 = arith.constant 0 : i32
    %c0_i32_1 = arith.constant 0 : i32
    return %c0_i32, %c0_i32_0 : i32, i32
  }
  func.func @transform_17(%arg0: i32) -> (i32, i32) {
    %c0_i32 = arith.constant 0 : i32
    %c0_i32_0 = arith.constant 0 : i32
    %c0_i32_1 = arith.constant 0 : i32
    return %c0_i32, %c0_i32_0 : i32, i32
  }
  func.func @transform_18(%arg0: i32) -> (i32, i32, i32) {
    %c0_i32 = arith.constant 0 : i32
    %c0_i32_0 = arith.constant 0 : i32
    %c0_i32_1 = arith.constant 0 : i32
    return %arg0, %c0_i32, %c0_i32_0 : i32, i32, i32
  }
}

</mosaic_0001>

<bundles_post_ra>
// kernel: dialogue_classifier_forward.4
= control target key start
LH: loop header
LB: loop body
LE: loop exit
PB: predicated region body
PF: predicated region fallthrough
CT: control target
= control target key end

     0   :  { %vm63_vm0 = vcmask 64512   ;;  %vm795_vm1 = vcmask 31744   ;;  %vm1267_vm4 = vcmask 1043456   ;;  %s1743_s24 = smov 4   ;;  %s1744_s25 = smov 16   ;;  %vm1241_vm7 = vcmask 97280   ;;  %s3015_s1 = inlined_call_operand.vmem [shape: f32[8,4], index: 1, kind: input, shape index: {}]   ;;  %s3016_s0 = inlined_call_operand.vmem [shape: f32[2,2,160,8], index: 0, kind: input, shape index: {}]   ;;  %s3017_s2 = inlined_call_operand.vmem [shape: f32[1,4], index: 2, kind: input, shape index: {}]   ;;  %s3018_s4 = inlined_call_operand.vmem [shape: f32[1,4], index: 4, kind: input, shape index: {}]   ;;  %s3019_s5 = inlined_call_operand.vmem [shape: f32[20,16], index: 5, kind: input, shape index: {}]   ;;  %s3020_s3 = inlined_call_operand.vmem [shape: f32[1,4], index: 3, kind: input, shape index: {}]   ;;  %s3021_s6 = inlined_call_operand.vmem [shape: f32[1,16], index: 6, kind: input, shape index: {}]   ;;  %s3022_s7 = inlined_call_operand.vmem [shape: f32[1,16], index: 7, kind: input, shape index: {}]   ;;  %s3023_s8 = inlined_call_operand.vmem [shape: f32[1,16], index: 8, kind: input, shape index: {}]   ;;  %s3024_s9 = inlined_call_operand.vmem [shape: f32[64,32], index: 9, kind: input, shape index: {}]   ;;  %s3025_s10 = inlined_call_operand.vmem [shape: f32[1,32], index: 10, kind: input, shape index: {}]   ;;  %s3026_s11 = inlined_call_operand.vmem [shape: f32[8,32], index: 11, kind: output, shape index: {}]  }
   0x1   :  { %v38_v0 = vld [vmem:[%s3015_s1] sm:$0xff]  ;;  %v59_v2 = vld [vmem:[%s3016_s0 + $0x98] sm:$0xff]  ;;  %v41_v5 = vld [vmem:[%s3016_s0 + $0x8] sm:$0xff]  ;;  %vm1246_vm8 = vcmask 130048   ;;  %vm1254_vm9 = vcmask 162816   ;;  %vm1520_vm14 = vcmask 261120  }
   0x2   :  { %v40_v1 = vld [vmem:[%s3016_s0] sm:$0xff]  ;;  %139 = vmatpush.msra.mxu0 %v38_v0  ;;  %1716 = vmatpush.msra.mxu3 %v38_v0  ;;  %v1604_v4 = vld [vmem:[%s3016_s0 + $0x138] sm:$0xff]  ;;  %v1586_v7 = vld [vmem:[%s3016_s0 + $0xa8] sm:$0xff]  ;;  %vm1522_vm15 = vcmask 392192  }
   0x3   :  { %v1585_v3 = vld [vmem:[%s3016_s0 + $0xa0] sm:$0xff]  ;;  %317 = vmatpush.msra.mxu1 %v38_v0  ;;  %1717 = vmatpush.msra.mxu2 %v38_v0  ;;  %v42_v9 = vld [vmem:[%s3016_s0 + $0x10] sm:$0xff]  ;;  %v1666_v10 = vld [vmem:[%s3016_s0 + $0x1e8] sm:$0xff] }
   0x4   :  { %1565 = vmatmul.msk.f32.vlgmr.msra.gmra.mxu0 %vm63_vm0, %v40_v1  ;;  %1584 = vmatmul.msk.f32.vlgmr.msra.gmra.mxu3 %vm63_vm0, %v59_v2  ;;  %v1665_v6 = vld [vmem:[%s3016_s0 + $0x1e0] sm:$0xff]  ;;  %v1587_v11 = vld [vmem:[%s3016_s0 + $0xb0] sm:$0xff]  ;;  %v1626_v12 = vld [vmem:[%s3016_s0 + $0x148] sm:$0xff] }
   0x5   :  { %1605 = vmatmul.msk.f32.vlgmr.msra.gmra.mxu1 %vm63_vm0, %v1585_v3  ;;  %1624 = vmatmul.msk.f32.vlgmr.msra.gmra.mxu2 %vm63_vm0, %v1604_v4  ;;  %v1625_v8 = vld [vmem:[%s3016_s0 + $0x140] sm:$0xff]  ;;  %v43_v13 = vld [vmem:[%s3016_s0 + $0x18] sm:$0xff]  ;;  %v1667_v14 = vld [vmem:[%s3016_s0 + $0x1f0] sm:$0xff] }
   0x6   :  { %515 = vmatpush.msrb.mxu2 %v38_v0  ;;  %693 = vmatpush.msrb.mxu3 %v38_v0  ;;  %v1588_v15 = vld [vmem:[%s3016_s0 + $0xb8] sm:$0xff]  ;;  %v1627_v16 = vld [vmem:[%s3016_s0 + $0x150] sm:$0xff]  ;;  %v44_v17 = vld [vmem:[%s3016_s0 + $0x20] sm:$0xff] }
   0x7   :  { %v1668_v18 = vld [vmem:[%s3016_s0 + $0x1f8] sm:$0xff]  ;;  %v1589_v19 = vld [vmem:[%s3016_s0 + $0xc0] sm:$0xff]  ;;  %v45_v21 = vld [vmem:[%s3016_s0 + $0x28] sm:$0xff] }
   0x8   :  { %v1628_v20 = vld [vmem:[%s3016_s0 + $0x158] sm:$0xff]  ;;  %v1669_v22 = vld [vmem:[%s3016_s0 + $0x200] sm:$0xff]  ;;  %v1590_v23 = vld [vmem:[%s3016_s0 + $0xc8] sm:$0xff] }
   0x9   :  { %v1629_v24 = vld [vmem:[%s3016_s0 + $0x160] sm:$0xff]  ;;  %v46_v25 = vld [vmem:[%s3016_s0 + $0x30] sm:$0xff]  ;;  %v1670_v26 = vld [vmem:[%s3016_s0 + $0x208] sm:$0xff] }
   0xa   :  { %v1591_v27 = vld [vmem:[%s3016_s0 + $0xd0] sm:$0xff]  ;;  %v1630_v28 = vld [vmem:[%s3016_s0 + $0x168] sm:$0xff]  ;;  %v47_v29 = vld [vmem:[%s3016_s0 + $0x38] sm:$0xff] }
   0xb   :  { %v1671_v30 = vld [vmem:[%s3016_s0 + $0x210] sm:$0xff]  ;;  %v1592_v31 = vld [vmem:[%s3016_s0 + $0xd8] sm:$0xff]  ;;  %v48_v33 = vld [vmem:[%s3016_s0 + $0x40] sm:$0xff] }
   0xc   :  { %1566 = vmatmul.msk.f32.gmra.mxu0 %vm63_vm0, %v41_v5  ;;  %1685 = vmatmul.msk.f32.vlgmr.msrb.gmra.mxu3 %vm63_vm0, %v1665_v6  ;;  %v1631_v32 = vld [vmem:[%s3016_s0 + $0x170] sm:$0xff]  ;;  %v1672_v34 = vld [vmem:[%s3016_s0 + $0x218] sm:$0xff]  ;;  %v1593_v35 = vld [vmem:[%s3016_s0 + $0xe0] sm:$0xff] }
   0xd   :  { %1606 = vmatmul.msk.f32.gmra.mxu1 %vm63_vm0, %v1586_v7  ;;  %1645 = vmatmul.msk.f32.vlgmr.msrb.gmra.mxu2 %vm63_vm0, %v1625_v8  ;;  %v1632_v36 = vld [vmem:[%s3016_s0 + $0x178] sm:$0xff]  ;;  %v49_v37 = vld [vmem:[%s3016_s0 + $0x48] sm:$0xff]  ;;  %v1673_v38 = vld [vmem:[%s3016_s0 + $0x220] sm:$0xff] }
   0xe   :  { %v1594_v39 = vld [vmem:[%s3016_s0 + $0xe8] sm:$0xff]  ;;  %v1633_v40 = vld [vmem:[%s3016_s0 + $0x180] sm:$0xff]  ;;  %v50_v41 = vld [vmem:[%s3016_s0 + $0x50] sm:$0xff] }
   0xf   :  { %v1674_v42 = vld [vmem:[%s3016_s0 + $0x228] sm:$0xff]  ;;  %v1595_v43 = vld [vmem:[%s3016_s0 + $0xf0] sm:$0xff]  ;;  %v51_v45 = vld [vmem:[%s3016_s0 + $0x58] sm:$0xff] }
  0x10   :  { %v1634_v44 = vld [vmem:[%s3016_s0 + $0x188] sm:$0xff]  ;;  %v1675_v46 = vld [vmem:[%s3016_s0 + $0x230] sm:$0xff]  ;;  %v1596_v47 = vld [vmem:[%s3016_s0 + $0xf8] sm:$0xff] }
  0x11   :  { %v1635_v48 = vld [vmem:[%s3016_s0 + $0x190] sm:$0xff]  ;;  %v52_v49 = vld [vmem:[%s3016_s0 + $0x60] sm:$0xff]  ;;  %v1676_v50 = vld [vmem:[%s3016_s0 + $0x238] sm:$0xff] }
  0x12   :  { %v1597_v51 = vld [vmem:[%s3016_s0 + $0x100] sm:$0xff]  ;;  %v1636_v52 = vld [vmem:[%s3016_s0 + $0x198] sm:$0xff]  ;;  %v53_v53 = vld [vmem:[%s3016_s0 + $0x68] sm:$0xff] }
  0x13   :  { %v1677_v54 = vld [vmem:[%s3016_s0 + $0x240] sm:$0xff]  ;;  %v1598_v55 = vld [vmem:[%s3016_s0 + $0x108] sm:$0xff]  ;;  %v54_v57 = vld [vmem:[%s3016_s0 + $0x70] sm:$0xff] }
  0x14   :  { %1567 = vmatmul.msk.f32.gmra.mxu0 %vm63_vm0, %v42_v9  ;;  %1686 = vmatmul.msk.f32.gmra.mxu3 %vm63_vm0, %v1666_v10  ;;  %v1637_v56 = vld [vmem:[%s3016_s0 + $0x1a0] sm:$0xff]  ;;  %v1678_v58 = vld [vmem:[%s3016_s0 + $0x248] sm:$0xff]  ;;  %v1599_v59 = vld [vmem:[%s3016_s0 + $0x110] sm:$0xff] }
  0x15   :  { %1607 = vmatmul.msk.f32.gmra.mxu1 %vm63_vm0, %v1587_v11  ;;  %1646 = vmatmul.msk.f32.gmra.mxu2 %vm63_vm0, %v1626_v12  ;;  %v1638_v60 = vld [vmem:[%s3016_s0 + $0x1a8] sm:$0xff]  ;;  %v55_v61 = vld [vmem:[%s3016_s0 + $0x78] sm:$0xff]  ;;  %v1679_v62 = vld [vmem:[%s3016_s0 + $0x250] sm:$0xff] }
  0x16   :  { %v1600_v63 = vld [vmem:[%s3016_s0 + $0x118] sm:$0xff]  ;;  %v1639_v0 = vld [vmem:[%s3016_s0 + $0x1b0] sm:$0xff]  ;;  %v2070_v1 = vld [vmem:[%s3017_s2] ss:$0 sm:$0xff] }
  0x17   :  { %v56_v3 = vld [vmem:[%s3016_s0 + $0x80] sm:$0xff]  ;;  %v1680_v4 = vld [vmem:[%s3016_s0 + $0x258] sm:$0xff] }
  0x18   :  { %v1601_v7 = vld [vmem:[%s3016_s0 + $0x120] sm:$0xff]  ;;  %v1640_v8 = vld [vmem:[%s3016_s0 + $0x1b8] sm:$0xff] }
  0x1c   :  { %1568 = vmatmul.msk.f32.gmra.mxu0 %vm63_vm0, %v43_v13  ;;  %1687 = vmatmul.msk.f32.gmra.mxu3 %vm63_vm0, %v1667_v14 }
  0x1d   :  { %1608 = vmatmul.msk.f32.gmra.mxu1 %vm63_vm0, %v1588_v15  ;;  %1647 = vmatmul.msk.f32.gmra.mxu2 %vm63_vm0, %v1627_v16 }
  0x24   :  { %1569 = vmatmul.msk.f32.gmra.mxu0 %vm63_vm0, %v44_v17  ;;  %1688 = vmatmul.msk.f32.gmra.mxu3 %vm63_vm0, %v1668_v18  ;;  %v57_v18 = vld [vmem:[%s3016_s0 + $0x88] sm:$0xff] }
  0x25   :  { %1609 = vmatmul.msk.f32.gmra.mxu1 %vm63_vm0, %v1589_v19  ;;  %1648 = vmatmul.msk.f32.gmra.mxu2 %vm63_vm0, %v1628_v20  ;;  %v1681_v19 = vld [vmem:[%s3016_s0 + $0x260] sm:$0xff] }
  0x2c   :  { %1570 = vmatmul.msk.f32.gmra.mxu0 %vm63_vm0, %v45_v21  ;;  %1689 = vmatmul.msk.f32.gmra.mxu3 %vm63_vm0, %v1669_v22 }
  0x2d   :  { %1610 = vmatmul.msk.f32.gmra.mxu1 %vm63_vm0, %v1590_v23  ;;  %1649 = vmatmul.msk.f32.gmra.mxu2 %vm63_vm0, %v1629_v24  ;;  %v1602_v23 = vld [vmem:[%s3016_s0 + $0x128] sm:$0xff]  ;;  %v1641_v24 = vld [vmem:[%s3016_s0 + $0x1c0] sm:$0xff] }
  0x34   :  { %1571 = vmatmul.msk.f32.gmra.mxu0 %vm63_vm0, %v46_v25  ;;  %1690 = vmatmul.msk.f32.gmra.mxu3 %vm63_vm0, %v1670_v26 }
  0x35   :  { %1611 = vmatmul.msk.f32.gmra.mxu1 %vm63_vm0, %v1591_v27  ;;  %1650 = vmatmul.msk.f32.gmra.mxu2 %vm63_vm0, %v1630_v28 }
  0x3c   :  { %1572 = vmatmul.msk.f32.gmra.mxu0 %vm63_vm0, %v47_v29  ;;  %1691 = vmatmul.msk.f32.gmra.mxu3 %vm63_vm0, %v1671_v30 }
  0x3d   :  { %1612 = vmatmul.msk.f32.gmra.mxu1 %vm63_vm0, %v1592_v31  ;;  %1651 = vmatmul.msk.f32.gmra.mxu2 %vm63_vm0, %v1631_v32 }
  0x44   :  { %1573 = vmatmul.msk.f32.gmra.mxu0 %vm63_vm0, %v48_v33  ;;  %1692 = vmatmul.msk.f32.gmra.mxu3 %vm63_vm0, %v1672_v34 }
  0x45   :  { %1613 = vmatmul.msk.f32.gmra.mxu1 %vm63_vm0, %v1593_v35  ;;  %1652 = vmatmul.msk.f32.gmra.mxu2 %vm63_vm0, %v1632_v36 }
  0x4c   :  { %1574 = vmatmul.msk.f32.gmra.mxu0 %vm63_vm0, %v49_v37  ;;  %1693 = vmatmul.msk.f32.gmra.mxu3 %vm63_vm0, %v1673_v38  ;;  %v58_v38 = vld [vmem:[%s3016_s0 + $0x90] sm:$0xff] }
  0x4d   :  { %1614 = vmatmul.msk.f32.gmra.mxu1 %vm63_vm0, %v1594_v39  ;;  %1653 = vmatmul.msk.f32.gmra.mxu2 %vm63_vm0, %v1633_v40  ;;  %v1682_v39 = vld [vmem:[%s3016_s0 + $0x268] sm:$0xff] }
  0x54   :  { %1575 = vmatmul.msk.f32.gmra.mxu0 %vm63_vm0, %v50_v41  ;;  %1694 = vmatmul.msk.f32.gmra.mxu3 %vm63_vm0, %v1674_v42 }
  0x55   :  { %1615 = vmatmul.msk.f32.gmra.mxu1 %vm63_vm0, %v1595_v43  ;;  %1654 = vmatmul.msk.f32.gmra.mxu2 %vm63_vm0, %v1634_v44  ;;  %v1603_v44 = vld [vmem:[%s3016_s0 + $0x130] sm:$0xff] }
  0x5c   :  { %1576 = vmatmul.msk.f32.gmra.mxu0 %vm63_vm0, %v51_v45  ;;  %1695 = vmatmul.msk.f32.gmra.mxu3 %vm63_vm0, %v1675_v46  ;;  %v1642_v45 = vld [vmem:[%s3016_s0 + $0x1c8] sm:$0xff] }
  0x5d   :  { %1616 = vmatmul.msk.f32.gmra.mxu1 %vm63_vm0, %v1596_v47  ;;  %1655 = vmatmul.msk.f32.gmra.mxu2 %vm63_vm0, %v1635_v48 }
  0x64   :  { %1577 = vmatmul.msk.f32.gmra.mxu0 %vm63_vm0, %v52_v49  ;;  %1696 = vmatmul.msk.f32.gmra.mxu3 %vm63_vm0, %v1676_v50 }
  0x65   :  { %1617 = vmatmul.msk.f32.gmra.mxu1 %vm63_vm0, %v1597_v51  ;;  %1656 = vmatmul.msk.f32.gmra.mxu2 %vm63_vm0, %v1636_v52 }
  0x6c   :  { %1578 = vmatmul.msk.f32.gmra.mxu0 %vm63_vm0, %v53_v53  ;;  %1697 = vmatmul.msk.f32.gmra.mxu3 %vm63_vm0, %v1677_v54 }
  0x6d   :  { %1618 = vmatmul.msk.f32.gmra.mxu1 %vm63_vm0, %v1598_v55  ;;  %1657 = vmatmul.msk.f32.gmra.mxu2 %vm63_vm0, %v1637_v56 }
  0x74   :  { %1579 = vmatmul.msk.f32.gmra.mxu0 %vm63_vm0, %v54_v57  ;;  %1698 = vmatmul.msk.f32.gmra.mxu3 %vm63_vm0, %v1678_v58  ;;  %v1683_v58 = vld [vmem:[%s3016_s0 + $0x270] sm:$0xff] }
  0x75   :  { %1619 = vmatmul.msk.f32.gmra.mxu1 %vm63_vm0, %v1599_v59  ;;  %1658 = vmatmul.msk.f32.gmra.mxu2 %vm63_vm0, %v1638_v60 }
  0x7c   :  { %1580 = vmatmul.msk.f32.gmra.mxu0 %vm63_vm0, %v55_v61  ;;  %1699 = vmatmul.msk.f32.gmra.mxu3 %vm63_vm0, %v1679_v62 }
  0x7d   :  { %1620 = vmatmul.msk.f32.gmra.mxu1 %vm63_vm0, %v1600_v63  ;;  %1659 = vmatmul.msk.f32.gmra.mxu2 %vm63_vm0, %v1639_v0  ;;  %v1643_v63 = vld [vmem:[%s3016_s0 + $0x1d0] sm:$0xff] }
  0x81   :  { %v141_v2 = vpop.f32.mrf.mxu0 }
  0x82   :  { %v142_v5 = vadd.f32 %v2070_v1, %v141_v2  ;;  %v319_v6 = vpop.f32.mrf.mxu1 }
  0x83   :  { %v320_v9 = vadd.f32 %v2070_v1, %v319_v6 }
  0x84   :  { %v201_v10 = vmax.f32 %v142_v5, 0.0  ;;  %1581 = vmatmul.msk.f32.gmra.mxu0 %vm63_vm0, %v56_v3  ;;  %1700 = vmatmul.msk.f32.gmra.mxu3 %vm63_vm0, %v1680_v4 }
  0x85   :  { %v379_v11 = vmax.f32 %v320_v9, 0.0  ;;  %1621 = vmatmul.msk.f32.gmra.mxu1 %vm63_vm0, %v1601_v7  ;;  %1660 = vmatmul.msk.f32.gmra.mxu2 %vm63_vm0, %v1640_v8 }
  0x87   :  { %v2090_v12 = vmax.f32 %v201_v10, %v379_v11  ;;  %v198_v13 = vpop.f32.mrf.mxu3 }
  0x88   :  { %v199_v14 = vadd.f32 %v2070_v1, %v198_v13  ;;  %v376_v15 = vpop.f32.mrf.mxu2 }
  0x89   :  { %v377_v16 = vadd.f32 %v2070_v1, %v376_v15  ;;  %v144_v17 = vpop.f32.mrf.mxu0  ;;  %v796_v30 = vsel %vm795_vm1, %v2090_v12, 0.0 }
  0x8a   :  { %v220_v20 = vmax.f32 %v199_v14, 0.0  ;;  %v145_v21 = vadd.f32 %v2070_v1, %v144_v17  ;;  %v322_v22 = vpop.f32.mrf.mxu1  ;;  %v1684_v17 = vld [vmem:[%s3016_s0 + $0x278] sm:$0xff] }
  0x8b   :  { %v398_v25 = vmax.f32 %v377_v16, 0.0  ;;  %v323_v26 = vadd.f32 %v2070_v1, %v322_v22  ;;  %v1644_v22 = vld [vmem:[%s3016_s0 + $0x1d8] sm:$0xff] }
  0x8c   :  { %v202_v27 = vmax.f32 %v145_v21, 0.0  ;;  %1582 = vmatmul.msk.f32.gmra.mxu0 %vm63_vm0, %v57_v18  ;;  %1701 = vmatmul.msk.f32.gmra.mxu3 %vm63_vm0, %v1681_v19 }
  0x8d   :  { %v2110_v28 = vmax.f32 %v220_v20, %v398_v25  ;;  %v380_v29 = vmax.f32 %v323_v26, 0.0  ;;  %1622 = vmatmul.msk.f32.gmra.mxu1 %vm63_vm0, %v1602_v23  ;;  %1661 = vmatmul.msk.f32.gmra.mxu2 %vm63_vm0, %v1641_v24 }
  0x8f   :  { %v2116_v31 = vmax.f32 %v202_v27, %v380_v29  ;;  %v695_v32 = vpop.f32.mrf.mxu3 }
  0x90   :  { %v517_v33 = vpop.f32.mrf.mxu2  ;;  %v696_v34 = vadd.f32 %v2070_v1, %v695_v32 }
  0x91   :  { %v797_v35 = vsel %vm795_vm1, %v2116_v31, 0.0  ;;  %v518_v36 = vadd.f32 %v2070_v1, %v517_v33  ;;  %v147_v37 = vpop.f32.mrf.mxu0 }
  0x92   :  { %v798_v40 = vadd.f32 %v797_v35, %v796_v30  ;;  %v755_v41 = vmax.f32 %v696_v34, 0.0  ;;  %v148_v42 = vadd.f32 %v2070_v1, %v147_v37  ;;  %v325_v43 = vpop.f32.mrf.mxu1 }
  0x93   :  { %v577_v46 = vmax.f32 %v518_v36, 0.0  ;;  %v326_v47 = vadd.f32 %v2070_v1, %v325_v43 }
  0x94   :  { %v203_v48 = vmax.f32 %v148_v42, 0.0  ;;  %1583 = vmatmul.msk.f32.gmra.mxu0 %vm63_vm0, %v58_v38  ;;  %1702 = vmatmul.msk.f32.gmra.mxu3 %vm63_vm0, %v1682_v39 }
  0x95   :  { %v2138_v49 = vmax.f32 %v577_v46, %v755_v41  ;;  %v381_v50 = vmax.f32 %v326_v47, 0.0  ;;  %1623 = vmatmul.msk.f32.gmra.mxu1 %vm63_vm0, %v1603_v44  ;;  %1662 = vmatmul.msk.f32.gmra.mxu2 %vm63_vm0, %v1642_v45 }
  0x97   :  { %v2142_v51 = vmax.f32 %v203_v48, %v381_v50  ;;  %v698_v52 = vpop.f32.mrf.mxu3  ;;  %v841_v6 = vsel %vm795_vm1, %v2138_v49, 0.0 }
  0x98   :  { %v520_v53 = vpop.f32.mrf.mxu2  ;;  %v699_v54 = vadd.f32 %v2070_v1, %v698_v52 }
  0x99   :  { %v799_v55 = vsel %vm795_vm1, %v2142_v51, 0.0  ;;  %v521_v56 = vadd.f32 %v2070_v1, %v520_v53  ;;  %v150_v57 = vpop.f32.mrf.mxu0 }
  0x9a   :  { %v800_v59 = vadd.f32 %v799_v55, %v798_v40  ;;  %v756_v60 = vmax.f32 %v699_v54, 0.0  ;;  %v151_v61 = vadd.f32 %v2070_v1, %v150_v57  ;;  %v328_v62 = vpop.f32.mrf.mxu1 }
  0x9b   :  { %v578_v0 = vmax.f32 %v521_v56, 0.0  ;;  %v329_v2 = vadd.f32 %v2070_v1, %v328_v62 }
  0x9c   :  { %v204_v3 = vmax.f32 %v151_v61, 0.0  ;;  %1703 = vmatmul.msk.f32.gmra.mxu3 %vm63_vm0, %v1683_v58 }
  0x9d   :  { %v2157_v4 = vmax.f32 %v578_v0, %v756_v60  ;;  %v382_v5 = vmax.f32 %v329_v2, 0.0  ;;  %1663 = vmatmul.msk.f32.gmra.mxu2 %vm63_vm0, %v1643_v63 }
  0x9f   :  { %v842_v7 = vsel %vm795_vm1, %v2157_v4, 0.0  ;;  %v2164_v8 = vmax.f32 %v204_v3, %v382_v5  ;;  %v701_v9 = vpop.f32.mrf.mxu3 }
  0xa0   :  { %v843_v10 = vadd.f32 %v842_v7, %v841_v6  ;;  %v523_v11 = vpop.f32.mrf.mxu2  ;;  %v702_v13 = vadd.f32 %v2070_v1, %v701_v9 }
  0xa1   :  { %v801_v14 = vsel %vm795_vm1, %v2164_v8, 0.0  ;;  %v524_v15 = vadd.f32 %v2070_v1, %v523_v11  ;;  %v153_v16 = vpop.f32.mrf.mxu0 }
  0xa2   :  { %v802_v18 = vadd.f32 %v801_v14, %v800_v59  ;;  %v757_v19 = vmax.f32 %v702_v13, 0.0  ;;  %v154_v20 = vadd.f32 %v2070_v1, %v153_v16  ;;  %v331_v21 = vpop.f32.mrf.mxu1 }
  0xa3   :  { %v579_v23 = vmax.f32 %v524_v15, 0.0  ;;  %v332_v24 = vadd.f32 %v2070_v1, %v331_v21 }
  0xa4   :  { %v205_v25 = vmax.f32 %v154_v20, 0.0  ;;  %1704 = vmatmul.msk.f32.gmra.mxu3 %vm63_vm0, %v1684_v17 }
  0xa5   :  { %v2179_v26 = vmax.f32 %v579_v23, %v757_v19  ;;  %v383_v27 = vmax.f32 %v332_v24, 0.0  ;;  %1664 = vmatmul.msk.f32.gmra.mxu2 %vm63_vm0, %v1644_v22 }
  0xa7   :  { %v844_v29 = vsel %vm795_vm1, %v2179_v26, 0.0  ;;  %v2184_v30 = vmax.f32 %v205_v25, %v383_v27  ;;  %v704_v32 = vpop.f32.mrf.mxu3 }
  0xa8   :  { %v845_v33 = vadd.f32 %v844_v29, %v843_v10  ;;  %v526_v34 = vpop.f32.mrf.mxu2  ;;  %v705_v35 = vadd.f32 %v2070_v1, %v704_v32 }
  0xa9   :  { %v803_v36 = vsel %vm795_vm1, %v2184_v30, 0.0  ;;  %v527_v37 = vadd.f32 %v2070_v1, %v526_v34  ;;  %v156_v38 = vpop.f32.mrf.mxu0 }
  0xaa   :  { %v804_v39 = vadd.f32 %v803_v36, %v802_v18  ;;  %v758_v40 = vmax.f32 %v705_v35, 0.0  ;;  %v157_v41 = vadd.f32 %v2070_v1, %v156_v38  ;;  %v334_v42 = vpop.f32.mrf.mxu1 }
  0xab   :  { %v580_v43 = vmax.f32 %v527_v37, 0.0  ;;  %v335_v44 = vadd.f32 %v2070_v1, %v334_v42 }
  0xac   :  { %v206_v45 = vmax.f32 %v157_v41, 0.0 }
  0xad   :  { %v2192_v46 = vmax.f32 %v580_v43, %v758_v40  ;;  %v384_v47 = vmax.f32 %v335_v44, 0.0 }
  0xaf   :  { %v846_v48 = vsel %vm795_vm1, %v2192_v46, 0.0  ;;  %v2196_v50 = vmax.f32 %v206_v45, %v384_v47  ;;  %v707_v52 = vpop.f32.mrf.mxu3 }
  0xb0   :  { %v847_v53 = vadd.f32 %v846_v48, %v845_v33  ;;  %v529_v54 = vpop.f32.mrf.mxu2  ;;  %v708_v55 = vadd.f32 %v2070_v1, %v707_v52 }
  0xb1   :  { %v805_v56 = vsel %vm795_vm1, %v2196_v50, 0.0  ;;  %v530_v57 = vadd.f32 %v2070_v1, %v529_v54  ;;  %v159_v58 = vpop.f32.mrf.mxu0 }
  0xb2   :  { %v806_v59 = vadd.f32 %v805_v56, %v804_v39  ;;  %v759_v60 = vmax.f32 %v708_v55, 0.0  ;;  %v160_v61 = vadd.f32 %v2070_v1, %v159_v58  ;;  %v337_v62 = vpop.f32.mrf.mxu1 }
  0xb3   :  { %v581_v63 = vmax.f32 %v530_v57, 0.0  ;;  %v338_v0 = vadd.f32 %v2070_v1, %v337_v62 }
  0xb4   :  { %v207_v2 = vmax.f32 %v160_v61, 0.0 }
  0xb5   :  { %v2204_v3 = vmax.f32 %v581_v63, %v759_v60  ;;  %v385_v5 = vmax.f32 %v338_v0, 0.0 }
  0xb7   :  { %v848_v6 = vsel %vm795_vm1, %v2204_v3, 0.0  ;;  %v2208_v7 = vmax.f32 %v207_v2, %v385_v5  ;;  %v710_v9 = vpop.f32.mrf.mxu3 }
  0xb8   :  { %v849_v10 = vadd.f32 %v848_v6, %v847_v53  ;;  %v532_v11 = vpop.f32.mrf.mxu2  ;;  %v711_v13 = vadd.f32 %v2070_v1, %v710_v9 }
  0xb9   :  { %v807_v14 = vsel %vm795_vm1, %v2208_v7, 0.0  ;;  %v533_v15 = vadd.f32 %v2070_v1, %v532_v11  ;;  %v162_v16 = vpop.f32.mrf.mxu0 }
  0xba   :  { %v808_v17 = vadd.f32 %v807_v14, %v806_v59  ;;  %v760_v18 = vmax.f32 %v711_v13, 0.0  ;;  %v163_v19 = vadd.f32 %v2070_v1, %v162_v16  ;;  %v340_v20 = vpop.f32.mrf.mxu1 }
  0xbb   :  { %v582_v21 = vmax.f32 %v533_v15, 0.0  ;;  %v341_v22 = vadd.f32 %v2070_v1, %v340_v20 }
  0xbc   :  { %v208_v23 = vmax.f32 %v163_v19, 0.0 }
  0xbd   :  { %v2216_v24 = vmax.f32 %v582_v21, %v760_v18  ;;  %v386_v25 = vmax.f32 %v341_v22, 0.0 }
  0xbf   :  { %v850_v27 = vsel %vm795_vm1, %v2216_v24, 0.0  ;;  %v2220_v29 = vmax.f32 %v208_v23, %v386_v25  ;;  %v713_v32 = vpop.f32.mrf.mxu3 }
  0xc0   :  { %v851_v33 = vadd.f32 %v850_v27, %v849_v10  ;;  %v535_v34 = vpop.f32.mrf.mxu2  ;;  %v714_v35 = vadd.f32 %v2070_v1, %v713_v32 }
  0xc1   :  { %v809_v36 = vsel %vm795_vm1, %v2220_v29, 0.0  ;;  %v536_v37 = vadd.f32 %v2070_v1, %v535_v34  ;;  %v165_v38 = vpop.f32.mrf.mxu0 }
  0xc2   :  { %v2226_v39 = vadd.f32 %v809_v36, %v808_v17  ;;  %v761_v40 = vmax.f32 %v714_v35, 0.0  ;;  %v343_v41 = vpop.f32.mrf.mxu1  ;;  %v166_v36 = vadd.f32 %v2070_v1, %v165_v38 }
  0xc3   :  { %v583_v42 = vmax.f32 %v536_v37, 0.0  ;;  %v344_v37 = vadd.f32 %v2070_v1, %v343_v41 }
  0xc5   :  { %v2228_v43 = vmax.f32 %v583_v42, %v761_v40 }
  0xc7   :  { %v852_v44 = vsel %vm795_vm1, %v2228_v43, 0.0  ;;  %v716_v45 = vpop.f32.mrf.mxu3 }
  0xc8   :  { %v853_v47 = vadd.f32 %v852_v44, %v851_v33  ;;  %v538_v48 = vpop.f32.mrf.mxu2  ;;  %v717_v52 = vadd.f32 %v2070_v1, %v716_v45 }
  0xc9   :  { %v539_v53 = vadd.f32 %v2070_v1, %v538_v48  ;;  %v168_v54 = vpop.f32.mrf.mxu0 }
  0xca   :  { %v762_v55 = vmax.f32 %v717_v52, 0.0  ;;  %v346_v56 = vpop.f32.mrf.mxu1  ;;  %v169_v42 = vadd.f32 %v2070_v1, %v168_v54 }
  0xcb   :  { %v584_v57 = vmax.f32 %v539_v53, 0.0  ;;  %v347_v44 = vadd.f32 %v2070_v1, %v346_v56 }
  0xcd   :  { %v2234_v58 = vmax.f32 %v584_v57, %v762_v55  ;;  %v209_v55 = vmax.f32 %v166_v36, 0.0  ;;  %v387_v57 = vmax.f32 %v344_v37, 0.0  ;;  %v388_v38 = vmax.f32 %v347_v44, 0.0 }
  0xcf   :  { %v854_v59 = vsel %vm795_vm1, %v2234_v58, 0.0  ;;  %v719_v60 = vpop.f32.mrf.mxu3 }
  0xd0   :  { %v855_v61 = vadd.f32 %v854_v59, %v853_v47  ;;  %v541_v62 = vpop.f32.mrf.mxu2  ;;  %v720_v63 = vadd.f32 %v2070_v1, %v719_v60  ;;  %v210_v59 = vmax.f32 %v169_v42, 0.0 }
  0xd1   :  { %v542_v0 = vadd.f32 %v2070_v1, %v541_v62  ;;  %v171_v2 = vpop.f32.mrf.mxu0 }
  0xd2   :  { %v763_v5 = vmax.f32 %v720_v63, 0.0  ;;  %v349_v6 = vpop.f32.mrf.mxu1  ;;  %v172_v48 = vadd.f32 %v2070_v1, %v171_v2  ;;  %v2274_v63 = vmax.f32 %v209_v55, %v387_v57  ;;  %v2278_v2 = vmax.f32 %v210_v59, %v388_v38 }
  0xd3   :  { %v585_v9 = vmax.f32 %v542_v0, 0.0  ;;  %v350_v52 = vadd.f32 %v2070_v1, %v349_v6 }
  0xd4   :  { %v811_v42 = vsel %vm795_vm1, %v2274_v63, 0.0 }
  0xd5   :  { %v2240_v10 = vmax.f32 %v585_v9, %v763_v5  ;;  %v389_v54 = vmax.f32 %v350_v52, 0.0  ;;  %v813_v52 = vsel %vm795_vm1, %v2278_v2, 0.0  ;;  %v812_v38 = vadd.f32 %v811_v42, %v2226_v39 }
  0xd7   :  { %v856_v11 = vsel %vm795_vm1, %v2240_v10, 0.0  ;;  %v722_v13 = vpop.f32.mrf.mxu3 }
  0xd8   :  { %v2244_v14 = vadd.f32 %v856_v11, %v855_v61  ;;  %v2246_v15 = vpop.f32.mrf.mxu2  ;;  %v211_v61 = vmax.f32 %v172_v48, 0.0 }
  0xd9   :  { %v174_v16 = vpop.f32.mrf.mxu0 }
  0xda   :  { %v352_v17 = vpop.f32.mrf.mxu1  ;;  %v175_v41 = vadd.f32 %v2070_v1, %v174_v16  ;;  %v2284_v36 = vmax.f32 %v211_v61, %v389_v54 }
  0xdb   :  { %v353_v60 = vadd.f32 %v2070_v1, %v352_v17 }
  0xdc   :  { %v212_v5 = vmax.f32 %v175_v41, 0.0  ;;  %v815_v41 = vsel %vm795_vm1, %v2284_v36, 0.0 }
  0xdd   :  { %v390_v6 = vmax.f32 %v353_v60, 0.0 }
  0xdf   :  { %v2248_v18 = vpop.f32.mrf.mxu3  ;;  %v2292_v55 = vmax.f32 %v212_v5, %v390_v6 }
  0xe0   :  { %v2250_v19 = vpop.f32.mrf.mxu2 }
  0xe1   :  { %v177_v20 = vpop.f32.mrf.mxu0  ;;  %v817_v5 = vsel %vm795_vm1, %v2292_v55, 0.0 }
  0xe2   :  { %v355_v21 = vpop.f32.mrf.mxu1  ;;  %v178_v56 = vadd.f32 %v2070_v1, %v177_v20 }
  0xe3   :  { %v356_v62 = vadd.f32 %v2070_v1, %v355_v21 }
  0xe4   :  { %v213_v20 = vmax.f32 %v178_v56, 0.0 }
  0xe5   :  { %v391_v37 = vmax.f32 %v356_v62, 0.0 }
  0xe7   :  { %v2252_v22 = vpop.f32.mrf.mxu3  ;;  %v2300_v60 = vmax.f32 %v213_v20, %v391_v37 }
  0xe8   :  { %v2254_v23 = vpop.f32.mrf.mxu2 }
  0xe9   :  { %v180_v25 = vpop.f32.mrf.mxu0  ;;  %v819_v37 = vsel %vm795_vm1, %v2300_v60, 0.0 }
  0xea   :  { %v358_v27 = vpop.f32.mrf.mxu1  ;;  %v181_v11 = vadd.f32 %v2070_v1, %v180_v25 }
  0xeb   :  { %v359_v16 = vadd.f32 %v2070_v1, %v358_v27 }
  0xec   :  { %v214_v25 = vmax.f32 %v181_v11, 0.0 }
  0xed   :  { %v392_v27 = vmax.f32 %v359_v16, 0.0 }
  0xef   :  { %v2256_v32 = vpop.f32.mrf.mxu3 }
  0xf0   :  { %v2258_v33 = vpop.f32.mrf.mxu2 }
  0xf1   :  { %v183_v34 = vpop.f32.mrf.mxu0 }
  0xf2   :  { %v361_v35 = vpop.f32.mrf.mxu1  ;;  %v184_v44 = vadd.f32 %v2070_v1, %v183_v34  ;;  %v723_v34 = vadd.f32 %v2070_v1, %v722_v13  ;;  %v2312_v13 = vmax.f32 %v214_v25, %v392_v27  ;;  %v548_v27 = vadd.f32 %v2070_v1, %v2250_v19 }
  0xf3   :  { %v362_v48 = vadd.f32 %v2070_v1, %v361_v35 }
  0xf4   :  { %v215_v35 = vmax.f32 %v184_v44, 0.0  ;;  %v587_v19 = vmax.f32 %v548_v27, 0.0 }
  0xf5   :  { %v393_v61 = vmax.f32 %v362_v48, 0.0 }
  0xf7   :  { %v2262_v40 = vpop.f32.mrf.mxu3  ;;  %v2317_v44 = vmax.f32 %v215_v35, %v393_v61 }
  0xf8   :  { %v2266_v45 = vpop.f32.mrf.mxu2 }
  0xf9   :  { %v186_v47 = vpop.f32.mrf.mxu0 }
  0xfa   :  { %v364_v53 = vpop.f32.mrf.mxu1  ;;  %v187_v57 = vadd.f32 %v2070_v1, %v186_v47  ;;  %v814_v47 = vadd.f32 %v813_v52, %v812_v38 }
  0xfb   :  { %v365_v59 = vadd.f32 %v2070_v1, %v364_v53  ;;  %v545_v53 = vadd.f32 %v2070_v1, %v2246_v15 }
  0xfc   :  { %v216_v6 = vmax.f32 %v187_v57, 0.0  ;;  %v816_v20 = vadd.f32 %v815_v41, %v814_v47  ;;  %v726_v57 = vadd.f32 %v2070_v1, %v2248_v18 }
  0xfd   :  { %v394_v11 = vmax.f32 %v365_v59, 0.0  ;;  %v586_v38 = vmax.f32 %v545_v53, 0.0  ;;  %v821_v59 = vsel %vm795_vm1, %v2312_v13, 0.0 }
  0xfe   :  { %v818_v25 = vadd.f32 %v817_v5, %v816_v20  ;;  %v765_v5 = vmax.f32 %v726_v57, 0.0  ;;  %v551_v20 = vadd.f32 %v2070_v1, %v2254_v23  ;;  %v735_v23 = vadd.f32 %v2070_v1, %v2262_v40 }
  0xff   :  { %v2276_v0 = vpop.f32.mrf.mxu3  ;;  %v2326_v41 = vmax.f32 %v216_v6, %v394_v11  ;;  %v729_v6 = vadd.f32 %v2070_v1, %v2252_v22 }
 0x100   :  { %v2280_v9 = vpop.f32.mrf.mxu2  ;;  %v820_v61 = vadd.f32 %v819_v37, %v818_v25  ;;  %v588_v57 = vmax.f32 %v551_v20, 0.0  ;;  %v2358_v40 = vmax.f32 %v587_v19, %v765_v5 }
 0x101   :  { %v189_v17 = vpop.f32.mrf.mxu0  ;;  %v825_v11 = vsel %vm795_vm1, %v2326_v41, 0.0 }
 0x102   :  { %v367_v21 = vpop.f32.mrf.mxu1  ;;  %v190_v54 = vadd.f32 %v2070_v1, %v189_v17  ;;  %v764_v17 = vmax.f32 %v723_v34, 0.0 }
 0x103   :  { %v368_v56 = vadd.f32 %v2070_v1, %v367_v21 }
 0x104   :  { %v217_v15 = vmax.f32 %v190_v54, 0.0  ;;  %v823_v54 = vsel %vm795_vm1, %v2317_v44, 0.0  ;;  %v2332_v53 = vmax.f32 %v586_v38, %v764_v17  ;;  %v554_v17 = vadd.f32 %v2070_v1, %v2258_v33 }
 0x105   :  { %v395_v48 = vmax.f32 %v368_v56, 0.0  ;;  %v557_v33 = vadd.f32 %v2070_v1, %v2266_v45  ;;  %v738_v45 = vadd.f32 %v2070_v1, %v2276_v0 }
 0x106   :  { %v858_v25 = vsel %vm795_vm1, %v2332_v53, 0.0 }
 0x107   :  { %v2304_v62 = vpop.f32.mrf.mxu3  ;;  %v2330_v56 = vmax.f32 %v217_v15, %v395_v48 }
 0x108   :  { %v2308_v39 = vpop.f32.mrf.mxu2  ;;  %v741_v19 = vadd.f32 %v2070_v1, %v2304_v62  ;;  %v769_v62 = vmax.f32 %v738_v45, 0.0 }
 0x109   :  { %v192_v16 = vpop.f32.mrf.mxu0  ;;  %v827_v22 = vsel %vm795_vm1, %v2330_v56, 0.0 }
 0x10a   :  { %v193_v21 = vadd.f32 %v2070_v1, %v192_v16  ;;  %v370_v42 = vpop.f32.mrf.mxu1  ;;  %v822_v16 = vadd.f32 %v821_v59, %v820_v61  ;;  %v766_v59 = vmax.f32 %v729_v6, 0.0  ;;  %v589_v61 = vmax.f32 %v554_v17, 0.0 }
 0x10b   :  { %v371_v52 = vadd.f32 %v2070_v1, %v370_v42  ;;  %v732_v42 = vadd.f32 %v2070_v1, %v2256_v32  ;;  %v590_v6 = vmax.f32 %v557_v33, 0.0 }
 0x10c   :  { %v218_v34 = vmax.f32 %v193_v21, 0.0  ;;  %v824_v15 = vadd.f32 %v823_v54, %v822_v16 }
 0x10d   :  { %v396_v35 = vmax.f32 %v371_v52, 0.0  ;;  %v767_v54 = vmax.f32 %v732_v42, 0.0  ;;  %v833_v42 = vsel %vm795_vm1, %v2110_v28, 0.0 }
 0x10e   :  { %v826_v27 = vadd.f32 %v825_v11, %v824_v15  ;;  %v563_v15 = vadd.f32 %v2070_v1, %v2308_v39 }
 0x10f   :  { %v743_v47 = vpop.f32.mrf.mxu3  ;;  %v2340_v37 = vmax.f32 %v218_v34, %v396_v35 }
 0x110   :  { %v565_v18 = vpop.f32.mrf.mxu2  ;;  %v828_v16 = vadd.f32 %v827_v22, %v826_v27  ;;  %v2379_v22 = vmax.f32 %v589_v61, %v767_v54  ;;  %v744_v27 = vadd.f32 %v2070_v1, %v743_v47 }
 0x111   :  { %v195_v21 = vpop.f32.mrf.mxu0  ;;  %v829_v34 = vsel %vm795_vm1, %v2340_v37, 0.0  ;;  %v566_v33 = vadd.f32 %v2070_v1, %v565_v18 }
 0x112   :  { %v196_v48 = vadd.f32 %v2070_v1, %v195_v21  ;;  %v373_v52 = vpop.f32.mrf.mxu1  ;;  %v768_v21 = vmax.f32 %v735_v23, 0.0  ;;  %v830_v5 = vadd.f32 %v829_v34, %v828_v16  ;;  %v860_v23 = vsel %vm795_vm1, %v2358_v40, 0.0 }
 0x113   :  { %v374_v38 = vadd.f32 %v2070_v1, %v373_v52  ;;  %v560_v52 = vadd.f32 %v2070_v1, %v2280_v9  ;;  %v859_v9 = vadd.f32 %v858_v25, %v2244_v14  ;;  %v864_v54 = vsel %vm795_vm1, %v2379_v22, 0.0 }
 0x114   :  { %v219_v32 = vmax.f32 %v196_v48, 0.0  ;;  %v2372_v48 = vmax.f32 %v588_v57, %v766_v59  ;;  %v592_v57 = vmax.f32 %v563_v15, 0.0  ;;  %v770_v59 = vmax.f32 %v741_v19, 0.0 }
 0x115   :  { %v397_v35 = vmax.f32 %v374_v38, 0.0  ;;  %v591_v38 = vmax.f32 %v560_v52, 0.0  ;;  %v861_v61 = vadd.f32 %v860_v23, %v859_v9  ;;  %v593_v18 = vmax.f32 %v566_v33, 0.0 }
 0x116   :  { %v862_v14 = vsel %vm795_vm1, %v2372_v48, 0.0  ;;  %v771_v47 = vmax.f32 %v744_v27, 0.0 }
 0x117   :  { %v2364_v11 = vmax.f32 %v219_v32, %v397_v35  ;;  %v746_v20 = vpop.f32.mrf.mxu3  ;;  %v2383_v32 = vmax.f32 %v590_v6, %v768_v21  ;;  %v2391_v16 = vmax.f32 %v591_v38, %v769_v62  ;;  %v863_v52 = vadd.f32 %v862_v14, %v861_v61 }
 0x118   :  { %v568_v17 = vpop.f32.mrf.mxu2  ;;  %v747_v35 = vadd.f32 %v2070_v1, %v746_v20  ;;  %v2395_v6 = vmax.f32 %v592_v57, %v770_v59  ;;  %v2401_v9 = vmax.f32 %v593_v18, %v771_v47  ;;  %v1740_v62 = vmov 320.0  }
 0x119   :  { %v831_v0 = vsel %vm795_vm1, %v2364_v11, 0.0  ;;  %v569_v25 = vadd.f32 %v2070_v1, %v568_v17  ;;  %v866_v45 = vsel %vm795_vm1, %v2383_v32, 0.0  ;;  %1732 = vrcp.f32 %v1740_v62 }
 0x11a   :  { %v832_v39 = vadd.f32 %v831_v0, %v830_v5  ;;  %v772_v20 = vmax.f32 %v747_v35, 0.0  ;;  %v868_v0 = vsel %vm795_vm1, %v2391_v16, 0.0  ;;  %v870_v33 = vsel %vm795_vm1, %v2395_v6, 0.0 }
 0x11b   :  { %v594_v5 = vmax.f32 %v569_v25, 0.0  ;;  %v872_v59 = vsel %vm795_vm1, %v2401_v9, 0.0 }
 0x11c   :  { %v834_v34 = vadd.f32 %v833_v42, %v832_v39  ;;  %v865_v42 = vadd.f32 %v864_v54, %v863_v52 }
 0x11d   :  { %v2405_v27 = vmax.f32 %v594_v5, %v772_v20 }
 0x11e   :  { %v867_v38 = vadd.f32 %v866_v45, %v865_v42  ;;  %v835_v61 = vrot.slane %v834_v34, 4 }
 0x11f   :  { %v749_v21 = vpop.f32.mrf.mxu3  ;;  %v874_v47 = vsel %vm795_vm1, %v2405_v27, 0.0  ;;  %v1733_v52 = vpop.eup %1732 }
 0x120   :  { %v571_v15 = vpop.f32.mrf.mxu2  ;;  %v750_v19 = vadd.f32 %v2070_v1, %v749_v21  ;;  %v869_v57 = vadd.f32 %v868_v0, %v867_v38  ;;  %v836_v20 = vadd.f32 %v835_v61, %v834_v34  ;;  %v888_v0 = vmul.f32 320.0, %v1733_v52 }
 0x121   :  { %v572_v17 = vadd.f32 %v2070_v1, %v571_v15  ;;  %vm892_vm2 = vweird.f32 %v1733_v52 }
 0x122   :  { %v773_v39 = vmax.f32 %v750_v19, 0.0  ;;  %v871_v35 = vadd.f32 %v870_v33, %v869_v57  ;;  %v837_v38 = vrot.slane %v836_v20, 2  ;;  %v889_v33 = vsub.f32 1.0, %v888_v0 }
 0x123   :  { %v595_v23 = vmax.f32 %v572_v17, 0.0 }
 0x124   :  { %v873_v45 = vadd.f32 %v872_v59, %v871_v35  ;;  %v838_v57 = vadd.f32 %v837_v38, %v836_v20 }
 0x125   :  { %v2409_v14 = vmax.f32 %v595_v23, %v773_v39 }
 0x126   :  { %v875_v17 = vadd.f32 %v874_v47, %v873_v45 }
 0x127   :  { %v752_v25 = vpop.f32.mrf.mxu3  ;;  %v876_v19 = vsel %vm795_vm1, %v2409_v14, 0.0 }
 0x128   :  { %v574_v54 = vpop.f32.mrf.mxu2  ;;  %v753_v18 = vadd.f32 %v2070_v1, %v752_v25  ;;  %v877_v23 = vadd.f32 %v876_v19, %v875_v17  ;;  %v890_v25 = vmul.f32 %v1733_v52, %v889_v33 }
 0x129   :  { %v575_v21 = vadd.f32 %v2070_v1, %v574_v54  ;;  %v839_v54 = vrot.slane %v838_v57, 1 }
 0x12a   :  { %v774_v15 = vmax.f32 %v753_v18, 0.0 }
 0x12b   :  { %v596_v5 = vmax.f32 %v575_v21, 0.0  ;;  %v891_v21 = vadd.f32 %v1733_v52, %v890_v25  ;;  %v840_v61 = vadd.f32 %v839_v54, %v838_v57 }
 0x12d   :  { %v2417_v42 = vmax.f32 %v596_v5, %v774_v15  ;;  %v2421_v45 = vsel %vm892_vm2, %v1733_v52, %v891_v21 }
 0x12f   :  { %v878_v39 = vsel %vm795_vm1, %v2417_v42, 0.0 }
 0x130   :  { %v879_v62 = vadd.f32 %v878_v39, %v877_v23 }
 0x132   :  { %v880_v1 = vrot.slane %v879_v62, 4 }
 0x134   :  { %v881_v59 = vadd.f32 %v880_v1, %v879_v62 }
 0x136   :  { %v882_v35 = vrot.slane %v881_v59, 2 }
 0x138   :  { %v883_v18 = vadd.f32 %v882_v35, %v881_v59 }
 0x13a   :  { %v884_v34 = vrot.slane %v883_v18, 1 }
 0x13c   :  { %v885_v47 = vadd.f32 %v884_v34, %v883_v18 }
 0x13e   :  { %v886_v15 = vadd.f32 %v885_v47, %v840_v61 }
 0x140   :  { %v2424_v19 = vmul.f32 %v2421_v45, %v886_v15 }
 0x142   :  { %v2428_v5 = vsub.f32 %v2090_v12, %v2424_v19  ;;  %v2432_v20 = vsub.f32 %v2116_v31, %v2424_v19  ;;  %v2436_v17 = vsub.f32 %v2142_v51, %v2424_v19  ;;  %v2440_v52 = vsub.f32 %v2164_v8, %v2424_v19 }
 0x143   :  { %v2444_v0 = vsub.f32 %v2184_v30, %v2424_v19  ;;  %v2448_v12 = vsub.f32 %v2196_v50, %v2424_v19  ;;  %v2452_v31 = vsub.f32 %v2208_v7, %v2424_v19  ;;  %v2456_v51 = vsub.f32 %v2220_v29, %v2424_v19 }
 0x144   :  { %v2460_v8 = vsub.f32 %v2110_v28, %v2424_v19  ;;  %v915_v30 = vmul.f32 %v2428_v5, %v2428_v5  ;;  %v916_v23 = vmul.f32 %v2432_v20, %v2432_v20  ;;  %v917_v50 = vmul.f32 %v2436_v17, %v2436_v17 }
 0x145   :  { %v918_v7 = vmul.f32 %v2440_v52, %v2440_v52  ;;  %v919_v28 = vmul.f32 %v2444_v0, %v2444_v0  ;;  %v2477_v1 = vsub.f32 %v2274_v63, %v2424_v19  ;;  %v920_v57 = vmul.f32 %v2448_v12, %v2448_v12 }
 0x146   :  { %v935_v39 = vsel %vm795_vm1, %v915_v30, 0.0  ;;  %v936_v29 = vsel %vm795_vm1, %v916_v23, 0.0  ;;  %v938_v62 = vsel %vm795_vm1, %v917_v50, 0.0  ;;  %v921_v25 = vmul.f32 %v2452_v31, %v2452_v31 }
 0x147   :  { %v937_v38 = vadd.f32 %v936_v29, %v935_v39  ;;  %v940_v59 = vsel %vm795_vm1, %v918_v7, 0.0  ;;  %v942_v54 = vsel %vm795_vm1, %v919_v28, 0.0  ;;  %v2487_v18 = vsub.f32 %v2138_v49, %v2424_v19 }
 0x148   :  { %v2491_v21 = vsub.f32 %v2157_v4, %v2424_v19  ;;  %v2495_v63 = vsub.f32 %v2179_v26, %v2424_v19  ;;  %v2499_v34 = vsub.f32 %v2192_v46, %v2424_v19  ;;  %v2503_v61 = vsub.f32 %v2204_v3, %v2424_v19 }
 0x149   :  { %v939_v33 = vadd.f32 %v938_v62, %v937_v38  ;;  %v2507_v49 = vsub.f32 %v2216_v24, %v2424_v19  ;;  %v2511_v4 = vsub.f32 %v2228_v43, %v2424_v19  ;;  %v2515_v26 = vsub.f32 %v2234_v58, %v2424_v19 }
 0x14a   :  { %v2519_v46 = vsub.f32 %v2278_v2, %v2424_v19  ;;  %v922_v3 = vmul.f32 %v2456_v51, %v2456_v51  ;;  %v944_v15 = vsel %vm795_vm1, %v920_v57, 0.0  ;;  %v2526_v24 = vsub.f32 %v2240_v10, %v2424_v19 }
 0x14b   :  { %v941_v35 = vadd.f32 %v940_v59, %v939_v33  ;;  %v2530_v43 = vsub.f32 %v2284_v36, %v2424_v19  ;;  %v923_v58 = vmul.f32 %v2477_v1, %v2477_v1  ;;  %v946_v2 = vsel %vm795_vm1, %v921_v25, 0.0 }
 0x14c   :  { %v2537_v50 = vsub.f32 %v2292_v55, %v2424_v19  ;;  %v924_v7 = vmul.f32 %v2519_v46, %v2519_v46  ;;  %v948_v10 = vsel %vm795_vm1, %v922_v3, 0.0  ;;  %v1000_v36 = vmul.f32 %v2487_v18, %v2487_v18 }
 0x14d   :  { %v943_v47 = vadd.f32 %v942_v54, %v941_v35  ;;  %v1001_v29 = vmul.f32 %v2491_v21, %v2491_v21  ;;  %v2548_v28 = vsub.f32 %v2300_v60, %v2424_v19  ;;  %v925_v55 = vmul.f32 %v2530_v43, %v2530_v43 }
 0x14e   :  { %v950_v38 = vsel %vm795_vm1, %v923_v58, 0.0  ;;  %v1002_v33 = vmul.f32 %v2495_v63, %v2495_v63  ;;  %v2557_v57 = vsub.f32 %v2312_v13, %v2424_v19  ;;  %v926_v59 = vmul.f32 %v2537_v50, %v2537_v50 }
 0x14f   :  { %v945_v30 = vadd.f32 %v944_v15, %v943_v47  ;;  %v952_v25 = vsel %vm795_vm1, %v924_v7, 0.0  ;;  %v1003_v35 = vmul.f32 %v2499_v34, %v2499_v34  ;;  %v1020_v54 = vsel %vm795_vm1, %v1000_v36, 0.0 }
 0x150   :  { %v1021_v47 = vsel %vm795_vm1, %v1001_v29, 0.0  ;;  %v2568_v3 = vsub.f32 %v2317_v44, %v2424_v19  ;;  %v927_v13 = vmul.f32 %v2548_v28, %v2548_v28  ;;  %v954_v15 = vsel %vm795_vm1, %v925_v55, 0.0 }
 0x151   :  { %v947_v23 = vadd.f32 %v946_v2, %v945_v30  ;;  %v1022_v30 = vadd.f32 %v1021_v47, %v1020_v54  ;;  %v1004_v2 = vmul.f32 %v2503_v61, %v2503_v61  ;;  %v2578_v7 = vsub.f32 %v2326_v41, %v2424_v19 }
 0x152   :  { %v928_v44 = vmul.f32 %v2557_v57, %v2557_v57  ;;  %v1005_v29 = vmul.f32 %v2507_v49, %v2507_v49  ;;  %v1025_v55 = vsel %vm795_vm1, %v1003_v35, 0.0  ;;  %v929_v41 = vmul.f32 %v2568_v3, %v2568_v3 }
 0x153   :  { %v949_v39 = vadd.f32 %v948_v10, %v947_v23  ;;  %v1023_v23 = vsel %vm795_vm1, %v1002_v33, 0.0  ;;  %v956_v10 = vsel %vm795_vm1, %v926_v59, 0.0  ;;  %v1006_v59 = vmul.f32 %v2511_v4, %v2511_v4 }
 0x154   :  { %v2598_v54 = vsub.f32 %v2340_v37, %v2424_v19  ;;  %v960_v35 = vsel %vm795_vm1, %v928_v44, 0.0  ;;  %v2612_v37 = vsub.f32 %v2364_v11, %v2424_v19 }
 0x155   :  { %v951_v62 = vadd.f32 %v950_v38, %v949_v39  ;;  %v1024_v39 = vadd.f32 %v1023_v23, %v1022_v30  ;;  %v2588_v38 = vsub.f32 %v2330_v56, %v2424_v19  ;;  %v930_v56 = vmul.f32 %v2578_v7, %v2578_v7 }
 0x156   :  { %v1007_v30 = vmul.f32 %v2515_v26, %v2515_v26  ;;  %v962_v23 = vsel %vm795_vm1, %v929_v41, 0.0  ;;  %v932_v11 = vmul.f32 %v2598_v54, %v2598_v54  ;;  %v2629_v41 = vsub.f32 %v2372_v48, %v2424_v19 }
 0x157   :  { %v953_v60 = vadd.f32 %v952_v25, %v951_v62  ;;  %v958_v62 = vsel %vm795_vm1, %v927_v13, 0.0  ;;  %v1026_v33 = vadd.f32 %v1025_v55, %v1024_v39  ;;  %v2605_v13 = vsub.f32 %v2332_v53, %v2424_v19 }
 0x158   :  { %v2619_v53 = vsub.f32 %v2358_v40, %v2424_v19  ;;  %v1008_v39 = vmul.f32 %v2526_v24, %v2526_v24 }
 0x159   :  { %v955_v58 = vadd.f32 %v954_v15, %v953_v60  ;;  %v1027_v60 = vsel %vm795_vm1, %v1004_v2, 0.0  ;;  %v931_v2 = vmul.f32 %v2588_v38, %v2588_v38  ;;  %v1009_v40 = vmul.f32 %v2605_v13, %v2605_v13 }
 0x15a   :  { %v1028_v47 = vadd.f32 %v1027_v60, %v1026_v33  ;;  %v1033_v33 = vsel %vm795_vm1, %v1007_v30, 0.0  ;;  %v1010_v48 = vmul.f32 %v2619_v53, %v2619_v53 }
 0x15b   :  { %v957_v36 = vadd.f32 %v956_v10, %v955_v58  ;;  %v1029_v58 = vsel %vm795_vm1, %v1005_v29, 0.0  ;;  %v964_v29 = vsel %vm795_vm1, %v930_v56, 0.0  ;;  %v2639_v56 = vsub.f32 %v2379_v22, %v2424_v19 }
 0x15c   :  { %v1030_v44 = vadd.f32 %v1029_v58, %v1028_v47  ;;  %v1035_v47 = vsel %vm795_vm1, %v1008_v39, 0.0  ;;  %v934_v22 = vmul.f32 %v2460_v8, %v2460_v8  ;;  %v2657_v39 = vsub.f32 %v2391_v16, %v2424_v19 }
 0x15d   :  { %v959_v25 = vadd.f32 %v958_v62, %v957_v36  ;;  %v1031_v36 = vsel %vm795_vm1, %v1006_v59, 0.0  ;;  %v966_v59 = vsel %vm795_vm1, %v931_v2, 0.0  ;;  %v1011_v2 = vmul.f32 %v2629_v41, %v2629_v41 }
 0x15e   :  { %v1032_v55 = vadd.f32 %v1031_v36, %v1030_v44  ;;  %v1037_v44 = vsel %vm795_vm1, %v1009_v40, 0.0  ;;  %v972_v16 = vsel %vm795_vm1, %v934_v22, 0.0 }
 0x15f   :  { %v961_v15 = vadd.f32 %v960_v35, %v959_v25  ;;  %v933_v25 = vmul.f32 %v2612_v37, %v2612_v37 }
 0x160   :  { %v1034_v60 = vadd.f32 %v1033_v33, %v1032_v55  ;;  %v1041_v33 = vsel %vm795_vm1, %v1011_v2, 0.0 }
 0x161   :  { %v963_v10 = vadd.f32 %v962_v23, %v961_v15  ;;  %v968_v15 = vsel %vm795_vm1, %v932_v11, 0.0  ;;  %v2647_v23 = vsub.f32 %v2383_v32, %v2424_v19  ;;  %v970_v36 = vsel %vm795_vm1, %v933_v25, 0.0 }
 0x162   :  { %v1036_v58 = vadd.f32 %v1035_v47, %v1034_v60  ;;  %v1012_v11 = vmul.f32 %v2639_v56, %v2639_v56  ;;  %v1039_v32 = vsel %vm795_vm1, %v1010_v48, 0.0  ;;  %v1014_v60 = vmul.f32 %v2657_v39, %v2657_v39 }
 0x163   :  { %v965_v62 = vadd.f32 %v964_v29, %v963_v10  ;;  %v1013_v40 = vmul.f32 %v2647_v23, %v2647_v23  ;;  %v2679_v47 = vsub.f32 %v2405_v27, %v2424_v19  ;;  %v2693_v27 = vsub.f32 %v2417_v42, %v2424_v19 }
 0x164   :  { %v1038_v10 = vadd.f32 %v1037_v44, %v1036_v58  ;;  %v1047_v44 = vsel %vm795_vm1, %v1014_v60, 0.0 }
 0x165   :  { %v967_v35 = vadd.f32 %v966_v59, %v965_v62  ;;  %v2664_v62 = vsub.f32 %v2395_v6, %v2424_v19  ;;  %v2672_v59 = vsub.f32 %v2401_v9, %v2424_v19  ;;  %v1045_v58 = vsel %vm795_vm1, %v1013_v40, 0.0 }
 0x166   :  { %v1040_v55 = vadd.f32 %v1039_v32, %v1038_v10  ;;  %v2686_v9 = vsub.f32 %v2409_v14, %v2424_v19 }
 0x167   :  { %v969_v30 = vadd.f32 %v968_v15, %v967_v35  ;;  %v1043_v35 = vsel %vm795_vm1, %v1012_v11, 0.0  ;;  %v1015_v15 = vmul.f32 %v2664_v62, %v2664_v62  ;;  %v1016_v2 = vmul.f32 %v2672_v59, %v2672_v59 }
 0x168   :  { %v1042_v25 = vadd.f32 %v1041_v33, %v1040_v55  ;;  %v1018_v14 = vmul.f32 %v2686_v9, %v2686_v9  ;;  %v1019_v33 = vmul.f32 %v2693_v27, %v2693_v27 }
 0x169   :  { %v971_v29 = vadd.f32 %v970_v36, %v969_v30  ;;  %v1017_v36 = vmul.f32 %v2679_v47, %v2679_v47  ;;  %v1049_v11 = vsel %vm795_vm1, %v1015_v15, 0.0 }
 0x16a   :  { %v1044_v6 = vadd.f32 %v1043_v35, %v1042_v25  ;;  %v1055_v19 = vsel %vm795_vm1, %v1018_v14, 0.0  ;;  %v1057_v35 = vsel %vm795_vm1, %v1019_v33, 0.0 }
 0x16b   :  { %v973_v48 = vadd.f32 %v972_v16, %v971_v29  ;;  %v1051_v29 = vsel %vm795_vm1, %v1016_v2, 0.0  ;;  %v1053_v25 = vsel %vm795_vm1, %v1017_v36, 0.0 }
 0x16c   :  { %v1046_v30 = vadd.f32 %v1045_v58, %v1044_v6 }
 0x16d   :  { %v974_v22 = vrot.slane %v973_v48, 4 }
 0x16e   :  { %v1048_v10 = vadd.f32 %v1047_v44, %v1046_v30 }
 0x16f   :  { %v975_v55 = vadd.f32 %v974_v22, %v973_v48 }
 0x170   :  { %v1050_v32 = vadd.f32 %v1049_v11, %v1048_v10 }
 0x171   :  { %v976_v16 = vrot.slane %v975_v55, 2 }
 0x172   :  { %v1052_v40 = vadd.f32 %v1051_v29, %v1050_v32 }
 0x173   :  { %v977_v15 = vadd.f32 %v976_v16, %v975_v55  ;;  %v1167_v55 = vld [vmem:[%s3019_s5 + $0x10] sm:$0xf] }
 0x174   :  { %v1054_v42 = vadd.f32 %v1053_v25, %v1052_v40  ;;  %1705 = vmatpush.msk.msrb.mxu0 %vm1267_vm4, %v1167_v55  ;;  %1710 = vmatpush.msk.msrb.mxu1 %vm1267_vm4, %v1167_v55 }
 0x175   :  { %v978_v44 = vrot.slane %v977_v15, 1 }
 0x176   :  { %v1056_v60 = vadd.f32 %v1055_v19, %v1054_v42 }
 0x177   :  { %v979_v22 = vadd.f32 %v978_v44, %v977_v15 }
 0x178   :  { %v1058_v6 = vadd.f32 %v1057_v35, %v1056_v60 }
 0x17a   :  { %v1059_v58 = vrot.slane %v1058_v6, 4 }
 0x17c   :  { %v1060_v30 = vadd.f32 %v1059_v58, %v1058_v6  ;;  %v2718_v6 = vld [vmem:[%s3018_s4] ss:$0 sm:$0xff]  ;;  %s1742_s4 = smov 8  }
 0x17e   :  { %v1061_v2 = vrot.slane %v1060_v30, 2 }
 0x180   :  { %v1062_v48 = vadd.f32 %v1061_v2, %v1060_v30 }
 0x182   :  { %v1063_v10 = vrot.slane %v1062_v48, 1 }
 0x184   :  { %v1064_v11 = vadd.f32 %v1063_v10, %v1062_v48 }
 0x186   :  { %v1065_v32 = vadd.f32 %v1064_v11, %v979_v22 }
 0x188   :  { %v1066_v36 = vmul.f32 %v1065_v32, %v2421_v45  ;;  %v1078_v45 = vld [vmem:[%s3020_s3] sm:$0x1]  ;;  %s1741_s3 = smov 12  }
 0x18a   :  { %v1067_v29 = vadd.f32 1e-05, %v1066_v36 }
 0x18c   :  { %1734 = vrsqrt.f32 %v1067_v29  ;;  %vm1074_vm5 = vweird.f32 %v1067_v29 }
 0x192   :  { %v1735_v14 = vpop.eup %1734 }
 0x193   :  { %v1069_v40 = vmul.f32 %v1735_v14, %v1067_v29  ;;  %vm1075_vm3 = vweird.f32 %v1735_v14 }
 0x194   :  { %vm1076_vm6 = vmor %vm1074_vm5, %vm1075_vm3 }
 0x195   :  { %v1070_v25 = vmul.f32 %v1735_v14, %v1069_v40 }
 0x197   :  { %v1071_v42 = vmul.f32 0.5, %v1070_v25 }
 0x199   :  { %v1072_v33 = vsub.f32 1.5, %v1071_v42 }
 0x19b   :  { %v1073_v19 = vmul.f32 %v1735_v14, %v1072_v33 }
 0x19d   :  { %v1077_v16 = vsel %vm1076_vm6, %v1735_v14, %v1073_v19 }
 0x19e   :  { %v1079_v60 = vmul.f32 %v1078_v45, %v1077_v16 }
 0x1a0   :  { %v2713_v35 = vperm.slane %v1079_v60, 0 }
 0x1a2   :  { %v1093_v15 = vmul.f32 %v2713_v35, %v2548_v28  ;;  %v1089_v58 = vmul.f32 %v2713_v35, %v2477_v1  ;;  %v1085_v30 = vmul.f32 %v2713_v35, %v2444_v0  ;;  %v1137_v1 = vmul.f32 %v2713_v35, %v2639_v56 }
 0x1a3   :  { %v1133_v0 = vmul.f32 %v2713_v35, %v2526_v24  ;;  %v1129_v28 = vmul.f32 %v2713_v35, %v2503_v61  ;;  %v1081_v22 = vmul.f32 %v2713_v35, %v2428_v5  ;;  %v1082_v10 = vmul.f32 %v2713_v35, %v2432_v20 }
 0x1a4   :  { %v1117_v44 = vadd.f32 %v2718_v6, %v1093_v15  ;;  %v1113_v2 = vadd.f32 %v2718_v6, %v1089_v58  ;;  %v1109_v48 = vadd.f32 %v2718_v6, %v1085_v30  ;;  %v1083_v11 = vmul.f32 %v2713_v35, %v2436_v17 }
 0x1a5   :  { %v1084_v32 = vmul.f32 %v2713_v35, %v2440_v52  ;;  %v1125_v56 = vmul.f32 %v2713_v35, %v2487_v18  ;;  %v1126_v24 = vmul.f32 %v2713_v35, %v2491_v21  ;;  %v1127_v61 = vmul.f32 %v2713_v35, %v2495_v63 }
 0x1a6   :  { %1205 = vrot.lane.b32.xlu2 %v1117_v44, %s1741_s3  ;;  %1189 = vrot.lane.b32.xlu1 %v1113_v2, %s1742_s4  ;;  %v1157_v5 = vadd.f32 %v2718_v6, %v1137_v1  ;;  %v1153_v36 = vadd.f32 %v2718_v6, %v1133_v0  ;;  %v1128_v20 = vmul.f32 %v2713_v35, %v2499_v34 }
 0x1a7   :  { %1173 = vrot.lane.b32.xlu0 %v1109_v48, %s1743_s24  ;;  %v1149_v17 = vadd.f32 %v2718_v6, %v1129_v28  ;;  %v1141_v52 = vmul.f32 %v2713_v35, %v2672_v59  ;;  %v1086_v18 = vmul.f32 %v2713_v35, %v2448_v12  ;;  %v1097_v21 = vmul.f32 %v2713_v35, %v2588_v38 }
 0x1a8   :  { %v1132_v63 = vmul.f32 %v2713_v35, %v2515_v26  ;;  %v1092_v34 = vmul.f32 %v2713_v35, %v2537_v50  ;;  %v1088_v59 = vmul.f32 %v2713_v35, %v2456_v51  ;;  %v1096_v12 = vmul.f32 %v2713_v35, %v2578_v7 }
 0x1a9   :  { %v1140_v29 = vmul.f32 %v2713_v35, %v2664_v62  ;;  %v1136_v38 = vmul.f32 %v2713_v35, %v2629_v41  ;;  %v1144_v50 = vmul.f32 %v2713_v35, %v2693_v27  ;;  %v1100_v51 = vmul.f32 %v2713_v35, %v2460_v8 }
 0x1aa   :  { %v2779_v14 = vadd.f32 %v2718_v6, %v1132_v63  ;;  %v2782_v26 = vadd.f32 %v2718_v6, %v1092_v34  ;;  %v2789_v7 = vadd.f32 %v2718_v6, %v1088_v59  ;;  %v2792_v62 = vadd.f32 %v2718_v6, %v1096_v12 }
 0x1ab   :  { %v2795_v41 = vadd.f32 %v2718_v6, %v1140_v29  ;;  %v2798_v40 = vadd.f32 %v2718_v6, %v1136_v38  ;;  %v2801_v25 = vadd.f32 %v2718_v6, %v1144_v50  ;;  %v2804_v27 = vadd.f32 %v2718_v6, %v1100_v51 }
 0x1ac   :  { %v2807_v8 = vadd.f32 %v2718_v6, %v1082_v10  ;;  %v2810_v42 = vadd.f32 %v2718_v6, %v1081_v22  ;;  %v2813_v33 = vadd.f32 %v2718_v6, %v1125_v56  ;;  %v2816_v55 = vadd.f32 %v2718_v6, %v1127_v61 }
 0x1ad   :  { %v2819_v19 = vadd.f32 %v2718_v6, %v1126_v24  ;;  %v2822_v45 = vadd.f32 %v2718_v6, %v1083_v11  ;;  %v1161_v16 = vadd.f32 %v2718_v6, %v1141_v52  ;;  %v1110_v60 = vadd.f32 %v2718_v6, %v1086_v18 }
 0x1ae   :  { %1340 = vrot.lane.b32.xlu2 %v1157_v5, %s1741_s3  ;;  %1324 = vrot.lane.b32.xlu1 %v1153_v36, %s1742_s4  ;;  %v2827_v15 = vadd.f32 %v2718_v6, %v1128_v20  ;;  %v2830_v58 = vadd.f32 %v2718_v6, %v1084_v32  ;;  %v1121_v30 = vadd.f32 %v2718_v6, %v1097_v21 }
 0x1af   :  { %1308 = vrot.lane.b32.xlu0 %v1149_v17, %s1743_s24  ;;  %v1090_v44 = vmul.f32 %v2713_v35, %v2519_v46  ;;  %v1134_v2 = vmul.f32 %v2713_v35, %v2605_v13  ;;  %v1130_v48 = vmul.f32 %v2713_v35, %v2507_v49  ;;  %v1138_v46 = vmul.f32 %v2713_v35, %v2647_v23  ;;  %v1166_v23 = vld [vmem:[%s3019_s5 + $0x8] sm:$0xff] }
 0x1b0   :  { %v1098_v13 = vmul.f32 %v2713_v35, %v2598_v54  ;;  %v1094_v49 = vmul.f32 %v2713_v35, %v2557_v57  ;;  %v1087_v54 = vmul.f32 %v2713_v35, %v2452_v31  ;;  %v1131_v57 = vmul.f32 %v2713_v35, %v2511_v4  ;;  %1285 = vmatpush.msrb.mxu0 %v1166_v23 }
 0x1b1   :  { %v1114_v1 = vadd.f32 %v2718_v6, %v1090_v44  ;;  %v1154_v0 = vadd.f32 %v2718_v6, %v1134_v2  ;;  %v1150_v28 = vadd.f32 %v2718_v6, %v1130_v48  ;;  %v1158_v22 = vadd.f32 %v2718_v6, %v1138_v46  ;;  %1410 = vmatpush.msrb.mxu1 %v1166_v23 }
 0x1b2   :  { %v1122_v10 = vadd.f32 %v2718_v6, %v1098_v13  ;;  %v1118_v11 = vadd.f32 %v2718_v6, %v1094_v49  ;;  %v1142_v32 = vmul.f32 %v2713_v35, %v2679_v47  ;;  %v1111_v56 = vadd.f32 %v2718_v6, %v1087_v54 }
 0x1b3   :  { %v1151_v24 = vadd.f32 %v2718_v6, %v1131_v57  ;;  %v1135_v31 = vmul.f32 %v2713_v35, %v2619_v53  ;;  %v1095_v4 = vmul.f32 %v2713_v35, %v2568_v3  ;;  %v1091_v47 = vmul.f32 %v2713_v35, %v2530_v43 }
 0x1b4   :  { %v1162_v61 = vadd.f32 %v2718_v6, %v1142_v32  ;;  %v1099_v53 = vmul.f32 %v2713_v35, %v2612_v37  ;;  %v1143_v3 = vmul.f32 %v2713_v35, %v2686_v9  ;;  %v1139_v43 = vmul.f32 %v2713_v35, %v2657_v39  ;;  %v1165_v37 = vld [vmem:[%s3019_s5] sm:$0xff] }
 0x1b5   :  { %v1155_v5 = vadd.f32 %v2718_v6, %v1135_v31  ;;  %v1119_v36 = vadd.f32 %v2718_v6, %v1095_v4  ;;  %v1115_v20 = vadd.f32 %v2718_v6, %v1091_v47  ;;  %1286 = vmatpush.msrb.mxu0 %v1165_v37  ;;  %1411 = vmatpush.msrb.mxu1 %v1165_v37 }
 0x1b6   :  { %1356 = vrot.lane.b32.xlu1 %v1161_v16, %s1744_s25  ;;  %1175 = vrot.lane.b32.xlu2 %v1110_v60, %s1743_s24  ;;  %v1123_v17 = vadd.f32 %v2718_v6, %v1099_v53  ;;  %v1163_v52 = vadd.f32 %v2718_v6, %v1143_v3  ;;  %v1159_v18 = vadd.f32 %v2718_v6, %v1139_v43 }
 0x1b7   :  { %1221 = vrot.lane.b32.xlu0 %v1121_v30, %s1744_s25 }
 0x1be   :  { %1191 = vrot.lane.b32.xlu1 %v1114_v1, %s1742_s4  ;;  %1326 = vrot.lane.b32.xlu2 %v1154_v0, %s1742_s4 }
 0x1bf   :  { %1310 = vrot.lane.b32.xlu0 %v1150_v28, %s1743_s24 }
 0x1c6   :  { %1342 = vrot.lane.b32.xlu1 %v1158_v22, %s1741_s3  ;;  %1223 = vrot.lane.b32.xlu2 %v1122_v10, %s1744_s25 }
 0x1c7   :  { %1207 = vrot.lane.b32.xlu0 %v1118_v11, %s1741_s3 }
 0x1ce   :  { %1177 = vrot.lane.b32.xlu1 %v1111_v56, %s1743_s24  ;;  %1312 = vrot.lane.b32.xlu2 %v1151_v24, %s1743_s24 }
 0x1cf   :  { %1358 = vrot.lane.b32.xlu0 %v1162_v61, %s1744_s25 }
 0x1d6   :  { %1328 = vrot.lane.b32.xlu1 %v1155_v5, %s1742_s4  ;;  %1209 = vrot.lane.b32.xlu2 %v1119_v36, %s1741_s3 }
 0x1d7   :  { %1193 = vrot.lane.b32.xlu0 %v1115_v20, %s1742_s4 }
 0x1de   :  { %1225 = vrot.lane.b32.xlu1 %v1123_v17, %s1744_s25  ;;  %1360 = vrot.lane.b32.xlu2 %v1163_v52, %s1744_s25 }
 0x1df   :  { %1344 = vrot.lane.b32.xlu0 %v1159_v18, %s1741_s3 }
 0x1e6   :  { %1314 = vrot.lane.b32.xlu1 %v2779_v14, %s1743_s24  ;;  %1195 = vrot.lane.b32.xlu2 %v2782_v26, %s1742_s4 }
 0x1e7   :  { %1179 = vrot.lane.b32.xlu0 %v2789_v7, %s1743_s24  ;;  %s1746_s24 = smov 48  }
 0x1ee   :  { %1211 = vrot.lane.b32.xlu1 %v2792_v62, %s1741_s3  ;;  %1346 = vrot.lane.b32.xlu2 %v2795_v41, %s1741_s3 }
 0x1ef   :  { %1330 = vrot.lane.b32.xlu0 %v2798_v40, %s1742_s4 }
 0x1f6   :  { %1362 = vrot.lane.b32.xlu1 %v2801_v25, %s1744_s25 }
 0x1f7   :  { %1227 = vrot.lane.b32.xlu0 %v2804_v27, %s1744_s25 }
 0x200   :  { %v1206_v39 = vpop.permute.xlu2 %1205 }
 0x208   :  { %v1341_v9 = vpop.permute.xlu2 %1340 }
 0x210   :  { %v1176_v21 = vpop.permute.xlu2 %1175 }
 0x218   :  { %v1190_v35 = vpop.permute.xlu1 %1189  ;;  %v1327_v62 = vpop.permute.xlu2 %1326 }
 0x219   :  { %v1174_v6 = vpop.permute.xlu0 %1173 }
 0x21a   :  { %v1233_v12 = vsel %vm795_vm1, %v2810_v42, %v1174_v6  ;;  %v1234_v42 = vsel %vm795_vm1, %v2807_v8, %v1176_v21  ;;  %v1728_v21 = vld [vmem:[%s3021_s6] ss:$0 sm:$0xff] }
 0x21b   :  { %v1237_v38 = vsel %vm63_vm0, %v1233_v12, %v1190_v35 }
 0x21c   :  { %v1242_v7 = vsel %vm1241_vm7, %v1237_v38, %v1206_v39 }
 0x220   :  { %v1325_v63 = vpop.permute.xlu1 %1324  ;;  %v1224_v27 = vpop.permute.xlu2 %1223 }
 0x221   :  { %v1309_v34 = vpop.permute.xlu0 %1308 }
 0x222   :  { %v1368_v59 = vsel %vm795_vm1, %v2813_v33, %v1309_v34 }
 0x223   :  { %v1372_v29 = vsel %vm63_vm0, %v1368_v59, %v1325_v63 }
 0x224   :  { %v1376_v26 = vsel %vm1241_vm7, %v1372_v29, %v1341_v9 }
 0x228   :  { %v1357_v14 = vpop.permute.xlu1 %1356  ;;  %v1313_v48 = vpop.permute.xlu2 %1312 }
 0x229   :  { %v1380_v50 = vsel %vm1246_vm8, %v1376_v26, %v1357_v14  ;;  %v1222_v51 = vpop.permute.xlu0 %1221 }
 0x22a   :  { %v1247_v41 = vsel %vm1246_vm8, %v1242_v7, %v1222_v51  ;;  %1711 = vmatmul.msk.f32.vlgmr.msrb.gmra.mxu1 %vm1254_vm9, %v1380_v50  ;;  %v1745_v7 = vmov 32.0  }
 0x22b   :  { %1706 = vmatmul.msk.f32.vlgmr.msrb.gmra.mxu0 %vm1254_vm9, %v1247_v41  ;;  %1736 = vrcp.f32 %v1745_v7 }
 0x230   :  { %v1192_v40 = vpop.permute.xlu1 %1191  ;;  %v1210_v13 = vpop.permute.xlu2 %1209 }
 0x231   :  { %v1311_v25 = vpop.permute.xlu0 %1310  ;;  %v1238_v16 = vsel %vm63_vm0, %v1234_v42, %v1192_v40 }
 0x232   :  { %v1369_v2 = vsel %vm795_vm1, %v2819_v19, %v1311_v25  ;;  %v1370_v19 = vsel %vm795_vm1, %v2816_v55, %v1313_v48 }
 0x233   :  { %v1373_v1 = vsel %vm63_vm0, %v1369_v2, %v1327_v62 }
 0x238   :  { %v1343_v33 = vpop.permute.xlu1 %1342  ;;  %v1361_v24 = vpop.permute.xlu2 %1360 }
 0x239   :  { %v1208_v60 = vpop.permute.xlu0 %1207  ;;  %v1377_v28 = vsel %vm1241_vm7, %v1373_v1, %v1343_v33 }
 0x23a   :  { %v1243_v30 = vsel %vm1241_vm7, %v1238_v16, %v1208_v60  ;;  %v1737_v60 = vpop.eup %1736 }
 0x23b   :  { %v1248_v44 = vsel %vm1246_vm8, %v1243_v30, %v1224_v27  ;;  %vm1451_vm10 = vweird.f32 %v1737_v60 }
 0x23c   :  { %1707 = vmatmul.msk.f32.gmra.mxu0 %vm1254_vm9, %v1248_v44 }
 0x240   :  { %v1178_v0 = vpop.permute.xlu1 %1177  ;;  %v1196_v55 = vpop.permute.xlu2 %1195 }
 0x241   :  { %v1359_v8 = vpop.permute.xlu0 %1358  ;;  %v1235_v10 = vsel %vm795_vm1, %v2822_v45, %v1178_v0 }
 0x242   :  { %v1381_v46 = vsel %vm1246_vm8, %v1377_v28, %v1359_v8 }
 0x243   :  { %1712 = vmatmul.msk.f32.gmra.mxu1 %vm1254_vm9, %v1381_v46  ;;  %v1447_v46 = vmul.f32 32.0, %v1737_v60 }
 0x248   :  { %v1329_v49 = vpop.permute.xlu1 %1328  ;;  %v1347_v3 = vpop.permute.xlu2 %1346 }
 0x249   :  { %v1194_v22 = vpop.permute.xlu0 %1193  ;;  %v1374_v57 = vsel %vm63_vm0, %v1370_v19, %v1329_v49 }
 0x24a   :  { %v1239_v11 = vsel %vm63_vm0, %v1235_v10, %v1194_v22 }
 0x24b   :  { %v1244_v54 = vsel %vm1241_vm7, %v1239_v11, %v1210_v13  ;;  %v1448_v11 = vsub.f32 1.0, %v1447_v46 }
 0x250   :  { %v1226_v23 = vpop.permute.xlu1 %1225 }
 0x251   :  { %v1345_v32 = vpop.permute.xlu0 %1344  ;;  %v1249_v56 = vsel %vm1246_vm8, %v1244_v54, %v1226_v23  ;;  %v1449_v54 = vmul.f32 %v1737_v60, %v1448_v11 }
 0x252   :  { %v1378_v61 = vsel %vm1241_vm7, %v1374_v57, %v1345_v32  ;;  %1708 = vmatmul.msk.f32.gmra.mxu0 %vm1254_vm9, %v1249_v56 }
 0x253   :  { %v1382_v45 = vsel %vm1246_vm8, %v1378_v61, %v1361_v24  ;;  %v1450_v56 = vadd.f32 %v1737_v60, %v1449_v54 }
 0x254   :  { %1713 = vmatmul.msk.f32.gmra.mxu1 %vm1254_vm9, %v1382_v45 }
 0x255   :  { %v1452_v45 = vsel %vm1451_vm10, %v1737_v60, %v1450_v56  ;;  %v1731_v56 = vld [vmem:[%s3025_s10] ss:$0 sm:$0xff] }
 0x258   :  { %v1315_v31 = vpop.permute.xlu1 %1314 }
 0x259   :  { %v1180_v4 = vpop.permute.xlu0 %1179  ;;  %v1371_v36 = vsel %vm795_vm1, %v2827_v15, %v1315_v31 }
 0x25a   :  { %v1236_v20 = vsel %vm795_vm1, %v2830_v58, %v1180_v4 }
 0x25b   :  { %v1240_v43 = vsel %vm63_vm0, %v1236_v20, %v1196_v55 }
 0x260   :  { %v1212_v47 = vpop.permute.xlu1 %1211 }
 0x261   :  { %v1331_v5 = vpop.permute.xlu0 %1330  ;;  %v1245_v18 = vsel %vm1241_vm7, %v1240_v43, %v1212_v47 }
 0x262   :  { %v1375_v53 = vsel %vm63_vm0, %v1371_v36, %v1331_v5  ;;  %vm1536_vm0 = vcmask 523264  }
 0x263   :  { %v1379_v52 = vsel %vm1241_vm7, %v1375_v53, %v1347_v3 }
 0x268   :  { %v1363_v17 = vpop.permute.xlu1 %1362 }
 0x269   :  { %v1228_v37 = vpop.permute.xlu0 %1227  ;;  %v1383_v39 = vsel %vm1246_vm8, %v1379_v52, %v1363_v17 }
 0x26a   :  { %v1250_v9 = vsel %vm1246_vm8, %v1245_v18, %v1228_v37  ;;  %1714 = vmatmul.msk.f32.gmra.mxu1 %vm1254_vm9, %v1383_v39 }
 0x26b   :  { %1709 = vmatmul.msk.f32.gmra.mxu0 %vm1254_vm9, %v1250_v9 }
 0x2a7   :  { %v1413_v58 = vpop.f32.mrf.mxu1 }
 0x2a8   :  { %v1288_v15 = vpop.f32.mrf.mxu0  ;;  %v1414_v29 = vadd.f32 %v1728_v21, %v1413_v58 }
 0x2a9   :  { %v1289_v12 = vadd.f32 %v1728_v21, %v1288_v15 }
 0x2aa   :  { %v1425_v51 = vmax.f32 %v1414_v29, 0.0  ;;  %v1528_v29 = vld [vmem:[%s3024_s9 + $0x20] sm:$0xff] }
 0x2ab   :  { %v1300_v62 = vmax.f32 %v1289_v12, 0.0 }
 0x2ad   :  { %v1429_v42 = vmax.f32 %v1300_v62, %v1425_v51  ;;  %v1525_v51 = vld [vmem:[%s3024_s9 + $0x8] sm:$0xff] }
 0x2af   :  { %v1433_v0 = vsel %vm1246_vm8, %v1429_v42, 0.0 }
 0x2b9   :  { %v1291_v35 = vpop.f32.mrf.mxu0 }
 0x2ba   :  { %v1292_v38 = vadd.f32 %v1728_v21, %v1291_v35 }
 0x2bc   :  { %v1301_v41 = vmax.f32 %v1292_v38, 0.0  ;;  %v1527_v38 = vld [vmem:[%s3024_s9 + $0x18] sm:$0xff] }
 0x2c0   :  { %v1416_v6 = vpop.f32.mrf.mxu1 }
 0x2c1   :  { %v1417_v59 = vadd.f32 %v1728_v21, %v1416_v6  ;;  %v1531_v6 = vld [vmem:[%s3024_s9 + $0x38] sm:$0xff] }
 0x2c2   :  { %1548 = vmatpush.msra.mxu2 %v1531_v6 }
 0x2c3   :  { %v1426_v50 = vmax.f32 %v1417_v59, 0.0 }
 0x2c5   :  { %v1430_v27 = vmax.f32 %v1301_v41, %v1426_v50 }
 0x2c7   :  { %v1434_v2 = vsel %vm1246_vm8, %v1430_v27, 0.0 }
 0x2c8   :  { %v1435_v13 = vadd.f32 %v1434_v2, %v1433_v0 }
 0x2cf   :  { %v1294_v63 = vpop.f32.mrf.mxu0 }
 0x2d0   :  { %v1295_v14 = vadd.f32 %v1728_v21, %v1294_v63 }
 0x2d1   :  { %v1419_v34 = vpop.f32.mrf.mxu1 }
 0x2d2   :  { %v1420_v26 = vadd.f32 %v1728_v21, %v1419_v34  ;;  %v1302_v40 = vmax.f32 %v1295_v14, 0.0  ;;  %v1529_v34 = vld [vmem:[%s3024_s9 + $0x28] sm:$0xff] }
 0x2d4   :  { %v1427_v25 = vmax.f32 %v1420_v26, 0.0  ;;  %v1526_v26 = vld [vmem:[%s3024_s9 + $0x10] sm:$0xff] }
 0x2d6   :  { %v1431_v33 = vmax.f32 %v1302_v40, %v1427_v25 }
 0x2d8   :  { %v1436_v28 = vsel %vm1246_vm8, %v1431_v33, 0.0 }
 0x2d9   :  { %v1437_v22 = vadd.f32 %v1436_v28, %v1435_v13 }
 0x2e7   :  { %v1422_v16 = vpop.f32.mrf.mxu1 }
 0x2e8   :  { %v1297_v30 = vpop.f32.mrf.mxu0  ;;  %v1423_v44 = vadd.f32 %v1728_v21, %v1422_v16 }
 0x2e9   :  { %v1298_v48 = vadd.f32 %v1728_v21, %v1297_v30  ;;  %v1530_v21 = vld [vmem:[%s3024_s9 + $0x30] sm:$0xff]  ;;  %v1730_v30 = vld [vmem:[%s3023_s8] ss:$0 sm:$0xff] }
 0x2ea   :  { %v1428_v1 = vmax.f32 %v1423_v44, 0.0  ;;  %1549 = vmatpush.msra.mxu2 %v1530_v21 }
 0x2eb   :  { %v1303_v8 = vmax.f32 %v1298_v48, 0.0 }
 0x2ec   :  { %1550 = vmatpush.msra.mxu2 %v1529_v34 }
 0x2ed   :  { %v1432_v49 = vmax.f32 %v1303_v8, %v1428_v1 }
 0x2ee   :  { %1551 = vmatpush.msra.mxu2 %v1528_v29 }
 0x2ef   :  { %v1438_v10 = vsel %vm1246_vm8, %v1432_v49, 0.0 }
 0x2f0   :  { %v1439_v19 = vadd.f32 %v1438_v10, %v1437_v22  ;;  %1552 = vmatpush.msra.mxu2 %v1527_v38  ;;  %v1524_v10 = vld [vmem:[%s3024_s9] sm:$0xff] }
 0x2f2   :  { %v1440_v23 = vrot.slane %v1439_v19, 4  ;;  %1553 = vmatpush.msra.mxu2 %v1526_v26 }
 0x2f4   :  { %v1441_v57 = vadd.f32 %v1440_v23, %v1439_v19  ;;  %1554 = vmatpush.msra.mxu2 %v1525_v51 }
 0x2f6   :  { %v1442_v32 = vrot.slane %v1441_v57, 2  ;;  %1555 = vmatpush.msra.mxu2 %v1524_v10 }
 0x2f8   :  { %v1443_v24 = vadd.f32 %v1442_v32, %v1441_v57 }
 0x2fa   :  { %v1444_v61 = vrot.slane %v1443_v24, 1 }
 0x2fc   :  { %v1445_v31 = vadd.f32 %v1444_v61, %v1443_v24 }
 0x2fe   :  { %v1453_v4 = vmul.f32 %v1452_v45, %v1445_v31 }
 0x300   :  { %v1454_v55 = vsub.f32 %v1429_v42, %v1453_v4  ;;  %v1455_v47 = vsub.f32 %v1430_v27, %v1453_v4  ;;  %v1456_v5 = vsub.f32 %v1431_v33, %v1453_v4  ;;  %v1457_v36 = vsub.f32 %v1432_v49, %v1453_v4  ;;  %v1729_v33 = vld [vmem:[%s3022_s7] ss:$0 sm:$0xff]  ;;  %s1747_s7 = smov 32  }
 0x302   :  { %v1458_v20 = vmul.f32 %v1454_v55, %v1454_v55  ;;  %v1459_v53 = vmul.f32 %v1455_v47, %v1455_v47  ;;  %v1460_v3 = vmul.f32 %v1456_v5, %v1456_v5  ;;  %v1461_v43 = vmul.f32 %v1457_v36, %v1457_v36 }
 0x304   :  { %v1462_v17 = vsel %vm1246_vm8, %v1458_v20, 0.0  ;;  %v1463_v52 = vsel %vm1246_vm8, %v1459_v53, 0.0  ;;  %v1465_v37 = vsel %vm1246_vm8, %v1460_v3, 0.0  ;;  %v1467_v9 = vsel %vm1246_vm8, %v1461_v43, 0.0 }
 0x305   :  { %v1464_v18 = vadd.f32 %v1463_v52, %v1462_v17 }
 0x307   :  { %v1466_v39 = vadd.f32 %v1465_v37, %v1464_v18 }
 0x309   :  { %v1468_v15 = vadd.f32 %v1467_v9, %v1466_v39 }
 0x30b   :  { %v1469_v58 = vrot.slane %v1468_v15, 4 }
 0x30d   :  { %v1470_v35 = vadd.f32 %v1469_v58, %v1468_v15 }
 0x30f   :  { %v1471_v63 = vrot.slane %v1470_v35, 2 }
 0x311   :  { %v1472_v59 = vadd.f32 %v1471_v63, %v1470_v35 }
 0x313   :  { %v1473_v12 = vrot.slane %v1472_v59, 1 }
 0x315   :  { %v1474_v14 = vadd.f32 %v1473_v12, %v1472_v59 }
 0x317   :  { %v1475_v50 = vmul.f32 %v1474_v14, %v1452_v45 }
 0x319   :  { %v1476_v7 = vadd.f32 1e-05, %v1475_v50 }
 0x31b   :  { %1738 = vrsqrt.f32 %v1476_v7  ;;  %vm1483_vm12 = vweird.f32 %v1476_v7 }
 0x321   :  { %v1739_v62 = vpop.eup %1738 }
 0x322   :  { %v1478_v41 = vmul.f32 %v1739_v62, %v1476_v7  ;;  %vm1484_vm11 = vweird.f32 %v1739_v62 }
 0x323   :  { %vm1485_vm13 = vmor %vm1483_vm12, %vm1484_vm11 }
 0x324   :  { %v1479_v40 = vmul.f32 %v1739_v62, %v1478_v41 }
 0x326   :  { %v1480_v25 = vmul.f32 0.5, %v1479_v40 }
 0x328   :  { %v1481_v27 = vsub.f32 1.5, %v1480_v25 }
 0x32a   :  { %v1482_v42 = vmul.f32 %v1739_v62, %v1481_v27 }
 0x32c   :  { %v1486_v16 = vsel %vm1485_vm13, %v1739_v62, %v1482_v42 }
 0x32d   :  { %v1490_v60 = vmul.f32 %v1486_v16, %v1457_v36  ;;  %v1489_v44 = vmul.f32 %v1486_v16, %v1456_v5  ;;  %v1488_v2 = vmul.f32 %v1486_v16, %v1455_v47  ;;  %v1487_v48 = vmul.f32 %v1486_v16, %v1454_v55 }
 0x32f   :  { %v1498_v1 = vmul.f32 %v1729_v33, %v1490_v60  ;;  %v1497_v0 = vmul.f32 %v1729_v33, %v1489_v44  ;;  %v1496_v28 = vmul.f32 %v1729_v33, %v1488_v2  ;;  %v1495_v8 = vmul.f32 %v1729_v33, %v1487_v48 }
 0x331   :  { %v1506_v46 = vadd.f32 %v1730_v30, %v1498_v1  ;;  %v1505_v13 = vadd.f32 %v1730_v30, %v1497_v0  ;;  %v1504_v49 = vadd.f32 %v1730_v30, %v1496_v28  ;;  %v1503_v22 = vadd.f32 %v1730_v30, %v1495_v8 }
 0x333   :  { %1516 = vrot.lane.b32.xlu1 %v1506_v46, %s1746_s24  ;;  %1512 = vrot.lane.b32.xlu0 %v1505_v13, %s1747_s7 }
 0x334   :  { %1508 = vrot.lane.b32.xlu2 %v1504_v49, %s1744_s25 }
 0x38e   :  { %v1509_v11 = vpop.permute.xlu2 %1508 }
 0x38f   :  { %v1519_v19 = vsel %vm1246_vm8, %v1503_v22, %v1509_v11 }
 0x3a5   :  { %v1517_v23 = vpop.permute.xlu1 %1516  ;;  %v1513_v54 = vpop.permute.xlu0 %1512 }
 0x3a6   :  { %v1521_v57 = vsel %vm1520_vm14, %v1519_v19, %v1513_v54 }
 0x3a7   :  { %v1523_v32 = vsel %vm1522_vm15, %v1521_v57, %v1517_v23 }
 0x3a8   :  { %1715 = vmatmul.msk.f32.vlgmr.msra.gmra.mxu2 %vm1536_vm0, %v1523_v32 }
 0x42b   :  { %v1557_v24 = vpop.f32.mrf.mxu2 }
 0x42c   :  { %v1558_v61 = vadd.f32 %v1731_v56, %v1557_v24 }
 0x42e   :  { %1560 = vst.msk [vmem:[%s3026_s11] sm:$0xff] %vm1520_vm14, %v1558_v61 }

// kernel: dialogue_classifier_forward.5
= control target key start
LH: loop header
LB: loop body
LE: loop exit
PB: predicated region body
PF: predicated region fallthrough
CT: control target
= control target key end

     0   :  { %s1419_s0 = inlined_call_operand.vmem [shape: f32[2,4,64], index: 0, kind: input, shape index: {}]   ;;  %s1420_s1 = inlined_call_operand.vmem [shape: f32[64,64], index: 1, kind: input, shape index: {}]   ;;  %s1421_s2 = inlined_call_operand.vmem [shape: f32[16,64], index: 2, kind: input, shape index: {}]   ;;  %s1422_s3 = inlined_call_operand.vmem [shape: f32[1,64], index: 3, kind: input, shape index: {}]   ;;  %s1423_s4 = inlined_call_operand.vmem [shape: f32[64,64], index: 4, kind: input, shape index: {}]   ;;  %s1424_s5 = inlined_call_operand.vmem [shape: f32[16,64], index: 5, kind: input, shape index: {}]   ;;  %s1425_s6 = inlined_call_operand.vmem [shape: f32[1,64], index: 6, kind: input, shape index: {}]   ;;  %s1426_s7 = inlined_call_operand.vmem [shape: f32[32,128], index: 7, kind: input, shape index: {}]   ;;  %s1427_s8 = inlined_call_operand.vmem [shape: f32[1,128], index: 8, kind: input, shape index: {}]   ;;  %s1428_s9 = inlined_call_operand.hbm [shape: f32[2,4,128], index: 9, kind: output, shape index: {}]  }
   0x1   :  { %v1104_v0 = vld [vmem:[%s1420_s1 + $0x38] sm:$0xff]  ;;  %v1109_v1 = vld [vmem:[%s1420_s1 + $0x30] sm:$0xff]  ;;  %v1116_v2 = vld [vmem:[%s1420_s1 + $0x28] sm:$0xff] }
   0x2   :  { %76 = vmatpush.msra.mxu0 %v1104_v0  ;;  %166 = vmatpush.msra.mxu2 %v1104_v0  ;;  %v42_v3 = vld [vmem:[%s1421_s2 + $0x8] sm:$0xff]  ;;  %v41_v4 = vld [vmem:[%s1421_s2] sm:$0xff] }
   0x3   :  { %106 = vmatpush.msra.mxu1 %v42_v3  ;;  %v1128_v5 = vld [vmem:[%s1420_s1 + $0x20] sm:$0xff]  ;;  %197 = vmatpush.msra.mxu3 %v42_v3 }
   0x4   :  { %77 = vmatpush.msra.mxu0 %v1109_v1  ;;  %167 = vmatpush.msra.mxu2 %v1109_v1 }
   0x5   :  { %107 = vmatpush.msra.mxu1 %v41_v4 }
   0x6   :  { %78 = vmatpush.msra.mxu0 %v1116_v2 }
   0x7   :  { %14 = vsyncpa [#allocation3], 0  ;;  %v1135_v6 = vld [vmem:[%s1420_s1 + $0x18] sm:$0xff]  ;;  %v56_v7 = vld [vmem:[%s1419_s0 + $0x4] sm:$0x1]  ;;  %v1043_v8 = vmov 0.0   ;;  %168 = vmatpush.msra.mxu2 %v1116_v2  ;;  %198 = vmatpush.msra.mxu3 %v41_v4 }
   0x8   :  { %108 = vmatmul.f32.vlgmr.msra.gmra.mxu1 %v1043_v8  ;;  %79 = vmatpush.msra.mxu0 %v1128_v5  ;;  %v1146_v9 = vld [vmem:[%s1420_s1 + $0x10] sm:$0xff]  ;;  %v62_v10 = vrot.slane %v56_v7, 7  ;;  %v1154_v11 = vld [vmem:[%s1420_s1 + $0x8] sm:$0xff]  ;;  %v55_v12 = vld [vmem:[%s1419_s0] sm:$0x1]  ;;  %vm63_vm0 = vcmask 1041409  }
   0x9   :  { %169 = vmatpush.msra.mxu2 %v1128_v5  ;;  %257 = vmatpush.msrb.mxu1 %v1104_v0  ;;  %v1165_v13 = vld [vmem:[%s1420_s1] sm:$0xff]  ;;  %vm65_vm1 = vcmask 523264   ;;  %s1044_s12 = smov 96   ;;  %s1046_s13 = smov 32   ;;  %vm88_vm6 = vcmask 130048  }
   0xa   :  { %80 = vmatpush.msra.mxu0 %v1135_v6  ;;  %288 = vmatpush.msrb.mxu3 %v42_v3  ;;  %v1171_v14 = vsel %vm63_vm0, %v62_v10, %v55_v12  ;;  %v1186_v15 = vld [vmem:[%s1422_s3] ss:$0 sm:$0xff]  ;;  %s1045_s3 = smov 16   ;;  %v150_v40 = vld [vmem:[%s1419_s0 + $0x1] sm:$0x1]  ;;  %s1047_s18 = smov 80  }
   0xb   :  { %170 = vmatpush.msra.mxu2 %v1135_v6  ;;  %258 = vmatpush.msrb.mxu1 %v1109_v1  ;;  %v151_v41 = vld [vmem:[%s1419_s0 + $0x5] sm:$0x1]  ;;  %v242_v7 = vld [vmem:[%s1419_s0 + $0x6] sm:$0x1]  ;;  %v47_v12 = vld [vmem:[%s1423_s4 + $0x18] sm:$0xff]  ;;  %s1049_s11 = smov 64  }
   0xc   :  { %81 = vmatpush.msra.mxu0 %v1146_v9  ;;  %289 = vmatpush.msrb.mxu3 %v41_v4  ;;  %v154_v42 = vrot.slane %v151_v41, 7  ;;  %v245_v10 = vrot.slane %v242_v7, 7  ;;  %s1050_s14 = smov 4  }
   0xd   :  { %171 = vmatpush.msra.mxu2 %v1146_v9  ;;  %259 = vmatpush.msrb.mxu1 %v1116_v2 }
   0xe   :  { %82 = vmatpush.msra.mxu0 %v1154_v11  ;;  %v1202_v43 = vsel %vm63_vm0, %v154_v42, %v150_v40 }
   0xf   :  { %172 = vmatpush.msra.mxu2 %v1154_v11  ;;  %260 = vmatpush.msrb.mxu1 %v1128_v5 }
  0x10   :  { %83 = vmatpush.msra.mxu0 %v1165_v13 }
  0x11   :  { %916 = vmatmul.msk.f32.vlgmr.msra.gmra.mxu0 %vm65_vm1, %v1171_v14  ;;  %173 = vmatpush.msra.mxu2 %v1165_v13 }
  0x12   :  { %261 = vmatpush.msrb.mxu1 %v1135_v6  ;;  %379 = vmatpush.msrb.mxu0 %v42_v3  ;;  %v1225_v3 = vld [vmem:[%s1423_s4 + $0x38] sm:$0xff] }
  0x13   :  { %918 = vmatmul.msk.f32.vlgmr.msra.gmra.mxu2 %vm65_vm1, %v1202_v43 }
  0x14   :  { %262 = vmatpush.msrb.mxu1 %v1146_v9  ;;  %380 = vmatpush.msrb.mxu0 %v41_v4  ;;  %v1230_v4 = vld [vmem:[%s1423_s4 + $0x30] sm:$0xff] }
  0x15   :  { %434 = vmatpush.msrb.mxu2 %v1225_v3 }
  0x16   :  { %263 = vmatpush.msrb.mxu1 %v1154_v11  ;;  %512 = vmatpush.msra.mxu0 %v1225_v3 }
  0x17   :  { %435 = vmatpush.msrb.mxu2 %v1230_v4 }
  0x18   :  { %264 = vmatpush.msrb.mxu1 %v1165_v13  ;;  %513 = vmatpush.msra.mxu0 %v1230_v4 }
  0x85   :  { %v109_v17 = vpop.f32.mrf.mxu1 }
  0x8e   :  { %v85_v16 = vpop.f32.mrf.mxu0 }
  0x8f   :  { %v86_v18 = vadd.f32 %v1186_v15, %v85_v16  ;;  %v333_v16 = vld [vmem:[%s1419_s0 + $0x7] sm:$0x1] }
  0x91   :  { %v112_v19 = vadd.f32 %v109_v17, %v86_v18  ;;  %v46_v17 = vld [vmem:[%s1423_s4 + $0x10] sm:$0xff]  ;;  %v336_v18 = vrot.slane %v333_v16, 7 }
  0x93   :  { %953 = vtanh.f32 %v112_v19  ;;  %v917_v21 = vmul.f32 -1.442695, %v112_v19  ;;  %v45_v19 = vld [vmem:[%s1423_s4 + $0x8] sm:$0xff] }
  0x95   :  { %955 = vpow2.f32 %v917_v21  ;;  %v44_v21 = vld [vmem:[%s1423_s4] sm:$0xff] }
  0x96   :  { %v175_v47 = vpop.f32.mrf.mxu2 }
  0x97   :  { %v176_v48 = vadd.f32 %v1186_v15, %v175_v47 }
  0x99   :  { %v954_v20 = vpop.eup %953 }
  0x9a   :  { %135 = vrot.lane.b32.xlu0 %v954_v20, %s1044_s12  ;;  %v332_v20 = vld [vmem:[%s1419_s0 + $0x3] sm:$0x1] }
  0x9b   :  { %v956_v22 = vpop.eup %955 }
  0x9c   :  { %v116_v23 = vadd.f32 1.0, %v956_v22  ;;  %v337_v22 = vsel %vm63_vm0, %v336_v18, %v332_v20 }
  0x9e   :  { %957 = vrcp.f32 %v116_v23  ;;  %v128_v29 = vand.u32 2147483648, %v116_v23  ;;  %vm122_vm3 = vweird.f32 %v116_v23  ;;  %v126_v30 = vand.u32 2147483647, %v116_v23 }
  0xa0   :  { %v129_v32 = vor.u32 1.1754944e-38, %v128_v29  ;;  %vm127_vm5 = vcmp.eq.f32.partialorder %v126_v30, 8.507059e+37  ;;  %v1311_v30 = vld [vmem:[%s1425_s6] ss:$0 sm:$0xff] }
  0xa4   :  { %v958_v24 = vpop.eup %957 }
  0xa5   :  { %v118_v25 = vmul.f32 %v958_v24, %v116_v23  ;;  %vm123_vm2 = vweird.f32 %v958_v24 }
  0xa6   :  { %vm124_vm4 = vmor %vm122_vm3, %vm123_vm2 }
  0xa7   :  { %v119_v26 = vsub.f32 1.0, %v118_v25 }
  0xa9   :  { %v120_v27 = vmul.f32 %v958_v24, %v119_v26 }
  0xab   :  { %v121_v28 = vadd.f32 %v958_v24, %v120_v27  ;;  %v1296_v27 = vld [vmem:[%s1424_s5] sm:$0xff] }
  0xad   :  { %v125_v31 = vsel %vm124_vm4, %v958_v24, %v121_v28 }
  0xae   :  { %v130_v34 = vsel %vm127_vm5, %v129_v32, %v125_v31 }
  0xaf   :  { %v133_v36 = vmul.f32 0.0, %v130_v34 }
 0x10c   :  { %v136_v33 = vpop.permute.xlu0 %135 }
 0x10d   :  { %v138_v35 = vmul.f32 %v136_v33, %v130_v34 }
 0x10f   :  { %140 = vrot.lane.b32.xlu0 %v138_v35, %s1045_s3 }
 0x181   :  { %v141_v37 = vpop.permute.xlu0 %140 }
 0x182   :  { %v1191_v38 = vadd.f32 %v141_v37, %v133_v36 }
 0x184   :  { %959 = vtanh.f32 %v1191_v38 }
 0x18a   :  { %v960_v39 = vpop.eup %959 }
 0x18b   :  { %146 = vrot.lane.b32.xlu1 %v960_v39, %s1046_s13 }
 0x1fd   :  { %v147_v44 = vpop.permute.xlu1 %146 }
 0x1fe   :  { %v149_v45 = vmul.f32 %v147_v44, %v130_v34 }
 0x200   :  { %179 = vrot.lane.b32.xlu1 %v149_v45, %s1047_s18 }
 0x272   :  { %v1207_v46 = vpop.permute.xlu1 %179 }
 0x273   :  { %919 = vmatmul.msk.f32.vlgmr.msra.gmra.mxu3 %vm88_vm6, %v1207_v46 }
 0x274   :  { %348 = vmatpush.msra.mxu3 %v1104_v0 }
 0x276   :  { %349 = vmatpush.msra.mxu3 %v1109_v1 }
 0x278   :  { %350 = vmatpush.msra.mxu3 %v1116_v2 }
 0x27a   :  { %351 = vmatpush.msra.mxu3 %v1128_v5  ;;  %v1237_v5 = vld [vmem:[%s1423_s4 + $0x28] sm:$0xff] }
 0x27b   :  { %436 = vmatpush.msrb.mxu2 %v1237_v5  ;;  %514 = vmatpush.msra.mxu0 %v1237_v5 }
 0x27c   :  { %352 = vmatpush.msra.mxu3 %v1135_v6  ;;  %v241_v6 = vld [vmem:[%s1419_s0 + $0x2] sm:$0x1] }
 0x27e   :  { %353 = vmatpush.msra.mxu3 %v1146_v9  ;;  %v1250_v9 = vld [vmem:[%s1423_s4 + $0x20] sm:$0xff] }
 0x27f   :  { %437 = vmatpush.msrb.mxu2 %v1250_v9  ;;  %515 = vmatpush.msra.mxu0 %v1250_v9 }
 0x280   :  { %354 = vmatpush.msra.mxu3 %v1154_v11  ;;  %v1255_v11 = vld [vmem:[%s1424_s5 + $0x8] sm:$0xff] }
 0x281   :  { %460 = vmatpush.msra.mxu1 %v1255_v11  ;;  %438 = vmatpush.msrb.mxu2 %v47_v12 }
 0x282   :  { %355 = vmatpush.msra.mxu3 %v1165_v13  ;;  %v1263_v13 = vsel %vm63_vm0, %v245_v10, %v241_v6  ;;  %516 = vmatpush.msra.mxu0 %v47_v12 }
 0x283   :  { %921 = vmatmul.msk.f32.vlgmr.msrb.gmra.mxu1 %vm65_vm1, %v1263_v13  ;;  %439 = vmatpush.msrb.mxu2 %v46_v17 }
 0x284   :  { %517 = vmatpush.msra.mxu0 %v46_v17  ;;  %461 = vmatpush.msra.mxu1 %v1296_v27 }
 0x285   :  { %440 = vmatpush.msrb.mxu2 %v45_v19 }
 0x286   :  { %518 = vmatpush.msra.mxu0 %v45_v19  ;;  %543 = vmatpush.msrb.mxu1 %v1255_v11 }
 0x287   :  { %441 = vmatpush.msrb.mxu2 %v44_v21 }
 0x288   :  { %927 = vmatmul.msk.f32.vlgmr.msrb.gmra.mxu2 %vm65_vm1, %v337_v22  ;;  %519 = vmatpush.msra.mxu0 %v44_v21 }
 0x289   :  { %626 = vmatpush.msra.mxu2 %v1255_v11  ;;  %544 = vmatpush.msrb.mxu1 %v1296_v27 }
 0x28b   :  { %627 = vmatpush.msra.mxu2 %v1296_v27  ;;  %462 = vmatmul.f32.vlgmr.msra.gmra.mxu1 %v1043_v8 }
 0x28c   :  { %678 = vmatpush.msra.mxu1 %v1225_v3 }
 0x28e   :  { %679 = vmatpush.msra.mxu1 %v1230_v4 }
 0x290   :  { %680 = vmatpush.msra.mxu1 %v1237_v5 }
 0x292   :  { %681 = vmatpush.msra.mxu1 %v1250_v9 }
 0x294   :  { %682 = vmatpush.msra.mxu1 %v47_v12 }
 0x296   :  { %683 = vmatpush.msra.mxu1 %v46_v17 }
 0x298   :  { %684 = vmatpush.msra.mxu1 %v45_v19 }
 0x29a   :  { %685 = vmatpush.msra.mxu1 %v44_v21 }
 0x2f6   :  { %v200_v49 = vpop.f32.mrf.mxu3 }
 0x2f7   :  { %v203_v50 = vadd.f32 %v200_v49, %v176_v48 }
 0x2f9   :  { %961 = vtanh.f32 %v203_v50  ;;  %v920_v52 = vmul.f32 -1.442695, %v203_v50 }
 0x2fb   :  { %963 = vpow2.f32 %v920_v52 }
 0x2ff   :  { %v962_v51 = vpop.eup %961 }
 0x300   :  { %226 = vrot.lane.b32.xlu2 %v962_v51, %s1044_s12  ;;  %v266_v8 = vpop.f32.mrf.mxu1 }
 0x301   :  { %v964_v53 = vpop.eup %963  ;;  %v267_v44 = vadd.f32 %v1186_v15, %v266_v8 }
 0x302   :  { %v207_v54 = vadd.f32 1.0, %v964_v53 }
 0x304   :  { %965 = vrcp.f32 %v207_v54  ;;  %v219_v60 = vand.u32 2147483648, %v207_v54  ;;  %vm213_vm8 = vweird.f32 %v207_v54  ;;  %v217_v61 = vand.u32 2147483647, %v207_v54 }
 0x306   :  { %v220_v63 = vor.u32 1.1754944e-38, %v219_v60  ;;  %vm218_vm10 = vcmp.eq.f32.partialorder %v217_v61, 8.507059e+37 }
 0x308   :  { %v463_v33 = vpop.f32.mrf.mxu1 }
 0x30a   :  { %v966_v55 = vpop.eup %965 }
 0x30b   :  { %v209_v56 = vmul.f32 %v966_v55, %v207_v54  ;;  %vm214_vm7 = vweird.f32 %v966_v55  ;;  %v443_v31 = vpop.f32.mrf.mxu2 }
 0x30c   :  { %vm215_vm9 = vmor %vm213_vm8, %vm214_vm7  ;;  %v444_v32 = vadd.f32 %v1311_v30, %v443_v31 }
 0x30d   :  { %v210_v57 = vsub.f32 1.0, %v209_v56 }
 0x30e   :  { %v466_v34 = vadd.f32 %v463_v33, %v444_v32 }
 0x30f   :  { %v211_v58 = vmul.f32 %v966_v55, %v210_v57 }
 0x310   :  { %v928_v37 = vmul.f32 -1.442695, %v466_v34 }
 0x311   :  { %v212_v59 = vadd.f32 %v966_v55, %v211_v58 }
 0x313   :  { %v216_v62 = vsel %vm215_vm9, %v966_v55, %v212_v59 }
 0x314   :  { %v221_v1 = vsel %vm218_vm10, %v220_v63, %v216_v62 }
 0x315   :  { %v224_v23 = vmul.f32 %v221_v1, %v1191_v38 }
 0x35a   :  { %v227_v0 = vpop.permute.xlu2 %226 }
 0x35b   :  { %v229_v2 = vmul.f32 %v227_v0, %v221_v1 }
 0x35d   :  { %231 = vrot.lane.b32.xlu2 %v229_v2, %s1045_s3 }
 0x3b7   :  { %v232_v24 = vpop.permute.xlu2 %231 }
 0x3b8   :  { %v1289_v25 = vadd.f32 %v232_v24, %v224_v23 }
 0x3ba   :  { %967 = vtanh.f32 %v1289_v25 }
 0x3bb   :  { %969 = vtanh.f32 %v466_v34 }
 0x3bc   :  { %971 = vpow2.f32 %v928_v37 }
 0x3c0   :  { %v968_v26 = vpop.eup %967 }
 0x3c1   :  { %237 = vrot.lane.b32.xlu0 %v968_v26, %s1046_s13  ;;  %v970_v35 = vpop.eup %969 }
 0x3c2   :  { %v972_v38 = vpop.eup %971 }
 0x3c3   :  { %v470_v39 = vadd.f32 1.0, %v972_v38 }
 0x3c5   :  { %973 = vrcp.f32 %v470_v39  ;;  %vm476_vm11 = vweird.f32 %v470_v39  ;;  %v482_v49 = vand.u32 2147483648, %v470_v39  ;;  %v480_v51 = vand.u32 2147483647, %v470_v39 }
 0x3c7   :  { %v483_v52 = vor.u32 1.1754944e-38, %v482_v49  ;;  %vm481_vm14 = vcmp.eq.f32.partialorder %v480_v51, 8.507059e+37 }
 0x3c9   :  { %489 = vrot.lane.b32.xlu0 %v970_v35, %s1044_s12 }
 0x3cb   :  { %v974_v40 = vpop.eup %973 }
 0x3cc   :  { %v472_v41 = vmul.f32 %v974_v40, %v470_v39  ;;  %vm477_vm12 = vweird.f32 %v974_v40 }
 0x3cd   :  { %vm478_vm13 = vmor %vm476_vm11, %vm477_vm12 }
 0x3ce   :  { %v473_v42 = vsub.f32 1.0, %v472_v41 }
 0x3d0   :  { %v474_v48 = vmul.f32 %v974_v40, %v473_v42 }
 0x3d2   :  { %v475_v50 = vadd.f32 %v974_v40, %v474_v48 }
 0x3d4   :  { %v479_v53 = vsel %vm478_vm13, %v974_v40, %v475_v50 }
 0x3d5   :  { %v484_v54 = vsel %vm481_vm14, %v483_v52, %v479_v53 }
 0x433   :  { %v238_v28 = vpop.permute.xlu0 %237 }
 0x434   :  { %v240_v29 = vmul.f32 %v238_v28, %v221_v1 }
 0x436   :  { %270 = vrot.lane.b32.xlu1 %v240_v29, %s1047_s18 }
 0x43b   :  { %v490_v55 = vpop.permute.xlu0 %489 }
 0x43c   :  { %v492_v56 = vmul.f32 %v490_v55, %v484_v54 }
 0x4a8   :  { %v1315_v36 = vpop.permute.xlu1 %270 }
 0x4a9   :  { %922 = vmatmul.msk.f32.vlgmr.msrb.gmra.mxu3 %vm88_vm6, %v1315_v36 }
 0x4aa   :  { %595 = vmatpush.msrb.mxu3 %v1225_v3 }
 0x4ac   :  { %596 = vmatpush.msrb.mxu3 %v1230_v4 }
 0x4ae   :  { %597 = vmatpush.msrb.mxu3 %v1237_v5 }
 0x4b0   :  { %598 = vmatpush.msrb.mxu3 %v1250_v9  ;;  %v487_v9 = vmul.f32 0.0, %v484_v54 }
 0x4b1   :  { %924 = vmatmul.msk.f32.vlgmr.msra.gmra.mxu3 %vm65_vm1, %v337_v22 }
 0x4b2   :  { %599 = vmatpush.msrb.mxu3 %v47_v12 }
 0x4b4   :  { %600 = vmatpush.msrb.mxu3 %v46_v17 }
 0x4b6   :  { %601 = vmatpush.msrb.mxu3 %v45_v19 }
 0x4b8   :  { %602 = vmatpush.msrb.mxu3 %v44_v21 }
 0x4b9   :  { %932 = vmatmul.msk.f32.vlgmr.msrb.gmra.mxu3 %vm65_vm1, %v1202_v43 }
 0x52c   :  { %v291_v45 = vpop.f32.mrf.mxu3 }
 0x52d   :  { %v294_v47 = vadd.f32 %v291_v45, %v267_v44 }
 0x52f   :  { %975 = vtanh.f32 %v294_v47  ;;  %v923_v57 = vmul.f32 -1.442695, %v294_v47 }
 0x531   :  { %977 = vpow2.f32 %v923_v57 }
 0x535   :  { %v976_v43 = vpop.eup %975 }
 0x536   :  { %317 = vrot.lane.b32.xlu2 %v976_v43, %s1044_s12 }
 0x537   :  { %v978_v58 = vpop.eup %977 }
 0x538   :  { %v298_v59 = vadd.f32 1.0, %v978_v58 }
 0x53a   :  { %979 = vrcp.f32 %v298_v59  ;;  %v310_v1 = vand.u32 2147483648, %v298_v59  ;;  %vm304_vm0 = vweird.f32 %v298_v59  ;;  %v308_v2 = vand.u32 2147483647, %v298_v59 }
 0x53c   :  { %v311_v4 = vor.u32 1.1754944e-38, %v310_v1  ;;  %vm309_vm3 = vcmp.eq.f32.partialorder %v308_v2, 8.507059e+37 }
 0x53e   :  { %494 = vrot.lane.b32.xlu2 %v492_v56, %s1045_s3 }
 0x540   :  { %v980_v60 = vpop.eup %979 }
 0x541   :  { %v300_v61 = vmul.f32 %v980_v60, %v298_v59  ;;  %vm305_vm15 = vweird.f32 %v980_v60 }
 0x542   :  { %vm306_vm2 = vmor %vm304_vm0, %vm305_vm15 }
 0x543   :  { %v301_v62 = vsub.f32 1.0, %v300_v61 }
 0x545   :  { %v302_v63 = vmul.f32 %v980_v60, %v301_v62 }
 0x547   :  { %v303_v0 = vadd.f32 %v980_v60, %v302_v63 }
 0x549   :  { %v307_v3 = vsel %vm306_vm2, %v980_v60, %v303_v0 }
 0x54a   :  { %v312_v6 = vsel %vm309_vm3, %v311_v4, %v307_v3 }
 0x54b   :  { %v315_v17 = vmul.f32 %v312_v6, %v1289_v25 }
 0x590   :  { %v318_v5 = vpop.permute.xlu2 %317 }
 0x591   :  { %v320_v7 = vmul.f32 %v318_v5, %v312_v6 }
 0x593   :  { %322 = vrot.lane.b32.xlu1 %v320_v7, %s1045_s3 }
 0x598   :  { %v495_v10 = vpop.permute.xlu2 %494 }
 0x599   :  { %v497_v12 = vadd.f32 %v495_v10, %v487_v9 }
 0x59b   :  { %981 = vtanh.f32 %v497_v12 }
 0x5a1   :  { %v982_v16 = vpop.eup %981 }
 0x5a2   :  { %500 = vrot.lane.b32.xlu1 %v982_v16, %s1046_s13 }
 0x605   :  { %v323_v18 = vpop.permute.xlu1 %322 }
 0x606   :  { %v1332_v19 = vadd.f32 %v323_v18, %v315_v17 }
 0x608   :  { %983 = vtanh.f32 %v1332_v19 }
 0x60e   :  { %v984_v20 = vpop.eup %983 }
 0x60f   :  { %328 = vrot.lane.b32.xlu0 %v984_v20, %s1046_s13 }
 0x614   :  { %v501_v21 = vpop.permute.xlu1 %500 }
 0x615   :  { %v1336_v22 = vmul.f32 %v501_v21, %v484_v54  ;;  %v357_v54 = vpop.f32.mrf.mxu3 }
 0x616   :  { %v358_v20 = vadd.f32 %v1186_v15, %v357_v54 }
 0x617   :  { %525 = vrot.lane.b32.xlu0 %v1336_v22, %s1047_s18 }
 0x61d   :  { %v604_v55 = vpop.f32.mrf.mxu3 }
 0x61e   :  { %v605_v56 = vadd.f32 %v1311_v30, %v604_v55 }
 0x681   :  { %v329_v23 = vpop.permute.xlu0 %328 }
 0x682   :  { %v331_v24 = vmul.f32 %v329_v23, %v312_v6 }
 0x684   :  { %361 = vrot.lane.b32.xlu2 %v331_v24, %s1047_s18 }
 0x689   :  { %v526_v26 = vpop.permute.xlu0 %525 }
 0x68a   :  { %930 = vmatmul.msk.f32.vlgmr.msrb.gmra.mxu1 %vm88_vm6, %v526_v26 }
 0x692   :  { %935 = vmatmul.msk.f32.vlgmr.msra.gmra.mxu1 %vm65_vm1, %v1171_v14 }
 0x6de   :  { %v1344_v25 = vpop.permute.xlu2 %361 }
 0x6df   :  { %925 = vmatmul.msk.f32.vlgmr.msrb.gmra.mxu0 %vm88_vm6, %v1344_v25 }
 0x6e0   :  { %709 = vmatpush.msrb.mxu0 %v1255_v11 }
 0x6e2   :  { %710 = vmatpush.msrb.mxu0 %v1296_v27 }
 0x6e7   :  { %929 = vmatmul.msk.f32.vlgmr.msra.gmra.mxu0 %vm65_vm1, %v1263_v13 }
 0x707   :  { %v546_v31 = vpop.f32.mrf.mxu1 }
 0x75c   :  { %v1352_v28 = vpop.f32.mrf.mxu0 }
 0x75d   :  { %v385_v21 = vadd.f32 %v1352_v28, %v358_v20 }
 0x75f   :  { %v926_v15 = vmul.f32 -1.442695, %v385_v21 }
 0x764   :  { %v521_v29 = vpop.f32.mrf.mxu0 }
 0x765   :  { %v522_v8 = vadd.f32 %v1311_v30, %v521_v29 }
 0x767   :  { %v549_v32 = vadd.f32 %v546_v31, %v522_v8 }
 0x769   :  { %985 = vtanh.f32 %v549_v32  ;;  %v931_v33 = vmul.f32 -1.442695, %v549_v32 }
 0x76b   :  { %987 = vpow2.f32 %v931_v33 }
 0x76f   :  { %v986_v14 = vpop.eup %985 }
 0x770   :  { %572 = vrot.lane.b32.xlu1 %v986_v14, %s1044_s12  ;;  %v687_v14 = vpop.f32.mrf.mxu1 }
 0x771   :  { %v988_v34 = vpop.eup %987 }
 0x772   :  { %v553_v11 = vadd.f32 1.0, %v988_v34  ;;  %v688_v34 = vadd.f32 %v1311_v30, %v687_v14 }
 0x774   :  { %989 = vrcp.f32 %v553_v11  ;;  %v565_v39 = vand.u32 2147483648, %v553_v11  ;;  %vm559_vm4 = vweird.f32 %v553_v11  ;;  %v563_v40 = vand.u32 2147483647, %v553_v11 }
 0x776   :  { %v566_v42 = vor.u32 1.1754944e-38, %v565_v39  ;;  %vm564_vm7 = vcmp.eq.f32.partialorder %v563_v40, 8.507059e+37 }
 0x77a   :  { %v990_v27 = vpop.eup %989 }
 0x77b   :  { %v555_v35 = vmul.f32 %v990_v27, %v553_v11  ;;  %vm560_vm1 = vweird.f32 %v990_v27 }
 0x77c   :  { %vm561_vm5 = vmor %vm559_vm4, %vm560_vm1  ;;  %vm767_vm4 = vcmask 261120  }
 0x77d   :  { %v556_v37 = vsub.f32 1.0, %v555_v35 }
 0x77f   :  { %v557_v13 = vmul.f32 %v990_v27, %v556_v37 }
 0x781   :  { %v558_v38 = vadd.f32 %v990_v27, %v557_v13 }
 0x783   :  { %v562_v41 = vsel %vm561_vm5, %v990_v27, %v558_v38 }
 0x784   :  { %v567_v45 = vsel %vm564_vm7, %v566_v42, %v562_v41 }
 0x785   :  { %v570_v48 = vmul.f32 %v567_v45, %v497_v12 }
 0x7e2   :  { %v573_v44 = vpop.permute.xlu1 %572 }
 0x7e3   :  { %v575_v47 = vmul.f32 %v573_v44, %v567_v45 }
 0x7e5   :  { %577 = vrot.lane.b32.xlu2 %v575_v47, %s1045_s3 }
 0x83f   :  { %v578_v49 = vpop.permute.xlu2 %577 }
 0x840   :  { %v580_v50 = vadd.f32 %v578_v49, %v570_v48 }
 0x842   :  { %991 = vtanh.f32 %v580_v50 }
 0x848   :  { %v992_v51 = vpop.eup %991 }
 0x849   :  { %583 = vrot.lane.b32.xlu0 %v992_v51, %s1046_s13 }
 0x8bb   :  { %v584_v43 = vpop.permute.xlu0 %583 }
 0x8bc   :  { %v1358_v52 = vmul.f32 %v584_v43, %v567_v45 }
 0x8be   :  { %608 = vrot.lane.b32.xlu1 %v1358_v52, %s1047_s18 }
 0x930   :  { %v609_v53 = vpop.permute.xlu1 %608 }
 0x931   :  { %933 = vmatmul.msk.f32.vlgmr.msra.gmra.mxu2 %vm88_vm6, %v609_v53 }
 0x9b4   :  { %v629_v57 = vpop.f32.mrf.mxu2 }
 0x9b5   :  { %v632_v58 = vadd.f32 %v629_v57, %v605_v56 }
 0x9b7   :  { %993 = vtanh.f32 %v632_v58  ;;  %v934_v60 = vmul.f32 -1.442695, %v632_v58 }
 0x9b9   :  { %995 = vpow2.f32 %v934_v60 }
 0x9bd   :  { %v994_v59 = vpop.eup %993 }
 0x9be   :  { %655 = vrot.lane.b32.xlu2 %v994_v59, %s1044_s12 }
 0x9bf   :  { %v996_v61 = vpop.eup %995 }
 0x9c0   :  { %v636_v62 = vadd.f32 1.0, %v996_v61 }
 0x9c2   :  { %997 = vrcp.f32 %v636_v62  ;;  %v648_v4 = vand.u32 2147483648, %v636_v62  ;;  %vm642_vm9 = vweird.f32 %v636_v62  ;;  %v646_v5 = vand.u32 2147483647, %v636_v62 }
 0x9c4   :  { %v649_v7 = vor.u32 1.1754944e-38, %v648_v4  ;;  %vm647_vm11 = vcmp.eq.f32.partialorder %v646_v5, 8.507059e+37 }
 0x9c8   :  { %v998_v63 = vpop.eup %997 }
 0x9c9   :  { %v638_v0 = vmul.f32 %v998_v63, %v636_v62  ;;  %vm643_vm8 = vweird.f32 %v998_v63 }
 0x9ca   :  { %vm644_vm10 = vmor %vm642_vm9, %vm643_vm8 }
 0x9cb   :  { %v639_v1 = vsub.f32 1.0, %v638_v0 }
 0x9cd   :  { %v640_v2 = vmul.f32 %v998_v63, %v639_v1 }
 0x9cf   :  { %v641_v3 = vadd.f32 %v998_v63, %v640_v2 }
 0x9d1   :  { %v645_v6 = vsel %vm644_vm10, %v998_v63, %v641_v3 }
 0x9d2   :  { %v650_v10 = vsel %vm647_vm11, %v649_v7, %v645_v6 }
 0x9d3   :  { %v653_v16 = vmul.f32 %v650_v10, %v580_v50 }
 0xa18   :  { %v656_v9 = vpop.permute.xlu2 %655 }
 0xa19   :  { %v658_v12 = vmul.f32 %v656_v9, %v650_v10  ;;  %v755_v9 = vld [vmem:[%s1426_s7 + $0x10] sm:$0xff] }
 0xa1b   :  { %660 = vrot.lane.b32.xlu0 %v658_v12, %s1045_s3 }
 0xa8d   :  { %v661_v17 = vpop.permute.xlu0 %660 }
 0xa8e   :  { %v1366_v18 = vadd.f32 %v661_v17, %v653_v16 }
 0xa90   :  { %999 = vtanh.f32 %v1366_v18 }
 0xa91   :  { %1001 = vtanh.f32 %v385_v21 }
 0xa92   :  { %1003 = vpow2.f32 %v926_v15 }
 0xa96   :  { %v1000_v23 = vpop.eup %999 }
 0xa97   :  { %666 = vrot.lane.b32.xlu1 %v1000_v23, %s1046_s13  ;;  %v1002_v24 = vpop.eup %1001 }
 0xa98   :  { %v1004_v31 = vpop.eup %1003 }
 0xa99   :  { %v389_v28 = vadd.f32 1.0, %v1004_v31 }
 0xa9b   :  { %1005 = vrcp.f32 %v389_v28  ;;  %v401_v39 = vand.u32 2147483648, %v389_v28  ;;  %vm395_vm13 = vweird.f32 %v389_v28  ;;  %v399_v40 = vand.u32 2147483647, %v389_v28 }
 0xa9d   :  { %v402_v42 = vor.u32 1.1754944e-38, %v401_v39  ;;  %vm400_vm15 = vcmp.eq.f32.partialorder %v399_v40, 8.507059e+37 }
 0xa9f   :  { %408 = vrot.lane.b32.xlu1 %v1002_v24, %s1044_s12 }
 0xaa1   :  { %v1006_v32 = vpop.eup %1005 }
 0xaa2   :  { %v391_v33 = vmul.f32 %v1006_v32, %v389_v28  ;;  %vm396_vm12 = vweird.f32 %v1006_v32 }
 0xaa3   :  { %vm397_vm14 = vmor %vm395_vm13, %vm396_vm12 }
 0xaa4   :  { %v392_v11 = vsub.f32 1.0, %v391_v33 }
 0xaa6   :  { %v393_v37 = vmul.f32 %v1006_v32, %v392_v11 }
 0xaa8   :  { %v394_v13 = vadd.f32 %v1006_v32, %v393_v37 }
 0xaaa   :  { %v398_v41 = vsel %vm397_vm14, %v1006_v32, %v394_v13 }
 0xaab   :  { %v403_v45 = vsel %vm400_vm15, %v402_v42, %v398_v41 }
 0xaac   :  { %v406_v62 = vmul.f32 %v403_v45, %v1332_v19  ;;  %v756_v19 = vld [vmem:[%s1426_s7 + $0x18] sm:$0xff] }
 0xaad   :  { %816 = vmatpush.msra.mxu3 %v756_v19  ;;  %849 = vmatpush.msra.mxu0 %v756_v19 }
 0xaae   :  { %783 = vmatpush.msrb.mxu2 %v756_v19 }
 0xaaf   :  { %817 = vmatpush.msra.mxu3 %v755_v9  ;;  %850 = vmatpush.msra.mxu0 %v755_v9 }
 0xab0   :  { %784 = vmatpush.msrb.mxu2 %v755_v9 }
 0xb09   :  { %v667_v26 = vpop.permute.xlu1 %666 }
 0xb0a   :  { %v1373_v29 = vmul.f32 %v667_v26, %v650_v10  ;;  %v754_v10 = vld [vmem:[%s1426_s7 + $0x8] sm:$0xff] }
 0xb0b   :  { %818 = vmatpush.msra.mxu3 %v754_v10  ;;  %851 = vmatpush.msra.mxu0 %v754_v10 }
 0xb0c   :  { %691 = vrot.lane.b32.xlu2 %v1373_v29, %s1047_s18  ;;  %785 = vmatpush.msrb.mxu2 %v754_v10 }
 0xb11   :  { %v409_v44 = vpop.permute.xlu1 %408 }
 0xb12   :  { %v411_v30 = vmul.f32 %v409_v44, %v403_v45 }
 0xb66   :  { %v692_v8 = vpop.permute.xlu2 %691 }
 0xb67   :  { %936 = vmatmul.msk.f32.vlgmr.msrb.gmra.mxu0 %vm88_vm6, %v692_v8 }
 0xbe4   :  { %v712_v27 = vpop.f32.mrf.mxu0 }
 0xbe5   :  { %v715_v35 = vadd.f32 %v712_v27, %v688_v34 }
 0xbe7   :  { %1007 = vtanh.f32 %v715_v35  ;;  %v937_v47 = vmul.f32 -1.442695, %v715_v35 }
 0xbe9   :  { %1009 = vpow2.f32 %v937_v47 }
 0xbed   :  { %v1008_v38 = vpop.eup %1007 }
 0xbee   :  { %738 = vrot.lane.b32.xlu0 %v1008_v38, %s1044_s12 }
 0xbef   :  { %v1010_v48 = vpop.eup %1009 }
 0xbf0   :  { %v719_v49 = vadd.f32 1.0, %v1010_v48 }
 0xbf2   :  { %1011 = vrcp.f32 %v719_v49  ;;  %v731_v55 = vand.u32 2147483648, %v719_v49  ;;  %vm725_vm2 = vweird.f32 %v719_v49  ;;  %v729_v56 = vand.u32 2147483647, %v719_v49 }
 0xbf4   :  { %v732_v58 = vor.u32 1.1754944e-38, %v731_v55  ;;  %vm730_vm1 = vcmp.eq.f32.partialorder %v729_v56, 8.507059e+37 }
 0xbf6   :  { %413 = vrot.lane.b32.xlu0 %v411_v30, %s1045_s3 }
 0xbf8   :  { %v1012_v50 = vpop.eup %1011 }
 0xbf9   :  { %v721_v51 = vmul.f32 %v1012_v50, %v719_v49  ;;  %vm726_vm0 = vweird.f32 %v1012_v50 }
 0xbfa   :  { %vm727_vm3 = vmor %vm725_vm2, %vm726_vm0 }
 0xbfb   :  { %v722_v43 = vsub.f32 1.0, %v721_v51 }
 0xbfd   :  { %v723_v53 = vmul.f32 %v1012_v50, %v722_v43 }
 0xbff   :  { %v724_v54 = vadd.f32 %v1012_v50, %v723_v53 }
 0xc01   :  { %v728_v57 = vsel %vm727_vm3, %v1012_v50, %v724_v54 }
 0xc02   :  { %v733_v60 = vsel %vm730_vm1, %v732_v58, %v728_v57 }
 0xc03   :  { %v736_v2 = vmul.f32 %v733_v60, %v1366_v18 }
 0xc60   :  { %v739_v59 = vpop.permute.xlu0 %738 }
 0xc61   :  { %v741_v61 = vmul.f32 %v739_v59, %v733_v60 }
 0xc63   :  { %743 = vrot.lane.b32.xlu2 %v741_v61, %s1045_s3 }
 0xc68   :  { %v414_v63 = vpop.permute.xlu0 %413 }
 0xc69   :  { %v416_v0 = vadd.f32 %v414_v63, %v406_v62 }
 0xc6b   :  { %1013 = vtanh.f32 %v416_v0 }
 0xc71   :  { %v1014_v1 = vpop.eup %1013 }
 0xc72   :  { %419 = vrot.lane.b32.xlu2 %v1014_v1, %s1046_s13 }
 0xcbd   :  { %v744_v3 = vpop.permute.xlu2 %743 }
 0xcbe   :  { %v746_v4 = vadd.f32 %v744_v3, %v736_v2 }
 0xcc0   :  { %1015 = vtanh.f32 %v746_v4 }
 0xcc6   :  { %v1016_v5 = vpop.eup %1015 }
 0xcc7   :  { %749 = vrot.lane.b32.xlu1 %v1016_v5, %s1046_s13 }
 0xccc   :  { %v420_v6 = vpop.permute.xlu2 %419 }
 0xccd   :  { %v422_v7 = vmul.f32 %v420_v6, %v403_v45 }
 0xccf   :  { %797 = vrot.lane.b32.xlu1 %v1373_v29, %s1044_s12  ;;  %863 = vrot.lane.b32.xlu2 %v422_v7, %s1047_s18 }
 0xcd7   :  { %830 = vrot.lane.b32.xlu1 %v1358_v52, %s1044_s12  ;;  %v753_v52 = vld [vmem:[%s1426_s7] sm:$0xff] }
 0xcd8   :  { %819 = vmatpush.msra.mxu3 %v753_v52  ;;  %852 = vmatpush.msra.mxu0 %v753_v52 }
 0xcd9   :  { %786 = vmatpush.msrb.mxu2 %v753_v52 }
 0xcdb   :  { %885 = vmatpush.msra.mxu2 %v756_v19 }
 0xcdd   :  { %886 = vmatpush.msra.mxu2 %v755_v9 }
 0xcdf   :  { %887 = vmatpush.msra.mxu2 %v754_v10 }
 0xce1   :  { %888 = vmatpush.msra.mxu2 %v753_v52 }
 0xd29   :  { %v864_v26 = vpop.permute.xlu2 %863 }
 0xd39   :  { %v750_v12 = vpop.permute.xlu1 %749 }
 0xd3a   :  { %v752_v16 = vmul.f32 %v750_v12, %v733_v60 }
 0xd3c   :  { %760 = vrot.lane.b32.xlu0 %v752_v16, %s1044_s12 }
 0xd41   :  { %v798_v17 = vpop.permute.xlu1 %797 }
 0xd42   :  { %v800_v18 = vsel %vm88_vm6, %v1315_v36, %v798_v17  ;;  %v952_v36 = vld [vmem:[%s1427_s8] ss:$0 sm:$0xff]  ;;  %s904_s8 = sshll.u32 %s1428_s9, 4  ;;  %s905_s8 = int_to_ptr.hbm [resolvable:$true] %s904_s8 }
 0xd43   :  { %939 = vmatmul.msk.f32.vlgmr.msra.gmra.mxu3 %vm767_vm4, %v800_v18 }
 0xd44   :  { %866 = vrot.lane.b32.xlu0 %v1336_v22, %s1044_s12  ;;  %s1048_s12 = smov [#allocation2]  }
 0xd45   :  { %s902_s30 = sshll.u32 %s1048_s12, 4  ;;  %s903_s30 = int_to_ptr.vmem [resolvable:$true] %s902_s30 }
 0xd49   :  { %v831_v20 = vpop.permute.xlu1 %830 }
 0xd4a   :  { %v833_v21 = vsel %vm88_vm6, %v1344_v25, %v831_v20 }
 0xd4b   :  { %940 = vmatmul.msk.f32.vlgmr.msra.gmra.mxu0 %vm767_vm4, %v833_v21 }
 0xdae   :  { %v761_v23 = vpop.permute.xlu0 %760 }
 0xdaf   :  { %v763_v24 = vsel %vm88_vm6, %v1207_v46, %v761_v23 }
 0xdb0   :  { %938 = vmatmul.msk.f32.vlgmr.msrb.gmra.mxu2 %vm767_vm4, %v763_v24 }
 0xdb6   :  { %v867_v29 = vpop.permute.xlu0 %866 }
 0xdb7   :  { %v869_v8 = vsel %vm88_vm6, %v864_v26, %v867_v29 }
 0xdb8   :  { %941 = vmatmul.msk.f32.vlgmr.msra.gmra.mxu2 %vm767_vm4, %v869_v8 }
 0xdc6   :  { %v821_v22 = vpop.f32.mrf.mxu3 }
 0xdc7   :  { %v822_v15 = vadd.f32 %v952_v36, %v821_v22 }
 0xdc8   :  { %v854_v31 = vpop.f32.mrf.mxu0 }
 0xdc9   :  { %v825_v28 = vrot.slane %v822_v15, 1  ;;  %827 = vst [vmem:[#allocation2 + $0x1] sm:$0x1] %v822_v15  ;;  %v855_v25 = vadd.f32 %v952_v36, %v854_v31 }
 0xdcb   :  { %828 = vst [vmem:[#allocation2 + $0x5] sm:$0x1] %v825_v28  ;;  %v858_v32 = vrot.slane %v855_v25, 1 }
 0xdcc   :  { %860 = vst [vmem:[#allocation2 + $0x2] sm:$0x1] %v855_v25 }
 0xdcd   :  { %861 = vst [vmem:[#allocation2 + $0x6] sm:$0x1] %v858_v32 }
 0xe33   :  { %v788_v46 = vpop.f32.mrf.mxu2 }
 0xe34   :  { %v789_v14 = vadd.f32 %v952_v36, %v788_v46 }
 0xe36   :  { %v792_v33 = vrot.slane %v789_v14, 1  ;;  %794 = vst [vmem:[#allocation2] sm:$0x1] %v789_v14 }
 0xe38   :  { %795 = vst [vmem:[#allocation2 + $0x4] sm:$0x1] %v792_v33 }
 0xe3b   :  { %v890_v34 = vpop.f32.mrf.mxu2 }
 0xe3c   :  { %v891_v11 = vadd.f32 %v952_v36, %v890_v34 }
 0xe3e   :  { %v894_v27 = vrot.slane %v891_v11, 1  ;;  %896 = vst [vmem:[#allocation2 + $0x3] sm:$0x1] %v891_v11 }
 0xe40   :  { %897 = vst [vmem:[#allocation2 + $0x7] sm:$0x1] %v894_v27 }
 0xe41   :  { %910 = dma.vmem_to_hbm [thread:$0]  %s903_s30, 128, %s905_s8, [#allocation3], %s1049_s11, %s1049_s11, %s1050_s14  }
 0xe42   :  { %1041 = dma.done.wait [#allocation3], 128  }
 0xe43   :  { %1042 = vsyncadd [#allocation3], 4294967168 }
 0xe44   :  { %915 = vsyncpa [#allocation3], 1 }

// kernel: dialogue_classifier_forward.3
= control target key start
LH: loop header
LB: loop body
LE: loop exit
PB: predicated region body
PF: predicated region fallthrough
CT: control target
= control target key end

     0   :  { %s3324_s27 = smov 0   ;;  %s4115_s0 = inlined_call_operand.vmem [shape: f32[8,8,32], index: 0, kind: input, shape index: {}]   ;;  %s4116_s1 = inlined_call_operand.vmem [shape: f32[8,1,8], index: 1, kind: input, shape index: {}]   ;;  %s4117_s2 = inlined_call_operand.vmem [shape: f32[1,32], index: 2, kind: input, shape index: {}]   ;;  %s4118_s3 = inlined_call_operand.vmem [shape: f32[1,32], index: 3, kind: input, shape index: {}]   ;;  %s4119_s4 = inlined_call_operand.vmem [shape: f32[2,32,96], index: 4, kind: input, shape index: {}]   ;;  %s4120_s5 = inlined_call_operand.vmem [shape: f32[2,1,96], index: 5, kind: input, shape index: {}]   ;;  %s4121_s6 = inlined_call_operand.vmem [shape: f32[2,32,32], index: 6, kind: input, shape index: {}]   ;;  %s4122_s7 = inlined_call_operand.vmem [shape: f32[2,1,32], index: 7, kind: input, shape index: {}]   ;;  %s4123_s8 = inlined_call_operand.vmem [shape: f32[2,1,32], index: 8, kind: input, shape index: {}]   ;;  %s4124_s9 = inlined_call_operand.vmem [shape: f32[2,1,32], index: 9, kind: input, shape index: {}]   ;;  %s4125_s10 = inlined_call_operand.vmem [shape: f32[2,32,128], index: 10, kind: input, shape index: {}]   ;;  %s4126_s11 = inlined_call_operand.vmem [shape: f32[2,1,128], index: 11, kind: input, shape index: {}]   ;;  %s4127_s12 = inlined_call_operand.vmem [shape: f32[2,128,32], index: 12, kind: input, shape index: {}]   ;;  %s4128_s13 = inlined_call_operand.vmem [shape: f32[2,1,32], index: 13, kind: input, shape index: {}]   ;;  %s4129_s14 = inlined_call_operand.vmem [shape: f32[2,1,32], index: 14, kind: input, shape index: {}]   ;;  %s4130_s15 = inlined_call_operand.vmem [shape: f32[2,1,32], index: 15, kind: input, shape index: {}]   ;;  %s4131_s16 = inlined_call_operand.vmem [shape: f32[32,32], index: 16, kind: input, shape index: {}]   ;;  %s4132_s17 = inlined_call_operand.vmem [shape: f32[1,32], index: 17, kind: input, shape index: {}]   ;;  %s4133_s18 = inlined_call_operand.vmem [shape: f32[8,1,32], index: 18, kind: output, shape index: {}]  }
   0x1   :  { %4142 = sst [smem:[#allocation2_spill]] %s4115_s0 }
   0x2   :  { %4143 = sst [smem:[#allocation3_spill]] %s4116_s1 }
   0x3   :  { %4144 = sst [smem:[#allocation4_spill]] %s4117_s2 }
   0x4 LB: > { %s2898_s28 = sadd.s32 4294967295, %s3219_s27   ;;  %p2902_p0 = scmp.ge.s32.totalorder %s3219_s27, 1  ;;  %s3219_s27 = sphi %s3324_s27, %s28_s27  }
   0x5   : > { %p523_p1 = scmp.lt.s32.totalorder %s3219_s27, 3 }
   0x7   : > { %p524_p2 = pnand %p2902_p0, %p523_p1 }
   0x8   : > { %s2903_s29 = sshll.u32 (!%p524_p2), %s2898_s28, 2  ;;  %s4145_s1 = sld [smem:[#allocation2_spill]] (!%p524_p2) }
   0x9   : > { %527 = sbr.rel (%p524_p2) target bundleno = 5012 (0x1394), region = 92  ;;  %p581_p3 = scmp.lt.s32.totalorder (!%p524_p2), %s2903_s29, 7 }
   0xa   : > { %s4146_s19 = sld [smem:[#allocation4_spill]] (!%p524_p2)  ;;  %s3222_s2 = smov (!%p524_p2), 96  }
   0xb   : > { %s4138_s23 = smov (!%p524_p2), 80   ;;  %s3224_s24 = smov (!%p524_p2), 64  }
   0xc   : > { %s4147_s28 = sld [smem:[#allocation3_spill]] (!%p524_p2)  ;;  %s4140_s0 = smov (!%p524_p2), 112  }
   0xd   : > { %s4151_s21 = smov (!%p524_p2), 16  }
   0xe   : > { %s4155_s29 = smov (!%p581_p3, %s2903_s29), 7  ;;  %vm614_vm0 = vcmask 261120   ;;  %v3221_v8 = vmov 32.0   ;;  %v727_v35 = vld [vmem:[%s4119_s4 + $0x18] sm:$0xff]  ;;  %v726_v36 = vld [vmem:[%s4119_s4 + $0x10] sm:$0xff]  ;;  %v725_v37 = vld [vmem:[%s4119_s4 + $0x8] sm:$0xff] }
   0xf   : > { %s2904_s30 = sshll.u32 %s4155_s29, 3  ;;  %3087 = vrcp.f32 %v3221_v8  ;;  %756 = vmatpush.msra.mxu0 %v727_v35  ;;  %v724_v38 = vld [vmem:[%s4119_s4] sm:$0xff]  ;;  %vm776_vm14 = vcmask 130048   ;;  %vm902_vm15 = vcmask 64512  }
  0x10   : > { %s584_s20 = scalar_lea.vmem %s4145_s1, %s2904_s30  ;;  %s4136_s1 = smov 16  }
  0x11   : > { %v610_v0 = vld [vmem:[%s584_s20 + $0x10] sm:$0xff]  ;;  %v608_v1 = vld [vmem:[%s584_s20] sm:$0xff]  ;;  %v611_v4 = vld [vmem:[%s584_s20 + $0x18] sm:$0xff]  ;;  %757 = vmatpush.msra.mxu0 %v726_v36 }
  0x12   : > { %v621_v2 = vsel %vm614_vm0, %v610_v0, 0.0  ;;  %v615_v3 = vsel %vm614_vm0, %v608_v1, 0.0  ;;  %v609_v5 = vld [vmem:[%s584_s20 + $0x8] sm:$0xff]  ;;  %v624_v6 = vsel %vm614_vm0, %v611_v4, 0.0  ;;  %s3451_s30 = scalar_lea.vmem %s4147_s28, %s4155_s29 }
  0x13   : > { %622 = vadd.xlane.f32.xlu1 %v621_v2  ;;  %616 = vadd.xlane.f32.xlu0 %v615_v3  ;;  %v618_v7 = vsel %vm614_vm0, %v609_v5, 0.0 }
  0x14   : > { %758 = vmatpush.msra.mxu0 %v725_v37 }
  0x15   : > { %v3088_v9 = vpop.eup %3087 }
  0x16   : > { %v628_v10 = vmul.f32 32.0, %v3088_v9  ;;  %vm632_vm1 = vweird.f32 %v3088_v9  ;;  %759 = vmatpush.msra.mxu0 %v724_v38 }
  0x18   : > { %v629_v11 = vsub.f32 1.0, %v628_v10 }
  0x1a   : > { %v630_v12 = vmul.f32 %v3088_v9, %v629_v11 }
  0x1b   : > { %625 = vadd.xlane.f32.xlu1 %v624_v6  ;;  %619 = vadd.xlane.f32.xlu0 %v618_v7 }
  0x1c   : > { %v631_v13 = vadd.f32 %v3088_v9, %v630_v12 }
  0x1e   : > { %v3342_v14 = vsel %vm632_vm1, %v3088_v9, %v631_v13 }
  0x86   : > { %v623_v15 = vpop.xlane.xlu1 %622  ;;  %v617_v16 = vpop.xlane.xlu0 %616 }
  0x87   : > { %v636_v17 = vmul.f32 %v3342_v14, %v623_v15  ;;  %v634_v18 = vmul.f32 %v3342_v14, %v617_v16 }
  0x89   : > { %v3346_v19 = vsub.f32 %v610_v0, %v636_v17  ;;  %v3348_v20 = vsub.f32 %v608_v1, %v634_v18  ;;  %v3068_v1 = vld [vmem:[%s4146_s19] ss:$0 sm:$0xff]  ;;  %s4134_s19 = smov 48  }
  0x8b   : > { %v644_v21 = vmul.f32 %v3346_v19, %v3346_v19  ;;  %v642_v22 = vmul.f32 %v3348_v20, %v3348_v20 }
  0x8d   : > { %v652_v23 = vsel %vm614_vm0, %v644_v21, 0.0  ;;  %v646_v24 = vsel %vm614_vm0, %v642_v22, 0.0 }
  0x8e   : > { %v626_v25 = vpop.xlane.xlu1 %625  ;;  %653 = vadd.xlane.f32.xlu0 %v652_v23  ;;  %647 = vadd.xlane.f32.xlu2 %v646_v24  ;;  %v620_v26 = vpop.xlane.xlu0 %619 }
  0x8f   : > { %v637_v27 = vmul.f32 %v3342_v14, %v626_v25  ;;  %v635_v28 = vmul.f32 %v3342_v14, %v620_v26 }
  0x91   : > { %v3358_v29 = vsub.f32 %v611_v4, %v637_v27  ;;  %v3360_v30 = vsub.f32 %v609_v5, %v635_v28  ;;  %v3069_v5 = vld [vmem:[%s4118_s3] ss:$0 sm:$0xff] }
  0x93   : > { %v645_v31 = vmul.f32 %v3358_v29, %v3358_v29  ;;  %v643_v32 = vmul.f32 %v3360_v30, %v3360_v30 }
  0x95   : > { %v655_v33 = vsel %vm614_vm0, %v645_v31, 0.0  ;;  %v649_v34 = vsel %vm614_vm0, %v643_v32, 0.0 }
  0x96   : > { %656 = vadd.xlane.f32.xlu1 %v655_v33  ;;  %650 = vadd.xlane.f32.xlu2 %v649_v34 }
 0x101   : > { %v648_v39 = vpop.xlane.xlu2 %647  ;;  %v654_v40 = vpop.xlane.xlu0 %653 }
 0x102   : > { %v658_v41 = vmul.f32 %v648_v39, %v3342_v14  ;;  %v660_v42 = vmul.f32 %v654_v40, %v3342_v14 }
 0x104   : > { %v662_v43 = vadd.f32 1e-12, %v658_v41  ;;  %v664_v44 = vadd.f32 1e-12, %v660_v42 }
 0x106   : > { %3089 = vrsqrt.f32 %v662_v43  ;;  %vm672_vm3 = vweird.f32 %v662_v43  ;;  %vm692_vm5 = vweird.f32 %v664_v44 }
 0x107   : > { %3091 = vrsqrt.f32 %v664_v44 }
 0x109   : > { %v657_v45 = vpop.xlane.xlu1 %656  ;;  %v651_v46 = vpop.xlane.xlu2 %650 }
 0x10a   : > { %v661_v47 = vmul.f32 %v657_v45, %v3342_v14  ;;  %v659_v48 = vmul.f32 %v651_v46, %v3342_v14 }
 0x10c   : > { %v3090_v49 = vpop.eup %3089  ;;  %v665_v50 = vadd.f32 1e-12, %v661_v47  ;;  %v663_v51 = vadd.f32 1e-12, %v659_v48  ;;  %v596_v48 = vld [vmem:[%s3451_s30] sm:$0x1] }
 0x10d   : > { %v3092_v52 = vpop.eup %3091  ;;  %v667_v53 = vmul.f32 %v3090_v49, %v662_v43  ;;  %vm673_vm2 = vweird.f32 %v3090_v49 }
 0x10e   : > { %v687_v54 = vmul.f32 %v3092_v52, %v664_v44  ;;  %3093 = vrsqrt.f32 %v665_v50  ;;  %vm674_vm4 = vmor %vm672_vm3, %vm673_vm2  ;;  %vm693_vm6 = vweird.f32 %v3092_v52  ;;  %vm682_vm9 = vweird.f32 %v663_v51 }
 0x10f   : > { %v668_v55 = vmul.f32 %v3090_v49, %v667_v53  ;;  %3095 = vrsqrt.f32 %v663_v51  ;;  %vm694_vm8 = vmor %vm692_vm5, %vm693_vm6  ;;  %vm702_vm11 = vweird.f32 %v665_v50 }
 0x110   : > { %v688_v57 = vmul.f32 %v3092_v52, %v687_v54 }
 0x111   : > { %v669_v56 = vmul.f32 0.5, %v668_v55 }
 0x112   : > { %v689_v62 = vmul.f32 0.5, %v688_v57 }
 0x113   : > { %v670_v58 = vsub.f32 1.5, %v669_v56  ;;  %v597_v56 = vld [vmem:[%s3451_s30 + $0x1] sm:$0x1] }
 0x114   : > { %v3094_v59 = vpop.eup %3093  ;;  %v690_v6 = vsub.f32 1.5, %v689_v62  ;;  %v601_v57 = vsub.f32 1.0, %v597_v56 }
 0x115   : > { %v3096_v60 = vpop.eup %3095  ;;  %v671_v61 = vmul.f32 %v3090_v49, %v670_v58  ;;  %v697_v63 = vmul.f32 %v3094_v59, %v665_v50  ;;  %vm703_vm12 = vweird.f32 %v3094_v59 }
 0x116   : > { %v677_v0 = vmul.f32 %v3096_v60, %v663_v51  ;;  %vm683_vm7 = vweird.f32 %v3096_v60  ;;  %v691_v12 = vmul.f32 %v3092_v52, %v690_v6  ;;  %vm704_vm13 = vmor %vm702_vm11, %vm703_vm12  ;;  %v605_v58 = vmul.f32 -10000.0, %v601_v57 }
 0x117   : > { %v675_v2 = vsel %vm674_vm4, %v3090_v49, %v671_v61  ;;  %v698_v7 = vmul.f32 %v3094_v59, %v697_v63  ;;  %vm684_vm10 = vmor %vm682_vm9, %vm683_vm7  ;;  %v600_v49 = vsub.f32 1.0, %v596_v48 }
 0x118   : > { %v678_v3 = vmul.f32 %v3096_v60, %v677_v0  ;;  %v706_v4 = vmul.f32 %v675_v2, %v3348_v20  ;;  %v695_v18 = vsel %vm694_vm8, %v3092_v52, %v691_v12 }
 0x119   : > { %v699_v13 = vmul.f32 0.5, %v698_v7  ;;  %v708_v23 = vmul.f32 %v695_v18, %v3346_v19  ;;  %v3070_v19 = vld [vmem:[%s4120_s5] ss:$0 sm:$0xff]  ;;  %v604_v50 = vmul.f32 -10000.0, %v600_v49 }
 0x11a   : > { %v679_v8 = vmul.f32 0.5, %v678_v3  ;;  %v713_v9 = vmul.f32 %v3068_v1, %v706_v4 }
 0x11b   : > { %v700_v20 = vsub.f32 1.5, %v699_v13  ;;  %v715_v25 = vmul.f32 %v3068_v1, %v708_v23  ;;  %v3454_v51 = vperm.slane %v604_v50, 0 }
 0x11c   : > { %v680_v10 = vsub.f32 1.5, %v679_v8  ;;  %v3391_v11 = vadd.f32 %v3069_v5, %v713_v9  ;;  %v599_v9 = vld [vmem:[%s3451_s30 + $0x3] sm:$0x1] }
 0x11d   : > { %v701_v24 = vmul.f32 %v3094_v59, %v700_v20  ;;  %v3401_v27 = vadd.f32 %v3069_v5, %v715_v25 }
 0x11e   : > { %v681_v15 = vmul.f32 %v3096_v60, %v680_v10  ;;  %2907 = vmatmul.msk.f32.vlgmr.msra.gmra.mxu0 %vm614_vm0, %v3391_v11  ;;  %v603_v10 = vsub.f32 1.0, %v599_v9 }
 0x11f   : > { %v705_v26 = vsel %vm704_vm13, %v3094_v59, %v701_v24  ;;  %v598_v59 = vld [vmem:[%s3451_s30 + $0x2] sm:$0x1] }
 0x120   : > { %v685_v16 = vsel %vm684_vm10, %v3096_v60, %v681_v15  ;;  %v709_v28 = vmul.f32 %v705_v26, %v3358_v29  ;;  %v3462_v60 = vperm.slane %v605_v58, 0  ;;  %v602_v61 = vsub.f32 1.0, %v598_v59 }
 0x121   : > { %v707_v17 = vmul.f32 %v685_v16, %v3360_v30  ;;  %v607_v12 = vmul.f32 -10000.0, %v603_v10 }
 0x122   : > { %v716_v30 = vmul.f32 %v3068_v1, %v709_v28 }
 0x123   : > { %v714_v21 = vmul.f32 %v3068_v1, %v707_v17  ;;  %v606_v1 = vmul.f32 -10000.0, %v602_v61  ;;  %v3478_v16 = vperm.slane %v607_v12, 0 }
 0x124   : > { %v3406_v31 = vadd.f32 %v3069_v5, %v716_v30 }
 0x125   : > { %v3396_v22 = vadd.f32 %v3069_v5, %v714_v21  ;;  %v3468_v3 = vperm.slane %v606_v1, 0 }
 0x127   : > { %2908 = vmatmul.msk.f32.gmra.mxu0 %vm614_vm0, %v3396_v22 }
 0x12f   : > { %2909 = vmatmul.msk.f32.gmra.mxu0 %vm614_vm0, %v3401_v27 }
 0x137   : > { %2910 = vmatmul.msk.f32.gmra.mxu0 %vm614_vm0, %v3406_v31 }
 0x19b   : > { %v761_v32 = vpop.f32.mrf.mxu0 }
 0x19c   : > { %v3413_v33 = vadd.f32 %v3070_v19, %v761_v32 }
 0x19e   : > { %774 = vrot.lane.b32.xlu2 %v3413_v33, %s3222_s2 }
 0x1a4   : > { %v764_v29 = vpop.f32.mrf.mxu0 }
 0x1a5   : > { %v3417_v34 = vadd.f32 %v3070_v19, %v764_v29 }
 0x1a7   : > { %802 = vrot.lane.b32.xlu0 %v3417_v34, %s3222_s2  ;;  %v3038_v39 = vpack.i.bf16 %v3413_v33, %v3417_v34 }
 0x1ac   : > { %v767_v35 = vpop.f32.mrf.mxu0 }
 0x1ad   : > { %v3421_v36 = vadd.f32 %v3070_v19, %v767_v35 }
 0x1af   : > { %1053 = vrot.lane.b32.xlu0 %v3413_v33, %s4138_s23  ;;  %829 = vrot.lane.b32.xlu1 %v3421_v36, %s3222_s2 }
 0x1b4   : > { %v770_v37 = vpop.f32.mrf.mxu0 }
 0x1b5   : > { %v3427_v38 = vadd.f32 %v3070_v19, %v770_v37 }
 0x1b7   : > { %856 = vrot.lane.b32.xlu2 %v3427_v38, %s3222_s2  ;;  %v3043_v8 = vpack.i.bf16 %v3427_v38, %v3421_v36 }
 0x1bf   : > { %3039 = vrot.lane.b32.xlu2 %v3038_v39, %s3224_s24 }
 0x1f8   : > { %v775_v40 = vpop.permute.xlu2 %774 }
 0x1f9   : > { %2911 = vmatpush.xpose.msk.msra.mxu3 %vm776_vm14, %v775_v40 }
 0x1fc   : > { %2912 = vmatmul.msk.f32.vlgmr.msra.gmra.mxu3 %vm776_vm14, %v3413_v33 }
 0x211   : > { %v857_v41 = vpop.permute.xlu2 %856 }
 0x212   : > { %2917 = vmatpush.xpose.msk.msra.mxu1 %vm776_vm14, %v857_v41 }
 0x215   : > { %2918 = vmatmul.msk.f32.vlgmr.msra.gmra.mxu1 %vm776_vm14, %v3427_v38 }
 0x219   : > { %v3040_v42 = vpop.permute.xlu2 %3039  ;;  %v803_v43 = vpop.permute.xlu0 %802 }
 0x21a   : > { %2913 = vmatpush.xpose.msk.msra.mxu2 %vm776_vm14, %v803_v43  ;;  %v3042_v44 = vunpack.i.h.bf16 %v3040_v42  ;;  %v3041_v45 = vunpack.i.l.bf16 %v3040_v42 }
 0x21d   : > { %2914 = vmatmul.msk.f32.vlgmr.msra.gmra.mxu2 %vm776_vm14, %v3417_v34 }
 0x21e   : > { %968 = vmatpush.msrb.mxu2 %v3042_v44 }
 0x221   : > { %v830_v46 = vpop.permute.xlu1 %829  ;;  %v1054_v47 = vpop.permute.xlu0 %1053 }
 0x222   : > { %2915 = vmatpush.xpose.msk.msrb.mxu3 %vm776_vm14, %v830_v46 }
 0x225   : > { %2916 = vmatmul.msk.f32.vlgmr.msrb.gmra.mxu3 %vm776_vm14, %v3421_v36 }
 0x226   : > { %994 = vmatpush.msra.mxu3 %v3041_v45 }
 0x228   : > { %2923 = vmatpush.xpose.msk.msrb.mxu3 %vm776_vm14, %v1054_v47 }
 0x27f   : > { %v798_v52 = vpop.f32.mrf.mxu3 }
 0x280   : > { %v882_v53 = vmul.f32 0.25, %v798_v52 }
 0x282   : > { %v898_v54 = vadd.f32 %v3454_v51, %v882_v53 }
 0x284   : > { %v903_v55 = vsel %vm902_vm15, %v898_v54, -inf }
 0x285   : > { %904 = vmax.xlane.f32.xlu2 %v903_v55 }
 0x292   : > { %v879_v13 = vpop.f32.mrf.mxu1 }
 0x293   : > { %v885_v15 = vmul.f32 0.25, %v879_v13 }
 0x295   : > { %v901_v17 = vadd.f32 %v3478_v16, %v885_v15 }
 0x297   : > { %v912_v18 = vsel %vm902_vm15, %v901_v17, -inf }
 0x29d   : > { %1051 = vrot.lane.b32.xlu2 %v3413_v33, %s4140_s0 }
 0x2a0   : > { %v825_v62 = vpop.f32.mrf.mxu2 }
 0x2a1   : > { %v883_v63 = vmul.f32 0.25, %v825_v62 }
 0x2a3   : > { %v899_v0 = vadd.f32 %v3462_v60, %v883_v63 }
 0x2a5   : > { %1109 = vrot.lane.b32.xlu2 %v3421_v36, %s4138_s23  ;;  %v906_v2 = vsel %vm902_vm15, %v899_v0, -inf }
 0x2a6   : > { %907 = vmax.xlane.f32.xlu0 %v906_v2 }
 0x2a8   : > { %v852_v4 = vpop.f32.mrf.mxu3 }
 0x2a9   : > { %v884_v5 = vmul.f32 0.25, %v852_v4 }
 0x2ab   : > { %v900_v6 = vadd.f32 %v3468_v3, %v884_v5 }
 0x2ad   : > { %v909_v7 = vsel %vm902_vm15, %v900_v6, -inf }
 0x2ae   : > { %910 = vmax.xlane.f32.xlu1 %v909_v7 }
 0x2ba   : > { %1081 = vrot.lane.b32.xlu0 %v3417_v34, %s4138_s23 }
 0x2c7   : > { %3044 = vrot.lane.b32.xlu1 %v3043_v8, %s3224_s24 }
 0x2e4   : > { %913 = vmax.xlane.f32.xlu0 %v912_v18 }
 0x2f8   : > { %1079 = vrot.lane.b32.xlu0 %v3417_v34, %s4140_s0  ;;  %v905_v20 = vpop.xlane.xlu2 %904 }
 0x2f9   : > { %v915_v21 = vsub.f32 %v898_v54, %v905_v20 }
 0x2fb   : > { %v919_v23 = vmul.f32 1.442695, %v915_v21 }
 0x2fd   : > { %3097 = vpow2.f32 %v919_v23 }
 0x300   : > { %v1052_v50 = vpop.permute.xlu2 %1051 }
 0x303   : > { %v3098_v24 = vpop.eup %3097 }
 0x304   : > { %v927_v25 = vsel %vm902_vm15, %v3098_v24, 0.0 }
 0x305   : > { %928 = vadd.xlane.f32.xlu1 %v927_v25 }
 0x308   : > { %v1110_v55 = vpop.permute.xlu2 %1109 }
 0x319   : > { %v908_v26 = vpop.xlane.xlu0 %907 }
 0x31a   : > { %v916_v28 = vsub.f32 %v899_v0, %v908_v26  ;;  %v3048_v26 = vpack.i.bf16 %v3417_v34, %v3413_v33 }
 0x31c   : > { %v921_v30 = vmul.f32 1.442695, %v916_v28 }
 0x31e   : > { %3099 = vpow2.f32 %v921_v30 }
 0x321   : > { %v911_v19 = vpop.xlane.xlu1 %910 }
 0x322   : > { %v917_v32 = vsub.f32 %v900_v6, %v911_v19 }
 0x324   : > { %v3100_v29 = vpop.eup %3099  ;;  %v923_v35 = vmul.f32 1.442695, %v917_v32 }
 0x325   : > { %v930_v37 = vsel %vm902_vm15, %v3100_v29, 0.0 }
 0x326   : > { %3101 = vpow2.f32 %v923_v35  ;;  %931 = vadd.xlane.f32.xlu2 %v930_v37 }
 0x32c   : > { %v3102_v39 = vpop.eup %3101  ;;  %v1082_v44 = vpop.permute.xlu0 %1081 }
 0x32d   : > { %v933_v40 = vsel %vm902_vm15, %v3102_v39, 0.0 }
 0x32e   : > { %934 = vadd.xlane.f32.xlu0 %v933_v40 }
 0x339   : > { %v3045_v41 = vpop.permute.xlu1 %3044 }
 0x33a   : > { %v3047_v42 = vunpack.i.h.bf16 %v3045_v41  ;;  %v3046_v43 = vunpack.i.l.bf16 %v3045_v41 }
 0x33c   : > { %1020 = vmatpush.msrb.mxu1 %v3046_v43  ;;  %1046 = vmatpush.msra.mxu2 %v3047_v42 }
 0x33e   : > { %2925 = vmatpush.xpose.msk.msra.mxu1 %vm776_vm14, %v1082_v44  ;;  %1137 = vrot.lane.b32.xlu2 %v3427_v38, %s4138_s23 }
 0x342   : > { %1135 = vrot.lane.b32.xlu0 %v3427_v38, %s4140_s0 }
 0x357   : > { %v914_v45 = vpop.xlane.xlu0 %913 }
 0x358   : > { %v918_v46 = vsub.f32 %v901_v17, %v914_v45 }
 0x35a   : > { %v925_v47 = vmul.f32 1.442695, %v918_v46 }
 0x35c   : > { %3103 = vpow2.f32 %v925_v47 }
 0x362   : > { %v3104_v48 = vpop.eup %3103 }
 0x363   : > { %v936_v49 = vsel %vm902_vm15, %v3104_v48, 0.0 }
 0x364   : > { %937 = vadd.xlane.f32.xlu1 %v936_v49 }
 0x36a   : > { %v1080_v56 = vpop.permute.xlu0 %1079 }
 0x378   : > { %v929_v52 = vpop.xlane.xlu1 %928 }
 0x379   : > { %3105 = vrcp.f32 %v929_v52 }
 0x37d   : > { %1107 = vrot.lane.b32.xlu1 %v3421_v36, %s4140_s0 }
 0x37f   : > { %v3106_v53 = vpop.eup %3105 }
 0x380   : > { %v943_v54 = vmul.f32 %v3106_v53, %v3098_v24 }
 0x382   : > { %2919 = vmatmul.msk.f32.vlgmr.msrb.gmra.mxu2 %vm902_vm15, %v943_v54 }
 0x383   : > { %2927 = vmatpush.xpose.msk.msrb.mxu2 %vm776_vm14, %v1110_v55 }
 0x399   : > { %v932_v57 = vpop.xlane.xlu2 %931 }
 0x39a   : > { %3107 = vrcp.f32 %v932_v57 }
 0x3a0   : > { %v3108_v58 = vpop.eup %3107 }
 0x3a1   : > { %v944_v59 = vmul.f32 %v3108_v58, %v3100_v29  ;;  %v1138_v61 = vpop.permute.xlu2 %1137  ;;  %v935_v62 = vpop.xlane.xlu0 %934 }
 0x3a2   : > { %3109 = vrcp.f32 %v935_v62 }
 0x3a3   : > { %2920 = vmatmul.msk.f32.vlgmr.msra.gmra.mxu3 %vm902_vm15, %v944_v59 }
 0x3a4   : > { %2929 = vmatpush.xpose.msk.msra.mxu3 %vm776_vm14, %v1138_v61 }
 0x3a8   : > { %v3110_v63 = vpop.eup %3109 }
 0x3a9   : > { %v945_v0 = vmul.f32 %v3110_v63, %v3102_v39 }
 0x3ab   : > { %2921 = vmatmul.msk.f32.vlgmr.msrb.gmra.mxu1 %vm902_vm15, %v945_v0  ;;  %2924 = vmatmul.msk.f32.vlgmr.msrb.gmra.mxu3 %vm776_vm14, %v1052_v50 }
 0x3b3   : > { %2926 = vmatmul.msk.f32.vlgmr.msra.gmra.mxu1 %vm776_vm14, %v1080_v56 }
 0x3b4   : > { %v1136_v1 = vpop.permute.xlu0 %1135 }
 0x3b5   : > { %2930 = vmatmul.msk.f32.vlgmr.msra.gmra.mxu3 %vm776_vm14, %v1136_v1 }
 0x3d7   : > { %v938_v2 = vpop.xlane.xlu1 %937 }
 0x3d8   : > { %3111 = vrcp.f32 %v938_v2 }
 0x3de   : > { %v3112_v4 = vpop.eup %3111 }
 0x3df   : > { %v946_v5 = vmul.f32 %v3112_v4, %v3104_v48 }
 0x3e1   : > { %2922 = vmatmul.msk.f32.vlgmr.msra.gmra.mxu2 %vm902_vm15, %v946_v5 }
 0x3ef   : > { %v1108_v6 = vpop.permute.xlu1 %1107 }
 0x3f0   : > { %2928 = vmatmul.msk.f32.vlgmr.msrb.gmra.mxu2 %vm776_vm14, %v1108_v6 }
 0x405   : > { %v3518_v28 = vpop.f32.mrf.mxu2 }
 0x426   : > { %v3505_v7 = vpop.f32.mrf.mxu3 }
 0x428   : > { %v3507_v8 = vpop.f32.mrf.mxu1 }
 0x42e   : > { %v1076_v9 = vpop.f32.mrf.mxu3 }
 0x42f   : > { %v1163_v10 = vmul.f32 0.25, %v1076_v9 }
 0x430   : > { %v1104_v12 = vpop.f32.mrf.mxu1 }
 0x431   : > { %v1164_v13 = vmul.f32 0.25, %v1104_v12  ;;  %v1167_v15 = vadd.f32 %v1163_v10, %v3454_v51 }
 0x433   : > { %v1171_v17 = vsel %vm902_vm15, %v1167_v15, -inf  ;;  %v1168_v18 = vadd.f32 %v1164_v13, %v3462_v60 }
 0x434   : > { %1172 = vmax.xlane.f32.xlu1 %v1171_v17  ;;  %v1342_v17 = vld [vmem:[%s4121_s6 + $0x18] sm:$0xff] }
 0x435   : > { %v1174_v20 = vsel %vm902_vm15, %v1168_v18, -inf }
 0x436   : > { %1175 = vmax.xlane.f32.xlu2 %v1174_v20  ;;  %v1340_v20 = vld [vmem:[%s4121_s6 + $0x8] sm:$0xff] }
 0x438   : > { %v1160_v21 = vpop.f32.mrf.mxu3 }
 0x439   : > { %v1166_v23 = vmul.f32 0.25, %v1160_v21 }
 0x43b   : > { %v1170_v24 = vadd.f32 %v1166_v23, %v3478_v16 }
 0x43d   : > { %v1180_v25 = vsel %vm902_vm15, %v1170_v24, -inf }
 0x43e   : > { %1181 = vmax.xlane.f32.xlu1 %v1180_v25 }
 0x457   : > { %3049 = vrot.lane.b32.xlu1 %v3048_v26, %s4134_s19 }
 0x464   : > { %v3520_v30 = vpop.f32.mrf.mxu2 }
 0x473   : > { %v1132_v19 = vpop.f32.mrf.mxu2 }
 0x474   : > { %v1165_v32 = vmul.f32 0.25, %v1132_v19 }
 0x476   : > { %v1169_v29 = vadd.f32 %v1165_v32, %v3468_v3 }
 0x478   : > { %v1177_v35 = vsel %vm902_vm15, %v1169_v29, -inf }
 0x479   : > { %1178 = vmax.xlane.f32.xlu0 %v1177_v35 }
 0x4a7   : > { %v1173_v37 = vpop.xlane.xlu1 %1172 }
 0x4a8   : > { %v1183_v39 = vsub.f32 %v1167_v15, %v1173_v37 }
 0x4a9   : > { %v1176_v40 = vpop.xlane.xlu2 %1175 }
 0x4aa   : > { %v1187_v41 = vmul.f32 1.442695, %v1183_v39  ;;  %v1184_v42 = vsub.f32 %v1168_v18, %v1176_v40  ;;  %v1341_v18 = vld [vmem:[%s4121_s6 + $0x10] sm:$0xff] }
 0x4ac   : > { %3113 = vpow2.f32 %v1187_v41  ;;  %v1189_v33 = vmul.f32 1.442695, %v1184_v42 }
 0x4ae   : > { %3115 = vpow2.f32 %v1189_v33 }
 0x4b1   : > { %v1182_v34 = vpop.xlane.xlu1 %1181 }
 0x4b2   : > { %v3114_v43 = vpop.eup %3113  ;;  %v1186_v44 = vsub.f32 %v1170_v24, %v1182_v34  ;;  %v1339_v24 = vld [vmem:[%s4121_s6] sm:$0xff] }
 0x4b3   : > { %v1195_v45 = vsel %vm902_vm15, %v3114_v43, 0.0 }
 0x4b4   : > { %v3116_v46 = vpop.eup %3115  ;;  %v1193_v47 = vmul.f32 1.442695, %v1186_v44  ;;  %1196 = vadd.xlane.f32.xlu2 %v1195_v45 }
 0x4b5   : > { %v1198_v48 = vsel %vm902_vm15, %v3116_v46, 0.0 }
 0x4b6   : > { %3117 = vpow2.f32 %v1193_v47  ;;  %1199 = vadd.xlane.f32.xlu0 %v1198_v48 }
 0x4bc   : > { %v3118_v49 = vpop.eup %3117 }
 0x4bd   : > { %v1204_v50 = vsel %vm902_vm15, %v3118_v49, 0.0 }
 0x4be   : > { %1205 = vadd.xlane.f32.xlu2 %v1204_v50 }
 0x4c9   : > { %v3050_v52 = vpop.permute.xlu1 %3049 }
 0x4ca   : > { %v3052_v53 = vunpack.i.h.bf16 %v3050_v52  ;;  %v3051_v54 = vunpack.i.l.bf16 %v3050_v52  ;;  %1267 = vrot.lane.b32.xlu0 %v3421_v36, %s4134_s19 }
 0x4cc   : > { %1236 = vmatpush.msrb.mxu1 %v3051_v54  ;;  %1262 = vmatpush.msra.mxu2 %v3052_v53 }
 0x4ce   : > { %1371 = vmatpush.msra.mxu1 %v1342_v17 }
 0x4d0   : > { %1372 = vmatpush.msra.mxu1 %v1341_v18 }
 0x4d2   : > { %1373 = vmatpush.msra.mxu1 %v1340_v20 }
 0x4d4   : > { %1374 = vmatpush.msra.mxu1 %v1339_v24 }
 0x4ec   : > { %v1179_v55 = vpop.xlane.xlu0 %1178 }
 0x4ed   : > { %v1185_v56 = vsub.f32 %v1169_v29, %v1179_v55 }
 0x4ef   : > { %v1191_v57 = vmul.f32 1.442695, %v1185_v56 }
 0x4f1   : > { %3119 = vpow2.f32 %v1191_v57 }
 0x4f7   : > { %v3120_v58 = vpop.eup %3119 }
 0x4f8   : > { %v1201_v59 = vsel %vm902_vm15, %v3120_v58, 0.0 }
 0x4f9   : > { %1202 = vadd.xlane.f32.xlu2 %v1201_v59 }
 0x511   : > { %1293 = vrot.lane.b32.xlu2 %v3427_v38, %s4134_s19  ;;  %s4150_s19 = smov 48  }
 0x527   : > { %v1197_v61 = vpop.xlane.xlu2 %1196 }
 0x528   : > { %3121 = vrcp.f32 %v1197_v61 }
 0x529   : > { %v1200_v62 = vpop.xlane.xlu0 %1199 }
 0x52a   : > { %3123 = vrcp.f32 %v1200_v62 }
 0x52e   : > { %v3122_v63 = vpop.eup %3121 }
 0x52f   : > { %v1211_v0 = vmul.f32 %v3122_v63, %v3114_v43 }
 0x530   : > { %v3124_v36 = vpop.eup %3123 }
 0x531   : > { %v1212_v1 = vmul.f32 %v3124_v36, %v3116_v46  ;;  %2931 = vmatmul.msk.f32.vlgmr.msrb.gmra.mxu1 %vm902_vm15, %v1211_v0  ;;  %v1206_v4 = vpop.xlane.xlu2 %1205 }
 0x532   : > { %3125 = vrcp.f32 %v1206_v4 }
 0x533   : > { %2932 = vmatmul.msk.f32.vlgmr.msra.gmra.mxu2 %vm902_vm15, %v1212_v1 }
 0x538   : > { %v3126_v6 = vpop.eup %3125 }
 0x539   : > { %v1214_v12 = vmul.f32 %v3126_v6, %v3118_v49  ;;  %v1498_v6 = vld [vmem:[%s4125_s10 + $0x10] sm:$0xff] }
 0x53c   : > { %v1268_v2 = vpop.permute.xlu0 %1267 }
 0x53d   : > { %1288 = vmatpush.msrb.mxu3 %v1268_v2 }
 0x56c   : > { %v1203_v5 = vpop.xlane.xlu2 %1202 }
 0x56d   : > { %3127 = vrcp.f32 %v1203_v5  ;;  %v1499_v5 = vld [vmem:[%s4125_s10 + $0x18] sm:$0xff] }
 0x56e   : > { %1528 = vmatpush.msra.mxu3 %v1499_v5 }
 0x570   : > { %1529 = vmatpush.msra.mxu3 %v1498_v6 }
 0x573   : > { %v3128_v38 = vpop.eup %3127 }
 0x574   : > { %v1213_v9 = vmul.f32 %v3128_v38, %v3120_v58  ;;  %v1294_v10 = vpop.permute.xlu2 %1293  ;;  %v1497_v38 = vld [vmem:[%s4125_s10 + $0x8] sm:$0xff] }
 0x575   : > { %1314 = vmatpush.msrb.mxu0 %v1294_v10  ;;  %1530 = vmatpush.msra.mxu3 %v1497_v38 }
 0x576   : > { %2933 = vmatmul.msk.f32.vlgmr.msrb.gmra.mxu3 %vm902_vm15, %v1213_v9  ;;  %2934 = vmatmul.msk.f32.vlgmr.msrb.gmra.mxu0 %vm902_vm15, %v1214_v12  ;;  %v1496_v9 = vld [vmem:[%s4125_s10] sm:$0xff] }
 0x577   : > { %1531 = vmatpush.msra.mxu3 %v1496_v9 }
 0x5ae   : > { %v1238_v13 = vpop.f32.mrf.mxu1 }
 0x5af   : > { %1323 = vrot.lane.b32.xlu1 %v1238_v13, %s4136_s1 }
 0x5b6   : > { %v1264_v15 = vpop.f32.mrf.mxu2 }
 0x5b7   : > { %1325 = vrot.lane.b32.xlu0 %v1264_v15, %s4136_s1 }
 0x5f3   : > { %v1316_v21 = vpop.f32.mrf.mxu0 }
 0x5f4   : > { %1329 = vrot.lane.b32.xlu0 %v1316_v21, %s4136_s1 }
 0x5f9   : > { %v1290_v23 = vpop.f32.mrf.mxu3 }
 0x5fa   : > { %1327 = vrot.lane.b32.xlu1 %v1290_v23, %s4136_s1  ;;  %s594_s1 = scalar_lea.vmem %s4133_s18, %s4155_s29 }
 0x621   : > { %v1324_v25 = vpop.permute.xlu1 %1323 }
 0x622   : > { %v1335_v26 = vsel %vm776_vm14, %v3518_v28, %v1324_v25  ;;  %v3071_v28 = vld [vmem:[%s4122_s7] ss:$0 sm:$0xff] }
 0x623   : > { %2935 = vmatmul.msk.f32.vlgmr.msra.gmra.mxu1 %vm614_vm0, %v1335_v26 }
 0x629   : > { %v1326_v19 = vpop.permute.xlu0 %1325 }
 0x62a   : > { %v1336_v32 = vsel %vm776_vm14, %v3505_v7, %v1326_v19 }
 0x62b   : > { %2936 = vmatmul.msk.f32.gmra.mxu1 %vm614_vm0, %v1336_v32 }
 0x666   : > { %v1330_v37 = vpop.permute.xlu0 %1329 }
 0x667   : > { %v1338_v39 = vsel %vm776_vm14, %v3520_v30, %v1330_v37 }
 0x66c   : > { %v1328_v29 = vpop.permute.xlu1 %1327 }
 0x66d   : > { %v1337_v35 = vsel %vm776_vm14, %v3507_v8, %v1328_v29  ;;  %v3072_v29 = vld [vmem:[%s4123_s8] ss:$0 sm:$0xff] }
 0x66e   : > { %2937 = vmatmul.msk.f32.gmra.mxu1 %vm614_vm0, %v1337_v35 }
 0x676   : > { %2938 = vmatmul.msk.f32.gmra.mxu1 %vm614_vm0, %v1338_v39 }
 0x6a0   : > { %v1376_v40 = vpop.f32.mrf.mxu1 }
 0x6a1   : > { %v1377_v7 = vadd.f32 %v3071_v28, %v1376_v40 }
 0x6a3   : > { %v1388_v41 = vadd.f32 %v1377_v7, %v3391_v11 }
 0x6a5   : > { %v1394_v42 = vsel %vm614_vm0, %v1388_v41, 0.0 }
 0x6a6   : > { %1395 = vadd.xlane.f32.xlu1 %v1394_v42 }
 0x6a8   : > { %v1379_v8 = vpop.f32.mrf.mxu1 }
 0x6a9   : > { %v1380_v33 = vadd.f32 %v3071_v28, %v1379_v8 }
 0x6ab   : > { %v1389_v34 = vadd.f32 %v1380_v33, %v3396_v22 }
 0x6ad   : > { %v1397_v43 = vsel %vm614_vm0, %v1389_v34, 0.0 }
 0x6ae   : > { %1398 = vadd.xlane.f32.xlu0 %v1397_v43 }
 0x6eb   : > { %v1382_v30 = vpop.f32.mrf.mxu1 }
 0x6ec   : > { %v1383_v44 = vadd.f32 %v3071_v28, %v1382_v30 }
 0x6ee   : > { %v1390_v45 = vadd.f32 %v1383_v44, %v3401_v27 }
 0x6f0   : > { %v1400_v46 = vsel %vm614_vm0, %v1390_v45, 0.0 }
 0x6f1   : > { %1401 = vadd.xlane.f32.xlu2 %v1400_v46 }
 0x6f3   : > { %v1385_v47 = vpop.f32.mrf.mxu1 }
 0x6f4   : > { %v1386_v48 = vadd.f32 %v3071_v28, %v1385_v47  ;;  %v3073_v28 = vld [vmem:[%s4124_s9] ss:$0 sm:$0xff]  ;;  %v1596_v47 = vld [vmem:[%s4127_s12 + $0x78] sm:$0xff] }
 0x6f5   : > { %1601 = vmatpush.msrb.mxu3 %v1596_v47 }
 0x6f6   : > { %v1391_v11 = vadd.f32 %v1386_v48, %v3406_v31  ;;  %v1595_v48 = vld [vmem:[%s4127_s12 + $0x70] sm:$0xff] }
 0x6f7   : > { %1602 = vmatpush.msrb.mxu3 %v1595_v48 }
 0x6f8   : > { %v1403_v49 = vsel %vm614_vm0, %v1391_v11, 0.0 }
 0x6f9   : > { %1404 = vadd.xlane.f32.xlu1 %v1403_v49 }
 0x719   : > { %v1396_v50 = vpop.xlane.xlu1 %1395 }
 0x71a   : > { %v1406_v22 = vmul.f32 %v1396_v50, %v3342_v14 }
 0x71c   : > { %v1410_v52 = vsub.f32 %v1388_v41, %v1406_v22 }
 0x71e   : > { %v1414_v53 = vmul.f32 %v1410_v52, %v1410_v52 }
 0x720   : > { %v1418_v54 = vsel %vm614_vm0, %v1414_v53, 0.0 }
 0x721   : > { %1419 = vadd.xlane.f32.xlu0 %v1418_v54  ;;  %v1399_v55 = vpop.xlane.xlu0 %1398 }
 0x722   : > { %v1407_v27 = vmul.f32 %v1399_v55, %v3342_v14 }
 0x724   : > { %v1411_v56 = vsub.f32 %v1389_v34, %v1407_v27 }
 0x726   : > { %v1415_v57 = vmul.f32 %v1411_v56, %v1411_v56 }
 0x728   : > { %v1421_v58 = vsel %vm614_vm0, %v1415_v57, 0.0 }
 0x729   : > { %1422 = vadd.xlane.f32.xlu2 %v1421_v58 }
 0x764   : > { %v1402_v31 = vpop.xlane.xlu2 %1401 }
 0x765   : > { %v1408_v59 = vmul.f32 %v1402_v31, %v3342_v14 }
 0x767   : > { %v3580_v61 = vsub.f32 %v1390_v45, %v1408_v59 }
 0x769   : > { %v1416_v62 = vmul.f32 %v3580_v61, %v3580_v61 }
 0x76b   : > { %v1424_v63 = vsel %vm614_vm0, %v1416_v62, 0.0 }
 0x76c   : > { %1425 = vadd.xlane.f32.xlu1 %v1424_v63  ;;  %v1405_v0 = vpop.xlane.xlu1 %1404 }
 0x76d   : > { %v1409_v36 = vmul.f32 %v1405_v0, %v3342_v14 }
 0x76f   : > { %v3586_v1 = vsub.f32 %v1391_v11, %v1409_v36  ;;  %v1594_v11 = vld [vmem:[%s4127_s12 + $0x68] sm:$0xff] }
 0x770   : > { %1603 = vmatpush.msrb.mxu3 %v1594_v11 }
 0x771   : > { %v1417_v2 = vmul.f32 %v3586_v1, %v3586_v1 }
 0x773   : > { %v1427_v4 = vsel %vm614_vm0, %v1417_v2, 0.0 }
 0x774   : > { %1428 = vadd.xlane.f32.xlu0 %v1427_v4 }
 0x794   : > { %v1420_v10 = vpop.xlane.xlu0 %1419 }
 0x795   : > { %v1430_v12 = vmul.f32 %v1420_v10, %v3342_v14  ;;  %v1592_v10 = vld [vmem:[%s4127_s12 + $0x58] sm:$0xff] }
 0x797   : > { %v1434_v13 = vadd.f32 1e-12, %v1430_v12  ;;  %v1590_v12 = vld [vmem:[%s4127_s12 + $0x48] sm:$0xff] }
 0x799   : > { %3129 = vrsqrt.f32 %v1434_v13  ;;  %vm1444_vm2 = vweird.f32 %v1434_v13 }
 0x79c   : > { %v1423_v15 = vpop.xlane.xlu2 %1422 }
 0x79d   : > { %v1431_v17 = vmul.f32 %v1423_v15, %v3342_v14  ;;  %v1588_v15 = vld [vmem:[%s4127_s12 + $0x38] sm:$0xff] }
 0x79f   : > { %v3130_v18 = vpop.eup %3129  ;;  %v1435_v20 = vadd.f32 1e-12, %v1431_v17  ;;  %v1587_v17 = vld [vmem:[%s4127_s12 + $0x30] sm:$0xff] }
 0x7a0   : > { %v1439_v21 = vmul.f32 %v3130_v18, %v1434_v13  ;;  %vm1445_vm1 = vweird.f32 %v3130_v18  ;;  %v1589_v13 = vld [vmem:[%s4127_s12 + $0x40] sm:$0xff] }
 0x7a1   : > { %3131 = vrsqrt.f32 %v1435_v20  ;;  %vm1446_vm3 = vmor %vm1444_vm2, %vm1445_vm1  ;;  %vm1454_vm5 = vweird.f32 %v1435_v20 }
 0x7a2   : > { %v1440_v23 = vmul.f32 %v3130_v18, %v1439_v21  ;;  %v1584_v21 = vld [vmem:[%s4127_s12 + $0x18] sm:$0xff] }
 0x7a4   : > { %v1441_v24 = vmul.f32 0.5, %v1440_v23  ;;  %v1583_v23 = vld [vmem:[%s4127_s12 + $0x10] sm:$0xff] }
 0x7a6   : > { %v1442_v25 = vsub.f32 1.5, %v1441_v24  ;;  %v1582_v24 = vld [vmem:[%s4127_s12 + $0x8] sm:$0xff] }
 0x7a7   : > { %v3132_v26 = vpop.eup %3131 }
 0x7a8   : > { %v1443_v19 = vmul.f32 %v3130_v18, %v1442_v25  ;;  %v1449_v32 = vmul.f32 %v3132_v26, %v1435_v20  ;;  %vm1455_vm4 = vweird.f32 %v3132_v26  ;;  %v1585_v20 = vld [vmem:[%s4127_s12 + $0x20] sm:$0xff] }
 0x7a9   : > { %vm1456_vm6 = vmor %vm1454_vm5, %vm1455_vm4  ;;  %v1581_v25 = vld [vmem:[%s4127_s12] sm:$0xff] }
 0x7aa   : > { %v1447_v35 = vsel %vm1446_vm3, %v3130_v18, %v1443_v19  ;;  %v1450_v37 = vmul.f32 %v3132_v26, %v1449_v32  ;;  %v1586_v18 = vld [vmem:[%s4127_s12 + $0x28] sm:$0xff] }
 0x7ab   : > { %v1478_v39 = vmul.f32 %v1447_v35, %v1410_v52 }
 0x7ac   : > { %v1451_v40 = vmul.f32 0.5, %v1450_v37 }
 0x7ad   : > { %v1485_v7 = vmul.f32 %v3072_v29, %v1478_v39 }
 0x7ae   : > { %v1452_v41 = vsub.f32 1.5, %v1451_v40 }
 0x7af   : > { %v3611_v42 = vadd.f32 %v3073_v28, %v1485_v7 }
 0x7b0   : > { %v1453_v8 = vmul.f32 %v3132_v26, %v1452_v41 }
 0x7b1   : > { %2939 = vmatmul.msk.f32.vlgmr.msra.gmra.mxu3 %vm614_vm0, %v3611_v42 }
 0x7b2   : > { %v1457_v33 = vsel %vm1456_vm6, %v3132_v26, %v1453_v8  ;;  %v3074_v26 = vld [vmem:[%s4126_s11] ss:$0 sm:$0xff] }
 0x7b3   : > { %v1479_v34 = vmul.f32 %v1457_v33, %v1411_v56 }
 0x7b5   : > { %v1486_v43 = vmul.f32 %v3072_v29, %v1479_v34 }
 0x7b7   : > { %v3615_v30 = vadd.f32 %v3073_v28, %v1486_v43 }
 0x7b9   : > { %2940 = vmatmul.msk.f32.gmra.mxu3 %vm614_vm0, %v3615_v30 }
 0x7df   : > { %v1426_v44 = vpop.xlane.xlu1 %1425 }
 0x7e0   : > { %v1432_v45 = vmul.f32 %v1426_v44, %v3342_v14 }
 0x7e2   : > { %v1436_v46 = vadd.f32 1e-12, %v1432_v45 }
 0x7e4   : > { %3133 = vrsqrt.f32 %v1436_v46  ;;  %vm1464_vm8 = vweird.f32 %v1436_v46 }
 0x7e7   : > { %v1429_v49 = vpop.xlane.xlu0 %1428 }
 0x7e8   : > { %v1433_v50 = vmul.f32 %v1429_v49, %v3342_v14 }
 0x7ea   : > { %v3134_v22 = vpop.eup %3133  ;;  %v1437_v52 = vadd.f32 1e-12, %v1433_v50 }
 0x7eb   : > { %v1459_v53 = vmul.f32 %v3134_v22, %v1436_v46  ;;  %vm1465_vm7 = vweird.f32 %v3134_v22 }
 0x7ec   : > { %3135 = vrsqrt.f32 %v1437_v52  ;;  %vm1466_vm9 = vmor %vm1464_vm8, %vm1465_vm7  ;;  %vm1474_vm11 = vweird.f32 %v1437_v52 }
 0x7ed   : > { %v1460_v54 = vmul.f32 %v3134_v22, %v1459_v53 }
 0x7ef   : > { %v1461_v55 = vmul.f32 0.5, %v1460_v54 }
 0x7f1   : > { %v1462_v27 = vsub.f32 1.5, %v1461_v55 }
 0x7f2   : > { %v3136_v56 = vpop.eup %3135 }
 0x7f3   : > { %v1463_v57 = vmul.f32 %v3134_v22, %v1462_v27  ;;  %v1469_v58 = vmul.f32 %v3136_v56, %v1437_v52  ;;  %vm1475_vm10 = vweird.f32 %v3136_v56 }
 0x7f4   : > { %vm1476_vm12 = vmor %vm1474_vm11, %vm1475_vm10 }
 0x7f5   : > { %v1467_v31 = vsel %vm1466_vm9, %v3134_v22, %v1463_v57  ;;  %v1470_v59 = vmul.f32 %v3136_v56, %v1469_v58 }
 0x7f6   : > { %v1480_v62 = vmul.f32 %v1467_v31, %v3580_v61  ;;  %v1593_v61 = vld [vmem:[%s4127_s12 + $0x60] sm:$0xff] }
 0x7f7   : > { %v1471_v63 = vmul.f32 0.5, %v1470_v59  ;;  %1604 = vmatpush.msrb.mxu3 %v1593_v61 }
 0x7f8   : > { %v1487_v0 = vmul.f32 %v3072_v29, %v1480_v62 }
 0x7f9   : > { %v1472_v36 = vsub.f32 1.5, %v1471_v63  ;;  %1605 = vmatpush.msrb.mxu3 %v1592_v10 }
 0x7fa   : > { %v3631_v2 = vadd.f32 %v3073_v28, %v1487_v0 }
 0x7fb   : > { %v1473_v4 = vmul.f32 %v3136_v56, %v1472_v36 }
 0x7fc   : > { %2941 = vmatmul.msk.f32.gmra.mxu3 %vm614_vm0, %v3631_v2 }
 0x7fd   : > { %v1477_v5 = vsel %vm1476_vm12, %v3136_v56, %v1473_v4 }
 0x7fe   : > { %v1481_v6 = vmul.f32 %v1477_v5, %v3586_v1  ;;  %v1591_v1 = vld [vmem:[%s4127_s12 + $0x50] sm:$0xff] }
 0x7ff   : > { %1606 = vmatpush.msrb.mxu3 %v1591_v1 }
 0x800   : > { %v1488_v38 = vmul.f32 %v3072_v29, %v1481_v6 }
 0x801   : > { %1607 = vmatpush.msrb.mxu3 %v1590_v12  ;;  %v3075_v12 = vld [vmem:[%s4128_s13] ss:$0 sm:$0xff] }
 0x802   : > { %v3636_v9 = vadd.f32 %v3073_v28, %v1488_v38 }
 0x803   : > { %1608 = vmatpush.msrb.mxu3 %v1589_v13 }
 0x804   : > { %2942 = vmatmul.msk.f32.gmra.mxu3 %vm614_vm0, %v3636_v9 }
 0x805   : > { %1609 = vmatpush.msrb.mxu3 %v1588_v15 }
 0x807   : > { %1610 = vmatpush.msrb.mxu3 %v1587_v17 }
 0x809   : > { %1611 = vmatpush.msrb.mxu3 %v1586_v18 }
 0x80b   : > { %1612 = vmatpush.msrb.mxu3 %v1585_v20 }
 0x80d   : > { %1613 = vmatpush.msrb.mxu3 %v1584_v21 }
 0x80f   : > { %1614 = vmatpush.msrb.mxu3 %v1583_v23 }
 0x811   : > { %1615 = vmatpush.msrb.mxu3 %v1582_v24 }
 0x813   : > { %1616 = vmatpush.msrb.mxu3 %v1581_v25 }
 0x834   : > { %v1533_v19 = vpop.f32.mrf.mxu3 }
 0x835   : > { %v1534_v32 = vadd.f32 %v3074_v26, %v1533_v19 }
 0x837   : > { %v1545_v29 = vmul.f32 %v1534_v32, %v1534_v32 }
 0x839   : > { %v1549_v35 = vmul.f32 %v1545_v29, %v1534_v32 }
 0x83b   : > { %v1553_v37 = vmul.f32 0.044715, %v1549_v35 }
 0x83c   : > { %v1536_v39 = vpop.f32.mrf.mxu3 }
 0x83d   : > { %v1557_v28 = vadd.f32 %v1553_v37, %v1534_v32  ;;  %v1537_v40 = vadd.f32 %v3074_v26, %v1536_v39 }
 0x83f   : > { %v1561_v7 = vmul.f32 0.7978846, %v1557_v28  ;;  %v1546_v41 = vmul.f32 %v1537_v40, %v1537_v40 }
 0x841   : > { %3137 = vtanh.f32 %v1561_v7  ;;  %v1550_v8 = vmul.f32 %v1546_v41, %v1537_v40 }
 0x843   : > { %v1554_v33 = vmul.f32 0.044715, %v1550_v8 }
 0x845   : > { %v1558_v34 = vadd.f32 %v1554_v33, %v1537_v40 }
 0x847   : > { %v3138_v43 = vpop.eup %3137  ;;  %v1562_v44 = vmul.f32 0.7978846, %v1558_v34 }
 0x848   : > { %v1569_v45 = vadd.f32 1.0, %v3138_v43 }
 0x849   : > { %3139 = vtanh.f32 %v1562_v44 }
 0x84a   : > { %v1573_v46 = vmul.f32 0.5, %v1569_v45 }
 0x84c   : > { %v1577_v47 = vmul.f32 %v1573_v46, %v1534_v32 }
 0x84e   : > { %1617 = vmatmul.f32.vlgmr.msrb.gmra.mxu3 %v1577_v47 }
 0x84f   : > { %v3140_v48 = vpop.eup %3139 }
 0x850   : > { %v1570_v11 = vadd.f32 1.0, %v3140_v48 }
 0x852   : > { %v1574_v49 = vmul.f32 0.5, %v1570_v11 }
 0x854   : > { %v1578_v50 = vmul.f32 %v1574_v49, %v1537_v40 }
 0x856   : > { %1620 = vmatmul.f32.gmra.mxu3 %v1578_v50 }
 0x87f   : > { %v1539_v22 = vpop.f32.mrf.mxu3 }
 0x880   : > { %v1540_v52 = vadd.f32 %v3074_v26, %v1539_v22  ;;  %v2946_v22 = vld [vmem:[%s4119_s4 + $0x38] sm:$0xff] }
 0x881   : > { %1772 = vmatpush.msra.mxu0 %v2946_v22 }
 0x882   : > { %v1547_v53 = vmul.f32 %v1540_v52, %v1540_v52 }
 0x884   : > { %v1551_v54 = vmul.f32 %v1547_v53, %v1540_v52  ;;  %v2944_v53 = vld [vmem:[%s4119_s4 + $0x28] sm:$0xff] }
 0x886   : > { %v1555_v55 = vmul.f32 0.044715, %v1551_v54  ;;  %v2943_v54 = vld [vmem:[%s4119_s4 + $0x20] sm:$0xff] }
 0x887   : > { %v1542_v27 = vpop.f32.mrf.mxu3 }
 0x888   : > { %v1543_v56 = vadd.f32 %v3074_v26, %v1542_v27  ;;  %v1559_v57 = vadd.f32 %v1555_v55, %v1540_v52 }
 0x88a   : > { %v1548_v58 = vmul.f32 %v1543_v56, %v1543_v56  ;;  %v1563_v31 = vmul.f32 0.7978846, %v1559_v57 }
 0x88c   : > { %v1552_v59 = vmul.f32 %v1548_v58, %v1543_v56  ;;  %3141 = vtanh.f32 %v1563_v31 }
 0x88e   : > { %v1556_v62 = vmul.f32 0.044715, %v1552_v59 }
 0x890   : > { %v1560_v63 = vadd.f32 %v1556_v62, %v1543_v56 }
 0x892   : > { %v3142_v0 = vpop.eup %3141  ;;  %v1564_v36 = vmul.f32 0.7978846, %v1560_v63 }
 0x893   : > { %v1571_v4 = vadd.f32 1.0, %v3142_v0 }
 0x894   : > { %3143 = vtanh.f32 %v1564_v36 }
 0x895   : > { %v1575_v5 = vmul.f32 0.5, %v1571_v4 }
 0x897   : > { %v1579_v6 = vmul.f32 %v1575_v5, %v1540_v52  ;;  %v2945_v52 = vld [vmem:[%s4119_s4 + $0x30] sm:$0xff] }
 0x898   : > { %1773 = vmatpush.msra.mxu0 %v2945_v52 }
 0x899   : > { %1623 = vmatmul.f32.gmra.mxu3 %v1579_v6 }
 0x89a   : > { %v3144_v38 = vpop.eup %3143  ;;  %1774 = vmatpush.msra.mxu0 %v2944_v53 }
 0x89b   : > { %v1572_v61 = vadd.f32 1.0, %v3144_v38  ;;  %v3076_v38 = vld [vmem:[%s4129_s14] ss:$0 sm:$0xff] }
 0x89c   : > { %1775 = vmatpush.msra.mxu0 %v2943_v54 }
 0x89d   : > { %v1576_v10 = vmul.f32 0.5, %v1572_v61 }
 0x89f   : > { %v1580_v1 = vmul.f32 %v1576_v10, %v1543_v56 }
 0x8a1   : > { %1626 = vmatmul.f32.gmra.mxu3 %v1580_v1 }
 0x8d1   : > { %v1618_v13 = vpop.f32.mrf.mxu3 }
 0x8d2   : > { %v1619_v15 = vadd.f32 %v3075_v12, %v1618_v13 }
 0x8d4   : > { %v1630_v17 = vadd.f32 %v1619_v15, %v3611_v42 }
 0x8d6   : > { %v1636_v18 = vsel %vm614_vm0, %v1630_v17, 0.0 }
 0x8d7   : > { %1637 = vadd.xlane.f32.xlu2 %v1636_v18 }
 0x8d9   : > { %v1621_v20 = vpop.f32.mrf.mxu3 }
 0x8da   : > { %v1622_v21 = vadd.f32 %v3075_v12, %v1621_v20 }
 0x8dc   : > { %v1631_v23 = vadd.f32 %v1622_v21, %v3615_v30 }
 0x8de   : > { %v1639_v24 = vsel %vm614_vm0, %v1631_v23, 0.0 }
 0x8df   : > { %1640 = vadd.xlane.f32.xlu1 %v1639_v24 }
 0x91c   : > { %v1624_v25 = vpop.f32.mrf.mxu3 }
 0x91d   : > { %v1625_v26 = vadd.f32 %v3075_v12, %v1624_v25 }
 0x91f   : > { %v1632_v19 = vadd.f32 %v1625_v26, %v3631_v2 }
 0x921   : > { %v1642_v32 = vsel %vm614_vm0, %v1632_v19, 0.0 }
 0x922   : > { %1643 = vadd.xlane.f32.xlu0 %v1642_v32 }
 0x924   : > { %v1627_v29 = vpop.f32.mrf.mxu3 }
 0x925   : > { %v1628_v35 = vadd.f32 %v3075_v12, %v1627_v29  ;;  %v3077_v12 = vld [vmem:[%s4130_s15] ss:$0 sm:$0xff] }
 0x927   : > { %v1633_v42 = vadd.f32 %v1628_v35, %v3636_v9 }
 0x929   : > { %v1645_v37 = vsel %vm614_vm0, %v1633_v42, 0.0 }
 0x92a   : > { %1646 = vadd.xlane.f32.xlu2 %v1645_v37 }
 0x94a   : > { %v1638_v39 = vpop.xlane.xlu2 %1637 }
 0x94b   : > { %v1648_v30 = vmul.f32 %v1638_v39, %v3342_v14 }
 0x94d   : > { %v1652_v28 = vsub.f32 %v1630_v17, %v1648_v30 }
 0x94f   : > { %v1656_v40 = vmul.f32 %v1652_v28, %v1652_v28 }
 0x951   : > { %v1660_v7 = vsel %vm614_vm0, %v1656_v40, 0.0 }
 0x952   : > { %v1641_v41 = vpop.xlane.xlu1 %1640  ;;  %1661 = vadd.xlane.f32.xlu1 %v1660_v7 }
 0x953   : > { %v1649_v2 = vmul.f32 %v1641_v41, %v3342_v14 }
 0x955   : > { %v1653_v8 = vsub.f32 %v1631_v23, %v1649_v2 }
 0x957   : > { %v1657_v33 = vmul.f32 %v1653_v8, %v1653_v8 }
 0x959   : > { %v1663_v34 = vsel %vm614_vm0, %v1657_v33, 0.0 }
 0x95a   : > { %1664 = vadd.xlane.f32.xlu0 %v1663_v34 }
 0x995   : > { %v1644_v9 = vpop.xlane.xlu0 %1643 }
 0x996   : > { %v1650_v43 = vmul.f32 %v1644_v9, %v3342_v14 }
 0x998   : > { %v3698_v44 = vsub.f32 %v1632_v19, %v1650_v43 }
 0x99a   : > { %v1658_v45 = vmul.f32 %v3698_v44, %v3698_v44 }
 0x99c   : > { %v1666_v46 = vsel %vm614_vm0, %v1658_v45, 0.0 }
 0x99d   : > { %1667 = vadd.xlane.f32.xlu2 %v1666_v46  ;;  %v1647_v47 = vpop.xlane.xlu2 %1646 }
 0x99e   : > { %v1651_v48 = vmul.f32 %v1647_v47, %v3342_v14 }
 0x9a0   : > { %v3704_v11 = vsub.f32 %v1633_v42, %v1651_v48 }
 0x9a2   : > { %v1659_v49 = vmul.f32 %v3704_v11, %v3704_v11 }
 0x9a4   : > { %v1669_v50 = vsel %vm614_vm0, %v1659_v49, 0.0 }
 0x9a5   : > { %1670 = vadd.xlane.f32.xlu1 %v1669_v50 }
 0x9c5   : > { %v1662_v55 = vpop.xlane.xlu1 %1661 }
 0x9c6   : > { %v1672_v27 = vmul.f32 %v1662_v55, %v3342_v14 }
 0x9c8   : > { %v1676_v56 = vadd.f32 1e-12, %v1672_v27 }
 0x9ca   : > { %3145 = vrsqrt.f32 %v1676_v56  ;;  %vm1686_vm1 = vweird.f32 %v1676_v56 }
 0x9cd   : > { %v1665_v57 = vpop.xlane.xlu0 %1664 }
 0x9ce   : > { %v1673_v58 = vmul.f32 %v1665_v57, %v3342_v14 }
 0x9d0   : > { %v3146_v31 = vpop.eup %3145  ;;  %v1677_v59 = vadd.f32 1e-12, %v1673_v58 }
 0x9d1   : > { %v1681_v62 = vmul.f32 %v3146_v31, %v1676_v56  ;;  %vm1687_vm13 = vweird.f32 %v3146_v31 }
 0x9d2   : > { %3147 = vrsqrt.f32 %v1677_v59  ;;  %vm1688_vm2 = vmor %vm1686_vm1, %vm1687_vm13  ;;  %vm1696_vm4 = vweird.f32 %v1677_v59 }
 0x9d3   : > { %v1682_v63 = vmul.f32 %v3146_v31, %v1681_v62 }
 0x9d5   : > { %v1683_v0 = vmul.f32 0.5, %v1682_v63 }
 0x9d7   : > { %v1684_v36 = vsub.f32 1.5, %v1683_v0 }
 0x9d8   : > { %v3148_v4 = vpop.eup %3147 }
 0x9d9   : > { %v1685_v5 = vmul.f32 %v3146_v31, %v1684_v36  ;;  %v1691_v6 = vmul.f32 %v3148_v4, %v1677_v59  ;;  %vm1697_vm3 = vweird.f32 %v3148_v4 }
 0x9da   : > { %vm1698_vm5 = vmor %vm1696_vm4, %vm1697_vm3 }
 0x9db   : > { %v1689_v61 = vsel %vm1688_vm2, %v3146_v31, %v1685_v5  ;;  %v1692_v10 = vmul.f32 %v3148_v4, %v1691_v6 }
 0x9dc   : > { %v1720_v1 = vmul.f32 %v1689_v61, %v1652_v28 }
 0x9dd   : > { %v1693_v13 = vmul.f32 0.5, %v1692_v10 }
 0x9de   : > { %v1727_v15 = vmul.f32 %v3076_v38, %v1720_v1 }
 0x9df   : > { %v1694_v17 = vsub.f32 1.5, %v1693_v13 }
 0x9e0   : > { %v3729_v18 = vadd.f32 %v3077_v12, %v1727_v15 }
 0x9e1   : > { %v1695_v20 = vmul.f32 %v3148_v4, %v1694_v17 }
 0x9e2   : > { %2948 = vmatmul.msk.f32.vlgmr.msra.gmra.mxu0 %vm614_vm0, %v3729_v18 }
 0x9e3   : > { %v1699_v21 = vsel %vm1698_vm5, %v3148_v4, %v1695_v20 }
 0x9e4   : > { %v1721_v23 = vmul.f32 %v1699_v21, %v1653_v8 }
 0x9e6   : > { %v1728_v24 = vmul.f32 %v3076_v38, %v1721_v23 }
 0x9e8   : > { %v3733_v25 = vadd.f32 %v3077_v12, %v1728_v24 }
 0x9ea   : > { %2949 = vmatmul.msk.f32.gmra.mxu0 %vm614_vm0, %v3733_v25 }
 0xa10   : > { %v1668_v26 = vpop.xlane.xlu2 %1667 }
 0xa11   : > { %v1674_v19 = vmul.f32 %v1668_v26, %v3342_v14 }
 0xa13   : > { %v1678_v32 = vadd.f32 1e-12, %v1674_v19 }
 0xa15   : > { %3149 = vrsqrt.f32 %v1678_v32  ;;  %vm1706_vm7 = vweird.f32 %v1678_v32 }
 0xa18   : > { %v1671_v29 = vpop.xlane.xlu1 %1670 }
 0xa19   : > { %v1675_v35 = vmul.f32 %v1671_v29, %v3342_v14 }
 0xa1b   : > { %v3150_v42 = vpop.eup %3149  ;;  %v1679_v37 = vadd.f32 1e-12, %v1675_v35 }
 0xa1c   : > { %v1701_v39 = vmul.f32 %v3150_v42, %v1678_v32  ;;  %vm1707_vm6 = vweird.f32 %v3150_v42 }
 0xa1d   : > { %3151 = vrsqrt.f32 %v1679_v37  ;;  %vm1708_vm8 = vmor %vm1706_vm7, %vm1707_vm6  ;;  %vm1716_vm10 = vweird.f32 %v1679_v37 }
 0xa1e   : > { %v1702_v30 = vmul.f32 %v3150_v42, %v1701_v39 }
 0xa20   : > { %v1703_v28 = vmul.f32 0.5, %v1702_v30 }
 0xa22   : > { %v1704_v40 = vsub.f32 1.5, %v1703_v28 }
 0xa23   : > { %v3152_v7 = vpop.eup %3151 }
 0xa24   : > { %v1705_v41 = vmul.f32 %v3150_v42, %v1704_v40  ;;  %v1711_v2 = vmul.f32 %v3152_v7, %v1679_v37  ;;  %vm1717_vm9 = vweird.f32 %v3152_v7 }
 0xa25   : > { %vm1718_vm11 = vmor %vm1716_vm10, %vm1717_vm9  ;;  %vm2750_vm9 = vcmask 57344  }
 0xa26   : > { %v1709_v8 = vsel %vm1708_vm8, %v3150_v42, %v1705_v41  ;;  %v1712_v33 = vmul.f32 %v3152_v7, %v1711_v2 }
 0xa27   : > { %v1722_v34 = vmul.f32 %v1709_v8, %v3698_v44  ;;  %v3078_v44 = vld [vmem:[%s4120_s5 + $0x1] ss:$0 sm:$0xff] }
 0xa28   : > { %v1713_v9 = vmul.f32 0.5, %v1712_v33 }
 0xa29   : > { %v1729_v43 = vmul.f32 %v3076_v38, %v1722_v34 }
 0xa2a   : > { %v1714_v45 = vsub.f32 1.5, %v1713_v9 }
 0xa2b   : > { %v3740_v46 = vadd.f32 %v3077_v12, %v1729_v43 }
 0xa2c   : > { %v1715_v47 = vmul.f32 %v3152_v7, %v1714_v45 }
 0xa2d   : > { %2950 = vmatmul.msk.f32.gmra.mxu0 %vm614_vm0, %v3740_v46 }
 0xa2e   : > { %v1719_v48 = vsel %vm1718_vm11, %v3152_v7, %v1715_v47 }
 0xa2f   : > { %v1723_v49 = vmul.f32 %v1719_v48, %v3704_v11 }
 0xa31   : > { %v1730_v50 = vmul.f32 %v3076_v38, %v1723_v49 }
 0xa33   : > { %v3745_v22 = vadd.f32 %v3077_v12, %v1730_v50 }
 0xa35   : > { %2951 = vmatmul.msk.f32.gmra.mxu0 %vm614_vm0, %v3745_v22 }
 0xa5f   : > { %v1777_v52 = vpop.f32.mrf.mxu0 }
 0xa60   : > { %v3752_v53 = vadd.f32 %v3078_v44, %v1777_v52 }
 0xa62   : > { %1790 = vrot.lane.b32.xlu2 %v3752_v53, %s3222_s2 }
 0xa67   : > { %v1780_v54 = vpop.f32.mrf.mxu0 }
 0xa68   : > { %v3756_v55 = vadd.f32 %v3078_v44, %v1780_v54 }
 0xa6a   : > { %1817 = vrot.lane.b32.xlu0 %v3756_v55, %s3222_s2  ;;  %v3768_v58 = vpack.i.bf16 %v3756_v55, %v3752_v53 }
 0xaaa   : > { %v1783_v11 = vpop.f32.mrf.mxu0 }
 0xaab   : > { %v3760_v27 = vadd.f32 %v3078_v44, %v1783_v11 }
 0xaad   : > { %1844 = vrot.lane.b32.xlu0 %v3760_v27, %s3222_s2 }
 0xab2   : > { %v1786_v56 = vpop.f32.mrf.mxu0 }
 0xab3   : > { %v3764_v57 = vadd.f32 %v3078_v44, %v1786_v56 }
 0xab5   : > { %1871 = vrot.lane.b32.xlu1 %v3764_v57, %s3222_s2  ;;  %3054 = vrot.lane.b32.xlu0 %v3768_v58, %s3224_s24  ;;  %v3058_v31 = vpack.i.bf16 %v3760_v27, %v3764_v57  ;;  %s4148_s2 = smov 112  }
 0xab7   : > { %3059 = vrot.lane.b32.xlu2 %v3058_v31, %s3224_s24  ;;  %s4149_s24 = smov 80  }
 0xabc   : > { %v1791_v59 = vpop.permute.xlu2 %1790 }
 0xabd   : > { %2952 = vmatpush.xpose.msk.msrb.mxu1 %vm776_vm14, %v1791_v59 }
 0xac0   : > { %2953 = vmatmul.msk.f32.vlgmr.msrb.gmra.mxu1 %vm776_vm14, %v3752_v53 }
 0xadc   : > { %v1818_v62 = vpop.permute.xlu0 %1817 }
 0xadd   : > { %2954 = vmatpush.xpose.msk.msrb.mxu2 %vm776_vm14, %v1818_v62 }
 0xae0   : > { %2955 = vmatmul.msk.f32.vlgmr.msrb.gmra.mxu2 %vm776_vm14, %v3756_v55 }
 0xb11   : > { %v3060_v0 = vpop.permute.xlu2 %3059 }
 0xb12   : > { %v3062_v36 = vunpack.i.h.bf16 %v3060_v0  ;;  %v3061_v61 = vunpack.i.l.bf16 %v3060_v0 }
 0xb1f   : > { %v1845_v63 = vpop.permute.xlu0 %1844 }
 0xb20   : > { %2956 = vmatpush.xpose.msk.msrb.mxu0 %vm776_vm14, %v1845_v63 }
 0xb23   : > { %2957 = vmatmul.msk.f32.vlgmr.msrb.gmra.mxu0 %vm776_vm14, %v3760_v27 }
 0xb27   : > { %v1872_v4 = vpop.permute.xlu1 %1871  ;;  %v3055_v5 = vpop.permute.xlu0 %3054 }
 0xb28   : > { %v3057_v6 = vunpack.i.h.bf16 %v3055_v5  ;;  %v3056_v38 = vunpack.i.l.bf16 %v3055_v5  ;;  %2958 = vmatpush.xpose.msk.msra.mxu1 %vm776_vm14, %v1872_v4 }
 0xb2a   : > { %1970 = vmatpush.msra.mxu2 %v3056_v38  ;;  %1996 = vmatpush.msra.mxu0 %v3057_v6 }
 0xb2b   : > { %2959 = vmatmul.msk.f32.vlgmr.msra.gmra.mxu1 %vm776_vm14, %v3764_v57 }
 0xb2c   : > { %2022 = vmatpush.msrb.mxu1 %v3062_v36  ;;  %2048 = vmatpush.msrb.mxu2 %v3061_v61 }
 0xb3d   : > { %v1813_v10 = vpop.f32.mrf.mxu1 }
 0xb3e   : > { %v1897_v1 = vmul.f32 0.25, %v1813_v10 }
 0xb40   : > { %v1901_v12 = vadd.f32 %v1897_v1, %v3454_v51 }
 0xb42   : > { %v1905_v13 = vsel %vm902_vm15, %v1901_v12, -inf }
 0xb43   : > { %1906 = vmax.xlane.f32.xlu2 %v1905_v13 }
 0xb63   : > { %v1840_v15 = vpop.f32.mrf.mxu2 }
 0xb64   : > { %v1898_v17 = vmul.f32 0.25, %v1840_v15 }
 0xb66   : > { %v1902_v20 = vadd.f32 %v1898_v17, %v3462_v60 }
 0xb68   : > { %v1908_v21 = vsel %vm902_vm15, %v1902_v20, -inf }
 0xb69   : > { %1909 = vmax.xlane.f32.xlu0 %v1908_v21 }
 0xb7d   : > { %2053 = vrot.lane.b32.xlu0 %v3752_v53, %s4148_s2 }
 0xb85   : > { %2111 = vrot.lane.b32.xlu0 %v3760_v27, %s4149_s24 }
 0xb8d   : > { %2083 = vrot.lane.b32.xlu0 %v3756_v55, %s4149_s24 }
 0xba0   : > { %v1867_v23 = vpop.f32.mrf.mxu0 }
 0xba1   : > { %v1899_v24 = vmul.f32 0.25, %v1867_v23 }
 0xba3   : > { %v1903_v26 = vadd.f32 %v1899_v24, %v3468_v3 }
 0xba5   : > { %v1911_v19 = vsel %vm902_vm15, %v1903_v26, -inf }
 0xba6   : > { %1912 = vmax.xlane.f32.xlu2 %v1911_v19 }
 0xba8   : > { %v1894_v32 = vpop.f32.mrf.mxu1 }
 0xba9   : > { %v1900_v29 = vmul.f32 0.25, %v1894_v32 }
 0xbab   : > { %v1904_v35 = vadd.f32 %v1900_v29, %v3478_v16 }
 0xbad   : > { %v1914_v42 = vsel %vm902_vm15, %v1904_v35, -inf }
 0xbae   : > { %1915 = vmax.xlane.f32.xlu1 %v1914_v42 }
 0xbb6   : > { %v1907_v37 = vpop.xlane.xlu2 %1906 }
 0xbb7   : > { %v1917_v39 = vsub.f32 %v1901_v12, %v1907_v37 }
 0xbb9   : > { %v1921_v30 = vmul.f32 1.442695, %v1917_v39 }
 0xbbb   : > { %3153 = vpow2.f32 %v1921_v30 }
 0xbbe   : > { %2109 = vrot.lane.b32.xlu2 %v3760_v27, %s4148_s2 }
 0xbc1   : > { %v3154_v28 = vpop.eup %3153 }
 0xbc2   : > { %v1929_v40 = vsel %vm902_vm15, %v3154_v28, 0.0 }
 0xbc3   : > { %1930 = vadd.xlane.f32.xlu0 %v1929_v40 }
 0xbc7   : > { %2055 = vrot.lane.b32.xlu1 %v3752_v53, %s4149_s24 }
 0xbd7   : > { %2137 = vrot.lane.b32.xlu0 %v3764_v57, %s4148_s2 }
 0xbdc   : > { %v1910_v7 = vpop.xlane.xlu0 %1909 }
 0xbdd   : > { %v1918_v41 = vsub.f32 %v1902_v20, %v1910_v7 }
 0xbdf   : > { %v1923_v2 = vmul.f32 1.442695, %v1918_v41 }
 0xbe1   : > { %3155 = vpow2.f32 %v1923_v2 }
 0xbe7   : > { %v3156_v8 = vpop.eup %3155 }
 0xbe8   : > { %v1932_v34 = vsel %vm902_vm15, %v3156_v8, 0.0 }
 0xbef   : > { %v2054_v33 = vpop.permute.xlu0 %2053 }
 0xbf1   : > { %1933 = vadd.xlane.f32.xlu1 %v1932_v34 }
 0xbf7   : > { %v2112_v9 = vpop.permute.xlu0 %2111 }
 0xbff   : > { %v2084_v43 = vpop.permute.xlu0 %2083 }
 0xc00   : > { %2966 = vmatpush.xpose.msk.msra.mxu1 %vm776_vm14, %v2084_v43 }
 0xc19   : > { %v1913_v45 = vpop.xlane.xlu2 %1912 }
 0xc1a   : > { %v1919_v47 = vsub.f32 %v1903_v26, %v1913_v45 }
 0xc1c   : > { %v1925_v48 = vmul.f32 1.442695, %v1919_v47 }
 0xc1e   : > { %3157 = vpow2.f32 %v1925_v48 }
 0xc21   : > { %v1916_v49 = vpop.xlane.xlu1 %1915  ;;  %v2110_v4 = vpop.permute.xlu2 %2109 }
 0xc22   : > { %v1920_v50 = vsub.f32 %v1904_v35, %v1916_v49 }
 0xc24   : > { %v3158_v44 = vpop.eup %3157  ;;  %v1927_v52 = vmul.f32 1.442695, %v1920_v50 }
 0xc25   : > { %v1935_v53 = vsel %vm902_vm15, %v3158_v44, 0.0 }
 0xc26   : > { %3159 = vpow2.f32 %v1927_v52  ;;  %1936 = vadd.xlane.f32.xlu1 %v1935_v53 }
 0xc2c   : > { %v3160_v54 = vpop.eup %3159 }
 0xc2d   : > { %v1938_v11 = vsel %vm902_vm15, %v3160_v54, 0.0 }
 0xc2e   : > { %1939 = vadd.xlane.f32.xlu2 %v1938_v11 }
 0xc36   : > { %v1931_v56 = vpop.xlane.xlu0 %1930 }
 0xc37   : > { %3161 = vrcp.f32 %v1931_v56 }
 0xc39   : > { %v2056_v31 = vpop.permute.xlu1 %2055 }
 0xc3a   : > { %2964 = vmatpush.xpose.msk.msrb.mxu0 %vm776_vm14, %v2056_v31 }
 0xc3d   : > { %v3162_v59 = vpop.eup %3161 }
 0xc3e   : > { %v1945_v62 = vmul.f32 %v3162_v59, %v3154_v28 }
 0xc3f   : > { %2139 = vrot.lane.b32.xlu1 %v3764_v57, %s4149_s24 }
 0xc40   : > { %2960 = vmatmul.msk.f32.vlgmr.msra.gmra.mxu2 %vm902_vm15, %v1945_v62 }
 0xc41   : > { %2968 = vmatpush.xpose.msk.msra.mxu2 %vm776_vm14, %v2112_v9 }
 0xc46   : > { %2081 = vrot.lane.b32.xlu2 %v3756_v55, %s4148_s2 }
 0xc49   : > { %v2138_v13 = vpop.permute.xlu0 %2137 }
 0xc64   : > { %v1934_v63 = vpop.xlane.xlu1 %1933 }
 0xc65   : > { %3163 = vrcp.f32 %v1934_v63 }
 0xc6b   : > { %v3164_v0 = vpop.eup %3163 }
 0xc6c   : > { %v1946_v36 = vmul.f32 %v3164_v0, %v3156_v8 }
 0xc6e   : > { %2961 = vmatmul.msk.f32.vlgmr.msra.gmra.mxu0 %vm902_vm15, %v1946_v36 }
 0xc76   : > { %2965 = vmatmul.msk.f32.vlgmr.msrb.gmra.mxu0 %vm776_vm14, %v2054_v33 }
 0xc99   : > { %v1937_v5 = vpop.xlane.xlu1 %1936 }
 0xc9a   : > { %3165 = vrcp.f32 %v1937_v5 }
 0xca0   : > { %v3166_v6 = vpop.eup %3165 }
 0xca1   : > { %v1947_v38 = vmul.f32 %v3166_v6, %v3158_v44  ;;  %v1940_v61 = vpop.xlane.xlu2 %1939 }
 0xca2   : > { %3167 = vrcp.f32 %v1940_v61 }
 0xca3   : > { %2962 = vmatmul.msk.f32.vlgmr.msrb.gmra.mxu1 %vm902_vm15, %v1947_v38 }
 0xca8   : > { %v3168_v10 = vpop.eup %3167 }
 0xca9   : > { %v1948_v1 = vmul.f32 %v3168_v10, %v3160_v54  ;;  %v2082_v55 = vpop.permute.xlu2 %2081 }
 0xcab   : > { %2963 = vmatmul.msk.f32.vlgmr.msrb.gmra.mxu2 %vm902_vm15, %v1948_v1  ;;  %2967 = vmatmul.msk.f32.vlgmr.msra.gmra.mxu1 %vm776_vm14, %v2082_v55 }
 0xcb1   : > { %v2140_v12 = vpop.permute.xlu1 %2139 }
 0xcb2   : > { %2970 = vmatpush.xpose.msk.msra.mxu3 %vm776_vm14, %v2140_v12 }
 0xcb3   : > { %2969 = vmatmul.msk.f32.vlgmr.msra.gmra.mxu2 %vm776_vm14, %v2110_v4 }
 0xcb5   : > { %2971 = vmatmul.msk.f32.vlgmr.msra.gmra.mxu3 %vm776_vm14, %v2138_v13  ;;  %v2979_v13 = vld [vmem:[%s4121_s6 + $0x38] sm:$0xff] }
 0xcc3   : > { %v3835_v26 = vpop.f32.mrf.mxu2 }
 0xceb   : > { %v3829_v15 = vpop.f32.mrf.mxu0 }
 0xcf3   : > { %v2078_v17 = vpop.f32.mrf.mxu0 }
 0xcf4   : > { %v2165_v20 = vmul.f32 0.25, %v2078_v17  ;;  %v2978_v17 = vld [vmem:[%s4121_s6 + $0x30] sm:$0xff] }
 0xcf6   : > { %v2169_v21 = vadd.f32 %v2165_v20, %v3454_v51  ;;  %v2977_v20 = vld [vmem:[%s4121_s6 + $0x28] sm:$0xff] }
 0xcf8   : > { %v2173_v23 = vsel %vm902_vm15, %v2169_v21, -inf }
 0xcf9   : > { %2174 = vmax.xlane.f32.xlu2 %v2173_v23  ;;  %v2976_v23 = vld [vmem:[%s4121_s6 + $0x20] sm:$0xff] }
 0xd20   : > { %v3833_v24 = vpop.f32.mrf.mxu1 }
 0xd28   : > { %v2106_v19 = vpop.f32.mrf.mxu1 }
 0xd29   : > { %v2166_v32 = vmul.f32 0.25, %v2106_v19 }
 0xd2b   : > { %v2170_v29 = vadd.f32 %v2166_v32, %v3462_v60 }
 0xd2d   : > { %v2176_v35 = vsel %vm902_vm15, %v2170_v29, -inf }
 0xd2e   : > { %2177 = vmax.xlane.f32.xlu1 %v2176_v35  ;;  %v3839_v42 = vpop.f32.mrf.mxu2 }
 0xd36   : > { %v2134_v37 = vpop.f32.mrf.mxu2 }
 0xd37   : > { %v2167_v39 = vmul.f32 0.25, %v2134_v37 }
 0xd38   : > { %v2162_v30 = vpop.f32.mrf.mxu3 }
 0xd39   : > { %v2168_v51 = vmul.f32 0.25, %v2162_v30  ;;  %v2171_v28 = vadd.f32 %v2167_v39, %v3468_v3 }
 0xd3b   : > { %v2179_v40 = vsel %vm902_vm15, %v2171_v28, -inf  ;;  %v2172_v7 = vadd.f32 %v2168_v51, %v3478_v16 }
 0xd3c   : > { %2180 = vmax.xlane.f32.xlu0 %v2179_v40 }
 0xd3d   : > { %v2182_v41 = vsel %vm902_vm15, %v2172_v7, -inf }
 0xd3e   : > { %2183 = vmax.xlane.f32.xlu2 %v2182_v41 }
 0xd50   : > { %3064 = vrot.lane.b32.xlu0 %v3768_v58, %s4150_s19 }
 0xd6c   : > { %v2175_v60 = vpop.xlane.xlu2 %2174 }
 0xd6d   : > { %v2185_v2 = vsub.f32 %v2169_v21, %v2175_v60 }
 0xd6f   : > { %v2189_v8 = vmul.f32 1.442695, %v2185_v2 }
 0xd71   : > { %3169 = vpow2.f32 %v2189_v8 }
 0xd77   : > { %v3170_v33 = vpop.eup %3169 }
 0xd78   : > { %v2197_v34 = vsel %vm902_vm15, %v3170_v33, 0.0 }
 0xd79   : > { %2198 = vadd.xlane.f32.xlu1 %v2197_v34 }
 0xda1   : > { %v2178_v43 = vpop.xlane.xlu1 %2177 }
 0xda2   : > { %v2186_v48 = vsub.f32 %v2170_v29, %v2178_v43 }
 0xda4   : > { %v2191_v50 = vmul.f32 1.442695, %v2186_v48 }
 0xdaf   : > { %v2181_v3 = vpop.xlane.xlu0 %2180 }
 0xdb0   : > { %v2187_v9 = vsub.f32 %v2171_v28, %v2181_v3 }
 0xdb1   : > { %v2184_v45 = vpop.xlane.xlu2 %2183 }
 0xdb2   : > { %v2193_v16 = vmul.f32 1.442695, %v2187_v9  ;;  %v2188_v47 = vsub.f32 %v2172_v7, %v2184_v45 }
 0xdb4   : > { %3171 = vpow2.f32 %v2193_v16  ;;  %v2195_v49 = vmul.f32 1.442695, %v2188_v47 }
 0xdb6   : > { %3173 = vpow2.f32 %v2195_v49 }
 0xdb7   : > { %3175 = vpow2.f32 %v2191_v50 }
 0xdba   : > { %v3172_v58 = vpop.eup %3171 }
 0xdbb   : > { %v2203_v44 = vsel %vm902_vm15, %v3172_v58, 0.0 }
 0xdbc   : > { %v3174_v52 = vpop.eup %3173  ;;  %2204 = vadd.xlane.f32.xlu1 %v2203_v44 }
 0xdbd   : > { %v2206_v53 = vsel %vm902_vm15, %v3174_v52, 0.0  ;;  %v3176_v54 = vpop.eup %3175 }
 0xdbe   : > { %2207 = vadd.xlane.f32.xlu2 %v2206_v53  ;;  %v2200_v59 = vsel %vm902_vm15, %v3176_v54, 0.0 }
 0xdc2   : > { %v3065_v11 = vpop.permute.xlu0 %3064 }
 0xdc3   : > { %v3067_v56 = vunpack.i.h.bf16 %v3065_v11  ;;  %v3066_v31 = vunpack.i.l.bf16 %v3065_v11 }
 0xdc5   : > { %2238 = vmatpush.msra.mxu0 %v3066_v31  ;;  %2264 = vmatpush.msrb.mxu1 %v3067_v56 }
 0xdc6   : > { %2201 = vadd.xlane.f32.xlu2 %v2200_v59 }
 0xdc7   : > { %2375 = vmatpush.msrb.mxu0 %v2979_v13 }
 0xdc9   : > { %2376 = vmatpush.msrb.mxu0 %v2978_v17 }
 0xdcb   : > { %2377 = vmatpush.msrb.mxu0 %v2977_v20  ;;  %v3934_v20 = vld [vmem:[%s4123_s8 + $0x1] ss:$0 sm:$0xff] }
 0xdcd   : > { %2378 = vmatpush.msrb.mxu0 %v2976_v23 }
 0xdd5   : > { %2269 = vrot.lane.b32.xlu1 %v3760_v27, %s4150_s19 }
 0xdde   : > { %2295 = vrot.lane.b32.xlu2 %v3764_v57, %s4150_s19 }
 0xdec   : > { %v2199_v62 = vpop.xlane.xlu1 %2198 }
 0xded   : > { %3177 = vrcp.f32 %v2199_v62 }
 0xdf3   : > { %v3178_v63 = vpop.eup %3177 }
 0xdf4   : > { %v2213_v0 = vmul.f32 %v3178_v63, %v3170_v33 }
 0xdf6   : > { %2972 = vmatmul.msk.f32.vlgmr.msra.gmra.mxu0 %vm902_vm15, %v2213_v0 }
 0xe2f   : > { %v2205_v5 = vpop.xlane.xlu1 %2204 }
 0xe31   : > { %v2208_v36 = vpop.xlane.xlu2 %2207 }
 0xe32   : > { %3179 = vrcp.f32 %v2208_v36 }
 0xe38   : > { %v3180_v6 = vpop.eup %3179 }
 0xe39   : > { %v2202_v4 = vpop.xlane.xlu2 %2201  ;;  %v2216_v61 = vmul.f32 %v3180_v6, %v3174_v52  ;;  %v2988_v6 = vld [vmem:[%s4125_s10 + $0x28] sm:$0xff] }
 0xe3a   : > { %3181 = vrcp.f32 %v2202_v4  ;;  %v2990_v4 = vld [vmem:[%s4125_s10 + $0x38] sm:$0xff] }
 0xe3b   : > { %3183 = vrcp.f32 %v2205_v5  ;;  %2536 = vmatpush.msra.mxu1 %v2990_v4  ;;  %v2989_v5 = vld [vmem:[%s4125_s10 + $0x30] sm:$0xff]  ;;  %v3007_v4 = vld [vmem:[%s4127_s12 + $0xd8] sm:$0xff] }
 0xe3d   : > { %2537 = vmatpush.msra.mxu1 %v2989_v5  ;;  %v3005_v5 = vld [vmem:[%s4127_s12 + $0xc8] sm:$0xff] }
 0xe3f   : > { %2538 = vmatpush.msra.mxu1 %v2988_v6  ;;  %v3004_v6 = vld [vmem:[%s4127_s12 + $0xc0] sm:$0xff] }
 0xe40   : > { %v3182_v38 = vpop.eup %3181 }
 0xe41   : > { %v2214_v10 = vmul.f32 %v3182_v38, %v3176_v54  ;;  %v2296_v27 = vpop.permute.xlu2 %2295  ;;  %v3184_v57 = vpop.eup %3183  ;;  %v2987_v38 = vld [vmem:[%s4125_s10 + $0x20] sm:$0xff] }
 0xe42   : > { %2316 = vmatpush.msrb.mxu3 %v2296_v27  ;;  %v2215_v1 = vmul.f32 %v3184_v57, %v3172_v58  ;;  %2539 = vmatpush.msra.mxu1 %v2987_v38  ;;  %v3003_v38 = vld [vmem:[%s4127_s12 + $0xb8] sm:$0xff] }
 0xe43   : > { %2973 = vmatmul.msk.f32.vlgmr.msrb.gmra.mxu1 %vm902_vm15, %v2214_v10  ;;  %2975 = vmatmul.msk.f32.vlgmr.msrb.gmra.mxu3 %vm902_vm15, %v2216_v61 }
 0xe47   : > { %v2270_v55 = vpop.permute.xlu1 %2269 }
 0xe48   : > { %2290 = vmatpush.msrb.mxu2 %v2270_v55 }
 0xe49   : > { %2974 = vmatmul.msk.f32.vlgmr.msrb.gmra.mxu2 %vm902_vm15, %v2215_v1 }
 0xe73   : > { %v2240_v12 = vpop.f32.mrf.mxu0 }
 0xe74   : > { %2325 = vrot.lane.b32.xlu0 %v2240_v12, %s4151_s21 }
 0xec0   : > { %v2266_v21 = vpop.f32.mrf.mxu1 }
 0xec1   : > { %2327 = vrot.lane.b32.xlu0 %v2266_v21, %s4151_s21 }
 0xec6   : > { %v2318_v19 = vpop.f32.mrf.mxu3 }
 0xec9   : > { %2331 = vrot.lane.b32.xlu0 %v2318_v19, %s4151_s21  ;;  %v3939_v19 = vld [vmem:[%s4124_s9 + $0x1] ss:$0 sm:$0xff] }
 0xecc   : > { %v2292_v32 = vpop.f32.mrf.mxu2 }
 0xecd   : > { %2329 = vrot.lane.b32.xlu1 %v2292_v32, %s4151_s21 }
 0xee6   : > { %v2326_v29 = vpop.permute.xlu0 %2325 }
 0xee7   : > { %v2337_v35 = vsel %vm776_vm14, %v3835_v26, %v2326_v29  ;;  %v3079_v26 = vld [vmem:[%s4122_s7 + $0x1] ss:$0 sm:$0xff] }
 0xee8   : > { %2981 = vmatmul.msk.f32.vlgmr.msrb.gmra.mxu0 %vm614_vm0, %v2337_v35 }
 0xf33   : > { %v2328_v37 = vpop.permute.xlu0 %2327 }
 0xf34   : > { %v2338_v39 = vsel %vm776_vm14, %v3829_v15, %v2328_v37 }
 0xf35   : > { %2982 = vmatmul.msk.f32.gmra.mxu0 %vm614_vm0, %v2338_v39 }
 0xf3b   : > { %v2332_v28 = vpop.permute.xlu0 %2331 }
 0xf3c   : > { %v2340_v40 = vsel %vm776_vm14, %v3839_v42, %v2332_v28 }
 0xf3f   : > { %v2330_v30 = vpop.permute.xlu1 %2329 }
 0xf40   : > { %v2339_v51 = vsel %vm776_vm14, %v3833_v24, %v2330_v30 }
 0xf41   : > { %2983 = vmatmul.msk.f32.gmra.mxu0 %vm614_vm0, %v2339_v51 }
 0xf49   : > { %2984 = vmatmul.msk.f32.gmra.mxu0 %vm614_vm0, %v2340_v40 }
 0xf65   : > { %v2380_v7 = vpop.f32.mrf.mxu0 }
 0xf66   : > { %v2381_v15 = vadd.f32 %v3079_v26, %v2380_v7 }
 0xf68   : > { %v2392_v41 = vadd.f32 %v2381_v15, %v3729_v18 }
 0xf6a   : > { %v2400_v60 = vsel %vm614_vm0, %v2392_v41, 0.0 }
 0xf6b   : > { %2401 = vadd.xlane.f32.xlu2 %v2400_v60  ;;  %v3010_v60 = vld [vmem:[%s4127_s12 + $0xf0] sm:$0xff] }
 0xfb2   : > { %v2383_v24 = vpop.f32.mrf.mxu0 }
 0xfb3   : > { %v2384_v2 = vadd.f32 %v3079_v26, %v2383_v24 }
 0xfb5   : > { %v2393_v8 = vadd.f32 %v2384_v2, %v3733_v25  ;;  %v3009_v2 = vld [vmem:[%s4127_s12 + $0xe8] sm:$0xff] }
 0xfb7   : > { %v2403_v33 = vsel %vm614_vm0, %v2393_v8, 0.0 }
 0xfb8   : > { %2404 = vadd.xlane.f32.xlu1 %v2403_v33 }
 0xfbe   : > { %v2386_v42 = vpop.f32.mrf.mxu0 }
 0xfbf   : > { %v2387_v34 = vadd.f32 %v3079_v26, %v2386_v42 }
 0xfc1   : > { %v2394_v3 = vadd.f32 %v2387_v34, %v3740_v46 }
 0xfc3   : > { %v2406_v9 = vsel %vm614_vm0, %v2394_v3, 0.0 }
 0xfc4   : > { %2407 = vadd.xlane.f32.xlu0 %v2406_v9 }
 0xfc6   : > { %v2389_v43 = vpop.f32.mrf.mxu0 }
 0xfc7   : > { %v2390_v45 = vadd.f32 %v3079_v26, %v2389_v43 }
 0xfc9   : > { %v2395_v18 = vadd.f32 %v2390_v45, %v3745_v22 }
 0xfcb   : > { %v2409_v16 = vsel %vm614_vm0, %v2395_v18, 0.0 }
 0xfcc   : > { %2410 = vadd.xlane.f32.xlu2 %v2409_v16 }
 0xfde   : > { %v2402_v47 = vpop.xlane.xlu2 %2401 }
 0xfdf   : > { %v2412_v25 = vmul.f32 %v2402_v47, %v3342_v14 }
 0xfe1   : > { %v2416_v48 = vsub.f32 %v2392_v41, %v2412_v25  ;;  %v3011_v41 = vld [vmem:[%s4127_s12 + $0xf8] sm:$0xff] }
 0xfe2   : > { %2611 = vmatpush.msra.mxu2 %v3011_v41 }
 0xfe3   : > { %v2420_v49 = vmul.f32 %v2416_v48, %v2416_v48 }
 0xfe4   : > { %2612 = vmatpush.msra.mxu2 %v3010_v60 }
 0xfe5   : > { %v2424_v50 = vsel %vm614_vm0, %v2420_v49, 0.0 }
 0xfe6   : > { %2425 = vadd.xlane.f32.xlu1 %v2424_v50  ;;  %2613 = vmatpush.msra.mxu2 %v3009_v2 }
0x102b   : > { %v2405_v58 = vpop.xlane.xlu1 %2404 }
0x102c   : > { %v2413_v46 = vmul.f32 %v2405_v58, %v3342_v14 }
0x102e   : > { %v3901_v44 = vsub.f32 %v2393_v8, %v2413_v46 }
0x1030   : > { %v2421_v52 = vmul.f32 %v3901_v44, %v3901_v44 }
0x1032   : > { %v2427_v22 = vsel %vm614_vm0, %v2421_v52, 0.0 }
0x1033   : > { %2428 = vadd.xlane.f32.xlu0 %v2427_v22 }
0x1037   : > { %v2408_v53 = vpop.xlane.xlu0 %2407 }
0x1038   : > { %v2414_v54 = vmul.f32 %v2408_v53, %v3342_v14 }
0x103a   : > { %v3907_v11 = vsub.f32 %v2394_v3, %v2414_v54 }
0x103c   : > { %v2422_v56 = vmul.f32 %v3907_v11, %v3907_v11 }
0x103e   : > { %v2430_v31 = vsel %vm614_vm0, %v2422_v56, 0.0 }
0x103f   : > { %v2411_v59 = vpop.xlane.xlu2 %2410  ;;  %2431 = vadd.xlane.f32.xlu2 %v2430_v31 }
0x1040   : > { %v2415_v62 = vmul.f32 %v2411_v59, %v3342_v14 }
0x1042   : > { %v3913_v63 = vsub.f32 %v2395_v18, %v2415_v62 }
0x1044   : > { %v2423_v0 = vmul.f32 %v3913_v63, %v3913_v63 }
0x1046   : > { %v2433_v36 = vsel %vm614_vm0, %v2423_v0, 0.0 }
0x1047   : > { %2434 = vadd.xlane.f32.xlu1 %v2433_v36 }
0x1059   : > { %v2426_v61 = vpop.xlane.xlu1 %2425 }
0x105a   : > { %v2436_v10 = vmul.f32 %v2426_v61, %v3342_v14  ;;  %v3002_v61 = vld [vmem:[%s4127_s12 + $0xb0] sm:$0xff] }
0x105c   : > { %v2440_v27 = vadd.f32 1e-12, %v2436_v10  ;;  %v3001_v10 = vld [vmem:[%s4127_s12 + $0xa8] sm:$0xff] }
0x105e   : > { %3185 = vrsqrt.f32 %v2440_v27  ;;  %vm2450_vm15 = vweird.f32 %v2440_v27 }
0x1064   : > { %v3186_v57 = vpop.eup %3185 }
0x1065   : > { %v2445_v1 = vmul.f32 %v3186_v57, %v2440_v27  ;;  %vm2451_vm14 = vweird.f32 %v3186_v57  ;;  %v3000_v27 = vld [vmem:[%s4127_s12 + $0xa0] sm:$0xff] }
0x1066   : > { %vm2452_vm12 = vmor %vm2450_vm15, %vm2451_vm14 }
0x1067   : > { %v2446_v55 = vmul.f32 %v3186_v57, %v2445_v1  ;;  %v2998_v1 = vld [vmem:[%s4127_s12 + $0x90] sm:$0xff] }
0x1069   : > { %v2447_v12 = vmul.f32 0.5, %v2446_v55  ;;  %v2997_v55 = vld [vmem:[%s4127_s12 + $0x88] sm:$0xff] }
0x106b   : > { %v2448_v13 = vsub.f32 1.5, %v2447_v12  ;;  %v2996_v12 = vld [vmem:[%s4127_s12 + $0x80] sm:$0xff] }
0x106d   : > { %v2449_v17 = vmul.f32 %v3186_v57, %v2448_v13  ;;  %v3082_v13 = vld [vmem:[%s4126_s11 + $0x1] ss:$0 sm:$0xff] }
0x106f   : > { %v2453_v21 = vsel %vm2452_vm12, %v3186_v57, %v2449_v17  ;;  %v2999_v57 = vld [vmem:[%s4127_s12 + $0x98] sm:$0xff] }
0x1070   : > { %v2484_v23 = vmul.f32 %v2453_v21, %v2416_v48 }
0x1072   : > { %v2491_v32 = vmul.f32 %v3934_v20, %v2484_v23 }
0x1074   : > { %v3943_v29 = vadd.f32 %v3939_v19, %v2491_v32 }
0x1076   : > { %2992 = vmatmul.msk.f32.vlgmr.msra.gmra.mxu1 %vm614_vm0, %v3943_v29 }
0x10a6   : > { %v2429_v35 = vpop.xlane.xlu0 %2428 }
0x10a7   : > { %v2437_v37 = vmul.f32 %v2429_v35, %v3342_v14 }
0x10a9   : > { %v2441_v39 = vadd.f32 1e-12, %v2437_v37 }
0x10ab   : > { %3187 = vrsqrt.f32 %v2441_v39  ;;  %vm2460_vm1 = vweird.f32 %v2441_v39 }
0x10b1   : > { %v3188_v30 = vpop.eup %3187 }
0x10b2   : > { %v2455_v51 = vmul.f32 %v3188_v30, %v2441_v39  ;;  %v2432_v28 = vpop.xlane.xlu2 %2431  ;;  %vm2461_vm13 = vweird.f32 %v3188_v30 }
0x10b3   : > { %v2438_v40 = vmul.f32 %v2432_v28, %v3342_v14  ;;  %vm2462_vm2 = vmor %vm2460_vm1, %vm2461_vm13 }
0x10b4   : > { %v2456_v26 = vmul.f32 %v3188_v30, %v2455_v51 }
0x10b5   : > { %v2442_v7 = vadd.f32 1e-12, %v2438_v40 }
0x10b6   : > { %v2457_v15 = vmul.f32 0.5, %v2456_v26 }
0x10b7   : > { %3189 = vrsqrt.f32 %v2442_v7  ;;  %vm2470_vm4 = vweird.f32 %v2442_v7 }
0x10b8   : > { %v2458_v24 = vsub.f32 1.5, %v2457_v15 }
0x10ba   : > { %v2459_v8 = vmul.f32 %v3188_v30, %v2458_v24  ;;  %v2435_v33 = vpop.xlane.xlu1 %2434 }
0x10bb   : > { %v2439_v42 = vmul.f32 %v2435_v33, %v3342_v14 }
0x10bc   : > { %v2463_v34 = vsel %vm2462_vm2, %v3188_v30, %v2459_v8 }
0x10bd   : > { %v3190_v3 = vpop.eup %3189  ;;  %v2443_v9 = vadd.f32 1e-12, %v2439_v42  ;;  %v2485_v43 = vmul.f32 %v2463_v34, %v3901_v44 }
0x10be   : > { %v2465_v45 = vmul.f32 %v3190_v3, %v2442_v7  ;;  %vm2471_vm3 = vweird.f32 %v3190_v3 }
0x10bf   : > { %3191 = vrsqrt.f32 %v2443_v9  ;;  %v2492_v18 = vmul.f32 %v3934_v20, %v2485_v43  ;;  %vm2472_vm5 = vmor %vm2470_vm4, %vm2471_vm3  ;;  %vm2480_vm7 = vweird.f32 %v2443_v9 }
0x10c0   : > { %v2466_v16 = vmul.f32 %v3190_v3, %v2465_v45 }
0x10c1   : > { %v3962_v47 = vadd.f32 %v3939_v19, %v2492_v18 }
0x10c2   : > { %v2467_v25 = vmul.f32 0.5, %v2466_v16 }
0x10c3   : > { %2993 = vmatmul.msk.f32.gmra.mxu1 %vm614_vm0, %v3962_v47 }
0x10c4   : > { %v2468_v48 = vsub.f32 1.5, %v2467_v25 }
0x10c5   : > { %v3192_v49 = vpop.eup %3191 }
0x10c6   : > { %v2469_v50 = vmul.f32 %v3190_v3, %v2468_v48  ;;  %v2475_v58 = vmul.f32 %v3192_v49, %v2443_v9  ;;  %vm2481_vm6 = vweird.f32 %v3192_v49 }
0x10c7   : > { %vm2482_vm8 = vmor %vm2480_vm7, %vm2481_vm6 }
0x10c8   : > { %v2473_v46 = vsel %vm2472_vm5, %v3190_v3, %v2469_v50  ;;  %v2476_v44 = vmul.f32 %v3192_v49, %v2475_v58 }
0x10c9   : > { %v2486_v52 = vmul.f32 %v2473_v46, %v3907_v11  ;;  %v3008_v11 = vld [vmem:[%s4127_s12 + $0xe0] sm:$0xff] }
0x10ca   : > { %v2477_v22 = vmul.f32 0.5, %v2476_v44  ;;  %2614 = vmatpush.msra.mxu2 %v3008_v11 }
0x10cb   : > { %v2493_v53 = vmul.f32 %v3934_v20, %v2486_v52 }
0x10cc   : > { %v2478_v54 = vsub.f32 1.5, %v2477_v22  ;;  %2615 = vmatpush.msra.mxu2 %v3007_v4 }
0x10cd   : > { %v3969_v56 = vadd.f32 %v3939_v19, %v2493_v53 }
0x10ce   : > { %v2479_v31 = vmul.f32 %v3192_v49, %v2478_v54 }
0x10cf   : > { %2994 = vmatmul.msk.f32.gmra.mxu1 %vm614_vm0, %v3969_v56 }
0x10d0   : > { %v2483_v59 = vsel %vm2482_vm8, %v3192_v49, %v2479_v31 }
0x10d1   : > { %v2487_v62 = vmul.f32 %v2483_v59, %v3913_v63  ;;  %v3006_v63 = vld [vmem:[%s4127_s12 + $0xd0] sm:$0xff] }
0x10d2   : > { %2616 = vmatpush.msra.mxu2 %v3006_v63 }
0x10d3   : > { %v2494_v0 = vmul.f32 %v3934_v20, %v2487_v62 }
0x10d4   : > { %2617 = vmatpush.msra.mxu2 %v3005_v5 }
0x10d5   : > { %v3979_v36 = vadd.f32 %v3939_v19, %v2494_v0  ;;  %v3083_v0 = vld [vmem:[%s4128_s13 + $0x1] ss:$0 sm:$0xff] }
0x10d6   : > { %2618 = vmatpush.msra.mxu2 %v3004_v6 }
0x10d7   : > { %2995 = vmatmul.msk.f32.gmra.mxu1 %vm614_vm0, %v3979_v36 }
0x10d8   : > { %2619 = vmatpush.msra.mxu2 %v3003_v38 }
0x10da   : > { %2620 = vmatpush.msra.mxu2 %v3002_v61 }
0x10dc   : > { %2621 = vmatpush.msra.mxu2 %v3001_v10 }
0x10de   : > { %2622 = vmatpush.msra.mxu2 %v3000_v27 }
0x10e0   : > { %2623 = vmatpush.msra.mxu2 %v2999_v57 }
0x10e2   : > { %2624 = vmatpush.msra.mxu2 %v2998_v1 }
0x10e4   : > { %2625 = vmatpush.msra.mxu2 %v2997_v55 }
0x10e6   : > { %2626 = vmatpush.msra.mxu2 %v2996_v12 }
0x10f3   : > { %v2541_v17 = vpop.f32.mrf.mxu1 }
0x10f4   : > { %v2542_v20 = vadd.f32 %v3082_v13, %v2541_v17 }
0x10f6   : > { %v2553_v21 = vmul.f32 %v2542_v20, %v2542_v20 }
0x10f8   : > { %v2557_v23 = vmul.f32 %v2553_v21, %v2542_v20 }
0x10fa   : > { %v2561_v19 = vmul.f32 0.044715, %v2557_v23 }
0x10fc   : > { %v2565_v32 = vadd.f32 %v2561_v19, %v2542_v20 }
0x10fe   : > { %v2569_v35 = vmul.f32 0.7978846, %v2565_v32 }
0x1100   : > { %3193 = vtanh.f32 %v2569_v35 }
0x1106   : > { %v3194_v37 = vpop.eup %3193 }
0x1107   : > { %v2577_v39 = vadd.f32 1.0, %v3194_v37 }
0x1109   : > { %v2581_v30 = vmul.f32 0.5, %v2577_v39 }
0x110b   : > { %v2585_v51 = vmul.f32 %v2581_v30, %v2542_v20 }
0x110d   : > { %2627 = vmatmul.f32.vlgmr.msra.gmra.mxu2 %v2585_v51 }
0x1140   : > { %v2544_v28 = vpop.f32.mrf.mxu1 }
0x1141   : > { %v2545_v40 = vadd.f32 %v3082_v13, %v2544_v28 }
0x1143   : > { %v2554_v26 = vmul.f32 %v2545_v40, %v2545_v40 }
0x1145   : > { %v2558_v7 = vmul.f32 %v2554_v26, %v2545_v40 }
0x1147   : > { %v2562_v15 = vmul.f32 0.044715, %v2558_v7 }
0x1149   : > { %v2566_v41 = vadd.f32 %v2562_v15, %v2545_v40 }
0x114b   : > { %v2570_v60 = vmul.f32 0.7978846, %v2566_v41 }
0x114c   : > { %v2547_v24 = vpop.f32.mrf.mxu1 }
0x114d   : > { %v2548_v2 = vadd.f32 %v3082_v13, %v2547_v24  ;;  %3195 = vtanh.f32 %v2570_v60 }
0x114f   : > { %v2555_v8 = vmul.f32 %v2548_v2, %v2548_v2 }
0x1151   : > { %v2559_v33 = vmul.f32 %v2555_v8, %v2548_v2 }
0x1153   : > { %v3196_v42 = vpop.eup %3195  ;;  %v2563_v34 = vmul.f32 0.044715, %v2559_v33 }
0x1154   : > { %v2550_v3 = vpop.f32.mrf.mxu1  ;;  %v2578_v9 = vadd.f32 1.0, %v3196_v42  ;;  %v3211_v42 = vld [vmem:[%s3451_s30] sm:$0x1] }
0x1155   : > { %v2551_v43 = vadd.f32 %v3082_v13, %v2550_v3  ;;  %v2567_v45 = vadd.f32 %v2563_v34, %v2548_v2  ;;  %v2751_v34 = vsel %vm2750_vm9, %v3211_v42, 0.0  ;;  %v3212_v3 = vld [vmem:[%s3451_s30 + $0x3] sm:$0x1] }
0x1156   : > { %v2582_v18 = vmul.f32 0.5, %v2578_v9  ;;  %v2760_v9 = vsel %vm2750_vm9, %v3212_v3, 0.0 }
0x1157   : > { %v2556_v16 = vmul.f32 %v2551_v43, %v2551_v43  ;;  %v2571_v25 = vmul.f32 0.7978846, %v2567_v45 }
0x1158   : > { %v2586_v48 = vmul.f32 %v2582_v18, %v2545_v40 }
0x1159   : > { %v2560_v49 = vmul.f32 %v2556_v16, %v2551_v43  ;;  %3197 = vtanh.f32 %v2571_v25 }
0x115a   : > { %2630 = vmatmul.f32.gmra.mxu2 %v2586_v48 }
0x115b   : > { %v2564_v50 = vmul.f32 0.044715, %v2560_v49 }
0x115d   : > { %v2568_v58 = vadd.f32 %v2564_v50, %v2551_v43 }
0x115f   : > { %v3198_v46 = vpop.eup %3197  ;;  %v2572_v44 = vmul.f32 0.7978846, %v2568_v58 }
0x1160   : > { %v2579_v52 = vadd.f32 1.0, %v3198_v46 }
0x1161   : > { %3199 = vtanh.f32 %v2572_v44 }
0x1162   : > { %v2583_v22 = vmul.f32 0.5, %v2579_v52 }
0x1164   : > { %v2587_v53 = vmul.f32 %v2583_v22, %v2548_v2  ;;  %v3210_v2 = vld [vmem:[%s3451_s30 + $0x1] sm:$0x1] }
0x1165   : > { %v2754_v8 = vsel %vm2750_vm9, %v3210_v2, 0.0 }
0x1166   : > { %2633 = vmatmul.f32.gmra.mxu2 %v2587_v53 }
0x1167   : > { %v3200_v54 = vpop.eup %3199 }
0x1168   : > { %v2580_v31 = vadd.f32 1.0, %v3200_v54  ;;  %v2786_v54 = vld [vmem:[%s4131_s16 + $0x18] sm:$0xff] }
0x1169   : > { %2818 = vmatpush.msra.mxu3 %v2786_v54 }
0x116a   : > { %v2584_v59 = vmul.f32 0.5, %v2580_v31  ;;  %v2785_v31 = vld [vmem:[%s4131_s16 + $0x10] sm:$0xff] }
0x116b   : > { %2819 = vmatpush.msra.mxu3 %v2785_v31 }
0x116c   : > { %v2588_v62 = vmul.f32 %v2584_v59, %v2551_v43 }
0x116e   : > { %2636 = vmatmul.f32.gmra.mxu2 %v2588_v62 }
0x1190   : > { %v2628_v11 = vpop.f32.mrf.mxu2 }
0x1191   : > { %v2629_v4 = vadd.f32 %v3083_v0, %v2628_v11  ;;  %v2783_v11 = vld [vmem:[%s4131_s16] sm:$0xff] }
0x1193   : > { %v2640_v63 = vadd.f32 %v2629_v4, %v3943_v29 }
0x1195   : > { %v2648_v5 = vsel %vm614_vm0, %v2640_v63, 0.0 }
0x1196   : > { %2649 = vadd.xlane.f32.xlu1 %v2648_v5 }
0x11dd   : > { %v2631_v6 = vpop.f32.mrf.mxu2 }
0x11de   : > { %v2632_v38 = vadd.f32 %v3083_v0, %v2631_v6 }
0x11e0   : > { %v2641_v61 = vadd.f32 %v2632_v38, %v3962_v47 }
0x11e2   : > { %v2651_v10 = vsel %vm614_vm0, %v2641_v61, 0.0 }
0x11e3   : > { %2652 = vadd.xlane.f32.xlu0 %v2651_v10 }
0x11e9   : > { %v2634_v27 = vpop.f32.mrf.mxu2 }
0x11ea   : > { %v2635_v57 = vadd.f32 %v3083_v0, %v2634_v27 }
0x11ec   : > { %v2642_v1 = vadd.f32 %v2635_v57, %v3969_v56 }
0x11ee   : > { %v2654_v55 = vsel %vm614_vm0, %v2642_v1, 0.0 }
0x11ef   : > { %2655 = vadd.xlane.f32.xlu2 %v2654_v55 }
0x11f1   : > { %v2637_v12 = vpop.f32.mrf.mxu2 }
0x11f2   : > { %v2638_v29 = vadd.f32 %v3083_v0, %v2637_v12  ;;  %v2784_v0 = vld [vmem:[%s4131_s16 + $0x8] sm:$0xff] }
0x11f3   : > { %2820 = vmatpush.msra.mxu3 %v2784_v0 }
0x11f4   : > { %v2643_v13 = vadd.f32 %v2638_v29, %v3979_v36  ;;  %v3209_v36 = vld [vmem:[%s3451_s30 + $0x2] sm:$0x1] }
0x11f5   : > { %v2757_v37 = vsel %vm2750_vm9, %v3209_v36, 0.0  ;;  %2821 = vmatpush.msra.mxu3 %v2783_v11 }
0x11f6   : > { %v2657_v17 = vsel %vm614_vm0, %v2643_v13, 0.0 }
0x11f7   : > { %2658 = vadd.xlane.f32.xlu0 %v2657_v17 }
0x1209   : > { %v2650_v20 = vpop.xlane.xlu1 %2649 }
0x120a   : > { %v2660_v47 = vmul.f32 %v2650_v20, %v3342_v14 }
0x120c   : > { %v4034_v21 = vsub.f32 %v2640_v63, %v2660_v47 }
0x120e   : > { %v2668_v23 = vmul.f32 %v4034_v21, %v4034_v21 }
0x1210   : > { %v2672_v56 = vsel %vm614_vm0, %v2668_v23, 0.0 }
0x1211   : > { %2673 = vadd.xlane.f32.xlu0 %v2672_v56 }
0x1219   : > { %2758 = vadd.xlane.f32.xlu0 %v2757_v37 }
0x1256   : > { %v2653_v19 = vpop.xlane.xlu0 %2652 }
0x1257   : > { %v2661_v32 = vmul.f32 %v2653_v19, %v3342_v14 }
0x1259   : > { %v4040_v35 = vsub.f32 %v2641_v61, %v2661_v32 }
0x125b   : > { %v2669_v39 = vmul.f32 %v4040_v35, %v4040_v35 }
0x125d   : > { %v2675_v30 = vsel %vm614_vm0, %v2669_v39, 0.0 }
0x125e   : > { %2676 = vadd.xlane.f32.xlu2 %v2675_v30  ;;  %v3084_v30 = vld [vmem:[%s4129_s14 + $0x1] ss:$0 sm:$0xff] }
0x1262   : > { %v2656_v51 = vpop.xlane.xlu2 %2655 }
0x1263   : > { %v2662_v28 = vmul.f32 %v2656_v51, %v3342_v14 }
0x1265   : > { %v4048_v40 = vsub.f32 %v2642_v1, %v2662_v28 }
0x1267   : > { %v2670_v26 = vmul.f32 %v4048_v40, %v4048_v40 }
0x1269   : > { %v2678_v7 = vsel %vm614_vm0, %v2670_v26, 0.0  ;;  %v3228_v26 = vmov 0.0  }
0x126a   : > { %2679 = vadd.xlane.f32.xlu1 %v2678_v7  ;;  %v2659_v15 = vpop.xlane.xlu0 %2658 }
0x126b   : > { %v2663_v41 = vmul.f32 %v2659_v15, %v3342_v14 }
0x126d   : > { %v4054_v60 = vsub.f32 %v2643_v13, %v2663_v41 }
0x126f   : > { %v2671_v24 = vmul.f32 %v4054_v60, %v4054_v60 }
0x1271   : > { %v2681_v33 = vsel %vm614_vm0, %v2671_v24, 0.0 }
0x1272   : > { %2682 = vadd.xlane.f32.xlu2 %v2681_v33  ;;  %2755 = vadd.xlane.f32.xlu1 %v2754_v8  ;;  %v3085_v8 = vld [vmem:[%s4130_s15 + $0x1] ss:$0 sm:$0xff] }
0x127a   : > { %2752 = vadd.xlane.f32.xlu2 %v2751_v34  ;;  %2761 = vadd.xlane.f32.xlu1 %v2760_v9 }
0x1284   : > { %v2674_v43 = vpop.xlane.xlu0 %2673 }
0x1285   : > { %v2684_v45 = vmul.f32 %v2674_v43, %v3342_v14 }
0x1287   : > { %v2688_v18 = vadd.f32 1e-12, %v2684_v45 }
0x1289   : > { %3201 = vrsqrt.f32 %v2688_v18  ;;  %vm2698_vm13 = vweird.f32 %v2688_v18 }
0x128c   : > { %v2759_v17 = vpop.xlane.xlu0 %2758 }
0x128d   : > { %vm2765_vm4 = vcmp.gt.f32.partialorder %v2759_v17, 0.0 }
0x128e   : > { %v3017_v7 = vsel %vm2765_vm4, 1.0, %v3228_v26 }
0x128f   : > { %v4067_v49 = vpop.eup %3201  ;;  %v2777_v42 = vperm.slane %v3017_v7, 0 }
0x1290   : > { %v2693_v52 = vmul.f32 %v4067_v49, %v2688_v18  ;;  %vm2699_vm14 = vweird.f32 %v4067_v49 }
0x1291   : > { %vm4087_vm1 = vmor %vm2698_vm13, %vm2699_vm14  ;;  %vm2799_vm14 = vcmask 1042434  }
0x1292   : > { %v2694_v59 = vmul.f32 %v4067_v49, %v2693_v52 }
0x1294   : > { %v2695_v5 = vmul.f32 0.5, %v2694_v59 }
0x1296   : > { %v2696_v27 = vsub.f32 1.5, %v2695_v5 }
0x1298   : > { %v2697_v29 = vmul.f32 %v4067_v49, %v2696_v27 }
0x129a   : > { %v2701_v32 = vsel %vm4087_vm1, %v4067_v49, %v2697_v29 }
0x129b   : > { %v2732_v41 = vmul.f32 %v2701_v32, %v4034_v21 }
0x129d   : > { %v2739_v45 = vmul.f32 %v3084_v30, %v2732_v41 }
0x12d1   : > { %v2677_v16 = vpop.xlane.xlu2 %2676 }
0x12d2   : > { %v2685_v25 = vmul.f32 %v2677_v16, %v3342_v14 }
0x12d4   : > { %v2689_v48 = vadd.f32 1e-12, %v2685_v25 }
0x12d6   : > { %3203 = vrsqrt.f32 %v2689_v48  ;;  %vm2708_vm11 = vweird.f32 %v2689_v48 }
0x12dc   : > { %v3204_v50 = vpop.eup %3203 }
0x12dd   : > { %v2703_v58 = vmul.f32 %v3204_v50, %v2689_v48  ;;  %v2680_v46 = vpop.xlane.xlu1 %2679  ;;  %vm2709_vm10 = vweird.f32 %v3204_v50 }
0x12de   : > { %v2686_v44 = vmul.f32 %v2680_v46, %v3342_v14  ;;  %vm2710_vm15 = vmor %vm2708_vm11, %vm2709_vm10  ;;  %vm2796_vm11 = vcmask 1041409  }
0x12df   : > { %v2704_v22 = vmul.f32 %v3204_v50, %v2703_v58 }
0x12e0   : > { %v2690_v53 = vadd.f32 1e-12, %v2686_v44 }
0x12e1   : > { %v2705_v62 = vmul.f32 0.5, %v2704_v22 }
0x12e2   : > { %3205 = vrsqrt.f32 %v2690_v53  ;;  %vm2718_vm2 = vweird.f32 %v2690_v53 }
0x12e3   : > { %v2706_v6 = vsub.f32 1.5, %v2705_v62 }
0x12e5   : > { %v2683_v4 = vpop.xlane.xlu2 %2682  ;;  %v2707_v57 = vmul.f32 %v3204_v50, %v2706_v6  ;;  %v2756_v12 = vpop.xlane.xlu1 %2755 }
0x12e6   : > { %v2687_v63 = vmul.f32 %v2683_v4, %v3342_v14  ;;  %vm2764_vm5 = vcmp.gt.f32.partialorder %v2756_v12, 0.0 }
0x12e7   : > { %v2711_v14 = vsel %vm2710_vm15, %v3204_v50, %v2707_v57  ;;  %v3016_v33 = vsel %vm2764_vm5, 1.0, %v3228_v26  ;;  %v2746_v50 = vadd.f32 %v3085_v8, %v2739_v45  ;;  %vm2802_vm15 = vcmask 1043459  }
0x12e8   : > { %v3206_v38 = vpop.eup %3205  ;;  %v2691_v61 = vadd.f32 1e-12, %v2687_v63  ;;  %v2733_v19 = vmul.f32 %v2711_v14, %v4040_v35  ;;  %v2776_v43 = vperm.slane %v3016_v33, 0 }
0x12e9   : > { %v2713_v10 = vmul.f32 %v3206_v38, %v2690_v53  ;;  %vm2719_vm12 = vweird.f32 %v3206_v38 }
0x12ea   : > { %3207 = vrsqrt.f32 %v2691_v61  ;;  %vm2720_vm3 = vmor %vm2718_vm2, %vm2719_vm12  ;;  %v2740_v35 = vmul.f32 %v3084_v30, %v2733_v19  ;;  %vm2728_vm9 = vweird.f32 %v2691_v61  ;;  %vm2834_vm12 = vcmask 253952  }
0x12eb   : > { %v2714_v1 = vmul.f32 %v3206_v38, %v2713_v10 }
0x12ec   : > { %v2747_v9 = vadd.f32 %v3085_v8, %v2740_v35 }
0x12ed   : > { %v2715_v55 = vmul.f32 0.5, %v2714_v1  ;;  %v2753_v39 = vpop.xlane.xlu2 %2752  ;;  %v2762_v15 = vpop.xlane.xlu1 %2761 }
0x12ee   : > { %vm2763_vm6 = vcmp.gt.f32.partialorder %v2753_v39, 0.0  ;;  %vm2766_vm8 = vcmp.gt.f32.partialorder %v2762_v15, 0.0  ;;  %v2780_v49 = vmul.f32 %v2776_v43, %v2747_v9 }
0x12ef   : > { %v2716_v13 = vsub.f32 1.5, %v2715_v55  ;;  %v3018_v18 = vsel %vm2766_vm8, 1.0, %v3228_v26 }
0x12f0   : > { %v3208_v20 = vpop.eup %3207  ;;  %v2778_v46 = vperm.slane %v3018_v18, 0  ;;  %v2795_v53 = vrot.slane %v2780_v49, 7 }
0x12f1   : > { %v2717_v23 = vmul.f32 %v3206_v38, %v2716_v13  ;;  %v2723_v56 = vmul.f32 %v3208_v20, %v2691_v61  ;;  %vm2729_vm7 = vweird.f32 %v3208_v20 }
0x12f2   : > { %vm2730_vm10 = vmor %vm2728_vm9, %vm2729_vm7 }
0x12f3   : > { %v2721_v36 = vsel %vm2720_vm3, %v3206_v38, %v2717_v23  ;;  %v2724_v37 = vmul.f32 %v3208_v20, %v2723_v56 }
0x12f4   : > { %v2734_v51 = vmul.f32 %v2721_v36, %v4048_v40  ;;  %v3015_v40 = vsel %vm2763_vm6, 1.0, %v3228_v26 }
0x12f5   : > { %v2725_v28 = vmul.f32 0.5, %v2724_v37  ;;  %v2775_v16 = vperm.slane %v3015_v40, 0 }
0x12f6   : > { %v2741_v24 = vmul.f32 %v3084_v30, %v2734_v51 }
0x12f7   : > { %v2726_v2 = vsub.f32 1.5, %v2725_v28  ;;  %v2779_v44 = vmul.f32 %v2775_v16, %v2746_v50 }
0x12f8   : > { %v2748_v3 = vadd.f32 %v3085_v8, %v2741_v24 }
0x12f9   : > { %v2727_v34 = vmul.f32 %v3208_v20, %v2726_v2  ;;  %v2797_v31 = vsel %vm2796_vm11, %v2795_v53, %v2779_v44 }
0x12fa   : > { %v2781_v48 = vmul.f32 %v2777_v42, %v2748_v3 }
0x12fb   : > { %v2731_v21 = vsel %vm2730_vm10, %v3208_v20, %v2727_v34 }
0x12fc   : > { %v2735_v25 = vmul.f32 %v2731_v21, %v4054_v60  ;;  %v2798_v22 = vrot.slane %v2781_v48, 6  ;;  %v3086_v60 = vld [vmem:[%s4132_s17] ss:$0 sm:$0xff] }
0x12fe   : > { %v2742_v58 = vmul.f32 %v3084_v30, %v2735_v25  ;;  %v2800_v62 = vsel %vm2799_vm14, %v2798_v22, %v2797_v31 }
0x1300   : > { %v2749_v52 = vadd.f32 %v3085_v8, %v2742_v58 }
0x1302   : > { %v2782_v54 = vmul.f32 %v2778_v46, %v2749_v52 }
0x1304   : > { %v2801_v59 = vrot.slane %v2782_v54, 5 }
0x1306   : > { %v2803_v0 = vsel %vm2802_vm15, %v2801_v59, %v2800_v62 }
0x1307   : > { %3019 = vmatmul.msk.f32.vlgmr.msra.gmra.mxu3 %vm614_vm0, %v2803_v0 }
0x138a   : > { %v2823_v11 = vpop.f32.mrf.mxu3 }
0x138b   : > { %v2824_v4 = vadd.f32 %v3086_v60, %v2823_v11 }
0x138d   : > { %v2826_v63 = vmax.f32 %v2824_v4, 0.0 }
0x138f   : > { %v2828_v5 = vrot.slane %v2826_v63, 1  ;;  %v2829_v6 = vrot.slane %v2826_v63, 2  ;;  %2835 = vst.msk [vmem:[%s594_s1] sm:$0x1] %vm2834_vm12, %v2826_v63  ;;  %v2830_v38 = vrot.slane %v2826_v63, 3 }
0x1391   : > { %2836 = vst.msk [vmem:[%s594_s1 + $0x1] sm:$0x1] %vm2834_vm12, %v2828_v5 }
0x1392   : > { %2837 = vst.msk [vmem:[%s594_s1 + $0x2] sm:$0x1] %vm2834_vm12, %v2829_v6 }
0x1393   : > { %2838 = vst.msk [vmem:[%s594_s1 + $0x3] sm:$0x1] %vm2834_vm12, %v2830_v38 }
0x1394 PF: > { %s28_s27 = sadd.s32 1, %s3219_s27  }
0x1395   : > { %p25_p4 = scmp.ge.s32.totalorder %s28_s27, 4  }
0x1397   :  { %27 = sbr.rel (!%p25_p4) target bundleno = 4 (0x4), region = 137 }

</bundles_post_ra>
